<compile_context>
chip_gen: v5e
topology: v5e:2x2
jax: 0.10.0
libtpu: 0.0.40
codegen_flags: <defaults>
</compile_context>

<pallas_src>
import math
from functools import partial

import jax
import jax.numpy as jnp
import numpy as np
from jax.experimental import pallas as pl
from jax.experimental.pallas import tpu as pltpu

_LANES = 128
_TB = 16  # batch tile: one bf16 (16,128) packed tile per (batch, channel) block


def _rup(n, m=_LANES):
    return ((n + m - 1) // m) * m


# ----------------------------------------------------------------------------
# Fused Pallas kernel: 3 conv blocks (implicit GEMM, fused taps) + fc_att head
# ----------------------------------------------------------------------------
def _fused_forward_kernel(n_conv, h0, w0, tb, x_ref, *refs):
    """Whole forward for one batch tile, fully VMEM/vreg resident.

    x_ref : (H0, W0, TB, Cp0) bf16 — input, channels zero-padded to 128 lanes.
    refs  : [w_0, b_0, ..., w_{n-1}, b_{n-1}, fc1_w, fc1_b, fc2_w, fc2_b,
             o_ref, lhs_scratch]
      w_l : (16*Cp_in_l, Cp_out_l) bf16  conv taps flattened into K, eval-BN folded
      b_l : (1, Cp_out_l) f32            conv bias + folded eval-BN shift
      o_ref       : (TB, Ap) f32
      lhs_scratch : (TB*(H0//2)*(W0//2), 16*Cp_max) bf16  im2col staging buffer
    """
    lhs_ref = refs[-1]
    o_ref = refs[-2]
    conv_refs = refs[:2 * n_conv]
    fw1_ref, fb1_ref, fw2_ref, fb2_ref = refs[2 * n_conv:2 * n_conv + 4]

    # Per-(h, w) activation blocks, each (TB, Cp): batch rows x channel lanes.
    act = {}
    for hh in range(h0):
        for ww in range(w0):
            act[(hh, ww)] = x_ref[hh, ww]

    H, W = h0, w0
    for l in range(n_conv):
        w_ref, b_ref = conv_refs[2 * l], conv_refs[2 * l + 1]
        k_dim = w_ref.shape[0]          # 16 * Cp_in
        cp_in = k_dim // 16
        Ho, Wo = H // 2, W // 2
        zero_blk = jnp.zeros((tb, cp_in), jnp.bfloat16)

        # Implicit-GEMM im2col: Conv(k=4, s=2, p=1) -> tap (kh, kw) of output
        # (ho, wo) reads input (2ho+kh-1, 2wo+kw-1); out-of-range taps are the
        # zero block.  The 16 taps are lane-concatenated (128-aligned) and the
        # (TB, 16*Cp_in) patch is staged in VMEM at a 16-row-aligned offset.
        pos = 0
        for ho in range(Ho):
            for wo in range(Wo):
                taps = []
                for kh in range(4):
                    for kw in range(4):
                        hi = 2 * ho + kh - 1
                        wi = 2 * wo + kw - 1
                        inside = (0 <= hi < H) and (0 <= wi < W)
                        taps.append(act[(hi, wi)] if inside else zero_blk)
                lhs_ref[pos * tb:(pos + 1) * tb, 0:k_dim] = jnp.concatenate(
                    taps, axis=-1)
                pos += 1

        # ONE fused-tap matmul per layer: (Ho*Wo*TB, 16*Cp_in) x (16*Cp_in, Cp_out).
        m = Ho * Wo * tb
        y = jnp.dot(lhs_ref[0:m, 0:k_dim], w_ref[...],
                    preferred_element_type=jnp.float32)
        y = y + b_ref[...]                 # conv bias + folded eval-BatchNorm
        y = jnp.maximum(y, 0.2 * y)        # LeakyReLU(0.2); Dropout(0.3)=id in eval
        y = y.astype(jnp.bfloat16)

        act = {}
        pos = 0
        for ho in range(Ho):
            for wo in range(Wo):
                act[(ho, wo)] = y[pos * tb:(pos + 1) * tb, :]
                pos += 1
        H, W = Ho, Wo

    # Final conv output is spatially 1x1 -> already equals PyTorch's y.view(B, -1).
    x_flat = act[(0, 0)]
    h = jnp.dot(x_flat, fw1_ref[...], preferred_element_type=jnp.float32) + fb1_ref[...]
    h = jnp.maximum(h, 0.2 * h)
    z = jnp.dot(h.astype(jnp.bfloat16), fw2_ref[...],
                preferred_element_type=jnp.float32) + fb2_ref[...]
    o_ref[...] = jnp.tanh(z)


# ----------------------------------------------------------------------------
# One-time parameter preparation (runs OUTSIDE jit)
# ----------------------------------------------------------------------------
def prepare_params(params):
    """Fold eval-BN into conv weights/bias, flatten the 16 conv taps into the K
    dim, zero-pad every channel dim to 128 lanes, pre-transpose fc weights."""
    layers = []
    for p in params["convs"]:
        w = np.asarray(p["w"], np.float32)            # (Cout, Cin, 4, 4)
        cout, cin, KH, KW = w.shape
        cin_p, cout_p = _rup(cin), _rup(cout)
        bias = np.asarray(p["b"], np.float32)
        if p["has_bn"]:   # plain Python bool, resolved here -> never traced
            scale = np.asarray(p["gamma"]) / np.sqrt(np.asarray(p["rvar"]) + 1e-5)
            shift = np.asarray(p["beta"]) - np.asarray(p["rmean"]) * scale
        else:
            scale = np.ones((cout,), np.float32)
            shift = np.zeros((cout,), np.float32)
        wmat = np.zeros((KH * KW * cin_p, cout_p), np.float32)
        for kh in range(KH):
            for kw in range(KW):
                k = kh * KW + kw
                wmat[k * cin_p:k * cin_p + cin, :cout] = (
                    w[:, :, kh, kw].T * scale[None, :])
        bvec = np.zeros((1, cout_p), np.float32)
        bvec[0, :cout] = bias * scale + shift
        layers.append(dict(w=jnp.asarray(wmat, jnp.bfloat16),
                           b=jnp.asarray(bvec, jnp.float32)))

    out_conv = int(np.asarray(params["convs"][-1]["w"]).shape[0])
    fc1_w = np.asarray(params["fc1_w"], np.float32)   # (fc_dim, out_conv)
    assert fc1_w.shape[1] == out_conv, (fc1_w.shape, out_conv)
    fc_dim = fc1_w.shape[0]
    attr_dim = int(np.asarray(params["fc2_w"]).shape[0])
    cpl, fp, ap = _rup(out_conv), _rup(fc_dim), _rup(attr_dim)

    w1 = np.zeros((cpl, fp), np.float32)
    w1[:out_conv, :fc_dim] = fc1_w.T
    b1 = np.zeros((1, fp), np.float32)
    b1[0, :fc_dim] = np.asarray(params["fc1_b"], np.float32)
    w2 = np.zeros((fp, ap), np.float32)
    w2[:fc_dim, :attr_dim] = np.asarray(params["fc2_w"], np.float32).T
    b2 = np.zeros((1, ap), np.float32)
    b2[0, :attr_dim] = np.asarray(params["fc2_b"], np.float32)

    prep = dict(layers=layers,
                fc1_w=jnp.asarray(w1, jnp.bfloat16), fc1_b=jnp.asarray(b1, jnp.float32),
                fc2_w=jnp.asarray(w2, jnp.bfloat16), fc2_b=jnp.asarray(b2, jnp.float32))
    return prep, attr_dim


def _cost_estimate(prep, b_pad, h0, args, out_bytes):
    flops = 0
    H = h0
    for lyr in prep["layers"]:
        Ho = H // 2
        K, N = lyr["w"].shape
        flops += 2 * b_pad * Ho * Ho * K * N
        H = Ho
    for name in ("fc1_w", "fc2_w"):
        K, N = prep[name].shape
        flops += 2 * b_pad * K * N
    ap = prep["fc2_w"].shape[1]
    bytes_acc = out_bytes + sum(
        int(np.prod(a.shape)) * a.dtype.itemsize for a in args)
    return pl.CostEstimate(flops=int(flops), transcendentals=int(b_pad * ap),
                           bytes_accessed=int(bytes_acc))


# ----------------------------------------------------------------------------
# Jitted forward: layout glue in XLA, then ONE fused pallas_call (batch grid)
# ----------------------------------------------------------------------------
@partial(jax.jit, static_argnames=("attr_dim",))
def latent_discriminator_forward(prep, x_nchw, *, attr_dim):
    B, C0, H0, W0 = x_nchw.shape
    n_conv = len(prep["layers"])
    assert H0 == W0 and H0 == (1 << n_conv), "final conv spatial must be 1x1"

    cp0 = prep["layers"][0]["w"].shape[0] // 16
    b_pad = _rup(B, _TB)
    n_tiles = b_pad // _TB

    # NCHW -> (H, W, B, C) bf16; zero-pad batch to the tile, channels to 128 lanes.
    x = jnp.transpose(x_nchw, (2, 3, 0, 1)).astype(jnp.bfloat16)
    x = jnp.pad(x, ((0, 0), (0, 0), (0, b_pad - B), (0, cp0 - C0)))

    args = [x]
    in_specs = [pl.BlockSpec((H0, W0, _TB, cp0), lambda i: (0, 0, i, 0))]
    for lyr in prep["layers"]:
        args += [lyr["w"], lyr["b"]]
        in_specs += [pl.BlockSpec(lyr["w"].shape, lambda i: (0, 0)),
                     pl.BlockSpec(lyr["b"].shape, lambda i: (0, 0))]
    for name in ("fc1_w", "fc1_b", "fc2_w", "fc2_b"):
        args.append(prep[name])
        in_specs.append(pl.BlockSpec(prep[name].shape, lambda i: (0, 0)))

    ap = prep["fc2_w"].shape[1]
    m_max = _TB * (H0 // 2) * (W0 // 2)
    k_max = max(int(lyr["w"].shape[0]) for lyr in prep["layers"])

    # Explicit VMEM budget from the real per-step footprint (weights + blocks,
    # double-buffered) + im2col scratch + headroom; clamped under v7x's 64 MiB.
    block_bytes = sum(int(np.prod(a.shape)) * a.dtype.itemsize for a in args[1:])
    block_bytes += H0 * W0 * _TB * cp0 * 2 + _TB * ap * 4
    vmem_limit = int(min(48 << 20, max(16 << 20,
                                       2 * block_bytes + m_max * k_max * 2 + (8 << 20))))

    out = pl.pallas_call(
        partial(_fused_forward_kernel, n_conv, H0, W0, _TB),
        out_shape=jax.ShapeDtypeStruct((b_pad, ap), jnp.float32),
        grid=(n_tiles,),
        in_specs=in_specs,
        out_specs=pl.BlockSpec((_TB, ap), lambda i: (i, 0)),
        scratch_shapes=[pltpu.VMEM((m_max, k_max), jnp.bfloat16)],
        compiler_params=pltpu.CompilerParams(
            dimension_semantics=("parallel",),
            vmem_limit_bytes=vmem_limit),
        cost_estimate=_cost_estimate(prep, b_pad, H0, args, b_pad * ap * 4),
    )(*args)
    return out[:B, :attr_dim]


# ----------------------------------------------------------------------------
# Deterministic parameter construction (mirrors Latent_Discriminator.__init__)
# ----------------------------------------------------------------------------
def build_params(key, image_size=16, max_dim=64, attr_dim=10, conv_dim=16,
                 fc_dim=32, n_layers=3, shortcut_layers=2):
    n_dis_layers = int(math.log2(image_size))
    chans = []
    in_c, out_c = 3, conv_dim
    for i in range(n_dis_layers):
        chans.append((in_c, out_c, i))
        in_c = out_c
        out_c = min(2 * out_c, max_dim)
    used = chans[n_layers - shortcut_layers:]   # self.conv = layers[n_layers - shortcut:]

    params = {"convs": []}
    for (cin, cout, i) in used:
        key, k1, k2, k3, k4, k5, k6 = jax.random.split(key, 7)
        params["convs"].append(dict(
            w=0.05 * jax.random.normal(k1, (cout, cin, 4, 4), jnp.float32),
            b=0.05 * jax.random.normal(k2, (cout,), jnp.float32),
            gamma=1.0 + 0.1 * jax.random.normal(k3, (cout,), jnp.float32),
            beta=0.1 * jax.random.normal(k4, (cout,), jnp.float32),
            rmean=0.1 * jax.random.normal(k5, (cout,), jnp.float32),
            rvar=1.0 + 0.5 * jax.random.uniform(k6, (cout,), jnp.float32),
            has_bn=bool(i > 0),
        ))

    out_conv = min(max_dim, conv_dim * 2 ** (n_dis_layers - 1))
    key, k1, k2, k3, k4 = jax.random.split(key, 5)
    params["fc1_w"] = 0.05 * jax.random.normal(k1, (fc_dim, out_conv), jnp.float32)
    params["fc1_b"] = 0.05 * jax.random.normal(k2, (fc_dim,), jnp.float32)
    params["fc2_w"] = 0.05 * jax.random.normal(k3, (attr_dim, fc_dim), jnp.float32)
    params["fc2_b"] = 0.05 * jax.random.normal(k4, (attr_dim,), jnp.float32)

    in_channels = used[0][0]
    in_spatial = image_size // (2 ** (n_layers - shortcut_layers))
    return params, (in_channels, in_spatial)


# ----------------------------------------------------------------------------
# Pure-JAX reference (same eval semantics) for a correctness check
# ----------------------------------------------------------------------------
def ref_forward(params, x_nchw):
    y = x_nchw
    for p in params["convs"]:
        y = jax.lax.conv_general_dilated(
            y, p["w"], window_strides=(2, 2), padding=((1, 1), (1, 1)),
            dimension_numbers=("NCHW", "OIHW", "NCHW"))
        y = y + p["b"][None, :, None, None]
        if p["has_bn"]:
            scale = p["gamma"] / jnp.sqrt(p["rvar"] + 1e-5)
            shift = p["beta"] - p["rmean"] * scale
            y = y * scale[None, :, None, None] + shift[None, :, None, None]
        y = jnp.where(y >= 0, y, 0.2 * y)
    y = y.reshape(y.shape[0], -1)
    h = y @ params["fc1_w"].T + params["fc1_b"]
    h = jnp.where(h >= 0, h, 0.2 * h)
    z = h @ params["fc2_w"].T + params["fc2_b"]
    return jnp.tanh(z)


# ----------------------------------------------------------------------------
if __name__ == "__main__":
    key = jax.random.PRNGKey(0)
    key, pkey, xkey = jax.random.split(key, 3)

    # image_size=16 -> n_dis_layers=4; n_layers=3, shortcut_layers=2
    # -> self.conv = 3 blocks (16->32->64->64), input (B, 16, 8, 8), fc: 64->32->10.
    params, (cin, hw) = build_params(pkey, image_size=16, max_dim=64,
                                     attr_dim=10, conv_dim=16, fc_dim=32,
                                     n_layers=3, shortcut_layers=2)

    B = 2
    x = jax.random.normal(xkey, (B, cin, hw, hw), jnp.float32)   # NCHW (2, 16, 8, 8)

    prep, attr_dim = prepare_params(params)                      # outside jit, once
    out = latent_discriminator_forward(prep, x, attr_dim=attr_dim)
    out = jax.block_until_ready(out)

    ref = jax.block_until_ready(ref_forward(params, x))
    assert out.shape == (B, attr_dim), out.shape
    assert np.allclose(np.asarray(out), np.asarray(ref), atol=5e-2, rtol=5e-2), (
        "Pallas output mismatch vs JAX reference")

    print("KERNEL_OK")
</pallas_src>

<mosaic_0001>
module attributes {stable_mosaic.version = 11 : i64} {
  func.func @_fused_forward_kernel(%arg0: i32, %arg1: memref<8x8x16x128xbf16, #tpu.memory_space<vmem>>, %arg2: memref<2048x128xbf16, #tpu.memory_space<vmem>>, %arg3: memref<1x128xf32, #tpu.memory_space<vmem>>, %arg4: memref<2048x128xbf16, #tpu.memory_space<vmem>>, %arg5: memref<1x128xf32, #tpu.memory_space<vmem>>, %arg6: memref<2048x128xbf16, #tpu.memory_space<vmem>>, %arg7: memref<1x128xf32, #tpu.memory_space<vmem>>, %arg8: memref<128x128xbf16, #tpu.memory_space<vmem>>, %arg9: memref<1x128xf32, #tpu.memory_space<vmem>>, %arg10: memref<128x128xbf16, #tpu.memory_space<vmem>>, %arg11: memref<1x128xf32, #tpu.memory_space<vmem>>, %arg12: memref<16x128xf32, #tpu.memory_space<vmem>>, %arg13: memref<256x2048xbf16, #tpu.memory_space<vmem>>) attributes {dimension_semantics = [#tpu.dimension_semantics<parallel>], iteration_bounds = array<i64: 1>, scalar_prefetch = 0 : i64, scratch_operands = 1 : i64, tpu.core_type = #tpu.core_type<tc>, window_params = [{transform_indices = @transform_0, window_bounds = array<i64: 8, 8, 16, 128>}, {pipeline_mode = #tpu.pipeline_mode<synchronous>, transform_indices = @transform_1, window_bounds = array<i64: 2048, 128>}, {pipeline_mode = #tpu.pipeline_mode<synchronous>, transform_indices = @transform_2, window_bounds = array<i64: 1, 128>}, {pipeline_mode = #tpu.pipeline_mode<synchronous>, transform_indices = @transform_3, window_bounds = array<i64: 2048, 128>}, {pipeline_mode = #tpu.pipeline_mode<synchronous>, transform_indices = @transform_4, window_bounds = array<i64: 1, 128>}, {pipeline_mode = #tpu.pipeline_mode<synchronous>, transform_indices = @transform_5, window_bounds = array<i64: 2048, 128>}, {pipeline_mode = #tpu.pipeline_mode<synchronous>, transform_indices = @transform_6, window_bounds = array<i64: 1, 128>}, {pipeline_mode = #tpu.pipeline_mode<synchronous>, transform_indices = @transform_7, window_bounds = array<i64: 128, 128>}, {pipeline_mode = #tpu.pipeline_mode<synchronous>, transform_indices = @transform_8, window_bounds = array<i64: 1, 128>}, {pipeline_mode = #tpu.pipeline_mode<synchronous>, transform_indices = @transform_9, window_bounds = array<i64: 128, 128>}, {pipeline_mode = #tpu.pipeline_mode<synchronous>, transform_indices = @transform_10, window_bounds = array<i64: 1, 128>}, {transform_indices = @transform_11, window_bounds = array<i64: 16, 128>}]} {
    %c0 = arith.constant 0 : index
    %c0_0 = arith.constant 0 : index
    %c0_1 = arith.constant 0 : index
    %c0_2 = arith.constant 0 : index
    %0 = vector.load %arg1[%c0, %c0_0, %c0_1, %c0_2] : memref<8x8x16x128xbf16, #tpu.memory_space<vmem>>, vector<1x1x16x128xbf16>
    %1 = vector.shape_cast %0 : vector<1x1x16x128xbf16> to vector<16x128xbf16>
    %c0_3 = arith.constant 0 : index
    %c1 = arith.constant 1 : index
    %c0_4 = arith.constant 0 : index
    %c0_5 = arith.constant 0 : index
    %2 = vector.load %arg1[%c0_3, %c1, %c0_4, %c0_5] : memref<8x8x16x128xbf16, #tpu.memory_space<vmem>>, vector<1x1x16x128xbf16>
    %3 = vector.shape_cast %2 : vector<1x1x16x128xbf16> to vector<16x128xbf16>
    %c0_6 = arith.constant 0 : index
    %c2 = arith.constant 2 : index
    %c0_7 = arith.constant 0 : index
    %c0_8 = arith.constant 0 : index
    %4 = vector.load %arg1[%c0_6, %c2, %c0_7, %c0_8] : memref<8x8x16x128xbf16, #tpu.memory_space<vmem>>, vector<1x1x16x128xbf16>
    %5 = vector.shape_cast %4 : vector<1x1x16x128xbf16> to vector<16x128xbf16>
    %c0_9 = arith.constant 0 : index
    %c3 = arith.constant 3 : index
    %c0_10 = arith.constant 0 : index
    %c0_11 = arith.constant 0 : index
    %6 = vector.load %arg1[%c0_9, %c3, %c0_10, %c0_11] : memref<8x8x16x128xbf16, #tpu.memory_space<vmem>>, vector<1x1x16x128xbf16>
    %7 = vector.shape_cast %6 : vector<1x1x16x128xbf16> to vector<16x128xbf16>
    %c0_12 = arith.constant 0 : index
    %c4 = arith.constant 4 : index
    %c0_13 = arith.constant 0 : index
    %c0_14 = arith.constant 0 : index
    %8 = vector.load %arg1[%c0_12, %c4, %c0_13, %c0_14] : memref<8x8x16x128xbf16, #tpu.memory_space<vmem>>, vector<1x1x16x128xbf16>
    %9 = vector.shape_cast %8 : vector<1x1x16x128xbf16> to vector<16x128xbf16>
    %c0_15 = arith.constant 0 : index
    %c5 = arith.constant 5 : index
    %c0_16 = arith.constant 0 : index
    %c0_17 = arith.constant 0 : index
    %10 = vector.load %arg1[%c0_15, %c5, %c0_16, %c0_17] : memref<8x8x16x128xbf16, #tpu.memory_space<vmem>>, vector<1x1x16x128xbf16>
    %11 = vector.shape_cast %10 : vector<1x1x16x128xbf16> to vector<16x128xbf16>
    %c0_18 = arith.constant 0 : index
    %c6 = arith.constant 6 : index
    %c0_19 = arith.constant 0 : index
    %c0_20 = arith.constant 0 : index
    %12 = vector.load %arg1[%c0_18, %c6, %c0_19, %c0_20] : memref<8x8x16x128xbf16, #tpu.memory_space<vmem>>, vector<1x1x16x128xbf16>
    %13 = vector.shape_cast %12 : vector<1x1x16x128xbf16> to vector<16x128xbf16>
    %c0_21 = arith.constant 0 : index
    %c7 = arith.constant 7 : index
    %c0_22 = arith.constant 0 : index
    %c0_23 = arith.constant 0 : index
    %14 = vector.load %arg1[%c0_21, %c7, %c0_22, %c0_23] : memref<8x8x16x128xbf16, #tpu.memory_space<vmem>>, vector<1x1x16x128xbf16>
    %15 = vector.shape_cast %14 : vector<1x1x16x128xbf16> to vector<16x128xbf16>
    %c1_24 = arith.constant 1 : index
    %c0_25 = arith.constant 0 : index
    %c0_26 = arith.constant 0 : index
    %c0_27 = arith.constant 0 : index
    %16 = vector.load %arg1[%c1_24, %c0_25, %c0_26, %c0_27] : memref<8x8x16x128xbf16, #tpu.memory_space<vmem>>, vector<1x1x16x128xbf16>
    %17 = vector.shape_cast %16 : vector<1x1x16x128xbf16> to vector<16x128xbf16>
    %c1_28 = arith.constant 1 : index
    %c1_29 = arith.constant 1 : index
    %c0_30 = arith.constant 0 : index
    %c0_31 = arith.constant 0 : index
    %18 = vector.load %arg1[%c1_28, %c1_29, %c0_30, %c0_31] : memref<8x8x16x128xbf16, #tpu.memory_space<vmem>>, vector<1x1x16x128xbf16>
    %19 = vector.shape_cast %18 : vector<1x1x16x128xbf16> to vector<16x128xbf16>
    %c1_32 = arith.constant 1 : index
    %c2_33 = arith.constant 2 : index
    %c0_34 = arith.constant 0 : index
    %c0_35 = arith.constant 0 : index
    %20 = vector.load %arg1[%c1_32, %c2_33, %c0_34, %c0_35] : memref<8x8x16x128xbf16, #tpu.memory_space<vmem>>, vector<1x1x16x128xbf16>
    %21 = vector.shape_cast %20 : vector<1x1x16x128xbf16> to vector<16x128xbf16>
    %c1_36 = arith.constant 1 : index
    %c3_37 = arith.constant 3 : index
    %c0_38 = arith.constant 0 : index
    %c0_39 = arith.constant 0 : index
    %22 = vector.load %arg1[%c1_36, %c3_37, %c0_38, %c0_39] : memref<8x8x16x128xbf16, #tpu.memory_space<vmem>>, vector<1x1x16x128xbf16>
    %23 = vector.shape_cast %22 : vector<1x1x16x128xbf16> to vector<16x128xbf16>
    %c1_40 = arith.constant 1 : index
    %c4_41 = arith.constant 4 : index
    %c0_42 = arith.constant 0 : index
    %c0_43 = arith.constant 0 : index
    %24 = vector.load %arg1[%c1_40, %c4_41, %c0_42, %c0_43] : memref<8x8x16x128xbf16, #tpu.memory_space<vmem>>, vector<1x1x16x128xbf16>
    %25 = vector.shape_cast %24 : vector<1x1x16x128xbf16> to vector<16x128xbf16>
    %c1_44 = arith.constant 1 : index
    %c5_45 = arith.constant 5 : index
    %c0_46 = arith.constant 0 : index
    %c0_47 = arith.constant 0 : index
    %26 = vector.load %arg1[%c1_44, %c5_45, %c0_46, %c0_47] : memref<8x8x16x128xbf16, #tpu.memory_space<vmem>>, vector<1x1x16x128xbf16>
    %27 = vector.shape_cast %26 : vector<1x1x16x128xbf16> to vector<16x128xbf16>
    %c1_48 = arith.constant 1 : index
    %c6_49 = arith.constant 6 : index
    %c0_50 = arith.constant 0 : index
    %c0_51 = arith.constant 0 : index
    %28 = vector.load %arg1[%c1_48, %c6_49, %c0_50, %c0_51] : memref<8x8x16x128xbf16, #tpu.memory_space<vmem>>, vector<1x1x16x128xbf16>
    %29 = vector.shape_cast %28 : vector<1x1x16x128xbf16> to vector<16x128xbf16>
    %c1_52 = arith.constant 1 : index
    %c7_53 = arith.constant 7 : index
    %c0_54 = arith.constant 0 : index
    %c0_55 = arith.constant 0 : index
    %30 = vector.load %arg1[%c1_52, %c7_53, %c0_54, %c0_55] : memref<8x8x16x128xbf16, #tpu.memory_space<vmem>>, vector<1x1x16x128xbf16>
    %31 = vector.shape_cast %30 : vector<1x1x16x128xbf16> to vector<16x128xbf16>
    %c2_56 = arith.constant 2 : index
    %c0_57 = arith.constant 0 : index
    %c0_58 = arith.constant 0 : index
    %c0_59 = arith.constant 0 : index
    %32 = vector.load %arg1[%c2_56, %c0_57, %c0_58, %c0_59] : memref<8x8x16x128xbf16, #tpu.memory_space<vmem>>, vector<1x1x16x128xbf16>
    %33 = vector.shape_cast %32 : vector<1x1x16x128xbf16> to vector<16x128xbf16>
    %c2_60 = arith.constant 2 : index
    %c1_61 = arith.constant 1 : index
    %c0_62 = arith.constant 0 : index
    %c0_63 = arith.constant 0 : index
    %34 = vector.load %arg1[%c2_60, %c1_61, %c0_62, %c0_63] : memref<8x8x16x128xbf16, #tpu.memory_space<vmem>>, vector<1x1x16x128xbf16>
    %35 = vector.shape_cast %34 : vector<1x1x16x128xbf16> to vector<16x128xbf16>
    %c2_64 = arith.constant 2 : index
    %c2_65 = arith.constant 2 : index
    %c0_66 = arith.constant 0 : index
    %c0_67 = arith.constant 0 : index
    %36 = vector.load %arg1[%c2_64, %c2_65, %c0_66, %c0_67] : memref<8x8x16x128xbf16, #tpu.memory_space<vmem>>, vector<1x1x16x128xbf16>
    %37 = vector.shape_cast %36 : vector<1x1x16x128xbf16> to vector<16x128xbf16>
    %c2_68 = arith.constant 2 : index
    %c3_69 = arith.constant 3 : index
    %c0_70 = arith.constant 0 : index
    %c0_71 = arith.constant 0 : index
    %38 = vector.load %arg1[%c2_68, %c3_69, %c0_70, %c0_71] : memref<8x8x16x128xbf16, #tpu.memory_space<vmem>>, vector<1x1x16x128xbf16>
    %39 = vector.shape_cast %38 : vector<1x1x16x128xbf16> to vector<16x128xbf16>
    %c2_72 = arith.constant 2 : index
    %c4_73 = arith.constant 4 : index
    %c0_74 = arith.constant 0 : index
    %c0_75 = arith.constant 0 : index
    %40 = vector.load %arg1[%c2_72, %c4_73, %c0_74, %c0_75] : memref<8x8x16x128xbf16, #tpu.memory_space<vmem>>, vector<1x1x16x128xbf16>
    %41 = vector.shape_cast %40 : vector<1x1x16x128xbf16> to vector<16x128xbf16>
    %c2_76 = arith.constant 2 : index
    %c5_77 = arith.constant 5 : index
    %c0_78 = arith.constant 0 : index
    %c0_79 = arith.constant 0 : index
    %42 = vector.load %arg1[%c2_76, %c5_77, %c0_78, %c0_79] : memref<8x8x16x128xbf16, #tpu.memory_space<vmem>>, vector<1x1x16x128xbf16>
    %43 = vector.shape_cast %42 : vector<1x1x16x128xbf16> to vector<16x128xbf16>
    %c2_80 = arith.constant 2 : index
    %c6_81 = arith.constant 6 : index
    %c0_82 = arith.constant 0 : index
    %c0_83 = arith.constant 0 : index
    %44 = vector.load %arg1[%c2_80, %c6_81, %c0_82, %c0_83] : memref<8x8x16x128xbf16, #tpu.memory_space<vmem>>, vector<1x1x16x128xbf16>
    %45 = vector.shape_cast %44 : vector<1x1x16x128xbf16> to vector<16x128xbf16>
    %c2_84 = arith.constant 2 : index
    %c7_85 = arith.constant 7 : index
    %c0_86 = arith.constant 0 : index
    %c0_87 = arith.constant 0 : index
    %46 = vector.load %arg1[%c2_84, %c7_85, %c0_86, %c0_87] : memref<8x8x16x128xbf16, #tpu.memory_space<vmem>>, vector<1x1x16x128xbf16>
    %47 = vector.shape_cast %46 : vector<1x1x16x128xbf16> to vector<16x128xbf16>
    %c3_88 = arith.constant 3 : index
    %c0_89 = arith.constant 0 : index
    %c0_90 = arith.constant 0 : index
    %c0_91 = arith.constant 0 : index
    %48 = vector.load %arg1[%c3_88, %c0_89, %c0_90, %c0_91] : memref<8x8x16x128xbf16, #tpu.memory_space<vmem>>, vector<1x1x16x128xbf16>
    %49 = vector.shape_cast %48 : vector<1x1x16x128xbf16> to vector<16x128xbf16>
    %c3_92 = arith.constant 3 : index
    %c1_93 = arith.constant 1 : index
    %c0_94 = arith.constant 0 : index
    %c0_95 = arith.constant 0 : index
    %50 = vector.load %arg1[%c3_92, %c1_93, %c0_94, %c0_95] : memref<8x8x16x128xbf16, #tpu.memory_space<vmem>>, vector<1x1x16x128xbf16>
    %51 = vector.shape_cast %50 : vector<1x1x16x128xbf16> to vector<16x128xbf16>
    %c3_96 = arith.constant 3 : index
    %c2_97 = arith.constant 2 : index
    %c0_98 = arith.constant 0 : index
    %c0_99 = arith.constant 0 : index
    %52 = vector.load %arg1[%c3_96, %c2_97, %c0_98, %c0_99] : memref<8x8x16x128xbf16, #tpu.memory_space<vmem>>, vector<1x1x16x128xbf16>
    %53 = vector.shape_cast %52 : vector<1x1x16x128xbf16> to vector<16x128xbf16>
    %c3_100 = arith.constant 3 : index
    %c3_101 = arith.constant 3 : index
    %c0_102 = arith.constant 0 : index
    %c0_103 = arith.constant 0 : index
    %54 = vector.load %arg1[%c3_100, %c3_101, %c0_102, %c0_103] : memref<8x8x16x128xbf16, #tpu.memory_space<vmem>>, vector<1x1x16x128xbf16>
    %55 = vector.shape_cast %54 : vector<1x1x16x128xbf16> to vector<16x128xbf16>
    %c3_104 = arith.constant 3 : index
    %c4_105 = arith.constant 4 : index
    %c0_106 = arith.constant 0 : index
    %c0_107 = arith.constant 0 : index
    %56 = vector.load %arg1[%c3_104, %c4_105, %c0_106, %c0_107] : memref<8x8x16x128xbf16, #tpu.memory_space<vmem>>, vector<1x1x16x128xbf16>
    %57 = vector.shape_cast %56 : vector<1x1x16x128xbf16> to vector<16x128xbf16>
    %c3_108 = arith.constant 3 : index
    %c5_109 = arith.constant 5 : index
    %c0_110 = arith.constant 0 : index
    %c0_111 = arith.constant 0 : index
    %58 = vector.load %arg1[%c3_108, %c5_109, %c0_110, %c0_111] : memref<8x8x16x128xbf16, #tpu.memory_space<vmem>>, vector<1x1x16x128xbf16>
    %59 = vector.shape_cast %58 : vector<1x1x16x128xbf16> to vector<16x128xbf16>
    %c3_112 = arith.constant 3 : index
    %c6_113 = arith.constant 6 : index
    %c0_114 = arith.constant 0 : index
    %c0_115 = arith.constant 0 : index
    %60 = vector.load %arg1[%c3_112, %c6_113, %c0_114, %c0_115] : memref<8x8x16x128xbf16, #tpu.memory_space<vmem>>, vector<1x1x16x128xbf16>
    %61 = vector.shape_cast %60 : vector<1x1x16x128xbf16> to vector<16x128xbf16>
    %c3_116 = arith.constant 3 : index
    %c7_117 = arith.constant 7 : index
    %c0_118 = arith.constant 0 : index
    %c0_119 = arith.constant 0 : index
    %62 = vector.load %arg1[%c3_116, %c7_117, %c0_118, %c0_119] : memref<8x8x16x128xbf16, #tpu.memory_space<vmem>>, vector<1x1x16x128xbf16>
    %63 = vector.shape_cast %62 : vector<1x1x16x128xbf16> to vector<16x128xbf16>
    %c4_120 = arith.constant 4 : index
    %c0_121 = arith.constant 0 : index
    %c0_122 = arith.constant 0 : index
    %c0_123 = arith.constant 0 : index
    %64 = vector.load %arg1[%c4_120, %c0_121, %c0_122, %c0_123] : memref<8x8x16x128xbf16, #tpu.memory_space<vmem>>, vector<1x1x16x128xbf16>
    %65 = vector.shape_cast %64 : vector<1x1x16x128xbf16> to vector<16x128xbf16>
    %c4_124 = arith.constant 4 : index
    %c1_125 = arith.constant 1 : index
    %c0_126 = arith.constant 0 : index
    %c0_127 = arith.constant 0 : index
    %66 = vector.load %arg1[%c4_124, %c1_125, %c0_126, %c0_127] : memref<8x8x16x128xbf16, #tpu.memory_space<vmem>>, vector<1x1x16x128xbf16>
    %67 = vector.shape_cast %66 : vector<1x1x16x128xbf16> to vector<16x128xbf16>
    %c4_128 = arith.constant 4 : index
    %c2_129 = arith.constant 2 : index
    %c0_130 = arith.constant 0 : index
    %c0_131 = arith.constant 0 : index
    %68 = vector.load %arg1[%c4_128, %c2_129, %c0_130, %c0_131] : memref<8x8x16x128xbf16, #tpu.memory_space<vmem>>, vector<1x1x16x128xbf16>
    %69 = vector.shape_cast %68 : vector<1x1x16x128xbf16> to vector<16x128xbf16>
    %c4_132 = arith.constant 4 : index
    %c3_133 = arith.constant 3 : index
    %c0_134 = arith.constant 0 : index
    %c0_135 = arith.constant 0 : index
    %70 = vector.load %arg1[%c4_132, %c3_133, %c0_134, %c0_135] : memref<8x8x16x128xbf16, #tpu.memory_space<vmem>>, vector<1x1x16x128xbf16>
    %71 = vector.shape_cast %70 : vector<1x1x16x128xbf16> to vector<16x128xbf16>
    %c4_136 = arith.constant 4 : index
    %c4_137 = arith.constant 4 : index
    %c0_138 = arith.constant 0 : index
    %c0_139 = arith.constant 0 : index
    %72 = vector.load %arg1[%c4_136, %c4_137, %c0_138, %c0_139] : memref<8x8x16x128xbf16, #tpu.memory_space<vmem>>, vector<1x1x16x128xbf16>
    %73 = vector.shape_cast %72 : vector<1x1x16x128xbf16> to vector<16x128xbf16>
    %c4_140 = arith.constant 4 : index
    %c5_141 = arith.constant 5 : index
    %c0_142 = arith.constant 0 : index
    %c0_143 = arith.constant 0 : index
    %74 = vector.load %arg1[%c4_140, %c5_141, %c0_142, %c0_143] : memref<8x8x16x128xbf16, #tpu.memory_space<vmem>>, vector<1x1x16x128xbf16>
    %75 = vector.shape_cast %74 : vector<1x1x16x128xbf16> to vector<16x128xbf16>
    %c4_144 = arith.constant 4 : index
    %c6_145 = arith.constant 6 : index
    %c0_146 = arith.constant 0 : index
    %c0_147 = arith.constant 0 : index
    %76 = vector.load %arg1[%c4_144, %c6_145, %c0_146, %c0_147] : memref<8x8x16x128xbf16, #tpu.memory_space<vmem>>, vector<1x1x16x128xbf16>
    %77 = vector.shape_cast %76 : vector<1x1x16x128xbf16> to vector<16x128xbf16>
    %c4_148 = arith.constant 4 : index
    %c7_149 = arith.constant 7 : index
    %c0_150 = arith.constant 0 : index
    %c0_151 = arith.constant 0 : index
    %78 = vector.load %arg1[%c4_148, %c7_149, %c0_150, %c0_151] : memref<8x8x16x128xbf16, #tpu.memory_space<vmem>>, vector<1x1x16x128xbf16>
    %79 = vector.shape_cast %78 : vector<1x1x16x128xbf16> to vector<16x128xbf16>
    %c5_152 = arith.constant 5 : index
    %c0_153 = arith.constant 0 : index
    %c0_154 = arith.constant 0 : index
    %c0_155 = arith.constant 0 : index
    %80 = vector.load %arg1[%c5_152, %c0_153, %c0_154, %c0_155] : memref<8x8x16x128xbf16, #tpu.memory_space<vmem>>, vector<1x1x16x128xbf16>
    %81 = vector.shape_cast %80 : vector<1x1x16x128xbf16> to vector<16x128xbf16>
    %c5_156 = arith.constant 5 : index
    %c1_157 = arith.constant 1 : index
    %c0_158 = arith.constant 0 : index
    %c0_159 = arith.constant 0 : index
    %82 = vector.load %arg1[%c5_156, %c1_157, %c0_158, %c0_159] : memref<8x8x16x128xbf16, #tpu.memory_space<vmem>>, vector<1x1x16x128xbf16>
    %83 = vector.shape_cast %82 : vector<1x1x16x128xbf16> to vector<16x128xbf16>
    %c5_160 = arith.constant 5 : index
    %c2_161 = arith.constant 2 : index
    %c0_162 = arith.constant 0 : index
    %c0_163 = arith.constant 0 : index
    %84 = vector.load %arg1[%c5_160, %c2_161, %c0_162, %c0_163] : memref<8x8x16x128xbf16, #tpu.memory_space<vmem>>, vector<1x1x16x128xbf16>
    %85 = vector.shape_cast %84 : vector<1x1x16x128xbf16> to vector<16x128xbf16>
    %c5_164 = arith.constant 5 : index
    %c3_165 = arith.constant 3 : index
    %c0_166 = arith.constant 0 : index
    %c0_167 = arith.constant 0 : index
    %86 = vector.load %arg1[%c5_164, %c3_165, %c0_166, %c0_167] : memref<8x8x16x128xbf16, #tpu.memory_space<vmem>>, vector<1x1x16x128xbf16>
    %87 = vector.shape_cast %86 : vector<1x1x16x128xbf16> to vector<16x128xbf16>
    %c5_168 = arith.constant 5 : index
    %c4_169 = arith.constant 4 : index
    %c0_170 = arith.constant 0 : index
    %c0_171 = arith.constant 0 : index
    %88 = vector.load %arg1[%c5_168, %c4_169, %c0_170, %c0_171] : memref<8x8x16x128xbf16, #tpu.memory_space<vmem>>, vector<1x1x16x128xbf16>
    %89 = vector.shape_cast %88 : vector<1x1x16x128xbf16> to vector<16x128xbf16>
    %c5_172 = arith.constant 5 : index
    %c5_173 = arith.constant 5 : index
    %c0_174 = arith.constant 0 : index
    %c0_175 = arith.constant 0 : index
    %90 = vector.load %arg1[%c5_172, %c5_173, %c0_174, %c0_175] : memref<8x8x16x128xbf16, #tpu.memory_space<vmem>>, vector<1x1x16x128xbf16>
    %91 = vector.shape_cast %90 : vector<1x1x16x128xbf16> to vector<16x128xbf16>
    %c5_176 = arith.constant 5 : index
    %c6_177 = arith.constant 6 : index
    %c0_178 = arith.constant 0 : index
    %c0_179 = arith.constant 0 : index
    %92 = vector.load %arg1[%c5_176, %c6_177, %c0_178, %c0_179] : memref<8x8x16x128xbf16, #tpu.memory_space<vmem>>, vector<1x1x16x128xbf16>
    %93 = vector.shape_cast %92 : vector<1x1x16x128xbf16> to vector<16x128xbf16>
    %c5_180 = arith.constant 5 : index
    %c7_181 = arith.constant 7 : index
    %c0_182 = arith.constant 0 : index
    %c0_183 = arith.constant 0 : index
    %94 = vector.load %arg1[%c5_180, %c7_181, %c0_182, %c0_183] : memref<8x8x16x128xbf16, #tpu.memory_space<vmem>>, vector<1x1x16x128xbf16>
    %95 = vector.shape_cast %94 : vector<1x1x16x128xbf16> to vector<16x128xbf16>
    %c6_184 = arith.constant 6 : index
    %c0_185 = arith.constant 0 : index
    %c0_186 = arith.constant 0 : index
    %c0_187 = arith.constant 0 : index
    %96 = vector.load %arg1[%c6_184, %c0_185, %c0_186, %c0_187] : memref<8x8x16x128xbf16, #tpu.memory_space<vmem>>, vector<1x1x16x128xbf16>
    %97 = vector.shape_cast %96 : vector<1x1x16x128xbf16> to vector<16x128xbf16>
    %c6_188 = arith.constant 6 : index
    %c1_189 = arith.constant 1 : index
    %c0_190 = arith.constant 0 : index
    %c0_191 = arith.constant 0 : index
    %98 = vector.load %arg1[%c6_188, %c1_189, %c0_190, %c0_191] : memref<8x8x16x128xbf16, #tpu.memory_space<vmem>>, vector<1x1x16x128xbf16>
    %99 = vector.shape_cast %98 : vector<1x1x16x128xbf16> to vector<16x128xbf16>
    %c6_192 = arith.constant 6 : index
    %c2_193 = arith.constant 2 : index
    %c0_194 = arith.constant 0 : index
    %c0_195 = arith.constant 0 : index
    %100 = vector.load %arg1[%c6_192, %c2_193, %c0_194, %c0_195] : memref<8x8x16x128xbf16, #tpu.memory_space<vmem>>, vector<1x1x16x128xbf16>
    %101 = vector.shape_cast %100 : vector<1x1x16x128xbf16> to vector<16x128xbf16>
    %c6_196 = arith.constant 6 : index
    %c3_197 = arith.constant 3 : index
    %c0_198 = arith.constant 0 : index
    %c0_199 = arith.constant 0 : index
    %102 = vector.load %arg1[%c6_196, %c3_197, %c0_198, %c0_199] : memref<8x8x16x128xbf16, #tpu.memory_space<vmem>>, vector<1x1x16x128xbf16>
    %103 = vector.shape_cast %102 : vector<1x1x16x128xbf16> to vector<16x128xbf16>
    %c6_200 = arith.constant 6 : index
    %c4_201 = arith.constant 4 : index
    %c0_202 = arith.constant 0 : index
    %c0_203 = arith.constant 0 : index
    %104 = vector.load %arg1[%c6_200, %c4_201, %c0_202, %c0_203] : memref<8x8x16x128xbf16, #tpu.memory_space<vmem>>, vector<1x1x16x128xbf16>
    %105 = vector.shape_cast %104 : vector<1x1x16x128xbf16> to vector<16x128xbf16>
    %c6_204 = arith.constant 6 : index
    %c5_205 = arith.constant 5 : index
    %c0_206 = arith.constant 0 : index
    %c0_207 = arith.constant 0 : index
    %106 = vector.load %arg1[%c6_204, %c5_205, %c0_206, %c0_207] : memref<8x8x16x128xbf16, #tpu.memory_space<vmem>>, vector<1x1x16x128xbf16>
    %107 = vector.shape_cast %106 : vector<1x1x16x128xbf16> to vector<16x128xbf16>
    %c6_208 = arith.constant 6 : index
    %c6_209 = arith.constant 6 : index
    %c0_210 = arith.constant 0 : index
    %c0_211 = arith.constant 0 : index
    %108 = vector.load %arg1[%c6_208, %c6_209, %c0_210, %c0_211] : memref<8x8x16x128xbf16, #tpu.memory_space<vmem>>, vector<1x1x16x128xbf16>
    %109 = vector.shape_cast %108 : vector<1x1x16x128xbf16> to vector<16x128xbf16>
    %c6_212 = arith.constant 6 : index
    %c7_213 = arith.constant 7 : index
    %c0_214 = arith.constant 0 : index
    %c0_215 = arith.constant 0 : index
    %110 = vector.load %arg1[%c6_212, %c7_213, %c0_214, %c0_215] : memref<8x8x16x128xbf16, #tpu.memory_space<vmem>>, vector<1x1x16x128xbf16>
    %111 = vector.shape_cast %110 : vector<1x1x16x128xbf16> to vector<16x128xbf16>
    %c7_216 = arith.constant 7 : index
    %c0_217 = arith.constant 0 : index
    %c0_218 = arith.constant 0 : index
    %c0_219 = arith.constant 0 : index
    %112 = vector.load %arg1[%c7_216, %c0_217, %c0_218, %c0_219] : memref<8x8x16x128xbf16, #tpu.memory_space<vmem>>, vector<1x1x16x128xbf16>
    %113 = vector.shape_cast %112 : vector<1x1x16x128xbf16> to vector<16x128xbf16>
    %c7_220 = arith.constant 7 : index
    %c1_221 = arith.constant 1 : index
    %c0_222 = arith.constant 0 : index
    %c0_223 = arith.constant 0 : index
    %114 = vector.load %arg1[%c7_220, %c1_221, %c0_222, %c0_223] : memref<8x8x16x128xbf16, #tpu.memory_space<vmem>>, vector<1x1x16x128xbf16>
    %115 = vector.shape_cast %114 : vector<1x1x16x128xbf16> to vector<16x128xbf16>
    %c7_224 = arith.constant 7 : index
    %c2_225 = arith.constant 2 : index
    %c0_226 = arith.constant 0 : index
    %c0_227 = arith.constant 0 : index
    %116 = vector.load %arg1[%c7_224, %c2_225, %c0_226, %c0_227] : memref<8x8x16x128xbf16, #tpu.memory_space<vmem>>, vector<1x1x16x128xbf16>
    %117 = vector.shape_cast %116 : vector<1x1x16x128xbf16> to vector<16x128xbf16>
    %c7_228 = arith.constant 7 : index
    %c3_229 = arith.constant 3 : index
    %c0_230 = arith.constant 0 : index
    %c0_231 = arith.constant 0 : index
    %118 = vector.load %arg1[%c7_228, %c3_229, %c0_230, %c0_231] : memref<8x8x16x128xbf16, #tpu.memory_space<vmem>>, vector<1x1x16x128xbf16>
    %119 = vector.shape_cast %118 : vector<1x1x16x128xbf16> to vector<16x128xbf16>
    %c7_232 = arith.constant 7 : index
    %c4_233 = arith.constant 4 : index
    %c0_234 = arith.constant 0 : index
    %c0_235 = arith.constant 0 : index
    %120 = vector.load %arg1[%c7_232, %c4_233, %c0_234, %c0_235] : memref<8x8x16x128xbf16, #tpu.memory_space<vmem>>, vector<1x1x16x128xbf16>
    %121 = vector.shape_cast %120 : vector<1x1x16x128xbf16> to vector<16x128xbf16>
    %c7_236 = arith.constant 7 : index
    %c5_237 = arith.constant 5 : index
    %c0_238 = arith.constant 0 : index
    %c0_239 = arith.constant 0 : index
    %122 = vector.load %arg1[%c7_236, %c5_237, %c0_238, %c0_239] : memref<8x8x16x128xbf16, #tpu.memory_space<vmem>>, vector<1x1x16x128xbf16>
    %123 = vector.shape_cast %122 : vector<1x1x16x128xbf16> to vector<16x128xbf16>
    %c7_240 = arith.constant 7 : index
    %c6_241 = arith.constant 6 : index
    %c0_242 = arith.constant 0 : index
    %c0_243 = arith.constant 0 : index
    %124 = vector.load %arg1[%c7_240, %c6_241, %c0_242, %c0_243] : memref<8x8x16x128xbf16, #tpu.memory_space<vmem>>, vector<1x1x16x128xbf16>
    %125 = vector.shape_cast %124 : vector<1x1x16x128xbf16> to vector<16x128xbf16>
    %c7_244 = arith.constant 7 : index
    %c7_245 = arith.constant 7 : index
    %c0_246 = arith.constant 0 : index
    %c0_247 = arith.constant 0 : index
    %126 = vector.load %arg1[%c7_244, %c7_245, %c0_246, %c0_247] : memref<8x8x16x128xbf16, #tpu.memory_space<vmem>>, vector<1x1x16x128xbf16>
    %127 = vector.shape_cast %126 : vector<1x1x16x128xbf16> to vector<16x128xbf16>
    %cst = arith.constant 0.000000e+00 : bf16
    %128 = vector.broadcast %cst : bf16 to vector<16x128xbf16>
    %129 = tpu.concatenate %128, %128, %128, %128, %128, %1, %3, %5, %128, %17, %19, %21, %128, %33, %35, %37 in 1 : vector<16x128xbf16>, vector<16x128xbf16>, vector<16x128xbf16>, vector<16x128xbf16>, vector<16x128xbf16>, vector<16x128xbf16>, vector<16x128xbf16>, vector<16x128xbf16>, vector<16x128xbf16>, vector<16x128xbf16>, vector<16x128xbf16>, vector<16x128xbf16>, vector<16x128xbf16>, vector<16x128xbf16>, vector<16x128xbf16>, vector<16x128xbf16> -> vector<16x2048xbf16>
    %c0_248 = arith.constant 0 : index
    %c0_249 = arith.constant 0 : index
    %130 = vector.load %arg13[%c0_248, %c0_249] : memref<256x2048xbf16, #tpu.memory_space<vmem>>, vector<16x2048xbf16>
    tpu.vector_store %arg13[%c0_248, %c0_249], %129 {strides = array<i32>} : memref<256x2048xbf16, #tpu.memory_space<vmem>>, vector<16x2048xbf16>,
    %131 = tpu.concatenate %128, %128, %128, %128, %3, %5, %7, %9, %19, %21, %23, %25, %35, %37, %39, %41 in 1 : vector<16x128xbf16>, vector<16x128xbf16>, vector<16x128xbf16>, vector<16x128xbf16>, vector<16x128xbf16>, vector<16x128xbf16>, vector<16x128xbf16>, vector<16x128xbf16>, vector<16x128xbf16>, vector<16x128xbf16>, vector<16x128xbf16>, vector<16x128xbf16>, vector<16x128xbf16>, vector<16x128xbf16>, vector<16x128xbf16>, vector<16x128xbf16> -> vector<16x2048xbf16>
    %c16 = arith.constant 16 : index
    %c0_250 = arith.constant 0 : index
    %132 = vector.load %arg13[%c16, %c0_250] : memref<256x2048xbf16, #tpu.memory_space<vmem>>, vector<16x2048xbf16>
    tpu.vector_store %arg13[%c16, %c0_250], %131 {strides = array<i32>} : memref<256x2048xbf16, #tpu.memory_space<vmem>>, vector<16x2048xbf16>,
    %133 = tpu.concatenate %128, %128, %128, %128, %7, %9, %11, %13, %23, %25, %27, %29, %39, %41, %43, %45 in 1 : vector<16x128xbf16>, vector<16x128xbf16>, vector<16x128xbf16>, vector<16x128xbf16>, vector<16x128xbf16>, vector<16x128xbf16>, vector<16x128xbf16>, vector<16x128xbf16>, vector<16x128xbf16>, vector<16x128xbf16>, vector<16x128xbf16>, vector<16x128xbf16>, vector<16x128xbf16>, vector<16x128xbf16>, vector<16x128xbf16>, vector<16x128xbf16> -> vector<16x2048xbf16>
    %c32 = arith.constant 32 : index
    %c0_251 = arith.constant 0 : index
    %134 = vector.load %arg13[%c32, %c0_251] : memref<256x2048xbf16, #tpu.memory_space<vmem>>, vector<16x2048xbf16>
    tpu.vector_store %arg13[%c32, %c0_251], %133 {strides = array<i32>} : memref<256x2048xbf16, #tpu.memory_space<vmem>>, vector<16x2048xbf16>,
    %135 = tpu.concatenate %128, %128, %128, %128, %11, %13, %15, %128, %27, %29, %31, %128, %43, %45, %47, %128 in 1 : vector<16x128xbf16>, vector<16x128xbf16>, vector<16x128xbf16>, vector<16x128xbf16>, vector<16x128xbf16>, vector<16x128xbf16>, vector<16x128xbf16>, vector<16x128xbf16>, vector<16x128xbf16>, vector<16x128xbf16>, vector<16x128xbf16>, vector<16x128xbf16>, vector<16x128xbf16>, vector<16x128xbf16>, vector<16x128xbf16>, vector<16x128xbf16> -> vector<16x2048xbf16>
    %c48 = arith.constant 48 : index
    %c0_252 = arith.constant 0 : index
    %136 = vector.load %arg13[%c48, %c0_252] : memref<256x2048xbf16, #tpu.memory_space<vmem>>, vector<16x2048xbf16>
    tpu.vector_store %arg13[%c48, %c0_252], %135 {strides = array<i32>} : memref<256x2048xbf16, #tpu.memory_space<vmem>>, vector<16x2048xbf16>,
    %137 = tpu.concatenate %128, %17, %19, %21, %128, %33, %35, %37, %128, %49, %51, %53, %128, %65, %67, %69 in 1 : vector<16x128xbf16>, vector<16x128xbf16>, vector<16x128xbf16>, vector<16x128xbf16>, vector<16x128xbf16>, vector<16x128xbf16>, vector<16x128xbf16>, vector<16x128xbf16>, vector<16x128xbf16>, vector<16x128xbf16>, vector<16x128xbf16>, vector<16x128xbf16>, vector<16x128xbf16>, vector<16x128xbf16>, vector<16x128xbf16>, vector<16x128xbf16> -> vector<16x2048xbf16>
    %c64 = arith.constant 64 : index
    %c0_253 = arith.constant 0 : index
    %138 = vector.load %arg13[%c64, %c0_253] : memref<256x2048xbf16, #tpu.memory_space<vmem>>, vector<16x2048xbf16>
    tpu.vector_store %arg13[%c64, %c0_253], %137 {strides = array<i32>} : memref<256x2048xbf16, #tpu.memory_space<vmem>>, vector<16x2048xbf16>,
    %139 = tpu.concatenate %19, %21, %23, %25, %35, %37, %39, %41, %51, %53, %55, %57, %67, %69, %71, %73 in 1 : vector<16x128xbf16>, vector<16x128xbf16>, vector<16x128xbf16>, vector<16x128xbf16>, vector<16x128xbf16>, vector<16x128xbf16>, vector<16x128xbf16>, vector<16x128xbf16>, vector<16x128xbf16>, vector<16x128xbf16>, vector<16x128xbf16>, vector<16x128xbf16>, vector<16x128xbf16>, vector<16x128xbf16>, vector<16x128xbf16>, vector<16x128xbf16> -> vector<16x2048xbf16>
    %c80 = arith.constant 80 : index
    %c0_254 = arith.constant 0 : index
    %140 = vector.load %arg13[%c80, %c0_254] : memref<256x2048xbf16, #tpu.memory_space<vmem>>, vector<16x2048xbf16>
    tpu.vector_store %arg13[%c80, %c0_254], %139 {strides = array<i32>} : memref<256x2048xbf16, #tpu.memory_space<vmem>>, vector<16x2048xbf16>,
    %141 = tpu.concatenate %23, %25, %27, %29, %39, %41, %43, %45, %55, %57, %59, %61, %71, %73, %75, %77 in 1 : vector<16x128xbf16>, vector<16x128xbf16>, vector<16x128xbf16>, vector<16x128xbf16>, vector<16x128xbf16>, vector<16x128xbf16>, vector<16x128xbf16>, vector<16x128xbf16>, vector<16x128xbf16>, vector<16x128xbf16>, vector<16x128xbf16>, vector<16x128xbf16>, vector<16x128xbf16>, vector<16x128xbf16>, vector<16x128xbf16>, vector<16x128xbf16> -> vector<16x2048xbf16>
    %c96 = arith.constant 96 : index
    %c0_255 = arith.constant 0 : index
    %142 = vector.load %arg13[%c96, %c0_255] : memref<256x2048xbf16, #tpu.memory_space<vmem>>, vector<16x2048xbf16>
    tpu.vector_store %arg13[%c96, %c0_255], %141 {strides = array<i32>} : memref<256x2048xbf16, #tpu.memory_space<vmem>>, vector<16x2048xbf16>,
    %143 = tpu.concatenate %27, %29, %31, %128, %43, %45, %47, %128, %59, %61, %63, %128, %75, %77, %79, %128 in 1 : vector<16x128xbf16>, vector<16x128xbf16>, vector<16x128xbf16>, vector<16x128xbf16>, vector<16x128xbf16>, vector<16x128xbf16>, vector<16x128xbf16>, vector<16x128xbf16>, vector<16x128xbf16>, vector<16x128xbf16>, vector<16x128xbf16>, vector<16x128xbf16>, vector<16x128xbf16>, vector<16x128xbf16>, vector<16x128xbf16>, vector<16x128xbf16> -> vector<16x2048xbf16>
    %c112 = arith.constant 112 : index
    %c0_256 = arith.constant 0 : index
    %144 = vector.load %arg13[%c112, %c0_256] : memref<256x2048xbf16, #tpu.memory_space<vmem>>, vector<16x2048xbf16>
    tpu.vector_store %arg13[%c112, %c0_256], %143 {strides = array<i32>} : memref<256x2048xbf16, #tpu.memory_space<vmem>>, vector<16x2048xbf16>,
    %145 = tpu.concatenate %128, %49, %51, %53, %128, %65, %67, %69, %128, %81, %83, %85, %128, %97, %99, %101 in 1 : vector<16x128xbf16>, vector<16x128xbf16>, vector<16x128xbf16>, vector<16x128xbf16>, vector<16x128xbf16>, vector<16x128xbf16>, vector<16x128xbf16>, vector<16x128xbf16>, vector<16x128xbf16>, vector<16x128xbf16>, vector<16x128xbf16>, vector<16x128xbf16>, vector<16x128xbf16>, vector<16x128xbf16>, vector<16x128xbf16>, vector<16x128xbf16> -> vector<16x2048xbf16>
    %c128 = arith.constant 128 : index
    %c0_257 = arith.constant 0 : index
    %146 = vector.load %arg13[%c128, %c0_257] : memref<256x2048xbf16, #tpu.memory_space<vmem>>, vector<16x2048xbf16>
    tpu.vector_store %arg13[%c128, %c0_257], %145 {strides = array<i32>} : memref<256x2048xbf16, #tpu.memory_space<vmem>>, vector<16x2048xbf16>,
    %147 = tpu.concatenate %51, %53, %55, %57, %67, %69, %71, %73, %83, %85, %87, %89, %99, %101, %103, %105 in 1 : vector<16x128xbf16>, vector<16x128xbf16>, vector<16x128xbf16>, vector<16x128xbf16>, vector<16x128xbf16>, vector<16x128xbf16>, vector<16x128xbf16>, vector<16x128xbf16>, vector<16x128xbf16>, vector<16x128xbf16>, vector<16x128xbf16>, vector<16x128xbf16>, vector<16x128xbf16>, vector<16x128xbf16>, vector<16x128xbf16>, vector<16x128xbf16> -> vector<16x2048xbf16>
    %c144 = arith.constant 144 : index
    %c0_258 = arith.constant 0 : index
    %148 = vector.load %arg13[%c144, %c0_258] : memref<256x2048xbf16, #tpu.memory_space<vmem>>, vector<16x2048xbf16>
    tpu.vector_store %arg13[%c144, %c0_258], %147 {strides = array<i32>} : memref<256x2048xbf16, #tpu.memory_space<vmem>>, vector<16x2048xbf16>,
    %149 = tpu.concatenate %55, %57, %59, %61, %71, %73, %75, %77, %87, %89, %91, %93, %103, %105, %107, %109 in 1 : vector<16x128xbf16>, vector<16x128xbf16>, vector<16x128xbf16>, vector<16x128xbf16>, vector<16x128xbf16>, vector<16x128xbf16>, vector<16x128xbf16>, vector<16x128xbf16>, vector<16x128xbf16>, vector<16x128xbf16>, vector<16x128xbf16>, vector<16x128xbf16>, vector<16x128xbf16>, vector<16x128xbf16>, vector<16x128xbf16>, vector<16x128xbf16> -> vector<16x2048xbf16>
    %c160 = arith.constant 160 : index
    %c0_259 = arith.constant 0 : index
    %150 = vector.load %arg13[%c160, %c0_259] : memref<256x2048xbf16, #tpu.memory_space<vmem>>, vector<16x2048xbf16>
    tpu.vector_store %arg13[%c160, %c0_259], %149 {strides = array<i32>} : memref<256x2048xbf16, #tpu.memory_space<vmem>>, vector<16x2048xbf16>,
    %151 = tpu.concatenate %59, %61, %63, %128, %75, %77, %79, %128, %91, %93, %95, %128, %107, %109, %111, %128 in 1 : vector<16x128xbf16>, vector<16x128xbf16>, vector<16x128xbf16>, vector<16x128xbf16>, vector<16x128xbf16>, vector<16x128xbf16>, vector<16x128xbf16>, vector<16x128xbf16>, vector<16x128xbf16>, vector<16x128xbf16>, vector<16x128xbf16>, vector<16x128xbf16>, vector<16x128xbf16>, vector<16x128xbf16>, vector<16x128xbf16>, vector<16x128xbf16> -> vector<16x2048xbf16>
    %c176 = arith.constant 176 : index
    %c0_260 = arith.constant 0 : index
    %152 = vector.load %arg13[%c176, %c0_260] : memref<256x2048xbf16, #tpu.memory_space<vmem>>, vector<16x2048xbf16>
    tpu.vector_store %arg13[%c176, %c0_260], %151 {strides = array<i32>} : memref<256x2048xbf16, #tpu.memory_space<vmem>>, vector<16x2048xbf16>,
    %153 = tpu.concatenate %128, %81, %83, %85, %128, %97, %99, %101, %128, %113, %115, %117, %128, %128, %128, %128 in 1 : vector<16x128xbf16>, vector<16x128xbf16>, vector<16x128xbf16>, vector<16x128xbf16>, vector<16x128xbf16>, vector<16x128xbf16>, vector<16x128xbf16>, vector<16x128xbf16>, vector<16x128xbf16>, vector<16x128xbf16>, vector<16x128xbf16>, vector<16x128xbf16>, vector<16x128xbf16>, vector<16x128xbf16>, vector<16x128xbf16>, vector<16x128xbf16> -> vector<16x2048xbf16>
    %c192 = arith.constant 192 : index
    %c0_261 = arith.constant 0 : index
    %154 = vector.load %arg13[%c192, %c0_261] : memref<256x2048xbf16, #tpu.memory_space<vmem>>, vector<16x2048xbf16>
    tpu.vector_store %arg13[%c192, %c0_261], %153 {strides = array<i32>} : memref<256x2048xbf16, #tpu.memory_space<vmem>>, vector<16x2048xbf16>,
    %155 = tpu.concatenate %83, %85, %87, %89, %99, %101, %103, %105, %115, %117, %119, %121, %128, %128, %128, %128 in 1 : vector<16x128xbf16>, vector<16x128xbf16>, vector<16x128xbf16>, vector<16x128xbf16>, vector<16x128xbf16>, vector<16x128xbf16>, vector<16x128xbf16>, vector<16x128xbf16>, vector<16x128xbf16>, vector<16x128xbf16>, vector<16x128xbf16>, vector<16x128xbf16>, vector<16x128xbf16>, vector<16x128xbf16>, vector<16x128xbf16>, vector<16x128xbf16> -> vector<16x2048xbf16>
    %c208 = arith.constant 208 : index
    %c0_262 = arith.constant 0 : index
    %156 = vector.load %arg13[%c208, %c0_262] : memref<256x2048xbf16, #tpu.memory_space<vmem>>, vector<16x2048xbf16>
    tpu.vector_store %arg13[%c208, %c0_262], %155 {strides = array<i32>} : memref<256x2048xbf16, #tpu.memory_space<vmem>>, vector<16x2048xbf16>,
    %157 = tpu.concatenate %87, %89, %91, %93, %103, %105, %107, %109, %119, %121, %123, %125, %128, %128, %128, %128 in 1 : vector<16x128xbf16>, vector<16x128xbf16>, vector<16x128xbf16>, vector<16x128xbf16>, vector<16x128xbf16>, vector<16x128xbf16>, vector<16x128xbf16>, vector<16x128xbf16>, vector<16x128xbf16>, vector<16x128xbf16>, vector<16x128xbf16>, vector<16x128xbf16>, vector<16x128xbf16>, vector<16x128xbf16>, vector<16x128xbf16>, vector<16x128xbf16> -> vector<16x2048xbf16>
    %c224 = arith.constant 224 : index
    %c0_263 = arith.constant 0 : index
    %158 = vector.load %arg13[%c224, %c0_263] : memref<256x2048xbf16, #tpu.memory_space<vmem>>, vector<16x2048xbf16>
    tpu.vector_store %arg13[%c224, %c0_263], %157 {strides = array<i32>} : memref<256x2048xbf16, #tpu.memory_space<vmem>>, vector<16x2048xbf16>,
    %159 = tpu.concatenate %91, %93, %95, %128, %107, %109, %111, %128, %123, %125, %127, %128, %128, %128, %128, %128 in 1 : vector<16x128xbf16>, vector<16x128xbf16>, vector<16x128xbf16>, vector<16x128xbf16>, vector<16x128xbf16>, vector<16x128xbf16>, vector<16x128xbf16>, vector<16x128xbf16>, vector<16x128xbf16>, vector<16x128xbf16>, vector<16x128xbf16>, vector<16x128xbf16>, vector<16x128xbf16>, vector<16x128xbf16>, vector<16x128xbf16>, vector<16x128xbf16> -> vector<16x2048xbf16>
    %c240 = arith.constant 240 : index
    %c0_264 = arith.constant 0 : index
    %160 = vector.load %arg13[%c240, %c0_264] : memref<256x2048xbf16, #tpu.memory_space<vmem>>, vector<16x2048xbf16>
    tpu.vector_store %arg13[%c240, %c0_264], %159 {strides = array<i32>} : memref<256x2048xbf16, #tpu.memory_space<vmem>>, vector<16x2048xbf16>,
    %c0_265 = arith.constant 0 : index
    %c0_266 = arith.constant 0 : index
    %161 = vector.load %arg13[%c0_265, %c0_266] : memref<256x2048xbf16, #tpu.memory_space<vmem>>, vector<256x2048xbf16>
    %c0_267 = arith.constant 0 : index
    %c0_268 = arith.constant 0 : index
    %162 = vector.load %arg2[%c0_267, %c0_268] : memref<2048x128xbf16, #tpu.memory_space<vmem>>, vector<2048x128xbf16>
    %cst_269 = arith.constant dense<0.000000e+00> : vector<256x128xf32>
    %163 = tpu.matmul %161, %162, %cst_269 {dimension_numbers = #tpu.dot_dimension_numbers<[1], [0], [0], [1], [0, 0, 1, 1], [], []>} : vector<256x2048xbf16>, vector<2048x128xbf16>, vector<256x128xf32> -> vector<256x128xf32>
    %c0_270 = arith.constant 0 : index
    %c0_271 = arith.constant 0 : index
    %164 = vector.load %arg3[%c0_270, %c0_271] : memref<1x128xf32, #tpu.memory_space<vmem>>, vector<1x128xf32>
    %165 = vector.broadcast %164 : vector<1x128xf32> to vector<256x128xf32>
    %166 = arith.addf %163, %165 : vector<256x128xf32>
    %cst_272 = arith.constant 2.000000e-01 : f32
    %167 = vector.broadcast %cst_272 : f32 to vector<256x128xf32>
    %168 = arith.mulf %167, %166 : vector<256x128xf32>
    %169 = arith.maximumf %166, %168 : vector<256x128xf32>
    %170 = arith.truncf %169 : vector<256x128xf32> to vector<256x128xbf16>
    %171 = vector.extract_strided_slice %170 {offsets = [0, 0], sizes = [16, 128], strides = [1, 1]} : vector<256x128xbf16> to vector<16x128xbf16>
    %172 = vector.extract_strided_slice %170 {offsets = [16, 0], sizes = [16, 128], strides = [1, 1]} : vector<256x128xbf16> to vector<16x128xbf16>
    %173 = vector.extract_strided_slice %170 {offsets = [32, 0], sizes = [16, 128], strides = [1, 1]} : vector<256x128xbf16> to vector<16x128xbf16>
    %174 = vector.extract_strided_slice %170 {offsets = [48, 0], sizes = [16, 128], strides = [1, 1]} : vector<256x128xbf16> to vector<16x128xbf16>
    %175 = vector.extract_strided_slice %170 {offsets = [64, 0], sizes = [16, 128], strides = [1, 1]} : vector<256x128xbf16> to vector<16x128xbf16>
    %176 = vector.extract_strided_slice %170 {offsets = [80, 0], sizes = [16, 128], strides = [1, 1]} : vector<256x128xbf16> to vector<16x128xbf16>
    %177 = vector.extract_strided_slice %170 {offsets = [96, 0], sizes = [16, 128], strides = [1, 1]} : vector<256x128xbf16> to vector<16x128xbf16>
    %178 = vector.extract_strided_slice %170 {offsets = [112, 0], sizes = [16, 128], strides = [1, 1]} : vector<256x128xbf16> to vector<16x128xbf16>
    %179 = vector.extract_strided_slice %170 {offsets = [128, 0], sizes = [16, 128], strides = [1, 1]} : vector<256x128xbf16> to vector<16x128xbf16>
    %180 = vector.extract_strided_slice %170 {offsets = [144, 0], sizes = [16, 128], strides = [1, 1]} : vector<256x128xbf16> to vector<16x128xbf16>
    %181 = vector.extract_strided_slice %170 {offsets = [160, 0], sizes = [16, 128], strides = [1, 1]} : vector<256x128xbf16> to vector<16x128xbf16>
    %182 = vector.extract_strided_slice %170 {offsets = [176, 0], sizes = [16, 128], strides = [1, 1]} : vector<256x128xbf16> to vector<16x128xbf16>
    %183 = vector.extract_strided_slice %170 {offsets = [192, 0], sizes = [16, 128], strides = [1, 1]} : vector<256x128xbf16> to vector<16x128xbf16>
    %184 = vector.extract_strided_slice %170 {offsets = [208, 0], sizes = [16, 128], strides = [1, 1]} : vector<256x128xbf16> to vector<16x128xbf16>
    %185 = vector.extract_strided_slice %170 {offsets = [224, 0], sizes = [16, 128], strides = [1, 1]} : vector<256x128xbf16> to vector<16x128xbf16>
    %186 = vector.extract_strided_slice %170 {offsets = [240, 0], sizes = [16, 128], strides = [1, 1]} : vector<256x128xbf16> to vector<16x128xbf16>
    %cst_273 = arith.constant 0.000000e+00 : bf16
    %187 = vector.broadcast %cst_273 : bf16 to vector<16x128xbf16>
    %188 = tpu.concatenate %187, %187, %187, %187, %187, %171, %172, %173, %187, %175, %176, %177, %187, %179, %180, %181 in 1 : vector<16x128xbf16>, vector<16x128xbf16>, vector<16x128xbf16>, vector<16x128xbf16>, vector<16x128xbf16>, vector<16x128xbf16>, vector<16x128xbf16>, vector<16x128xbf16>, vector<16x128xbf16>, vector<16x128xbf16>, vector<16x128xbf16>, vector<16x128xbf16>, vector<16x128xbf16>, vector<16x128xbf16>, vector<16x128xbf16>, vector<16x128xbf16> -> vector<16x2048xbf16>
    %c0_274 = arith.constant 0 : index
    %c0_275 = arith.constant 0 : index
    %189 = vector.load %arg13[%c0_274, %c0_275] : memref<256x2048xbf16, #tpu.memory_space<vmem>>, vector<16x2048xbf16>
    tpu.vector_store %arg13[%c0_274, %c0_275], %188 {strides = array<i32>} : memref<256x2048xbf16, #tpu.memory_space<vmem>>, vector<16x2048xbf16>,
    %190 = tpu.concatenate %187, %187, %187, %187, %172, %173, %174, %187, %176, %177, %178, %187, %180, %181, %182, %187 in 1 : vector<16x128xbf16>, vector<16x128xbf16>, vector<16x128xbf16>, vector<16x128xbf16>, vector<16x128xbf16>, vector<16x128xbf16>, vector<16x128xbf16>, vector<16x128xbf16>, vector<16x128xbf16>, vector<16x128xbf16>, vector<16x128xbf16>, vector<16x128xbf16>, vector<16x128xbf16>, vector<16x128xbf16>, vector<16x128xbf16>, vector<16x128xbf16> -> vector<16x2048xbf16>
    %c16_276 = arith.constant 16 : index
    %c0_277 = arith.constant 0 : index
    %191 = vector.load %arg13[%c16_276, %c0_277] : memref<256x2048xbf16, #tpu.memory_space<vmem>>, vector<16x2048xbf16>
    tpu.vector_store %arg13[%c16_276, %c0_277], %190 {strides = array<i32>} : memref<256x2048xbf16, #tpu.memory_space<vmem>>, vector<16x2048xbf16>,
    %192 = tpu.concatenate %187, %175, %176, %177, %187, %179, %180, %181, %187, %183, %184, %185, %187, %187, %187, %187 in 1 : vector<16x128xbf16>, vector<16x128xbf16>, vector<16x128xbf16>, vector<16x128xbf16>, vector<16x128xbf16>, vector<16x128xbf16>, vector<16x128xbf16>, vector<16x128xbf16>, vector<16x128xbf16>, vector<16x128xbf16>, vector<16x128xbf16>, vector<16x128xbf16>, vector<16x128xbf16>, vector<16x128xbf16>, vector<16x128xbf16>, vector<16x128xbf16> -> vector<16x2048xbf16>
    %c32_278 = arith.constant 32 : index
    %c0_279 = arith.constant 0 : index
    %193 = vector.load %arg13[%c32_278, %c0_279] : memref<256x2048xbf16, #tpu.memory_space<vmem>>, vector<16x2048xbf16>
    tpu.vector_store %arg13[%c32_278, %c0_279], %192 {strides = array<i32>} : memref<256x2048xbf16, #tpu.memory_space<vmem>>, vector<16x2048xbf16>,
    %194 = tpu.concatenate %176, %177, %178, %187, %180, %181, %182, %187, %184, %185, %186, %187, %187, %187, %187, %187 in 1 : vector<16x128xbf16>, vector<16x128xbf16>, vector<16x128xbf16>, vector<16x128xbf16>, vector<16x128xbf16>, vector<16x128xbf16>, vector<16x128xbf16>, vector<16x128xbf16>, vector<16x128xbf16>, vector<16x128xbf16>, vector<16x128xbf16>, vector<16x128xbf16>, vector<16x128xbf16>, vector<16x128xbf16>, vector<16x128xbf16>, vector<16x128xbf16> -> vector<16x2048xbf16>
    %c48_280 = arith.constant 48 : index
    %c0_281 = arith.constant 0 : index
    %195 = vector.load %arg13[%c48_280, %c0_281] : memref<256x2048xbf16, #tpu.memory_space<vmem>>, vector<16x2048xbf16>
    tpu.vector_store %arg13[%c48_280, %c0_281], %194 {strides = array<i32>} : memref<256x2048xbf16, #tpu.memory_space<vmem>>, vector<16x2048xbf16>,
    %c0_282 = arith.constant 0 : index
    %c0_283 = arith.constant 0 : index
    %196 = vector.load %arg13[%c0_282, %c0_283] : memref<256x2048xbf16, #tpu.memory_space<vmem>>, vector<64x2048xbf16>
    %c0_284 = arith.constant 0 : index
    %c0_285 = arith.constant 0 : index
    %197 = vector.load %arg4[%c0_284, %c0_285] : memref<2048x128xbf16, #tpu.memory_space<vmem>>, vector<2048x128xbf16>
    %cst_286 = arith.constant dense<0.000000e+00> : vector<64x128xf32>
    %198 = tpu.matmul %196, %197, %cst_286 {dimension_numbers = #tpu.dot_dimension_numbers<[1], [0], [0], [1], [0, 0, 1, 1], [], []>} : vector<64x2048xbf16>, vector<2048x128xbf16>, vector<64x128xf32> -> vector<64x128xf32>
    %c0_287 = arith.constant 0 : index
    %c0_288 = arith.constant 0 : index
    %199 = vector.load %arg5[%c0_287, %c0_288] : memref<1x128xf32, #tpu.memory_space<vmem>>, vector<1x128xf32>
    %200 = vector.broadcast %199 : vector<1x128xf32> to vector<64x128xf32>
    %201 = arith.addf %198, %200 : vector<64x128xf32>
    %cst_289 = arith.constant 2.000000e-01 : f32
    %202 = vector.broadcast %cst_289 : f32 to vector<64x128xf32>
    %203 = arith.mulf %202, %201 : vector<64x128xf32>
    %204 = arith.maximumf %201, %203 : vector<64x128xf32>
    %205 = arith.truncf %204 : vector<64x128xf32> to vector<64x128xbf16>
    %206 = vector.extract_strided_slice %205 {offsets = [0, 0], sizes = [16, 128], strides = [1, 1]} : vector<64x128xbf16> to vector<16x128xbf16>
    %207 = vector.extract_strided_slice %205 {offsets = [16, 0], sizes = [16, 128], strides = [1, 1]} : vector<64x128xbf16> to vector<16x128xbf16>
    %208 = vector.extract_strided_slice %205 {offsets = [32, 0], sizes = [16, 128], strides = [1, 1]} : vector<64x128xbf16> to vector<16x128xbf16>
    %209 = vector.extract_strided_slice %205 {offsets = [48, 0], sizes = [16, 128], strides = [1, 1]} : vector<64x128xbf16> to vector<16x128xbf16>
    %cst_290 = arith.constant 0.000000e+00 : bf16
    %210 = vector.broadcast %cst_290 : bf16 to vector<16x128xbf16>
    %211 = tpu.concatenate %210, %210, %210, %210, %210, %206, %207, %210, %210, %208, %209, %210, %210, %210, %210, %210 in 1 : vector<16x128xbf16>, vector<16x128xbf16>, vector<16x128xbf16>, vector<16x128xbf16>, vector<16x128xbf16>, vector<16x128xbf16>, vector<16x128xbf16>, vector<16x128xbf16>, vector<16x128xbf16>, vector<16x128xbf16>, vector<16x128xbf16>, vector<16x128xbf16>, vector<16x128xbf16>, vector<16x128xbf16>, vector<16x128xbf16>, vector<16x128xbf16> -> vector<16x2048xbf16>
    %c0_291 = arith.constant 0 : index
    %c0_292 = arith.constant 0 : index
    %212 = vector.load %arg13[%c0_291, %c0_292] : memref<256x2048xbf16, #tpu.memory_space<vmem>>, vector<16x2048xbf16>
    tpu.vector_store %arg13[%c0_291, %c0_292], %211 {strides = array<i32>} : memref<256x2048xbf16, #tpu.memory_space<vmem>>, vector<16x2048xbf16>,
    %c0_293 = arith.constant 0 : index
    %c0_294 = arith.constant 0 : index
    %213 = vector.load %arg13[%c0_293, %c0_294] : memref<256x2048xbf16, #tpu.memory_space<vmem>>, vector<16x2048xbf16>
    %c0_295 = arith.constant 0 : index
    %c0_296 = arith.constant 0 : index
    %214 = vector.load %arg6[%c0_295, %c0_296] : memref<2048x128xbf16, #tpu.memory_space<vmem>>, vector<2048x128xbf16>
    %cst_297 = arith.constant dense<0.000000e+00> : vector<16x128xf32>
    %215 = tpu.matmul %213, %214, %cst_297 {dimension_numbers = #tpu.dot_dimension_numbers<[1], [0], [0], [1], [0, 0, 1, 1], [], []>} : vector<16x2048xbf16>, vector<2048x128xbf16>, vector<16x128xf32> -> vector<16x128xf32>
    %c0_298 = arith.constant 0 : index
    %c0_299 = arith.constant 0 : index
    %216 = vector.load %arg7[%c0_298, %c0_299] : memref<1x128xf32, #tpu.memory_space<vmem>>, vector<1x128xf32>
    %217 = vector.broadcast %216 : vector<1x128xf32> to vector<16x128xf32>
    %218 = arith.addf %215, %217 : vector<16x128xf32>
    %cst_300 = arith.constant 2.000000e-01 : f32
    %219 = vector.broadcast %cst_300 : f32 to vector<16x128xf32>
    %220 = arith.mulf %219, %218 : vector<16x128xf32>
    %221 = arith.maximumf %218, %220 : vector<16x128xf32>
    %222 = arith.truncf %221 : vector<16x128xf32> to vector<16x128xbf16>
    %c0_301 = arith.constant 0 : index
    %c0_302 = arith.constant 0 : index
    %223 = vector.load %arg8[%c0_301, %c0_302] : memref<128x128xbf16, #tpu.memory_space<vmem>>, vector<128x128xbf16>
    %cst_303 = arith.constant dense<0.000000e+00> : vector<16x128xf32>
    %224 = tpu.matmul %222, %223, %cst_303 {dimension_numbers = #tpu.dot_dimension_numbers<[1], [0], [0], [1], [0, 0, 1, 1], [], []>} : vector<16x128xbf16>, vector<128x128xbf16>, vector<16x128xf32> -> vector<16x128xf32>
    %c0_304 = arith.constant 0 : index
    %c0_305 = arith.constant 0 : index
    %225 = vector.load %arg9[%c0_304, %c0_305] : memref<1x128xf32, #tpu.memory_space<vmem>>, vector<1x128xf32>
    %226 = vector.broadcast %225 : vector<1x128xf32> to vector<16x128xf32>
    %227 = arith.addf %224, %226 : vector<16x128xf32>
    %cst_306 = arith.constant 2.000000e-01 : f32
    %228 = vector.broadcast %cst_306 : f32 to vector<16x128xf32>
    %229 = arith.mulf %228, %227 : vector<16x128xf32>
    %230 = arith.maximumf %227, %229 : vector<16x128xf32>
    %231 = arith.truncf %230 : vector<16x128xf32> to vector<16x128xbf16>
    %c0_307 = arith.constant 0 : index
    %c0_308 = arith.constant 0 : index
    %232 = vector.load %arg10[%c0_307, %c0_308] : memref<128x128xbf16, #tpu.memory_space<vmem>>, vector<128x128xbf16>
    %cst_309 = arith.constant dense<0.000000e+00> : vector<16x128xf32>
    %233 = tpu.matmul %231, %232, %cst_309 {dimension_numbers = #tpu.dot_dimension_numbers<[1], [0], [0], [1], [0, 0, 1, 1], [], []>} : vector<16x128xbf16>, vector<128x128xbf16>, vector<16x128xf32> -> vector<16x128xf32>
    %c0_310 = arith.constant 0 : index
    %c0_311 = arith.constant 0 : index
    %234 = vector.load %arg11[%c0_310, %c0_311] : memref<1x128xf32, #tpu.memory_space<vmem>>, vector<1x128xf32>
    %235 = vector.broadcast %234 : vector<1x128xf32> to vector<16x128xf32>
    %236 = arith.addf %233, %235 : vector<16x128xf32>
    %237 = math.tanh %236 : vector<16x128xf32>
    %c0_312 = arith.constant 0 : index
    %c0_313 = arith.constant 0 : index
    %238 = vector.load %arg12[%c0_312, %c0_313] : memref<16x128xf32, #tpu.memory_space<vmem>>, vector<16x128xf32>
    tpu.vector_store %arg12[%c0_312, %c0_313], %237 {strides = array<i32>} : memref<16x128xf32, #tpu.memory_space<vmem>>, vector<16x128xf32>,
    return
  }
  func.func @transform_0(%arg0: i32) -> (i32, i32, i32, i32) {
    %c0_i32 = arith.constant 0 : i32
    %c0_i32_0 = arith.constant 0 : i32
    %c0_i32_1 = arith.constant 0 : i32
    %c0_i32_2 = arith.constant 0 : i32
    return %c0_i32, %c0_i32_0, %arg0, %c0_i32_1 : i32, i32, i32, i32
  }
  func.func @transform_1(%arg0: i32) -> (i32, i32) {
    %c0_i32 = arith.constant 0 : i32
    %c0_i32_0 = arith.constant 0 : i32
    %c0_i32_1 = arith.constant 0 : i32
    return %c0_i32, %c0_i32_0 : i32, i32
  }
  func.func @transform_2(%arg0: i32) -> (i32, i32) {
    %c0_i32 = arith.constant 0 : i32
    %c0_i32_0 = arith.constant 0 : i32
    %c0_i32_1 = arith.constant 0 : i32
    return %c0_i32, %c0_i32_0 : i32, i32
  }
  func.func @transform_3(%arg0: i32) -> (i32, i32) {
    %c0_i32 = arith.constant 0 : i32
    %c0_i32_0 = arith.constant 0 : i32
    %c0_i32_1 = arith.constant 0 : i32
    return %c0_i32, %c0_i32_0 : i32, i32
  }
  func.func @transform_4(%arg0: i32) -> (i32, i32) {
    %c0_i32 = arith.constant 0 : i32
    %c0_i32_0 = arith.constant 0 : i32
    %c0_i32_1 = arith.constant 0 : i32
    return %c0_i32, %c0_i32_0 : i32, i32
  }
  func.func @transform_5(%arg0: i32) -> (i32, i32) {
    %c0_i32 = arith.constant 0 : i32
    %c0_i32_0 = arith.constant 0 : i32
    %c0_i32_1 = arith.constant 0 : i32
    return %c0_i32, %c0_i32_0 : i32, i32
  }
  func.func @transform_6(%arg0: i32) -> (i32, i32) {
    %c0_i32 = arith.constant 0 : i32
    %c0_i32_0 = arith.constant 0 : i32
    %c0_i32_1 = arith.constant 0 : i32
    return %c0_i32, %c0_i32_0 : i32, i32
  }
  func.func @transform_7(%arg0: i32) -> (i32, i32) {
    %c0_i32 = arith.constant 0 : i32
    %c0_i32_0 = arith.constant 0 : i32
    %c0_i32_1 = arith.constant 0 : i32
    return %c0_i32, %c0_i32_0 : i32, i32
  }
  func.func @transform_8(%arg0: i32) -> (i32, i32) {
    %c0_i32 = arith.constant 0 : i32
    %c0_i32_0 = arith.constant 0 : i32
    %c0_i32_1 = arith.constant 0 : i32
    return %c0_i32, %c0_i32_0 : i32, i32
  }
  func.func @transform_9(%arg0: i32) -> (i32, i32) {
    %c0_i32 = arith.constant 0 : i32
    %c0_i32_0 = arith.constant 0 : i32
    %c0_i32_1 = arith.constant 0 : i32
    return %c0_i32, %c0_i32_0 : i32, i32
  }
  func.func @transform_10(%arg0: i32) -> (i32, i32) {
    %c0_i32 = arith.constant 0 : i32
    %c0_i32_0 = arith.constant 0 : i32
    %c0_i32_1 = arith.constant 0 : i32
    return %c0_i32, %c0_i32_0 : i32, i32
  }
  func.func @transform_11(%arg0: i32) -> (i32, i32) {
    %c0_i32 = arith.constant 0 : i32
    %c0_i32_0 = arith.constant 0 : i32
    return %arg0, %c0_i32 : i32, i32
  }
}

</mosaic_0001>

<bundles_post_ra>
// kernel: latent_discriminator_forward.1
= control target key start
LH: loop header
LB: loop body
LE: loop exit
PB: predicated region body
PF: predicated region fallthrough
CT: control target
= control target key end

     0   :  { %16 = vsyncpa [#allocation4], 0  ;;  %s14136_s0 = inlined_call_operand.vmem [shape: bf16[8,8,16,128], index: 0, kind: input, shape index: {}]   ;;  %s14137_s1 = inlined_call_operand.hbm [shape: bf16[2048,128], index: 1, kind: input, shape index: {}]   ;;  %s14138_s2 = inlined_call_operand.vmem [shape: f32[1,128], index: 2, kind: input, shape index: {}]   ;;  %s14139_s3 = inlined_call_operand.hbm [shape: bf16[2048,128], index: 3, kind: input, shape index: {}]   ;;  %s14140_s4 = inlined_call_operand.vmem [shape: f32[1,128], index: 4, kind: input, shape index: {}]   ;;  %s14141_s5 = inlined_call_operand.hbm [shape: bf16[2048,128], index: 5, kind: input, shape index: {}]   ;;  %s14142_s6 = inlined_call_operand.vmem [shape: f32[1,128], index: 6, kind: input, shape index: {}]   ;;  %s14143_s7 = inlined_call_operand.vmem [shape: bf16[128,128], index: 7, kind: input, shape index: {}]   ;;  %s14144_s8 = inlined_call_operand.vmem [shape: f32[1,128], index: 8, kind: input, shape index: {}]   ;;  %s14145_s9 = inlined_call_operand.vmem [shape: bf16[128,128], index: 9, kind: input, shape index: {}]   ;;  %s14146_s10 = inlined_call_operand.vmem [shape: f32[1,128], index: 10, kind: input, shape index: {}]   ;;  %s14147_s11 = inlined_call_operand.vmem [shape: f32[16,128], index: 11, kind: output, shape index: {}]  }
   0x1   :  { %17 = vsyncpa [#allocation6], 0  ;;  %s39_s19 = sshll.u32 %s14139_s3, 4  ;;  %s12917_s20 = smov [#allocation5]   ;;  %s40_s19 = int_to_ptr.hbm [resolvable:$true] %s39_s19 }
   0x2   :  { %s41_s21 = sshll.u32 %s12917_s20, 4  ;;  %s24_s24 = sshll.u32 %s14137_s1, 4  ;;  %s42_s21 = int_to_ptr.vmem [resolvable:$true] %s41_s21  ;;  %s25_s24 = int_to_ptr.hbm [resolvable:$true] %s24_s24 }
   0x3   :  { %s12918_s25 = smov 64   ;;  %s12919_s26 = smov 4  }
   0x4   :  { %47 = dma.hbm_to_vmem [thread:$0]  %s40_s19, 16384, %s42_s21, [#allocation6], %s12918_s25, %s12918_s25, %s12919_s26  }
   0x5   :  { %s12920_s27 = smov [#allocation3]   ;;  %s54_s12 = sshll.u32 %s14141_s5, 4  ;;  %s55_s12 = int_to_ptr.hbm [resolvable:$true] %s54_s12 }
   0x6   :  { %s26_s28 = sshll.u32 %s12920_s27, 4  ;;  %s12921_s3 = smov [#allocation7]   ;;  %s27_s28 = int_to_ptr.vmem [resolvable:$true] %s26_s28 }
   0x7   :  { %32 = dma.hbm_to_vmem [thread:$0]  %s25_s24, 16384, %s27_s28, [#allocation4], %s12918_s25, %s12918_s25, %s12919_s26  }
   0x8   :  { %s56_s13 = sshll.u32 %s12921_s3, 4  ;;  %s57_s13 = int_to_ptr.vmem [resolvable:$true] %s56_s13 }
   0x9   :  { %62 = dma.hbm_to_vmem [thread:$0]  %s55_s12, 16384, %s57_s13, [#allocation6], %s12918_s25, %s12918_s25, %s12919_s26  }
   0xa   :  { %12913 = dma.done.wait [#allocation4], 16384  }
   0xb   :  { %12914 = vsyncadd [#allocation4], 4294950912 }
   0xc   :  { %12915 = dma.done.wait [#allocation6], 32768  }
   0xd   :  { %12916 = vsyncadd [#allocation6], 4294934528  ;;  %v12922_v0 = vmov 0   ;;  %v12269_v5 = vld [vmem:[#allocation3 + $0x38] sm:$0xff]  ;;  %v12268_v9 = vld [vmem:[#allocation3 + $0x30] sm:$0xff] }
   0xe   :  { %v12992_v1 = vunpack.c.l.b16 %v12922_v0  ;;  %v12994_v2 = vunpack.c.h.b16 %v12922_v0  ;;  %v12277_v6 = vld [vmem:[#allocation3 + $0x78] sm:$0xff]  ;;  %3520 = vmatpush.bf16.msra.mxu0 %v12269_v5  ;;  %v12276_v10 = vld [vmem:[#allocation3 + $0x70] sm:$0xff]  ;;  %v12267_v13 = vld [vmem:[#allocation3 + $0x28] sm:$0xff] }
   0xf   :  { %v12285_v7 = vld [vmem:[#allocation3 + $0xb8] sm:$0xff]  ;;  %3609 = vmatpush.bf16.msra.mxu1 %v12277_v6  ;;  %v12284_v11 = vld [vmem:[#allocation3 + $0xb0] sm:$0xff]  ;;  %v12275_v14 = vld [vmem:[#allocation3 + $0x68] sm:$0xff] }
  0x10   :  { %v12998_v3 = vpack.c.b16 %v12992_v1, %v12992_v1  ;;  %v13002_v4 = vpack.c.b16 %v12994_v2, %v12994_v2  ;;  %v12293_v8 = vld [vmem:[#allocation3 + $0xf8] sm:$0xff]  ;;  %3698 = vmatpush.bf16.msra.mxu2 %v12285_v7  ;;  %v12292_v12 = vld [vmem:[#allocation3 + $0xf0] sm:$0xff]  ;;  %v12283_v15 = vld [vmem:[#allocation3 + $0xa8] sm:$0xff] }
  0x11   :  { %3787 = vmatpush.bf16.msra.mxu3 %v12293_v8  ;;  %v12291_v16 = vld [vmem:[#allocation3 + $0xe8] sm:$0xff]  ;;  %v12266_v17 = vld [vmem:[#allocation3 + $0x20] sm:$0xff]  ;;  %v12265_v21 = vld [vmem:[#allocation3 + $0x18] sm:$0xff] }
  0x12   :  { %344 = vst [vmem:[#allocation2] sm:$0xff] %v12998_v3  ;;  %3521 = vmatpush.bf16.msra.mxu0 %v12268_v9  ;;  %v12274_v18 = vld [vmem:[#allocation3 + $0x60] sm:$0xff]  ;;  %v12273_v22 = vld [vmem:[#allocation3 + $0x58] sm:$0xff]  ;;  %v12264_v25 = vld [vmem:[#allocation3 + $0x10] sm:$0xff] }
  0x13   :  { %352 = vst [vmem:[#allocation2 + $0x40] sm:$0xff] %v13002_v4  ;;  %3610 = vmatpush.bf16.msra.mxu1 %v12276_v10  ;;  %v12282_v19 = vld [vmem:[#allocation3 + $0xa0] sm:$0xff]  ;;  %v12281_v23 = vld [vmem:[#allocation3 + $0x98] sm:$0xff]  ;;  %v12272_v26 = vld [vmem:[#allocation3 + $0x50] sm:$0xff] }
  0x14   :  { %345 = vst [vmem:[#allocation2 + $0x8] sm:$0xff] %v12998_v3  ;;  %3699 = vmatpush.bf16.msra.mxu2 %v12284_v11  ;;  %v12290_v20 = vld [vmem:[#allocation3 + $0xe0] sm:$0xff]  ;;  %v12289_v24 = vld [vmem:[#allocation3 + $0xd8] sm:$0xff]  ;;  %v12280_v27 = vld [vmem:[#allocation3 + $0x90] sm:$0xff] }
  0x15   :  { %353 = vst [vmem:[#allocation2 + $0x48] sm:$0xff] %v13002_v4  ;;  %3788 = vmatpush.bf16.msra.mxu3 %v12292_v12  ;;  %v12288_v28 = vld [vmem:[#allocation3 + $0xd0] sm:$0xff]  ;;  %v12263_v29 = vld [vmem:[#allocation3 + $0x8] sm:$0xff]  ;;  %v12262_v33 = vld [vmem:[#allocation3] sm:$0xff] }
  0x16   :  { %396 = vst [vmem:[#allocation2 + $0x80] sm:$0xff] %v12998_v3  ;;  %3522 = vmatpush.bf16.msra.mxu0 %v12267_v13  ;;  %v12271_v30 = vld [vmem:[#allocation3 + $0x48] sm:$0xff]  ;;  %v12270_v36 = vld [vmem:[#allocation3 + $0x40] sm:$0xff]  ;;  %v12317_v45 = vld [vmem:[#allocation3 + $0x1b8] sm:$0xff] }
  0x17   :  { %397 = vst [vmem:[#allocation2 + $0x88] sm:$0xff] %v12998_v3  ;;  %3611 = vmatpush.bf16.msra.mxu1 %v12275_v14  ;;  %v12279_v31 = vld [vmem:[#allocation3 + $0x88] sm:$0xff]  ;;  %v12278_v39 = vld [vmem:[#allocation3 + $0x80] sm:$0xff]  ;;  %v12301_v46 = vld [vmem:[#allocation3 + $0x138] sm:$0xff] }
  0x18   :  { %404 = vst [vmem:[#allocation2 + $0xc0] sm:$0xff] %v13002_v4  ;;  %3700 = vmatpush.bf16.msra.mxu2 %v12283_v15  ;;  %v12287_v32 = vld [vmem:[#allocation3 + $0xc8] sm:$0xff]  ;;  %v12286_v42 = vld [vmem:[#allocation3 + $0xc0] sm:$0xff]  ;;  %v12325_v51 = vld [vmem:[#allocation3 + $0x1f8] sm:$0xff] }
  0x19   :  { %405 = vst [vmem:[#allocation2 + $0xc8] sm:$0xff] %v13002_v4  ;;  %3789 = vmatpush.bf16.msra.mxu3 %v12291_v16  ;;  %v9016_v34 = vld [vmem:[#allocation2] sm:$0xf]  ;;  %v12006_v37 = vld [vmem:[#allocation2 + $0x4] sm:$0xf]  ;;  %v12309_v52 = vld [vmem:[#allocation3 + $0x178] sm:$0xff] }
  0x1a   :  { %448 = vst [vmem:[#allocation2 + $0x100] sm:$0xff] %v12998_v3  ;;  %3523 = vmatpush.bf16.msra.mxu0 %v12266_v17  ;;  %v12014_v35 = vld [vmem:[#allocation2 + $0x3c] sm:$0xf0]  ;;  %v9018_v38 = vld [vmem:[#allocation2 + $0x40] sm:$0xf0]  ;;  %v12316_v58 = vld [vmem:[#allocation3 + $0x1b0] sm:$0xff] }
  0x1b   :  { %449 = vst [vmem:[#allocation2 + $0x108] sm:$0xff] %v12998_v3  ;;  %3612 = vmatpush.bf16.msra.mxu1 %v12274_v18  ;;  %v9024_v40 = vld [vmem:[#allocation2 + $0x8] sm:$0xf]  ;;  %v12007_v43 = vld [vmem:[#allocation2 + $0xc] sm:$0xf]  ;;  %v9017_v47 = vor.u32 %v12014_v35, %v9016_v34  ;;  %v9021_v48 = vor.u32 %v12006_v37, %v9018_v38  ;;  %v12300_v59 = vld [vmem:[#allocation3 + $0x130] sm:$0xff] }
  0x1c   :  { %456 = vst [vmem:[#allocation2 + $0x140] sm:$0xff] %v13002_v4  ;;  %3701 = vmatpush.bf16.msra.mxu2 %v12282_v19  ;;  %v12015_v41 = vld [vmem:[#allocation2 + $0x44] sm:$0xf0]  ;;  %v9026_v44 = vld [vmem:[#allocation2 + $0x48] sm:$0xf0]  ;;  %v12324_v61 = vld [vmem:[#allocation3 + $0x1f0] sm:$0xff] }
  0x1d   :  { %457 = vst [vmem:[#allocation2 + $0x148] sm:$0xff] %v13002_v4  ;;  %3790 = vmatpush.bf16.msra.mxu3 %v12290_v20  ;;  %v9025_v49 = vor.u32 %v12015_v41, %v9024_v40  ;;  %v9029_v50 = vor.u32 %v12007_v43, %v9026_v44  ;;  %v9080_v53 = vld [vmem:[#allocation2 + $0x80] sm:$0xf]  ;;  %v12022_v55 = vld [vmem:[#allocation2 + $0x84] sm:$0xf]  ;;  %v12308_v62 = vld [vmem:[#allocation3 + $0x170] sm:$0xff] }
  0x1e   :  { %488 = vst [vmem:[#allocation2 + $0x180] sm:$0xff] %v12998_v3  ;;  %3524 = vmatpush.bf16.msra.mxu0 %v12265_v21  ;;  %v9088_v57 = vld [vmem:[#allocation2 + $0x88] sm:$0xf]  ;;  %v12023_v60 = vld [vmem:[#allocation2 + $0x8c] sm:$0xf]  ;;  %v12807_v17 = vld [vmem:[%s14136_s0 + $0x40] sm:$0xff]  }
  0x1f   :  { %489 = vst [vmem:[#allocation2 + $0x188] sm:$0xff] %v12998_v3  ;;  %3613 = vmatpush.bf16.msra.mxu1 %v12273_v22  ;;  %v12030_v54 = vld [vmem:[#allocation2 + $0xbc] sm:$0xf0]  ;;  %v9082_v56 = vld [vmem:[#allocation2 + $0xc0] sm:$0xf0]  ;;  %v12752_v18 = vunpack.c.l.b16 %v12807_v17  ;;  %v12753_v19 = vunpack.c.h.b16 %v12807_v17  ;;  %v12315_v38 = vld [vmem:[#allocation3 + $0x1a8] sm:$0xff] }
  0x20   :  { %496 = vst [vmem:[#allocation2 + $0x1c0] sm:$0xff] %v13002_v4  ;;  %3702 = vmatpush.bf16.msra.mxu2 %v12281_v23  ;;  %v12031_v63 = vld [vmem:[#allocation2 + $0xc4] sm:$0xf0]  ;;  %v9090_v0 = vld [vmem:[#allocation2 + $0xc8] sm:$0xf0]  ;;  %v9081_v13 = vor.u32 %v12030_v54, %v9080_v53  ;;  %v9085_v14 = vor.u32 %v12022_v55, %v9082_v56 }
  0x21   :  { %497 = vst [vmem:[#allocation2 + $0x1c8] sm:$0xff] %v13002_v4  ;;  %3791 = vmatpush.bf16.msra.mxu3 %v12289_v24  ;;  %v9089_v15 = vor.u32 %v12031_v63, %v9088_v57  ;;  %v9093_v16 = vor.u32 %v12023_v60, %v9090_v0  ;;  %v319_v20 = vpack.c.b16 %v12752_v18, %v12992_v1  ;;  %v11964_v21 = vld [vmem:[%s14136_s0 + $0x4c] sm:$0xf0]  ;;  %v11965_v23 = vld [vmem:[%s14136_s0 + $0x50] sm:$0xf0]  ;;  %v12323_v40 = vld [vmem:[#allocation3 + $0x1e8] sm:$0xff] }
  0x22   :  { %866 = vst [vmem:[#allocation2 + $0x630] sm:$0xff] %v12998_v3  ;;  %3525 = vmatpush.bf16.msra.mxu0 %v12264_v25  ;;  %v326_v22 = vpack.c.b16 %v12753_v19, %v12994_v2  ;;  %v9144_v25 = vld [vmem:[#allocation2 + $0x100] sm:$0xf]  ;;  %v12307_v41 = vld [vmem:[#allocation3 + $0x168] sm:$0xff]  ;;  %v8864_v43 = vld [vmem:[%s14136_s0 + $0x5c] sm:$0xf] }
  0x23   :  { %867 = vst [vmem:[#allocation2 + $0x638] sm:$0xff] %v12998_v3  ;;  %3614 = vmatpush.bf16.msra.mxu1 %v12272_v26  ;;  %v12046_v26 = vld [vmem:[#allocation2 + $0x13c] sm:$0xf0]  ;;  %v8876_v60 = vld [vmem:[%s14136_s0 + $0x68] sm:$0xf] }
  0x24   :  { %874 = vst [vmem:[#allocation2 + $0x670] sm:$0xff] %v13002_v4  ;;  %3703 = vmatpush.bf16.msra.mxu2 %v12280_v27  ;;  %v9145_v34 = vor.u32 %v12046_v26, %v9144_v25  ;;  %v11966_v44 = vld [vmem:[%s14136_s0 + $0x5c] sm:$0xf0]  ;;  %v11969_v63 = vld [vmem:[%s14136_s0 + $0x70] sm:$0xf0] }
  0x25   :  { %875 = vst [vmem:[#allocation2 + $0x678] sm:$0xff] %v13002_v4  ;;  %3792 = vmatpush.bf16.msra.mxu3 %v12288_v28  ;;  %v12038_v28 = vld [vmem:[#allocation2 + $0x104] sm:$0xf] }
  0x26   :  { %894 = vst [vmem:[#allocation2 + $0x6b0] sm:$0xff] %v12998_v3  ;;  %3526 = vmatpush.bf16.msra.mxu0 %v12263_v29  ;;  %v9146_v29 = vld [vmem:[#allocation2 + $0x140] sm:$0xf0]  ;;  %v12055_v54 = vld [vmem:[#allocation2 + $0x18c] sm:$0xf] }
  0x27   :  { %895 = vst [vmem:[#allocation2 + $0x6b8] sm:$0xff] %v12998_v3  ;;  %3615 = vmatpush.bf16.msra.mxu1 %v12271_v30  ;;  %v9152_v30 = vld [vmem:[#allocation2 + $0x108] sm:$0xf]  ;;  %v9149_v35 = vor.u32 %v12038_v28, %v9146_v29  ;;  %v12298_v25 = vld [vmem:[#allocation3 + $0x120] sm:$0xff]  ;;  %v12808_v28 = vld [vmem:[%s14136_s0 + $0x78] sm:$0xff]  }
  0x28   :  { %902 = vst [vmem:[#allocation2 + $0x6f0] sm:$0xff] %v13002_v4  ;;  %3704 = vmatpush.bf16.msra.mxu2 %v12279_v31  ;;  %v12047_v31 = vld [vmem:[#allocation2 + $0x144] sm:$0xf0]  ;;  %v9218_v55 = vld [vmem:[#allocation2 + $0x1c8] sm:$0xf0]  ;;  %v12322_v26 = vld [vmem:[#allocation3 + $0x1e0] sm:$0xff]  ;;  %v12756_v29 = vunpack.c.l.b16 %v12808_v28 }
  0x29   :  { %903 = vst [vmem:[#allocation2 + $0x6f8] sm:$0xff] %v13002_v4  ;;  %3793 = vmatpush.bf16.msra.mxu3 %v12287_v32  ;;  %v12039_v32 = vld [vmem:[#allocation2 + $0x10c] sm:$0xf]  ;;  %v12063_v53 = vld [vmem:[#allocation2 + $0x1c4] sm:$0xf0] }
  0x2a   :  { %922 = vst [vmem:[#allocation2 + $0x730] sm:$0xff] %v12998_v3  ;;  %3527 = vmatpush.bf16.msra.mxu0 %v12262_v33  ;;  %v9154_v33 = vld [vmem:[#allocation2 + $0x148] sm:$0xf0] }
  0x2b   :  { %923 = vst [vmem:[#allocation2 + $0x738] sm:$0xff] %v12998_v3  ;;  %3616 = vmatpush.bf16.msra.mxu1 %v12270_v36  ;;  %v9153_v36 = vor.u32 %v12047_v31, %v9152_v30  ;;  %v9157_v37 = vor.u32 %v12039_v32, %v9154_v33  ;;  %v12757_v30 = vunpack.c.h.b16 %v12808_v28  ;;  %v477_v31 = vpack.c.b16 %v12992_v1, %v12756_v29 }
  0x2c   :  { %930 = vst [vmem:[#allocation2 + $0x770] sm:$0xff] %v13002_v4  ;;  %3705 = vmatpush.bf16.msra.mxu2 %v12278_v39  ;;  %v12299_v39 = vld [vmem:[#allocation3 + $0x128] sm:$0xff] }
  0x2d   :  { %931 = vst [vmem:[#allocation2 + $0x778] sm:$0xff] %v13002_v4  ;;  %3794 = vmatpush.bf16.msra.mxu3 %v12286_v42  ;;  %3528 = vmatmul.bf16.vlgmr.msra.gmra.mxu0 %v9017_v47  ;;  %v8852_v42 = vld [vmem:[%s14136_s0 + $0x58] sm:$0xf]  ;;  %v480_v32 = vpack.c.b16 %v12994_v2, %v12757_v30 }
  0x2e   :  { %946 = vst [vmem:[#allocation2 + $0x7b0] sm:$0xff] %v12998_v3  ;;  %3876 = vmatpush.bf16.msrb.mxu0 %v12301_v46  ;;  %3617 = vmatmul.bf16.vlgmr.msra.gmra.mxu1 %v9021_v48  ;;  %v8853_v46 = vor.u32 %v11966_v44, %v8852_v42  ;;  %v9208_v48 = vld [vmem:[#allocation2 + $0x180] sm:$0xf] }
  0x2f   :  { %947 = vst [vmem:[#allocation2 + $0x7b8] sm:$0xff] %v12998_v3  ;;  %3706 = vmatmul.bf16.vlgmr.msra.gmra.mxu2 %v9025_v49  ;;  %3965 = vmatpush.bf16.msrb.mxu1 %v12309_v52  ;;  %v12062_v49 = vld [vmem:[#allocation2 + $0x1bc] sm:$0xf0]  ;;  %v9216_v52 = vld [vmem:[#allocation2 + $0x188] sm:$0xf] }
  0x30   :  { %954 = vst [vmem:[#allocation2 + $0x7f0] sm:$0xff] %v13002_v4  ;;  %4054 = vmatpush.bf16.msrb.mxu2 %v12317_v45  ;;  %3795 = vmatmul.bf16.vlgmr.msra.gmra.mxu3 %v9029_v50  ;;  %v11967_v45 = vld [vmem:[%s14136_s0 + $0x60] sm:$0xf0]  ;;  %v9209_v56 = vor.u32 %v12062_v49, %v9208_v48  ;;  %v8896_v48 = vld [vmem:[%s14136_s0 + $0xc8] sm:$0xf] }
  0x31   :  { %955 = vst [vmem:[#allocation2 + $0x7f8] sm:$0xff] %v13002_v4  ;;  %4143 = vmatpush.bf16.msrb.mxu3 %v12325_v51  ;;  %v8865_v47 = vor.u32 %v11967_v45, %v8864_v43  ;;  %v12054_v50 = vld [vmem:[#allocation2 + $0x184] sm:$0xf]  ;;  %v11976_v49 = vld [vmem:[%s14136_s0 + $0xcc] sm:$0xf0] }
  0x32   :  { %5100 = vst [vmem:[#allocation2] sm:$0xff] %v12998_v3  ;;  %3877 = vmatpush.bf16.msrb.mxu0 %v12300_v59  ;;  %v9210_v51 = vld [vmem:[#allocation2 + $0x1c0] sm:$0xf0]  ;;  %v9221_v59 = vor.u32 %v12055_v54, %v9218_v55 }
  0x33   :  { %5108 = vst [vmem:[#allocation2 + $0x40] sm:$0xff] %v13002_v4  ;;  %3966 = vmatpush.bf16.msrb.mxu1 %v12308_v62  ;;  %v9213_v57 = vor.u32 %v12054_v50, %v9210_v51  ;;  %v11968_v62 = vld [vmem:[%s14136_s0 + $0x6c] sm:$0xf0]  ;;  %v12811_v45 = vld [vmem:[%s14136_s0 + $0xc0] sm:$0xff]  }
  0x34   :  { %5101 = vst [vmem:[#allocation2 + $0x8] sm:$0xff] %v12998_v3  ;;  %4055 = vmatpush.bf16.msrb.mxu2 %v12316_v58  ;;  %v9217_v58 = vor.u32 %v12063_v53, %v9216_v52  ;;  %v8877_v0 = vor.u32 %v11968_v62, %v8876_v60  ;;  %v8904_v52 = vld [vmem:[%s14136_s0 + $0xcc] sm:$0xf]  ;;  %v11977_v53 = vld [vmem:[%s14136_s0 + $0xd0] sm:$0xf0] }
  0x35   :  { %5109 = vst [vmem:[#allocation2 + $0x48] sm:$0xff] %v13002_v4  ;;  %4144 = vmatpush.bf16.msrb.mxu3 %v12324_v61  ;;  %v8888_v61 = vld [vmem:[%s14136_s0 + $0x6c] sm:$0xf] }
  0x36   :  { %5140 = vst [vmem:[#allocation2 + $0x80] sm:$0xff] %v12998_v3  ;;  %3878 = vmatpush.bf16.msrb.mxu0 %v12299_v39 }
  0x37   :  { %5148 = vst [vmem:[#allocation2 + $0xc0] sm:$0xff] %v13002_v4  ;;  %3967 = vmatpush.bf16.msrb.mxu1 %v12307_v41 }
  0x38   :  { %5141 = vst [vmem:[#allocation2 + $0x88] sm:$0xff] %v12998_v3  ;;  %4056 = vmatpush.bf16.msrb.mxu2 %v12315_v38 }
  0x39   :  { %v13043_v5 = vld [vmem:[#allocation2 + $0x4] sm:$0xf]  ;;  %v13045_v6 = vld [vmem:[#allocation2] sm:$0xf]  ;;  %5149 = vst [vmem:[#allocation2 + $0xc8] sm:$0xff] %v13002_v4  ;;  %4145 = vmatpush.bf16.msrb.mxu3 %v12323_v40 }
  0x3a   :  { %14148 = vst [vmem:[#allocation10_spill] sm:$0xff] %v13043_v5  ;;  %v13048_v7 = vld [vmem:[#allocation2 + $0x40] sm:$0xf0]  ;;  %v13050_v8 = vld [vmem:[#allocation2 + $0x3c] sm:$0xf0]  ;;  %3879 = vmatpush.bf16.msrb.mxu0 %v12298_v25  ;;  %v12305_v25 = vld [vmem:[#allocation3 + $0x158] sm:$0xff] }
  0x3b   :  { %14149 = vst [vmem:[#allocation11_spill] sm:$0xff] %v13045_v6  ;;  %v13054_v9 = vld [vmem:[#allocation2 + $0xc] sm:$0xf]  ;;  %v13056_v10 = vld [vmem:[#allocation2 + $0x8] sm:$0xf] }
  0x3c   :  { %14150 = vst [vmem:[#allocation12_spill] sm:$0xff] %v13048_v7  ;;  %v13058_v11 = vld [vmem:[#allocation2 + $0x48] sm:$0xf0]  ;;  %v13060_v12 = vld [vmem:[#allocation2 + $0x44] sm:$0xf0] }
  0x3d   :  { %14151 = vst [vmem:[#allocation13_spill] sm:$0xff] %v13050_v8  ;;  %3533 = vmatmul.bf16.gmra.mxu0 %v9081_v13  ;;  %v8889_v13 = vor.u32 %v11969_v63, %v8888_v61  ;;  %4146 = vmatpush.bf16.msrb.mxu3 %v12322_v26 }
  0x3e   :  { %7148 = vst [vmem:[#allocation2] sm:$0xff] %v12998_v3  ;;  %3622 = vmatmul.bf16.gmra.mxu1 %v9085_v14 }
  0x3f   :  { %7156 = vst [vmem:[#allocation2 + $0x40] sm:$0xff] %v13002_v4  ;;  %3711 = vmatmul.bf16.gmra.mxu2 %v9089_v15 }
  0x40   :  { %14152 = vst [vmem:[#allocation14_spill] sm:$0xff] %v13054_v9  ;;  %3800 = vmatmul.bf16.gmra.mxu3 %v9093_v16  ;;  %v12344_v9 = vld [vmem:[#allocation3 + $0x290] sm:$0xff] }
  0x41   :  { %14153 = vst [vmem:[#allocation15_spill] sm:$0xff] %v13056_v10 }
  0x42   :  { %14154 = vst [vmem:[#allocation16_spill] sm:$0xff] %v13058_v11 }
  0x43   :  { %14155 = vst [vmem:[#allocation17_spill] sm:$0xff] %v13060_v12 }
  0x44   :  { %7149 = vst [vmem:[#allocation2 + $0x8] sm:$0xff] %v12998_v3  ;;  %v8828_v3 = vld [vmem:[%s14136_s0 + $0x48] sm:$0xf] }
  0x45   :  { %7157 = vst [vmem:[#allocation2 + $0x48] sm:$0xff] %v13002_v4  ;;  %v8840_v4 = vld [vmem:[%s14136_s0 + $0x4c] sm:$0xf]  ;;  %v8829_v24 = vor.u32 %v11964_v21, %v8828_v3 }
  0x46   :  { %348 = vst [vmem:[#allocation2 + $0x20] sm:$0xff] %v319_v20  ;;  %v8841_v27 = vor.u32 %v11965_v23, %v8840_v4 }
  0x47   :  { %356 = vst [vmem:[#allocation2 + $0x60] sm:$0xff] %v326_v22 }
  0x48   :  { %544 = vst [vmem:[#allocation2 + $0x200] sm:$0xff] %v319_v20 }
  0x49   :  { %552 = vst [vmem:[#allocation2 + $0x240] sm:$0xff] %v326_v22 }
  0x4a   :  { %545 = vst [vmem:[#allocation2 + $0x208] sm:$0xff] %v8829_v24 }
  0x4b   :  { %553 = vst [vmem:[#allocation2 + $0x248] sm:$0xff] %v8841_v27 }
  0x4c   :  { %349 = vst [vmem:[#allocation2 + $0x28] sm:$0xff] %v8829_v24 }
  0x4d   :  { %357 = vst [vmem:[#allocation2 + $0x68] sm:$0xff] %v8841_v27  ;;  %3538 = vmatmul.bf16.gmra.mxu0 %v9145_v34 }
  0x4e   :  { %400 = vst [vmem:[#allocation2 + $0xa0] sm:$0xff] %v8829_v24  ;;  %3627 = vmatmul.bf16.gmra.mxu1 %v9149_v35 }
  0x4f   :  { %408 = vst [vmem:[#allocation2 + $0xe0] sm:$0xff] %v8841_v27  ;;  %3716 = vmatmul.bf16.gmra.mxu2 %v9153_v36  ;;  %v9272_v14 = vld [vmem:[#allocation2 + $0x200] sm:$0xf]  ;;  %v12070_v15 = vld [vmem:[#allocation2 + $0x204] sm:$0xf] }
  0x50   :  { %584 = vst [vmem:[#allocation2 + $0x280] sm:$0xff] %v8829_v24  ;;  %3805 = vmatmul.bf16.gmra.mxu3 %v9157_v37  ;;  %v12078_v16 = vld [vmem:[#allocation2 + $0x23c] sm:$0xf0]  ;;  %v9274_v17 = vld [vmem:[#allocation2 + $0x240] sm:$0xf0] }
  0x51   :  { %592 = vst [vmem:[#allocation2 + $0x2c0] sm:$0xff] %v8841_v27  ;;  %v9280_v18 = vld [vmem:[#allocation2 + $0x208] sm:$0xf]  ;;  %v12071_v19 = vld [vmem:[#allocation2 + $0x20c] sm:$0xf]  ;;  %v9273_v4 = vor.u32 %v12078_v16, %v9272_v14  ;;  %v9277_v21 = vor.u32 %v12070_v15, %v9274_v17  ;;  %v12314_v24 = vld [vmem:[#allocation3 + $0x1a0] sm:$0xff] }
  0x52   :  { %585 = vst [vmem:[#allocation2 + $0x288] sm:$0xff] %v8853_v46  ;;  %v12079_v20 = vld [vmem:[#allocation2 + $0x244] sm:$0xf0]  ;;  %v9282_v3 = vld [vmem:[#allocation2 + $0x248] sm:$0xf0]  ;;  %v12306_v27 = vld [vmem:[#allocation3 + $0x160] sm:$0xff]  ;;  %4057 = vmatpush.bf16.msrb.mxu2 %v12314_v24 }
  0x53   :  { %593 = vst [vmem:[#allocation2 + $0x2c8] sm:$0xff] %v8865_v47  ;;  %v9281_v22 = vor.u32 %v12079_v20, %v9280_v18  ;;  %v9285_v23 = vor.u32 %v12071_v19, %v9282_v3  ;;  %3968 = vmatpush.bf16.msrb.mxu1 %v12306_v27  ;;  %v12313_v16 = vld [vmem:[#allocation3 + $0x198] sm:$0xff]  ;;  %v11978_v3 = vld [vmem:[%s14136_s0 + $0xdc] sm:$0xf0] }
  0x54   :  { %401 = vst [vmem:[#allocation2 + $0xa8] sm:$0xff] %v8853_v46  ;;  %v12297_v17 = vld [vmem:[#allocation3 + $0x118] sm:$0xff] }
  0x55   :  { %409 = vst [vmem:[#allocation2 + $0xe8] sm:$0xff] %v8865_v47  ;;  %v12321_v18 = vld [vmem:[#allocation3 + $0x1d8] sm:$0xff]  ;;  %3880 = vmatpush.bf16.msrb.mxu0 %v12297_v17 }
  0x56   :  { %452 = vst [vmem:[#allocation2 + $0x120] sm:$0xff] %v8853_v46  ;;  %4058 = vmatpush.bf16.msrb.mxu2 %v12313_v16  ;;  %4147 = vmatpush.bf16.msrb.mxu3 %v12321_v18  ;;  %v8912_v19 = vld [vmem:[%s14136_s0 + $0xd8] sm:$0xf]  ;;  %v8920_v20 = vld [vmem:[%s14136_s0 + $0xdc] sm:$0xf] }
  0x57   :  { %460 = vst [vmem:[#allocation2 + $0x160] sm:$0xff] %v8865_v47  ;;  %v9336_v33 = vld [vmem:[#allocation2 + $0x280] sm:$0xf]  ;;  %v12086_v35 = vld [vmem:[#allocation2 + $0x284] sm:$0xf]  ;;  %3969 = vmatpush.bf16.msrb.mxu1 %v12305_v25 }
  0x58   :  { %624 = vst [vmem:[#allocation2 + $0x300] sm:$0xff] %v8853_v46  ;;  %v12094_v34 = vld [vmem:[#allocation2 + $0x2bc] sm:$0xf0]  ;;  %v9338_v36 = vld [vmem:[#allocation2 + $0x2c0] sm:$0xf0]  ;;  %v12768_v46 = vunpack.c.l.b16 %v12811_v45 }
  0x59   :  { %632 = vst [vmem:[#allocation2 + $0x340] sm:$0xff] %v8865_v47  ;;  %v9344_v37 = vld [vmem:[#allocation2 + $0x288] sm:$0xf]  ;;  %v12087_v39 = vld [vmem:[#allocation2 + $0x28c] sm:$0xf]  ;;  %v9337_v41 = vor.u32 %v12094_v34, %v9336_v33  ;;  %v9341_v42 = vor.u32 %v12086_v35, %v9338_v36  ;;  %v12769_v47 = vunpack.c.h.b16 %v12811_v45 }
  0x5a   :  { %625 = vst [vmem:[#allocation2 + $0x308] sm:$0xff] %v8877_v0  ;;  %v12095_v38 = vld [vmem:[#allocation2 + $0x2c4] sm:$0xf0]  ;;  %v9346_v40 = vld [vmem:[#allocation2 + $0x2c8] sm:$0xf0]  ;;  %v528_v50 = vpack.c.b16 %v12768_v46, %v12992_v1 }
  0x5b   :  { %633 = vst [vmem:[#allocation2 + $0x348] sm:$0xff] %v8889_v13  ;;  %v9345_v43 = vor.u32 %v12095_v38, %v9344_v37  ;;  %v9349_v44 = vor.u32 %v12087_v39, %v9346_v40  ;;  %v532_v51 = vpack.c.b16 %v12769_v47, %v12994_v2  ;;  %v8928_v36 = vld [vmem:[%s14136_s0 + $0xe8] sm:$0xf]  ;;  %v8936_v37 = vld [vmem:[%s14136_s0 + $0xec] sm:$0xf] }
  0x5c   :  { %453 = vst [vmem:[#allocation2 + $0x128] sm:$0xff] %v8877_v0  ;;  %v11980_v38 = vld [vmem:[%s14136_s0 + $0xec] sm:$0xf0]  ;;  %v11981_v39 = vld [vmem:[%s14136_s0 + $0xf0] sm:$0xf0] }
  0x5d   :  { %3543 = vmatmul.bf16.gmra.mxu0 %v9209_v56  ;;  %461 = vst [vmem:[#allocation2 + $0x168] sm:$0xff] %v8889_v13  ;;  %v8897_v56 = vor.u32 %v11976_v49, %v8896_v48  ;;  %v8929_v40 = vor.u32 %v11980_v38, %v8928_v36 }
  0x5e   :  { %3632 = vmatmul.bf16.gmra.mxu1 %v9213_v57  ;;  %492 = vst [vmem:[#allocation2 + $0x1a0] sm:$0xff] %v8877_v0 }
  0x5f   :  { %3721 = vmatmul.bf16.gmra.mxu2 %v9217_v58  ;;  %500 = vst [vmem:[#allocation2 + $0x1e0] sm:$0xff] %v8889_v13  ;;  %v9400_v54 = vld [vmem:[#allocation2 + $0x300] sm:$0xf]  ;;  %v12102_v57 = vld [vmem:[#allocation2 + $0x304] sm:$0xf] }
  0x60   :  { %3810 = vmatmul.bf16.gmra.mxu3 %v9221_v59  ;;  %656 = vst [vmem:[#allocation2 + $0x380] sm:$0xff] %v8877_v0  ;;  %v12110_v55 = vld [vmem:[#allocation2 + $0x33c] sm:$0xf0]  ;;  %v9402_v58 = vld [vmem:[#allocation2 + $0x340] sm:$0xf0]  ;;  %v8905_v59 = vor.u32 %v11977_v53, %v8904_v52 }
  0x61   :  { %664 = vst [vmem:[#allocation2 + $0x3c0] sm:$0xff] %v8889_v13  ;;  %v9408_v60 = vld [vmem:[#allocation2 + $0x308] sm:$0xf]  ;;  %v12103_v61 = vld [vmem:[#allocation2 + $0x30c] sm:$0xf]  ;;  %v9401_v0 = vor.u32 %v12110_v55, %v9400_v54  ;;  %v9405_v13 = vor.u32 %v12102_v57, %v9402_v58 }
  0x62   :  { %657 = vst [vmem:[#allocation2 + $0x388] sm:$0xff] %v477_v31  ;;  %v12111_v62 = vld [vmem:[#allocation2 + $0x344] sm:$0xf0]  ;;  %v9410_v63 = vld [vmem:[#allocation2 + $0x348] sm:$0xf0] }
  0x63   :  { %665 = vst [vmem:[#allocation2 + $0x3c8] sm:$0xff] %v480_v32  ;;  %v9409_v14 = vor.u32 %v12111_v62, %v9408_v60  ;;  %v9413_v15 = vor.u32 %v12103_v61, %v9410_v63  ;;  %v12296_v60 = vld [vmem:[#allocation3 + $0x110] sm:$0xff]  ;;  %v12812_v62 = vld [vmem:[%s14136_s0 + $0xf8] sm:$0xff]  }
  0x64   :  { %493 = vst [vmem:[#allocation2 + $0x1a8] sm:$0xff] %v477_v31  ;;  %v12320_v61 = vld [vmem:[#allocation3 + $0x1d0] sm:$0xff]  ;;  %3881 = vmatpush.bf16.msrb.mxu0 %v12296_v60  ;;  %v12772_v63 = vunpack.c.l.b16 %v12812_v62 }
  0x65   :  { %501 = vst [vmem:[#allocation2 + $0x1e8] sm:$0xff] %v480_v32  ;;  %4148 = vmatpush.bf16.msrb.mxu3 %v12320_v61 }
  0x66   :  { %712 = vst [vmem:[#allocation2 + $0x400] sm:$0xff] %v528_v50  ;;  %v648_v18 = vpack.c.b16 %v12992_v1, %v12772_v63 }
  0x67   :  { %720 = vst [vmem:[#allocation2 + $0x440] sm:$0xff] %v532_v51  ;;  %v12118_v26 = vld [vmem:[#allocation2 + $0x384] sm:$0xf] }
  0x68   :  { %548 = vst [vmem:[#allocation2 + $0x220] sm:$0xff] %v528_v50  ;;  %v12126_v24 = vld [vmem:[#allocation2 + $0x3bc] sm:$0xf0]  ;;  %v9466_v27 = vld [vmem:[#allocation2 + $0x3c0] sm:$0xf0] }
  0x69   :  { %556 = vst [vmem:[#allocation2 + $0x260] sm:$0xff] %v532_v51  ;;  %v9472_v28 = vld [vmem:[#allocation2 + $0x388] sm:$0xf]  ;;  %v12119_v30 = vld [vmem:[#allocation2 + $0x38c] sm:$0xf]  ;;  %v9469_v33 = vor.u32 %v12118_v26, %v9466_v27 }
  0x6a   :  { %713 = vst [vmem:[#allocation2 + $0x408] sm:$0xff] %v8897_v56  ;;  %v12127_v29 = vld [vmem:[#allocation2 + $0x3c4] sm:$0xf0]  ;;  %v9474_v31 = vld [vmem:[#allocation2 + $0x3c8] sm:$0xf0] }
  0x6b   :  { %721 = vst [vmem:[#allocation2 + $0x448] sm:$0xff] %v8905_v59  ;;  %v9473_v34 = vor.u32 %v12127_v29, %v9472_v28  ;;  %v9477_v35 = vor.u32 %v12119_v30, %v9474_v31 }
  0x6c   :  { %549 = vst [vmem:[#allocation2 + $0x228] sm:$0xff] %v8897_v56 }
  0x6d   :  { %3548 = vmatmul.bf16.gmra.mxu0 %v9273_v4  ;;  %557 = vst [vmem:[#allocation2 + $0x268] sm:$0xff] %v8905_v59  ;;  %v11979_v4 = vld [vmem:[%s14136_s0 + $0xe0] sm:$0xf0] }
  0x6e   :  { %3637 = vmatmul.bf16.gmra.mxu1 %v9277_v21  ;;  %588 = vst [vmem:[#allocation2 + $0x2a0] sm:$0xff] %v8897_v56  ;;  %v8913_v21 = vor.u32 %v11978_v3, %v8912_v19  ;;  %v12142_v45 = vld [vmem:[#allocation2 + $0x43c] sm:$0xf0]  ;;  %v9530_v46 = vld [vmem:[#allocation2 + $0x440] sm:$0xf0] }
  0x6f   :  { %3726 = vmatmul.bf16.gmra.mxu2 %v9281_v22  ;;  %596 = vst [vmem:[#allocation2 + $0x2e0] sm:$0xff] %v8905_v59  ;;  %v8921_v22 = vor.u32 %v11979_v4, %v8920_v20 }
  0x70   :  { %3815 = vmatmul.bf16.gmra.mxu3 %v9285_v23  ;;  %752 = vst [vmem:[#allocation2 + $0x480] sm:$0xff] %v8897_v56  ;;  %v9464_v23 = vld [vmem:[#allocation2 + $0x380] sm:$0xf] }
  0x71   :  { %760 = vst [vmem:[#allocation2 + $0x4c0] sm:$0xff] %v8905_v59  ;;  %v9465_v32 = vor.u32 %v12126_v24, %v9464_v23  ;;  %v9536_v47 = vld [vmem:[#allocation2 + $0x408] sm:$0xf]  ;;  %v12135_v48 = vld [vmem:[#allocation2 + $0x40c] sm:$0xf]  ;;  %v12312_v59 = vld [vmem:[#allocation3 + $0x190] sm:$0xff] }
  0x72   :  { %753 = vst [vmem:[#allocation2 + $0x488] sm:$0xff] %v8913_v21  ;;  %v12143_v49 = vld [vmem:[#allocation2 + $0x444] sm:$0xf0]  ;;  %v9538_v50 = vld [vmem:[#allocation2 + $0x448] sm:$0xf0]  ;;  %4059 = vmatpush.bf16.msrb.mxu2 %v12312_v59 }
  0x73   :  { %761 = vst [vmem:[#allocation2 + $0x4c8] sm:$0xff] %v8921_v22  ;;  %v9537_v55 = vor.u32 %v12143_v49, %v9536_v47  ;;  %v9541_v56 = vor.u32 %v12135_v48, %v9538_v50  ;;  %v8944_v48 = vld [vmem:[%s14136_s0 + $0x148] sm:$0xf]  ;;  %v11988_v49 = vld [vmem:[%s14136_s0 + $0x14c] sm:$0xf0] }
  0x74   :  { %589 = vst [vmem:[#allocation2 + $0x2a8] sm:$0xff] %v8913_v21  ;;  %v8945_v61 = vor.u32 %v11988_v49, %v8944_v48  ;;  %v12303_v49 = vld [vmem:[#allocation3 + $0x148] sm:$0xff] }
  0x75   :  { %597 = vst [vmem:[#allocation2 + $0x2e8] sm:$0xff] %v8921_v22 }
  0x76   :  { %628 = vst [vmem:[#allocation2 + $0x320] sm:$0xff] %v8913_v21 }
  0x77   :  { %636 = vst [vmem:[#allocation2 + $0x360] sm:$0xff] %v8921_v22  ;;  %v9592_v4 = vld [vmem:[#allocation2 + $0x480] sm:$0xf]  ;;  %v12150_v24 = vld [vmem:[#allocation2 + $0x484] sm:$0xf] }
  0x78   :  { %792 = vst [vmem:[#allocation2 + $0x500] sm:$0xff] %v8913_v21  ;;  %v12158_v21 = vld [vmem:[#allocation2 + $0x4bc] sm:$0xf0]  ;;  %v9594_v25 = vld [vmem:[#allocation2 + $0x4c0] sm:$0xf0] }
  0x79   :  { %800 = vst [vmem:[#allocation2 + $0x540] sm:$0xff] %v8921_v22  ;;  %v12304_v22 = vld [vmem:[#allocation3 + $0x150] sm:$0xff]  ;;  %v9600_v26 = vld [vmem:[#allocation2 + $0x488] sm:$0xf]  ;;  %v12151_v28 = vld [vmem:[#allocation2 + $0x48c] sm:$0xf] }
  0x7a   :  { %793 = vst [vmem:[#allocation2 + $0x508] sm:$0xff] %v8929_v40  ;;  %v12159_v27 = vld [vmem:[#allocation2 + $0x4c4] sm:$0xf0]  ;;  %3970 = vmatpush.bf16.msrb.mxu1 %v12304_v22  ;;  %v9602_v29 = vld [vmem:[#allocation2 + $0x4c8] sm:$0xf0] }
  0x7b   :  { %629 = vst [vmem:[#allocation2 + $0x328] sm:$0xff] %v8929_v40  ;;  %v9605_v38 = vor.u32 %v12151_v28, %v9602_v29  ;;  %v12311_v29 = vld [vmem:[#allocation3 + $0x188] sm:$0xff] }
  0x7c   :  { %660 = vst [vmem:[#allocation2 + $0x3a0] sm:$0xff] %v8929_v40  ;;  %4060 = vmatpush.bf16.msrb.mxu2 %v12311_v29 }
  0x7d   :  { %3553 = vmatmul.bf16.gmra.mxu0 %v9337_v41  ;;  %v8937_v41 = vor.u32 %v11981_v39, %v8936_v37  ;;  %824 = vst [vmem:[#allocation2 + $0x580] sm:$0xff] %v8929_v40  ;;  %v9601_v37 = vor.u32 %v12159_v27, %v9600_v26 }
  0x7e   :  { %3642 = vmatmul.bf16.gmra.mxu1 %v9341_v42  ;;  %v9528_v42 = vld [vmem:[#allocation2 + $0x400] sm:$0xf]  ;;  %825 = vst [vmem:[#allocation2 + $0x588] sm:$0xff] %v648_v18 }
  0x7f   :  { %3731 = vmatmul.bf16.gmra.mxu2 %v9345_v43  ;;  %v12134_v43 = vld [vmem:[#allocation2 + $0x404] sm:$0xf]  ;;  %801 = vst [vmem:[#allocation2 + $0x548] sm:$0xff] %v8937_v41  ;;  %v9529_v51 = vor.u32 %v12142_v45, %v9528_v42  ;;  %v9656_v59 = vld [vmem:[#allocation2 + $0x500] sm:$0xf]  ;;  %3971 = vmatpush.bf16.msrb.mxu1 %v12303_v49 }
  0x80   :  { %3820 = vmatmul.bf16.gmra.mxu3 %v9349_v44  ;;  %v13154_v44 = vld [vmem:[%s14138_s2] ss:$0 sm:$0xff]  ;;  %637 = vst [vmem:[#allocation2 + $0x368] sm:$0xff] %v8937_v41  ;;  %v9533_v52 = vor.u32 %v12134_v43, %v9530_v46  ;;  %v12166_v63 = vld [vmem:[#allocation2 + $0x504] sm:$0xf] }
  0x81   :  { %668 = vst [vmem:[#allocation2 + $0x3e0] sm:$0xff] %v8937_v41  ;;  %v12815_v42 = vld [vmem:[%s14136_s0 + $0x140] sm:$0xff]  }
  0x82   :  { %832 = vst [vmem:[#allocation2 + $0x5c0] sm:$0xff] %v8937_v41  ;;  %v12784_v43 = vunpack.c.l.b16 %v12815_v42  ;;  %v12785_v45 = vunpack.c.h.b16 %v12815_v42  ;;  %v12174_v60 = vld [vmem:[#allocation2 + $0x53c] sm:$0xf0] }
  0x83   :  { %661 = vst [vmem:[#allocation2 + $0x3a8] sm:$0xff] %v648_v18 }
  0x84   :  { %861 = vst [vmem:[#allocation2 + $0x608] sm:$0xff] %v8945_v61 }
  0x85   :  { %717 = vst [vmem:[#allocation2 + $0x428] sm:$0xff] %v8945_v61 }
  0x86   :  { %756 = vst [vmem:[#allocation2 + $0x4a0] sm:$0xff] %v8945_v61 }
  0x87   :  { %888 = vst [vmem:[#allocation2 + $0x680] sm:$0xff] %v8945_v61 }
  0x89   :  { %v12190_v48 = vld [vmem:[#allocation2 + $0x5bc] sm:$0xf0] }
  0x8d   :  { %3558 = vmatmul.bf16.gmra.mxu0 %v9401_v0  ;;  %v12773_v0 = vunpack.c.h.b16 %v12812_v62 }
  0x8e   :  { %3647 = vmatmul.bf16.gmra.mxu1 %v9405_v13 }
  0x8f   :  { %3736 = vmatmul.bf16.gmra.mxu2 %v9409_v14  ;;  %v650_v19 = vpack.c.b16 %v12994_v2, %v12773_v0  ;;  %v9658_v0 = vld [vmem:[#allocation2 + $0x540] sm:$0xf0] }
  0x90   :  { %3825 = vmatmul.bf16.gmra.mxu3 %v9413_v15 }
  0x91   :  { %833 = vst [vmem:[#allocation2 + $0x5c8] sm:$0xff] %v650_v19 }
  0x92   :  { %669 = vst [vmem:[#allocation2 + $0x3e8] sm:$0xff] %v650_v19 }
  0x9d   :  { %3563 = vmatmul.bf16.gmra.mxu0 %v9465_v32  ;;  %v9593_v32 = vor.u32 %v12158_v21, %v9592_v4  ;;  %v9661_v4 = vor.u32 %v12166_v63, %v9658_v0 }
  0x9e   :  { %3652 = vmatmul.bf16.gmra.mxu1 %v9469_v33  ;;  %v9597_v33 = vor.u32 %v12150_v24, %v9594_v25 }
  0x9f   :  { %3741 = vmatmul.bf16.gmra.mxu2 %v9473_v34 }
  0xa0   :  { %3830 = vmatmul.bf16.gmra.mxu3 %v9477_v35 }
  0xaa   :  { %v3529_v53 = vpop.f32.mrf.mxu0 }
  0xab   :  { %v3618_v54 = vpop.f32.mrf.mxu1  ;;  %v3530_v57 = vadd.f32 %v13154_v44, %v3529_v53  ;;  %v696_v53 = vpack.c.b16 %v12784_v43, %v12992_v1 }
  0xad   :  { %v3619_v58 = vadd.f32 %v3618_v54, %v3530_v57  ;;  %3568 = vmatmul.bf16.gmra.mxu0 %v9529_v51  ;;  %v700_v54 = vpack.c.b16 %v12785_v45, %v12994_v2  ;;  %860 = vst [vmem:[#allocation2 + $0x600] sm:$0xff] %v696_v53 }
  0xae   :  { %3657 = vmatmul.bf16.gmra.mxu1 %v9533_v52  ;;  %716 = vst [vmem:[#allocation2 + $0x420] sm:$0xff] %v696_v53  ;;  %v9728_v53 = vld [vmem:[#allocation2 + $0x588] sm:$0xf] }
  0xaf   :  { %3746 = vmatmul.bf16.gmra.mxu2 %v9537_v55  ;;  %v8952_v55 = vld [vmem:[%s14136_s0 + $0x14c] sm:$0xf]  ;;  %868 = vst [vmem:[#allocation2 + $0x640] sm:$0xff] %v700_v54 }
  0xb0   :  { %3835 = vmatmul.bf16.gmra.mxu3 %v9541_v56  ;;  %v11989_v56 = vld [vmem:[%s14136_s0 + $0x150] sm:$0xf0]  ;;  %724 = vst [vmem:[#allocation2 + $0x460] sm:$0xff] %v700_v54  ;;  %v12191_v54 = vld [vmem:[#allocation2 + $0x5c4] sm:$0xf0] }
  0xb2   :  { %v3707_v13 = vpop.f32.mrf.mxu2  ;;  %v3531_v16 = vpop.f32.mrf.mxu0 }
  0xb3   :  { %v3796_v14 = vpop.f32.mrf.mxu3  ;;  %v3708_v15 = vadd.f32 %v3707_v13, %v3619_v58  ;;  %v3620_v17 = vpop.f32.mrf.mxu1  ;;  %v3532_v20 = vadd.f32 %v13154_v44, %v3531_v16  ;;  %v8953_v13 = vor.u32 %v11989_v56, %v8952_v55  ;;  %v12167_v16 = vld [vmem:[#allocation2 + $0x50c] sm:$0xf] }
  0xb4   :  { %v12183_v55 = vld [vmem:[#allocation2 + $0x58c] sm:$0xf] }
  0xb5   :  { %v13163_v3 = vadd.f32 %v3796_v14, %v3708_v15  ;;  %v3621_v23 = vadd.f32 %v3620_v17, %v3532_v20  ;;  %v9664_v14 = vld [vmem:[#allocation2 + $0x508] sm:$0xf]  ;;  %v9666_v17 = vld [vmem:[#allocation2 + $0x548] sm:$0xf0]  ;;  %v9657_v20 = vor.u32 %v12174_v60, %v9656_v59  ;;  %869 = vst [vmem:[#allocation2 + $0x648] sm:$0xff] %v8953_v13 }
  0xb6   :  { %v12175_v15 = vld [vmem:[#allocation2 + $0x544] sm:$0xf0]  ;;  %v9669_v25 = vor.u32 %v12167_v16, %v9666_v17  ;;  %725 = vst [vmem:[#allocation2 + $0x468] sm:$0xff] %v8953_v13  ;;  %v9730_v56 = vld [vmem:[#allocation2 + $0x5c8] sm:$0xf0] }
  0xb7   :  { %v9665_v24 = vor.u32 %v12175_v15, %v9664_v14  ;;  %764 = vst [vmem:[#allocation2 + $0x4e0] sm:$0xff] %v8953_v13  ;;  %v9733_v14 = vor.u32 %v12183_v55, %v9730_v56  ;;  %v12310_v55 = vld [vmem:[#allocation3 + $0x180] sm:$0xff] }
  0xb8   :  { %896 = vst [vmem:[#allocation2 + $0x6c0] sm:$0xff] %v8953_v13  ;;  %v9729_v13 = vor.u32 %v12191_v54, %v9728_v53  ;;  %v12294_v56 = vld [vmem:[#allocation3 + $0x100] sm:$0xff]  ;;  %4061 = vmatpush.bf16.msrb.mxu2 %v12310_v55 }
  0xba   :  { %v3709_v30 = vpop.f32.mrf.mxu2  ;;  %v3534_v35 = vpop.f32.mrf.mxu0 }
  0xbb   :  { %v3798_v31 = vpop.f32.mrf.mxu3  ;;  %v3710_v34 = vadd.f32 %v3709_v30, %v3621_v23  ;;  %v3623_v36 = vpop.f32.mrf.mxu1  ;;  %v3535_v39 = vadd.f32 %v13154_v44, %v3534_v35  ;;  %v12295_v30 = vld [vmem:[#allocation3 + $0x108] sm:$0xff]  ;;  %v8968_v35 = vld [vmem:[%s14136_s0 + $0x15c] sm:$0xf] }
  0xbc   :  { %3882 = vmatpush.bf16.msrb.mxu0 %v12295_v30 }
  0xbd   :  { %v13166_v40 = vadd.f32 %v3798_v31, %v3710_v34  ;;  %v3624_v41 = vadd.f32 %v3623_v36, %v3535_v39  ;;  %3573 = vmatmul.bf16.gmra.mxu0 %v9593_v32  ;;  %v12319_v31 = vld [vmem:[#allocation3 + $0x1c8] sm:$0xff]  ;;  %v8960_v34 = vld [vmem:[%s14136_s0 + $0x158] sm:$0xf]  ;;  %v11990_v36 = vld [vmem:[%s14136_s0 + $0x15c] sm:$0xf0] }
  0xbe   :  { %3662 = vmatmul.bf16.gmra.mxu1 %v9597_v33  ;;  %4149 = vmatpush.bf16.msrb.mxu3 %v12319_v31  ;;  %v8961_v42 = vor.u32 %v11990_v36, %v8960_v34  ;;  %v9784_v31 = vld [vmem:[#allocation2 + $0x600] sm:$0xf]  ;;  %v9792_v36 = vld [vmem:[#allocation2 + $0x608] sm:$0xf] }
  0xbf   :  { %3751 = vmatmul.bf16.gmra.mxu2 %v9601_v37  ;;  %v12206_v34 = vld [vmem:[#allocation2 + $0x63c] sm:$0xf0] }
  0xc0   :  { %3840 = vmatmul.bf16.gmra.mxu3 %v9605_v38  ;;  %889 = vst [vmem:[#allocation2 + $0x688] sm:$0xff] %v8961_v42  ;;  %3883 = vmatpush.bf16.msrb.mxu0 %v12294_v56 }
  0xc1   :  { %757 = vst [vmem:[#allocation2 + $0x4a8] sm:$0xff] %v8961_v42 }
  0xc2   :  { %v3712_v46 = vpop.f32.mrf.mxu2  ;;  %v3536_v51 = vpop.f32.mrf.mxu0  ;;  %796 = vst [vmem:[#allocation2 + $0x520] sm:$0xff] %v8961_v42 }
  0xc3   :  { %v3801_v47 = vpop.f32.mrf.mxu3  ;;  %v3713_v50 = vadd.f32 %v3712_v46, %v3624_v41  ;;  %v3625_v52 = vpop.f32.mrf.mxu1  ;;  %v3537_v57 = vadd.f32 %v13154_v44, %v3536_v51  ;;  %v11991_v41 = vld [vmem:[%s14136_s0 + $0x160] sm:$0xf0]  ;;  %916 = vst [vmem:[#allocation2 + $0x700] sm:$0xff] %v8961_v42 }
  0xc4   :  { %v8969_v45 = vor.u32 %v11991_v41, %v8968_v35  ;;  %v12182_v51 = vld [vmem:[#allocation2 + $0x584] sm:$0xf] }
  0xc5   :  { %v13186_v58 = vadd.f32 %v3801_v47, %v3713_v50  ;;  %v3626_v62 = vadd.f32 %v3625_v52, %v3537_v57  ;;  %v9720_v47 = vld [vmem:[#allocation2 + $0x580] sm:$0xf]  ;;  %v9722_v52 = vld [vmem:[#allocation2 + $0x5c0] sm:$0xf0] }
  0xc6   :  { %897 = vst [vmem:[#allocation2 + $0x6c8] sm:$0xff] %v8969_v45  ;;  %v9721_v60 = vor.u32 %v12190_v48, %v9720_v47  ;;  %v9725_v61 = vor.u32 %v12182_v51, %v9722_v52  ;;  %v9786_v35 = vld [vmem:[#allocation2 + $0x640] sm:$0xf0] }
  0xc7   :  { %765 = vst [vmem:[#allocation2 + $0x4e8] sm:$0xff] %v8969_v45 }
  0xc8   :  { %804 = vst [vmem:[#allocation2 + $0x560] sm:$0xff] %v8969_v45 }
  0xc9   :  { %924 = vst [vmem:[#allocation2 + $0x740] sm:$0xff] %v8969_v45 }
  0xca   :  { %v3714_v18 = vpop.f32.mrf.mxu2  ;;  %v3539_v22 = vpop.f32.mrf.mxu0 }
  0xcb   :  { %v3803_v19 = vpop.f32.mrf.mxu3  ;;  %v3715_v21 = vadd.f32 %v3714_v18, %v3626_v62  ;;  %v3628_v23 = vpop.f32.mrf.mxu1  ;;  %v3540_v26 = vadd.f32 %v13154_v44, %v3539_v22 }
  0xcd   :  { %v13189_v27 = vadd.f32 %v3803_v19, %v3715_v21  ;;  %v3629_v28 = vadd.f32 %v3628_v23, %v3540_v26  ;;  %3578 = vmatmul.bf16.gmra.mxu0 %v9657_v20  ;;  %v8976_v20 = vld [vmem:[%s14136_s0 + $0x168] sm:$0xf]  ;;  %v11992_v21 = vld [vmem:[%s14136_s0 + $0x16c] sm:$0xf0] }
  0xce   :  { %3667 = vmatmul.bf16.gmra.mxu1 %v9661_v4  ;;  %v8984_v4 = vld [vmem:[%s14136_s0 + $0x16c] sm:$0xf]  ;;  %v8977_v26 = vor.u32 %v11992_v21, %v8976_v20  ;;  %v9848_v20 = vld [vmem:[#allocation2 + $0x680] sm:$0xf] }
  0xcf   :  { %3756 = vmatmul.bf16.gmra.mxu2 %v9665_v24  ;;  %v12302_v21 = vld [vmem:[#allocation3 + $0x140] sm:$0xff] }
  0xd0   :  { %3845 = vmatmul.bf16.gmra.mxu3 %v9669_v25  ;;  %v11993_v25 = vld [vmem:[%s14136_s0 + $0x170] sm:$0xf0]  ;;  %917 = vst [vmem:[#allocation2 + $0x708] sm:$0xff] %v8977_v26  ;;  %3972 = vmatpush.bf16.msrb.mxu1 %v12302_v21 }
  0xd1   :  { %v8985_v29 = vor.u32 %v11993_v25, %v8984_v4  ;;  %797 = vst [vmem:[#allocation2 + $0x528] sm:$0xff] %v8977_v26  ;;  %v12222_v4 = vld [vmem:[#allocation2 + $0x6bc] sm:$0xf0]  ;;  %v9856_v25 = vld [vmem:[#allocation2 + $0x688] sm:$0xf] }
  0xd2   :  { %v3717_v32 = vpop.f32.mrf.mxu2  ;;  %v3541_v38 = vpop.f32.mrf.mxu0  ;;  %828 = vst [vmem:[#allocation2 + $0x5a0] sm:$0xff] %v8977_v26 }
  0xd3   :  { %v3806_v33 = vpop.f32.mrf.mxu3  ;;  %v3718_v37 = vadd.f32 %v3717_v32, %v3629_v28  ;;  %v3630_v39 = vpop.f32.mrf.mxu1  ;;  %v3542_v43 = vadd.f32 %v13154_v44, %v3541_v38  ;;  %v12198_v32 = vld [vmem:[#allocation2 + $0x604] sm:$0xf]  ;;  %925 = vst [vmem:[#allocation2 + $0x748] sm:$0xff] %v8985_v29  ;;  %v12207_v38 = vld [vmem:[#allocation2 + $0x644] sm:$0xf0] }
  0xd4   :  { %805 = vst [vmem:[#allocation2 + $0x568] sm:$0xff] %v8985_v29  ;;  %v9789_v45 = vor.u32 %v12198_v32, %v9786_v35 }
  0xd5   :  { %v13204_v46 = vadd.f32 %v3806_v33, %v3718_v37  ;;  %v3631_v50 = vadd.f32 %v3630_v39, %v3542_v43  ;;  %v12199_v37 = vld [vmem:[#allocation2 + $0x60c] sm:$0xf]  ;;  %v9785_v43 = vor.u32 %v12206_v34, %v9784_v31  ;;  %836 = vst [vmem:[#allocation2 + $0x5e0] sm:$0xff] %v8985_v29 }
  0xd6   :  { %v9794_v39 = vld [vmem:[#allocation2 + $0x648] sm:$0xf0]  ;;  %940 = vst [vmem:[#allocation2 + $0x780] sm:$0xff] %v8977_v26  ;;  %v12223_v26 = vld [vmem:[#allocation2 + $0x6c4] sm:$0xf0] }
  0xd7   :  { %v9797_v51 = vor.u32 %v12199_v37, %v9794_v39  ;;  %948 = vst [vmem:[#allocation2 + $0x7c0] sm:$0xff] %v8985_v29  ;;  %v9858_v29 = vld [vmem:[#allocation2 + $0x6c8] sm:$0xf0] }
  0xda   :  { %v3719_v57 = vpop.f32.mrf.mxu2  ;;  %v3544_v63 = vpop.f32.mrf.mxu0  ;;  %v12239_v21 = vld [vmem:[#allocation2 + $0x744] sm:$0xf0] }
  0xdb   :  { %v3808_v59 = vpop.f32.mrf.mxu3  ;;  %v3720_v62 = vadd.f32 %v3719_v57, %v3631_v50  ;;  %v3633_v0 = vpop.f32.mrf.mxu1  ;;  %v3545_v15 = vadd.f32 %v13154_v44, %v3544_v63  ;;  %v9793_v50 = vor.u32 %v12207_v38, %v9792_v36  ;;  %v12318_v57 = vld [vmem:[#allocation3 + $0x1c0] sm:$0xff]  ;;  %v9857_v38 = vor.u32 %v12223_v26, %v9856_v25 }
  0xdc   :  { %4150 = vmatpush.bf16.msrb.mxu3 %v12318_v57 }
  0xdd   :  { %v13207_v16 = vadd.f32 %v3808_v59, %v3720_v62  ;;  %v3634_v17 = vadd.f32 %v3633_v0, %v3545_v15  ;;  %3583 = vmatmul.bf16.gmra.mxu0 %v9721_v60  ;;  %v12816_v59 = vld [vmem:[%s14136_s0 + $0x178] sm:$0xff]  }
  0xde   :  { %3672 = vmatmul.bf16.gmra.mxu1 %v9725_v61  ;;  %v12788_v60 = vunpack.c.l.b16 %v12816_v59  ;;  %v12789_v61 = vunpack.c.h.b16 %v12816_v59 }
  0xdf   :  { %3761 = vmatmul.bf16.gmra.mxu2 %v9729_v13 }
  0xe0   :  { %3850 = vmatmul.bf16.gmra.mxu3 %v9733_v14  ;;  %v816_v15 = vpack.c.b16 %v12992_v1, %v12788_v60 }
  0xe2   :  { %v3722_v18 = vpop.f32.mrf.mxu2  ;;  %v3546_v23 = vpop.f32.mrf.mxu0  ;;  %941 = vst [vmem:[#allocation2 + $0x788] sm:$0xff] %v816_v15 }
  0xe3   :  { %v3811_v19 = vpop.f32.mrf.mxu3  ;;  %v3723_v22 = vadd.f32 %v3722_v18, %v3634_v17  ;;  %v3635_v24 = vpop.f32.mrf.mxu1  ;;  %v3547_v28 = vadd.f32 %v13154_v44, %v3546_v23  ;;  %v818_v17 = vpack.c.b16 %v12994_v2, %v12789_v61  ;;  %v12214_v23 = vld [vmem:[#allocation2 + $0x684] sm:$0xf]  ;;  %829 = vst [vmem:[#allocation2 + $0x5a8] sm:$0xff] %v816_v15  ;;  %v11959_v61 = vld [vmem:[%s14136_s0 + $0x10] sm:$0xf0] }
  0xe4   :  { %v12238_v15 = vld [vmem:[#allocation2 + $0x73c] sm:$0xf0] }
  0xe5   :  { %v13222_v30 = vadd.f32 %v3811_v19, %v3723_v22  ;;  %v3636_v33 = vadd.f32 %v3635_v24, %v3547_v28  ;;  %v9850_v24 = vld [vmem:[#allocation2 + $0x6c0] sm:$0xf0]  ;;  %949 = vst [vmem:[#allocation2 + $0x7c8] sm:$0xff] %v818_v17  ;;  %v12215_v28 = vld [vmem:[#allocation2 + $0x68c] sm:$0xf] }
  0xe6   :  { %837 = vst [vmem:[#allocation2 + $0x5e8] sm:$0xff] %v818_v17  ;;  %v9853_v34 = vor.u32 %v12214_v23, %v9850_v24  ;;  %v9861_v39 = vor.u32 %v12215_v28, %v9858_v29  ;;  %v9922_v23 = vld [vmem:[#allocation2 + $0x748] sm:$0xf0] }
  0xea   :  { %v3724_v41 = vpop.f32.mrf.mxu2  ;;  %v3549_v48 = vpop.f32.mrf.mxu0 }
  0xeb   :  { %v3813_v42 = vpop.f32.mrf.mxu3  ;;  %v3725_v47 = vadd.f32 %v3724_v41, %v3636_v33  ;;  %v3638_v49 = vpop.f32.mrf.mxu1  ;;  %v3550_v52 = vadd.f32 %v13154_v44, %v3549_v48  ;;  %v9849_v33 = vor.u32 %v12222_v4, %v9848_v20  ;;  %v9914_v20 = vld [vmem:[#allocation2 + $0x740] sm:$0xf0]  ;;  %v9920_v4 = vld [vmem:[#allocation2 + $0x708] sm:$0xf] }
  0xed   :  { %v13225_v53 = vadd.f32 %v3813_v42, %v3725_v47  ;;  %v3639_v54 = vadd.f32 %v3638_v49, %v3550_v52  ;;  %3588 = vmatmul.bf16.gmra.mxu0 %v9785_v43  ;;  %v8836_v52 = vld [vmem:[%s14136_s0 + $0xc] sm:$0xf] }
  0xee   :  { %3677 = vmatmul.bf16.gmra.mxu1 %v9789_v45  ;;  %v12743_v45 = vld [vmem:[%s14136_s0] sm:$0xff]  }
  0xef   :  { %3766 = vmatmul.bf16.gmra.mxu2 %v9793_v50  ;;  %v12744_v47 = vunpack.c.l.b16 %v12743_v45  ;;  %v12745_v48 = vunpack.c.h.b16 %v12743_v45 }
  0xf0   :  { %3855 = vmatmul.bf16.gmra.mxu3 %v9797_v51  ;;  %v8824_v51 = vld [vmem:[%s14136_s0 + $0x8] sm:$0xf] }
  0xf1   :  { %v317_v59 = vpack.c.b16 %v12744_v47, %v12992_v1  ;;  %v324_v60 = vpack.c.b16 %v12745_v48, %v12994_v2  ;;  %v8848_v47 = vld [vmem:[%s14136_s0 + $0x18] sm:$0xf]  ;;  %v8860_v48 = vld [vmem:[%s14136_s0 + $0x1c] sm:$0xf] }
  0xf2   :  { %v3727_v62 = vpop.f32.mrf.mxu2  ;;  %v3551_v13 = vpop.f32.mrf.mxu0 }
  0xf3   :  { %v3816_v63 = vpop.f32.mrf.mxu3  ;;  %v3728_v0 = vadd.f32 %v3727_v62, %v3639_v54  ;;  %v3640_v14 = vpop.f32.mrf.mxu1  ;;  %v3552_v18 = vadd.f32 %v13154_v44, %v3551_v13  ;;  %v11958_v54 = vld [vmem:[%s14136_s0 + $0xc] sm:$0xf0]  ;;  %346 = vst [vmem:[#allocation2 + $0x10] sm:$0xff] %v317_v59 }
  0xf4   :  { %v8825_v62 = vor.u32 %v11958_v54, %v8824_v51  ;;  %354 = vst [vmem:[#allocation2 + $0x50] sm:$0xff] %v324_v60  ;;  %v11961_v54 = vld [vmem:[%s14136_s0 + $0x20] sm:$0xf0]  ;;  %v9976_v60 = vld [vmem:[#allocation2 + $0x780] sm:$0xf] }
  0xf5   :  { %v13233_v19 = vadd.f32 %v3816_v63, %v3728_v0  ;;  %v3641_v22 = vadd.f32 %v3640_v14, %v3552_v18  ;;  %v8837_v0 = vor.u32 %v11959_v61, %v8836_v52  ;;  %v9912_v14 = vld [vmem:[#allocation2 + $0x700] sm:$0xf]  ;;  %v12230_v18 = vld [vmem:[#allocation2 + $0x704] sm:$0xf] }
  0xf6   :  { %347 = vst [vmem:[#allocation2 + $0x18] sm:$0xff] %v8825_v62  ;;  %v9913_v26 = vor.u32 %v12238_v15, %v9912_v14  ;;  %v9917_v28 = vor.u32 %v12230_v18, %v9914_v20  ;;  %v12254_v61 = vld [vmem:[#allocation2 + $0x7bc] sm:$0xf0]  ;;  %v9978_v14 = vld [vmem:[#allocation2 + $0x7c0] sm:$0xf0] }
  0xf7   :  { %355 = vst [vmem:[#allocation2 + $0x58] sm:$0xff] %v8837_v0  ;;  %v9984_v15 = vld [vmem:[#allocation2 + $0x788] sm:$0xf]  ;;  %v12247_v18 = vld [vmem:[#allocation2 + $0x78c] sm:$0xf] }
  0xf8   :  { %398 = vst [vmem:[#allocation2 + $0x90] sm:$0xff] %v8825_v62  ;;  %v12341_v62 = vld [vmem:[#allocation3 + $0x278] sm:$0xff]  ;;  %v9986_v20 = vld [vmem:[#allocation2 + $0x7c8] sm:$0xf0] }
  0xf9   :  { %406 = vst [vmem:[#allocation2 + $0xd0] sm:$0xff] %v8837_v0  ;;  %v12246_v0 = vld [vmem:[#allocation2 + $0x784] sm:$0xf]  ;;  %4321 = vmatpush.bf16.msra.mxu1 %v12341_v62 }
  0xfa   :  { %v3729_v31 = vpop.f32.mrf.mxu2  ;;  %v3554_v36 = vpop.f32.mrf.mxu0 }
  0xfb   :  { %v3818_v32 = vpop.f32.mrf.mxu3  ;;  %v3730_v35 = vadd.f32 %v3729_v31, %v3641_v22  ;;  %v3643_v37 = vpop.f32.mrf.mxu1  ;;  %v3555_v41 = vadd.f32 %v13154_v44, %v3554_v36  ;;  %v12231_v22 = vld [vmem:[#allocation2 + $0x70c] sm:$0xf] }
  0xfd   :  { %v13236_v42 = vadd.f32 %v3818_v32, %v3730_v35  ;;  %v3644_v43 = vadd.f32 %v3643_v37, %v3555_v41  ;;  %3593 = vmatmul.bf16.gmra.mxu0 %v9849_v33  ;;  %v9921_v33 = vor.u32 %v12239_v21, %v9920_v4  ;;  %v12357_v41 = vld [vmem:[#allocation3 + $0x2f8] sm:$0xff] }
  0xfe   :  { %3682 = vmatmul.bf16.gmra.mxu1 %v9853_v34  ;;  %v9925_v34 = vor.u32 %v12231_v22, %v9922_v23  ;;  %4499 = vmatpush.bf16.msra.mxu3 %v12357_v41  ;;  %v9977_v22 = vor.u32 %v12254_v61, %v9976_v60  ;;  %v9981_v23 = vor.u32 %v12246_v0, %v9978_v14  ;;  %v9040_v60 = vld [vmem:[#allocation2 + $0x18] sm:$0xf]  ;;  %v12009_v61 = vld [vmem:[#allocation2 + $0x1c] sm:$0xf] }
  0xff   :  { %3771 = vmatmul.bf16.gmra.mxu2 %v9857_v38  ;;  %v12349_v38 = vld [vmem:[#allocation3 + $0x2b8] sm:$0xff] }
 0x100   :  { %3860 = vmatmul.bf16.gmra.mxu3 %v9861_v39  ;;  %v12333_v39 = vld [vmem:[#allocation3 + $0x238] sm:$0xff]  ;;  %4410 = vmatpush.bf16.msra.mxu2 %v12349_v38  ;;  %v8884_v38 = vld [vmem:[%s14136_s0 + $0x2c] sm:$0xf] }
 0x101   :  { %4232 = vmatpush.bf16.msra.mxu0 %v12333_v39  ;;  %v11962_v39 = vld [vmem:[%s14136_s0 + $0x2c] sm:$0xf0]  ;;  %v12017_v62 = vld [vmem:[#allocation2 + $0x54] sm:$0xf0] }
 0x102   :  { %v3732_v49 = vpop.f32.mrf.mxu2  ;;  %v3556_v56 = vpop.f32.mrf.mxu0 }
 0x103   :  { %v3821_v50 = vpop.f32.mrf.mxu3  ;;  %v3733_v55 = vadd.f32 %v3732_v49, %v3644_v43  ;;  %v3645_v57 = vpop.f32.mrf.mxu1  ;;  %v3557_v63 = vadd.f32 %v13154_v44, %v3556_v56  ;;  %v11960_v49 = vld [vmem:[%s14136_s0 + $0x1c] sm:$0xf0] }
 0x105   :  { %v13256_v13 = vadd.f32 %v3821_v50, %v3733_v55  ;;  %v3646_v17 = vadd.f32 %v3645_v57, %v3557_v63  ;;  %v8849_v55 = vor.u32 %v11960_v49, %v8848_v47  ;;  %v8861_v57 = vor.u32 %v11961_v54, %v8860_v48  ;;  %v11963_v47 = vld [vmem:[%s14136_s0 + $0x30] sm:$0xf0] }
 0x106   :  { %v12008_v54 = vld [vmem:[#allocation2 + $0x14] sm:$0xf] }
 0x107   :  { %399 = vst [vmem:[#allocation2 + $0x98] sm:$0xff] %v8849_v55 }
 0x108   :  { %407 = vst [vmem:[#allocation2 + $0xd8] sm:$0xff] %v8861_v57 }
 0x109   :  { %450 = vst [vmem:[#allocation2 + $0x110] sm:$0xff] %v8849_v55 }
 0x10a   :  { %v3734_v24 = vpop.f32.mrf.mxu2  ;;  %v3559_v31 = vpop.f32.mrf.mxu0  ;;  %458 = vst [vmem:[#allocation2 + $0x150] sm:$0xff] %v8861_v57  ;;  %v9034_v57 = vld [vmem:[#allocation2 + $0x50] sm:$0xf0] }
 0x10b   :  { %v3823_v25 = vpop.f32.mrf.mxu3  ;;  %v3735_v29 = vadd.f32 %v3734_v24, %v3646_v17  ;;  %v3648_v32 = vpop.f32.mrf.mxu1  ;;  %v3560_v35 = vadd.f32 %v13154_v44, %v3559_v31  ;;  %v12255_v17 = vld [vmem:[#allocation2 + $0x7c4] sm:$0xf0] }
 0x10d   :  { %v13259_v36 = vadd.f32 %v3823_v25, %v3735_v29  ;;  %v3649_v37 = vadd.f32 %v3648_v32, %v3560_v35  ;;  %3598 = vmatmul.bf16.gmra.mxu0 %v9913_v26  ;;  %v9989_v29 = vor.u32 %v12247_v18, %v9986_v20 }
 0x10e   :  { %3687 = vmatmul.bf16.gmra.mxu1 %v9917_v28  ;;  %v9985_v28 = vor.u32 %v12255_v17, %v9984_v15  ;;  %v9037_v17 = vor.u32 %v12008_v54, %v9034_v57  ;;  %v12032_v54 = vld [vmem:[#allocation2 + $0xcc] sm:$0xf0]  ;;  %v9104_v57 = vld [vmem:[#allocation2 + $0x98] sm:$0xf] }
 0x10f   :  { %3776 = vmatmul.bf16.gmra.mxu2 %v9921_v33 }
 0x110   :  { %3865 = vmatmul.bf16.gmra.mxu3 %v9925_v34 }
 0x112   :  { %v3737_v43 = vpop.f32.mrf.mxu2  ;;  %v3561_v51 = vpop.f32.mrf.mxu0 }
 0x113   :  { %v3826_v45 = vpop.f32.mrf.mxu3  ;;  %v3738_v50 = vadd.f32 %v3737_v43, %v3649_v37  ;;  %v3650_v52 = vpop.f32.mrf.mxu1  ;;  %v3562_v56 = vadd.f32 %v13154_v44, %v3561_v51  ;;  %v8872_v37 = vld [vmem:[%s14136_s0 + $0x28] sm:$0xf] }
 0x114   :  { %v8873_v48 = vor.u32 %v11962_v39, %v8872_v37 }
 0x115   :  { %v13274_v59 = vadd.f32 %v3826_v45, %v3738_v50  ;;  %v3651_v63 = vadd.f32 %v3650_v52, %v3562_v56  ;;  %v8885_v50 = vor.u32 %v11963_v47, %v8884_v38  ;;  %v9032_v52 = vld [vmem:[#allocation2 + $0x10] sm:$0xf] }
 0x116   :  { %451 = vst [vmem:[#allocation2 + $0x118] sm:$0xff] %v8873_v48  ;;  %v12016_v56 = vld [vmem:[#allocation2 + $0x4c] sm:$0xf0] }
 0x117   :  { %459 = vst [vmem:[#allocation2 + $0x158] sm:$0xff] %v8885_v50  ;;  %v9033_v15 = vor.u32 %v12016_v56, %v9032_v52  ;;  %v9096_v52 = vld [vmem:[#allocation2 + $0x90] sm:$0xf]  ;;  %v9098_v56 = vld [vmem:[#allocation2 + $0xd0] sm:$0xf0] }
 0x118   :  { %490 = vst [vmem:[#allocation2 + $0x190] sm:$0xff] %v8873_v48 }
 0x119   :  { %498 = vst [vmem:[#allocation2 + $0x1d0] sm:$0xff] %v8885_v50 }
 0x11a   :  { %v3739_v4 = vpop.f32.mrf.mxu2  ;;  %v3564_v25 = vpop.f32.mrf.mxu0 }
 0x11b   :  { %v3828_v21 = vpop.f32.mrf.mxu3  ;;  %v3740_v24 = vadd.f32 %v3739_v4, %v3651_v63  ;;  %v3653_v26 = vpop.f32.mrf.mxu1  ;;  %v3565_v31 = vadd.f32 %v13154_v44, %v3564_v25  ;;  %v9042_v63 = vld [vmem:[#allocation2 + $0x58] sm:$0xf0] }
 0x11d   :  { %v13277_v32 = vadd.f32 %v3828_v21, %v3740_v24  ;;  %v3654_v33 = vadd.f32 %v3653_v26, %v3565_v31  ;;  %3603 = vmatmul.bf16.gmra.mxu0 %v9977_v22  ;;  %v9041_v21 = vor.u32 %v12017_v62, %v9040_v60  ;;  %v9045_v22 = vor.u32 %v12009_v61, %v9042_v63  ;;  %v12348_v26 = vld [vmem:[#allocation3 + $0x2b0] sm:$0xff]  ;;  %v12806_v31 = vld [vmem:[%s14136_s0 + $0x38] sm:$0xff]  }
 0x11e   :  { %3692 = vmatmul.bf16.gmra.mxu1 %v9981_v23  ;;  %4411 = vmatpush.bf16.msra.mxu2 %v12348_v26  ;;  %v12033_v60 = vld [vmem:[#allocation2 + $0xd4] sm:$0xf0]  ;;  %v12025_v61 = vld [vmem:[#allocation2 + $0x9c] sm:$0xf]  ;;  %v12809_v26 = vld [vmem:[%s14136_s0 + $0x80] sm:$0xff]  }
 0x11f   :  { %3781 = vmatmul.bf16.gmra.mxu2 %v9985_v28  ;;  %v12332_v28 = vld [vmem:[#allocation3 + $0x230] sm:$0xff]  ;;  %v9106_v62 = vld [vmem:[#allocation2 + $0xd8] sm:$0xf0] }
 0x120   :  { %3870 = vmatmul.bf16.gmra.mxu3 %v9989_v29  ;;  %v12356_v29 = vld [vmem:[#allocation3 + $0x2f0] sm:$0xff]  ;;  %4233 = vmatpush.bf16.msra.mxu0 %v12332_v28  ;;  %v12760_v28 = vunpack.c.l.b16 %v12809_v26 }
 0x121   :  { %4500 = vmatpush.bf16.msra.mxu3 %v12356_v29  ;;  %v12761_v29 = vunpack.c.h.b16 %v12809_v26 }
 0x122   :  { %v3742_v34 = vpop.f32.mrf.mxu2  ;;  %v3566_v43 = vpop.f32.mrf.mxu0 }
 0x123   :  { %v3831_v35 = vpop.f32.mrf.mxu3  ;;  %v3743_v41 = vadd.f32 %v3742_v34, %v3654_v33  ;;  %v3655_v45 = vpop.f32.mrf.mxu1  ;;  %v3567_v49 = vadd.f32 %v13154_v44, %v3566_v43  ;;  %v12748_v33 = vunpack.c.l.b16 %v12806_v31  ;;  %v12749_v34 = vunpack.c.h.b16 %v12806_v31 }
 0x125   :  { %v13292_v51 = vadd.f32 %v3831_v35, %v3743_v41  ;;  %v3656_v55 = vadd.f32 %v3655_v45, %v3567_v49  ;;  %v476_v43 = vpack.c.b16 %v12992_v1, %v12748_v33  ;;  %v479_v45 = vpack.c.b16 %v12994_v2, %v12749_v34  ;;  %v12340_v49 = vld [vmem:[#allocation3 + $0x270] sm:$0xff]  ;;  %v8832_v34 = vld [vmem:[%s14136_s0 + $0x88] sm:$0xf] }
 0x126   :  { %4322 = vmatpush.bf16.msra.mxu1 %v12340_v49  ;;  %v328_v49 = vpack.c.b16 %v12761_v29, %v12994_v2 }
 0x127   :  { %491 = vst [vmem:[#allocation2 + $0x198] sm:$0xff] %v476_v43  ;;  %v8844_v43 = vld [vmem:[%s14136_s0 + $0x8c] sm:$0xf] }
 0x128   :  { %499 = vst [vmem:[#allocation2 + $0x1d8] sm:$0xff] %v479_v45  ;;  %v11971_v45 = vld [vmem:[%s14136_s0 + $0x90] sm:$0xf0] }
 0x129   :  { %358 = vst [vmem:[#allocation2 + $0x70] sm:$0xff] %v328_v49 }
 0x12a   :  { %v3744_v0 = vpop.f32.mrf.mxu2  ;;  %v3569_v20 = vpop.f32.mrf.mxu0  ;;  %554 = vst [vmem:[#allocation2 + $0x250] sm:$0xff] %v328_v49  ;;  %v11973_v49 = vld [vmem:[%s14136_s0 + $0xa0] sm:$0xf0] }
 0x12b   :  { %v3833_v14 = vpop.f32.mrf.mxu3  ;;  %v3745_v18 = vadd.f32 %v3744_v0, %v3656_v55  ;;  %v3658_v4 = vpop.f32.mrf.mxu1  ;;  %v3570_v23 = vadd.f32 %v13154_v44, %v3569_v20  ;;  %v12024_v55 = vld [vmem:[#allocation2 + $0x94] sm:$0xf] }
 0x12d   :  { %v13295_v24 = vadd.f32 %v3833_v14, %v3745_v18  ;;  %v3659_v25 = vadd.f32 %v3658_v4, %v3570_v23  ;;  %3884 = vmatmul.bf16.vlgmr.msrb.gmra.mxu0 %v9033_v15  ;;  %v9097_v14 = vor.u32 %v12032_v54, %v9096_v52  ;;  %v9101_v15 = vor.u32 %v12024_v55, %v9098_v56  ;;  %v9160_v52 = vld [vmem:[#allocation2 + $0x110] sm:$0xf] }
 0x12e   :  { %3973 = vmatmul.bf16.vlgmr.msrb.gmra.mxu1 %v9037_v17  ;;  %v9105_v4 = vor.u32 %v12033_v60, %v9104_v57  ;;  %v12048_v54 = vld [vmem:[#allocation2 + $0x14c] sm:$0xf0]  ;;  %v12040_v57 = vld [vmem:[#allocation2 + $0x114] sm:$0xf] }
 0x12f   :  { %4062 = vmatmul.bf16.vlgmr.msrb.gmra.mxu2 %v9041_v21  ;;  %v9109_v21 = vor.u32 %v12025_v61, %v9106_v62  ;;  %v9162_v60 = vld [vmem:[#allocation2 + $0x150] sm:$0xf0]  ;;  %v8845_v61 = vor.u32 %v11971_v45, %v8844_v43  ;;  %v9168_v62 = vld [vmem:[#allocation2 + $0x118] sm:$0xf] }
 0x130   :  { %4151 = vmatmul.bf16.vlgmr.msrb.gmra.mxu3 %v9045_v22 }
 0x131   :  { %555 = vst [vmem:[#allocation2 + $0x258] sm:$0xff] %v8845_v61 }
 0x132   :  { %v3747_v35 = vpop.f32.mrf.mxu2  ;;  %v3571_v39 = vpop.f32.mrf.mxu0  ;;  %359 = vst [vmem:[#allocation2 + $0x78] sm:$0xff] %v8845_v61 }
 0x133   :  { %v3836_v37 = vpop.f32.mrf.mxu3  ;;  %v3748_v38 = vadd.f32 %v3747_v35, %v3659_v25  ;;  %v3660_v41 = vpop.f32.mrf.mxu1  ;;  %v3572_v47 = vadd.f32 %v13154_v44, %v3571_v39  ;;  %v11970_v35 = vld [vmem:[%s14136_s0 + $0x8c] sm:$0xf0]  ;;  %410 = vst [vmem:[#allocation2 + $0xf0] sm:$0xff] %v8845_v61 }
 0x134   :  { %v8833_v55 = vor.u32 %v11970_v35, %v8832_v34  ;;  %594 = vst [vmem:[#allocation2 + $0x2d0] sm:$0xff] %v8845_v61  ;;  %v12331_v34 = vld [vmem:[#allocation3 + $0x228] sm:$0xff]  ;;  %v12064_v61 = vld [vmem:[#allocation2 + $0x1cc] sm:$0xf0] }
 0x135   :  { %v13303_v48 = vadd.f32 %v3836_v37, %v3748_v38  ;;  %v3661_v50 = vadd.f32 %v3660_v41, %v3572_v47  ;;  %v321_v41 = vpack.c.b16 %v12760_v28, %v12992_v1  ;;  %v12355_v35 = vld [vmem:[#allocation3 + $0x2e8] sm:$0xff]  ;;  %4234 = vmatpush.bf16.msra.mxu0 %v12331_v34 }
 0x136   :  { %547 = vst [vmem:[#allocation2 + $0x218] sm:$0xff] %v8833_v55  ;;  %4501 = vmatpush.bf16.msra.mxu3 %v12355_v35 }
 0x137   :  { %350 = vst [vmem:[#allocation2 + $0x30] sm:$0xff] %v321_v41 }
 0x138   :  { %546 = vst [vmem:[#allocation2 + $0x210] sm:$0xff] %v321_v41  ;;  %v11972_v41 = vld [vmem:[%s14136_s0 + $0x9c] sm:$0xf0] }
 0x139   :  { %351 = vst [vmem:[#allocation2 + $0x38] sm:$0xff] %v8833_v55 }
 0x13a   :  { %v3749_v63 = vpop.f32.mrf.mxu2  ;;  %v3574_v18 = vpop.f32.mrf.mxu0  ;;  %402 = vst [vmem:[#allocation2 + $0xb0] sm:$0xff] %v8833_v55  ;;  %v9130_v10 = vld [vmem:[#allocation2 + $0xf0] sm:$0xf0] }
 0x13b   :  { %v3838_v0 = vpop.f32.mrf.mxu3  ;;  %v3750_v17 = vadd.f32 %v3749_v63, %v3661_v50  ;;  %v3663_v20 = vpop.f32.mrf.mxu1  ;;  %v3575_v22 = vadd.f32 %v13154_v44, %v3574_v18  ;;  %v12049_v63 = vld [vmem:[#allocation2 + $0x154] sm:$0xf0]  ;;  %v9161_v18 = vor.u32 %v12048_v54, %v9160_v52  ;;  %586 = vst [vmem:[#allocation2 + $0x290] sm:$0xff] %v8833_v55  ;;  %v13346_v54 = vld [vmem:[%s14138_s2] ss:$0 sm:$0xff] }
 0x13d   :  { %v13306_v23 = vadd.f32 %v3838_v0, %v3750_v17  ;;  %v3664_v25 = vadd.f32 %v3663_v20, %v3575_v22  ;;  %3889 = vmatmul.bf16.gmra.mxu0 %v9097_v14  ;;  %v12041_v0 = vld [vmem:[#allocation2 + $0x11c] sm:$0xf]  ;;  %v9165_v20 = vor.u32 %v12040_v57, %v9162_v60  ;;  %v9224_v60 = vld [vmem:[#allocation2 + $0x190] sm:$0xf] }
 0x13e   :  { %3978 = vmatmul.bf16.gmra.mxu1 %v9101_v15  ;;  %v9170_v14 = vld [vmem:[#allocation2 + $0x158] sm:$0xf0] }
 0x13f   :  { %4067 = vmatmul.bf16.gmra.mxu2 %v9105_v4  ;;  %v9173_v26 = vor.u32 %v12041_v0, %v9170_v14  ;;  %v12056_v0 = vld [vmem:[#allocation2 + $0x194] sm:$0xf] }
 0x140   :  { %4156 = vmatmul.bf16.gmra.mxu3 %v9109_v21  ;;  %v9226_v14 = vld [vmem:[#allocation2 + $0x1d0] sm:$0xf0] }
 0x141   :  { %v12028_v12 = vld [vmem:[#allocation2 + $0xb4] sm:$0xf] }
 0x142   :  { %v3752_v31 = vpop.f32.mrf.mxu2  ;;  %v3576_v38 = vpop.f32.mrf.mxu0 }
 0x143   :  { %v3841_v33 = vpop.f32.mrf.mxu3  ;;  %v3753_v37 = vadd.f32 %v3752_v31, %v3664_v25  ;;  %v3665_v39 = vpop.f32.mrf.mxu1  ;;  %v3577_v47 = vadd.f32 %v13154_v44, %v3576_v38  ;;  %v9169_v25 = vor.u32 %v12049_v63, %v9168_v62  ;;  %v12339_v62 = vld [vmem:[#allocation3 + $0x268] sm:$0xff] }
 0x144   :  { %4323 = vmatpush.bf16.msra.mxu1 %v12339_v62 }
 0x145   :  { %v13326_v50 = vadd.f32 %v3841_v33, %v3753_v37  ;;  %v3666_v56 = vadd.f32 %v3665_v39, %v3577_v47  ;;  %v12347_v33 = vld [vmem:[#allocation3 + $0x2a8] sm:$0xff]  ;;  %v8868_v39 = vld [vmem:[%s14136_s0 + $0x9c] sm:$0xf] }
 0x146   :  { %4412 = vmatpush.bf16.msra.mxu2 %v12347_v33 }
 0x14a   :  { %v3754_v15 = vpop.f32.mrf.mxu2  ;;  %v3579_v21 = vpop.f32.mrf.mxu0 }
 0x14b   :  { %v3843_v17 = vpop.f32.mrf.mxu3  ;;  %v3755_v4 = vadd.f32 %v3754_v15, %v3666_v56  ;;  %v3668_v22 = vpop.f32.mrf.mxu1  ;;  %v3580_v28 = vadd.f32 %v13154_v44, %v3579_v21  ;;  %v8856_v44 = vld [vmem:[%s14136_s0 + $0x98] sm:$0xf]  ;;  %v8869_v56 = vor.u32 %v11973_v49, %v8868_v39 }
 0x14c   :  { %v8857_v52 = vor.u32 %v11972_v41, %v8856_v44  ;;  %v9232_v15 = vld [vmem:[#allocation2 + $0x198] sm:$0xf]  ;;  %v8880_v41 = vld [vmem:[%s14136_s0 + $0xa8] sm:$0xf] }
 0x14d   :  { %v13329_v29 = vadd.f32 %v3843_v17, %v3755_v4  ;;  %v3669_v31 = vadd.f32 %v3668_v22, %v3580_v28  ;;  %3894 = vmatmul.bf16.gmra.mxu0 %v9161_v18  ;;  %595 = vst [vmem:[#allocation2 + $0x2d8] sm:$0xff] %v8869_v56  ;;  %v12065_v17 = vld [vmem:[#allocation2 + $0x1d4] sm:$0xf0]  ;;  %v12057_v18 = vld [vmem:[#allocation2 + $0x19c] sm:$0xf]  ;;  %v9225_v22 = vor.u32 %v12064_v61, %v9224_v60 }
 0x14e   :  { %3983 = vmatmul.bf16.gmra.mxu1 %v9165_v20  ;;  %587 = vst [vmem:[#allocation2 + $0x298] sm:$0xff] %v8857_v52  ;;  %v9234_v20 = vld [vmem:[#allocation2 + $0x1d8] sm:$0xf0]  ;;  %v9233_v33 = vor.u32 %v12065_v17, %v9232_v15  ;;  %v12080_v15 = vld [vmem:[#allocation2 + $0x24c] sm:$0xf0] }
 0x14f   :  { %4072 = vmatmul.bf16.gmra.mxu2 %v9169_v25  ;;  %403 = vst [vmem:[#allocation2 + $0xb8] sm:$0xff] %v8857_v52  ;;  %v9229_v25 = vor.u32 %v12056_v0, %v9226_v14  ;;  %v9237_v34 = vor.u32 %v12057_v18, %v9234_v20  ;;  %v12072_v0 = vld [vmem:[#allocation2 + $0x214] sm:$0xf]  ;;  %v9296_v18 = vld [vmem:[#allocation2 + $0x218] sm:$0xf] }
 0x150   :  { %4161 = vmatmul.bf16.gmra.mxu3 %v9173_v26  ;;  %411 = vst [vmem:[#allocation2 + $0xf8] sm:$0xff] %v8869_v56  ;;  %v9290_v17 = vld [vmem:[#allocation2 + $0x250] sm:$0xf0]  ;;  %v12073_v20 = vld [vmem:[#allocation2 + $0x21c] sm:$0xf] }
 0x151   :  { %454 = vst [vmem:[#allocation2 + $0x130] sm:$0xff] %v8857_v52 }
 0x152   :  { %v3757_v37 = vpop.f32.mrf.mxu2  ;;  %v3581_v45 = vpop.f32.mrf.mxu0  ;;  %462 = vst [vmem:[#allocation2 + $0x170] sm:$0xff] %v8869_v56 }
 0x153   :  { %v3846_v38 = vpop.f32.mrf.mxu3  ;;  %v3758_v43 = vadd.f32 %v3757_v37, %v3669_v31  ;;  %v3670_v47 = vpop.f32.mrf.mxu1  ;;  %v3582_v55 = vadd.f32 %v13346_v54, %v3581_v45  ;;  %626 = vst [vmem:[#allocation2 + $0x310] sm:$0xff] %v8857_v52  ;;  %v11974_v45 = vld [vmem:[%s14136_s0 + $0xac] sm:$0xf0] }
 0x154   :  { %634 = vst [vmem:[#allocation2 + $0x350] sm:$0xff] %v8869_v56  ;;  %v8881_v56 = vor.u32 %v11974_v45, %v8880_v41  ;;  %v12330_v45 = vld [vmem:[#allocation3 + $0x220] sm:$0xff] }
 0x155   :  { %v13349_v57 = vadd.f32 %v3846_v38, %v3758_v43  ;;  %v3671_v63 = vadd.f32 %v3670_v47, %v3582_v55  ;;  %v8892_v43 = vld [vmem:[%s14136_s0 + $0xac] sm:$0xf]  ;;  %v11975_v55 = vld [vmem:[%s14136_s0 + $0xb0] sm:$0xf0]  ;;  %4235 = vmatpush.bf16.msra.mxu0 %v12330_v45 }
 0x156   :  { %v8893_v61 = vor.u32 %v11975_v55, %v8892_v43  ;;  %627 = vst [vmem:[#allocation2 + $0x318] sm:$0xff] %v8881_v56  ;;  %v12346_v43 = vld [vmem:[#allocation3 + $0x2a0] sm:$0xff]  ;;  %v9136_v5 = vld [vmem:[#allocation2 + $0xb8] sm:$0xf] }
 0x157   :  { %455 = vst [vmem:[#allocation2 + $0x138] sm:$0xff] %v8881_v56  ;;  %4413 = vmatpush.bf16.msra.mxu2 %v12346_v43  ;;  %v9138_v7 = vld [vmem:[#allocation2 + $0xf8] sm:$0xf0] }
 0x158   :  { %635 = vst [vmem:[#allocation2 + $0x358] sm:$0xff] %v8893_v61 }
 0x159   :  { %463 = vst [vmem:[#allocation2 + $0x178] sm:$0xff] %v8893_v61 }
 0x15a   :  { %v3759_v4 = vpop.f32.mrf.mxu2  ;;  %v3584_v28 = vpop.f32.mrf.mxu0  ;;  %494 = vst [vmem:[#allocation2 + $0x1b0] sm:$0xff] %v8881_v56 }
 0x15b   :  { %v3848_v21 = vpop.f32.mrf.mxu3  ;;  %v3760_v26 = vadd.f32 %v3759_v4, %v3671_v63  ;;  %v3673_v31 = vpop.f32.mrf.mxu1  ;;  %v3585_v35 = vadd.f32 %v13346_v54, %v3584_v28  ;;  %v9288_v63 = vld [vmem:[#allocation2 + $0x210] sm:$0xf]  ;;  %v12081_v4 = vld [vmem:[#allocation2 + $0x254] sm:$0xf0]  ;;  %v9293_v28 = vor.u32 %v12072_v0, %v9290_v17  ;;  %502 = vst [vmem:[#allocation2 + $0x1f0] sm:$0xff] %v8893_v61 }
 0x15c   :  { %658 = vst [vmem:[#allocation2 + $0x390] sm:$0xff] %v8881_v56 }
 0x15d   :  { %v13352_v37 = vadd.f32 %v3848_v21, %v3760_v26  ;;  %v3674_v38 = vadd.f32 %v3673_v31, %v3585_v35  ;;  %3899 = vmatmul.bf16.gmra.mxu0 %v9225_v22  ;;  %v9298_v21 = vld [vmem:[#allocation2 + $0x258] sm:$0xf0]  ;;  %v9289_v26 = vor.u32 %v12080_v15, %v9288_v63  ;;  %v9297_v35 = vor.u32 %v12081_v4, %v9296_v18  ;;  %v12096_v4 = vld [vmem:[#allocation2 + $0x2cc] sm:$0xf0] }
 0x15e   :  { %3988 = vmatmul.bf16.gmra.mxu1 %v9229_v25  ;;  %666 = vst [vmem:[#allocation2 + $0x3d0] sm:$0xff] %v8893_v61 }
 0x15f   :  { %4077 = vmatmul.bf16.gmra.mxu2 %v9233_v33 }
 0x160   :  { %4166 = vmatmul.bf16.gmra.mxu3 %v9237_v34 }
 0x162   :  { %v3762_v44 = vpop.f32.mrf.mxu2  ;;  %v3586_v49 = vpop.f32.mrf.mxu0 }
 0x163   :  { %v3851_v39 = vpop.f32.mrf.mxu3  ;;  %v3763_v47 = vadd.f32 %v3762_v44, %v3674_v38  ;;  %v3675_v52 = vpop.f32.mrf.mxu1  ;;  %v3587_v60 = vadd.f32 %v13346_v54, %v3586_v49  ;;  %v9301_v38 = vor.u32 %v12073_v20, %v9298_v21  ;;  %v12810_v49 = vld [vmem:[%s14136_s0 + $0xb8] sm:$0xff]   ;;  %v9352_v20 = vld [vmem:[#allocation2 + $0x290] sm:$0xf]  ;;  %v12338_v21 = vld [vmem:[#allocation3 + $0x260] sm:$0xff] }
 0x164   :  { %v12765_v55 = vunpack.c.h.b16 %v12810_v49  ;;  %4324 = vmatpush.bf16.msra.mxu1 %v12338_v21 }
 0x165   :  { %v13367_v62 = vadd.f32 %v3851_v39, %v3763_v47  ;;  %v3676_v14 = vadd.f32 %v3675_v52, %v3587_v60  ;;  %v12354_v47 = vld [vmem:[#allocation3 + $0x2e0] sm:$0xff]  ;;  %v12764_v52 = vunpack.c.l.b16 %v12810_v49 }
 0x166   :  { %4502 = vmatpush.bf16.msra.mxu3 %v12354_v47  ;;  %v481_v15 = vpack.c.b16 %v12994_v2, %v12765_v55 }
 0x167   :  { %v478_v61 = vpack.c.b16 %v12992_v1, %v12764_v52 }
 0x168   :  { %667 = vst [vmem:[#allocation2 + $0x3d8] sm:$0xff] %v481_v15 }
 0x169   :  { %659 = vst [vmem:[#allocation2 + $0x398] sm:$0xff] %v478_v61 }
 0x16a   :  { %v3764_v22 = vpop.f32.mrf.mxu2  ;;  %v3589_v33 = vpop.f32.mrf.mxu0  ;;  %495 = vst [vmem:[#allocation2 + $0x1b8] sm:$0xff] %v478_v61 }
 0x16b   :  { %v3853_v25 = vpop.f32.mrf.mxu3  ;;  %v3765_v31 = vadd.f32 %v3764_v22, %v3676_v14  ;;  %v3678_v34 = vpop.f32.mrf.mxu1  ;;  %v3590_v44 = vadd.f32 %v13346_v54, %v3589_v33  ;;  %v12089_v33 = vld [vmem:[#allocation2 + $0x29c] sm:$0xf]  ;;  %503 = vst [vmem:[#allocation2 + $0x1f8] sm:$0xff] %v481_v15 }
 0x16d   :  { %v13370_v39 = vadd.f32 %v3853_v25, %v3765_v31  ;;  %v3679_v41 = vadd.f32 %v3678_v34, %v3590_v44  ;;  %3904 = vmatmul.bf16.gmra.mxu0 %v9289_v26  ;;  %v12088_v25 = vld [vmem:[#allocation2 + $0x294] sm:$0xf]  ;;  %v12097_v31 = vld [vmem:[#allocation2 + $0x2d4] sm:$0xf0]  ;;  %v9362_v34 = vld [vmem:[#allocation2 + $0x2d8] sm:$0xf0]  ;;  %v9353_v44 = vor.u32 %v12096_v4, %v9352_v20 }
 0x16e   :  { %3993 = vmatmul.bf16.gmra.mxu1 %v9293_v28  ;;  %v9354_v26 = vld [vmem:[#allocation2 + $0x2d0] sm:$0xf0]  ;;  %v9360_v28 = vld [vmem:[#allocation2 + $0x298] sm:$0xf]  ;;  %v9365_v52 = vor.u32 %v12089_v33, %v9362_v34  ;;  %v11982_v20 = vld [vmem:[%s14136_s0 + $0x10c] sm:$0xf0] }
 0x16f   :  { %4082 = vmatmul.bf16.gmra.mxu2 %v9297_v35  ;;  %v9361_v49 = vor.u32 %v12097_v31, %v9360_v28  ;;  %v8908_v28 = vld [vmem:[%s14136_s0 + $0x10c] sm:$0xf]  ;;  %v11983_v31 = vld [vmem:[%s14136_s0 + $0x110] sm:$0xf0] }
 0x170   :  { %4171 = vmatmul.bf16.gmra.mxu3 %v9301_v38 }
 0x172   :  { %v3767_v56 = vpop.f32.mrf.mxu2  ;;  %v3591_v0 = vpop.f32.mrf.mxu0 }
 0x173   :  { %v3856_v60 = vpop.f32.mrf.mxu3  ;;  %v3768_v63 = vadd.f32 %v3767_v56, %v3679_v41  ;;  %v3680_v14 = vpop.f32.mrf.mxu1  ;;  %v3592_v17 = vadd.f32 %v13346_v54, %v3591_v0  ;;  %v9357_v41 = vor.u32 %v12088_v25, %v9354_v26 }
 0x175   :  { %v13378_v18 = vadd.f32 %v3856_v60, %v3768_v63  ;;  %v3681_v22 = vadd.f32 %v3680_v14, %v3592_v17  ;;  %v12813_v63 = vld [vmem:[%s14136_s0 + $0x100] sm:$0xff]   ;;  %v8900_v17 = vld [vmem:[%s14136_s0 + $0x108] sm:$0xf] }
 0x176   :  { %v12776_v0 = vunpack.c.l.b16 %v12813_v63  ;;  %v12777_v14 = vunpack.c.h.b16 %v12813_v63 }
 0x178   :  { %v530_v25 = vpack.c.b16 %v12776_v0, %v12992_v1  ;;  %v534_v26 = vpack.c.b16 %v12777_v14, %v12994_v2 }
 0x17a   :  { %v3769_v35 = vpop.f32.mrf.mxu2  ;;  %v3594_v45 = vpop.f32.mrf.mxu0  ;;  %714 = vst [vmem:[#allocation2 + $0x410] sm:$0xff] %v530_v25 }
 0x17b   :  { %v3858_v38 = vpop.f32.mrf.mxu3  ;;  %v3770_v43 = vadd.f32 %v3769_v35, %v3681_v22  ;;  %v3683_v47 = vpop.f32.mrf.mxu1  ;;  %v3595_v55 = vadd.f32 %v13346_v54, %v3594_v45  ;;  %v9416_v35 = vld [vmem:[#allocation2 + $0x310] sm:$0xf]  ;;  %v9418_v45 = vld [vmem:[#allocation2 + $0x350] sm:$0xf0]  ;;  %722 = vst [vmem:[#allocation2 + $0x450] sm:$0xff] %v534_v26 }
 0x17c   :  { %550 = vst [vmem:[#allocation2 + $0x230] sm:$0xff] %v530_v25 }
 0x17d   :  { %v13381_v56 = vadd.f32 %v3858_v38, %v3770_v43  ;;  %v3684_v60 = vadd.f32 %v3683_v47, %v3595_v55  ;;  %3909 = vmatmul.bf16.gmra.mxu0 %v9353_v44  ;;  %v12112_v38 = vld [vmem:[#allocation2 + $0x34c] sm:$0xf0]  ;;  %v8901_v44 = vor.u32 %v11982_v20, %v8900_v17  ;;  %v12104_v43 = vld [vmem:[#allocation2 + $0x314] sm:$0xf]  ;;  %v8909_v47 = vor.u32 %v11983_v31, %v8908_v28  ;;  %v12105_v55 = vld [vmem:[#allocation2 + $0x31c] sm:$0xf] }
 0x17e   :  { %3998 = vmatmul.bf16.gmra.mxu1 %v9357_v41  ;;  %558 = vst [vmem:[#allocation2 + $0x270] sm:$0xff] %v534_v26  ;;  %v9417_v14 = vor.u32 %v12112_v38, %v9416_v35  ;;  %v12345_v26 = vld [vmem:[#allocation3 + $0x298] sm:$0xff] }
 0x17f   :  { %4087 = vmatmul.bf16.gmra.mxu2 %v9361_v49  ;;  %v9424_v49 = vld [vmem:[#allocation2 + $0x318] sm:$0xf]  ;;  %715 = vst [vmem:[#allocation2 + $0x418] sm:$0xff] %v8901_v44 }
 0x180   :  { %4176 = vmatmul.bf16.gmra.mxu3 %v9365_v52  ;;  %v12113_v52 = vld [vmem:[#allocation2 + $0x354] sm:$0xf0]  ;;  %723 = vst [vmem:[#allocation2 + $0x458] sm:$0xff] %v8909_v47  ;;  %4414 = vmatpush.bf16.msra.mxu2 %v12345_v26  ;;  %v9490_v26 = vld [vmem:[#allocation2 + $0x3d8] sm:$0xf0] }
 0x181   :  { %v9425_v20 = vor.u32 %v12113_v52, %v9424_v49  ;;  %551 = vst [vmem:[#allocation2 + $0x238] sm:$0xff] %v8901_v44  ;;  %v12329_v31 = vld [vmem:[#allocation3 + $0x218] sm:$0xff]  ;;  %v11985_v52 = vld [vmem:[%s14136_s0 + $0x120] sm:$0xf0] }
 0x182   :  { %v3772_v61 = vpop.f32.mrf.mxu2  ;;  %v3596_v21 = vpop.f32.mrf.mxu0  ;;  %559 = vst [vmem:[#allocation2 + $0x278] sm:$0xff] %v8909_v47  ;;  %4236 = vmatpush.bf16.msra.mxu0 %v12329_v31 }
 0x183   :  { %v3861_v15 = vpop.f32.mrf.mxu3  ;;  %v3773_v4 = vadd.f32 %v3772_v61, %v3684_v60  ;;  %v3685_v22 = vpop.f32.mrf.mxu1  ;;  %v3597_v33 = vadd.f32 %v13346_v54, %v3596_v21  ;;  %v9426_v60 = vld [vmem:[#allocation2 + $0x358] sm:$0xf0]  ;;  %v9421_v61 = vor.u32 %v12104_v43, %v9418_v45  ;;  %590 = vst [vmem:[#allocation2 + $0x2b0] sm:$0xff] %v8901_v44 }
 0x184   :  { %v9429_v21 = vor.u32 %v12105_v55, %v9426_v60  ;;  %598 = vst [vmem:[#allocation2 + $0x2f0] sm:$0xff] %v8909_v47  ;;  %v8924_v43 = vld [vmem:[%s14136_s0 + $0x11c] sm:$0xf]  ;;  %4415 = vmatpush.bf16.msra.mxu2 %v12344_v9  ;;  %v12336_v9 = vld [vmem:[#allocation3 + $0x250] sm:$0xff] }
 0x185   :  { %v13401_v34 = vadd.f32 %v3861_v15, %v3773_v4  ;;  %v3686_v41 = vadd.f32 %v3685_v22, %v3597_v33  ;;  %754 = vst [vmem:[#allocation2 + $0x490] sm:$0xff] %v8901_v44  ;;  %v12353_v33 = vld [vmem:[#allocation3 + $0x2d8] sm:$0xff]  ;;  %v11984_v44 = vld [vmem:[%s14136_s0 + $0x11c] sm:$0xf0] }
 0x186   :  { %762 = vst [vmem:[#allocation2 + $0x4d0] sm:$0xff] %v8909_v47  ;;  %4503 = vmatpush.bf16.msra.mxu3 %v12353_v33 }
 0x18a   :  { %v3774_v63 = vpop.f32.mrf.mxu2  ;;  %v3599_v4 = vpop.f32.mrf.mxu0 }
 0x18b   :  { %v3863_v0 = vpop.f32.mrf.mxu3  ;;  %v3775_v15 = vadd.f32 %v3774_v63, %v3686_v41  ;;  %v3688_v17 = vpop.f32.mrf.mxu1  ;;  %v3600_v22 = vadd.f32 %v13346_v54, %v3599_v4  ;;  %v8916_v41 = vld [vmem:[%s14136_s0 + $0x118] sm:$0xf]  ;;  %v8925_v63 = vor.u32 %v11985_v52, %v8924_v43 }
 0x18c   :  { %v8917_v55 = vor.u32 %v11984_v44, %v8916_v41 }
 0x18d   :  { %v13404_v28 = vadd.f32 %v3863_v0, %v3775_v15  ;;  %v3689_v25 = vadd.f32 %v3688_v17, %v3600_v22  ;;  %3914 = vmatmul.bf16.gmra.mxu0 %v9417_v14  ;;  %v9480_v14 = vld [vmem:[#allocation2 + $0x390] sm:$0xf]  ;;  %v12337_v15 = vld [vmem:[#allocation3 + $0x258] sm:$0xff]  ;;  %v12120_v17 = vld [vmem:[#allocation2 + $0x394] sm:$0xf]  ;;  %763 = vst [vmem:[#allocation2 + $0x4d8] sm:$0xff] %v8925_v63 }
 0x18e   :  { %4003 = vmatmul.bf16.gmra.mxu1 %v9421_v61  ;;  %v12128_v61 = vld [vmem:[#allocation2 + $0x3cc] sm:$0xf0]  ;;  %755 = vst [vmem:[#allocation2 + $0x498] sm:$0xff] %v8917_v55  ;;  %v12129_v22 = vld [vmem:[#allocation2 + $0x3d4] sm:$0xf0] }
 0x18f   :  { %4092 = vmatmul.bf16.gmra.mxu2 %v9425_v20  ;;  %v9482_v20 = vld [vmem:[#allocation2 + $0x3d0] sm:$0xf0]  ;;  %4325 = vmatpush.bf16.msra.mxu1 %v12337_v15  ;;  %591 = vst [vmem:[#allocation2 + $0x2b8] sm:$0xff] %v8917_v55 }
 0x190   :  { %4181 = vmatmul.bf16.gmra.mxu3 %v9429_v21  ;;  %v9488_v21 = vld [vmem:[#allocation2 + $0x398] sm:$0xf]  ;;  %599 = vst [vmem:[#allocation2 + $0x2f8] sm:$0xff] %v8925_v63 }
 0x191   :  { %630 = vst [vmem:[#allocation2 + $0x330] sm:$0xff] %v8917_v55 }
 0x192   :  { %v3777_v35 = vpop.f32.mrf.mxu2  ;;  %v3601_v49 = vpop.f32.mrf.mxu0  ;;  %638 = vst [vmem:[#allocation2 + $0x370] sm:$0xff] %v8925_v63 }
 0x193   :  { %v3866_v38 = vpop.f32.mrf.mxu3  ;;  %v3778_v45 = vadd.f32 %v3777_v35, %v3689_v25  ;;  %v3690_v47 = vpop.f32.mrf.mxu1  ;;  %v3602_v60 = vadd.f32 %v13346_v54, %v3601_v49  ;;  %v12121_v25 = vld [vmem:[#allocation2 + $0x39c] sm:$0xf]  ;;  %v9481_v35 = vor.u32 %v12128_v61, %v9480_v14  ;;  %794 = vst [vmem:[#allocation2 + $0x510] sm:$0xff] %v8917_v55  ;;  %v8932_v61 = vld [vmem:[%s14136_s0 + $0x128] sm:$0xf]  ;;  %4326 = vmatpush.bf16.msra.mxu1 %v12336_v9 }
 0x194   :  { %v9493_v49 = vor.u32 %v12121_v25, %v9490_v26  ;;  %802 = vst [vmem:[#allocation2 + $0x550] sm:$0xff] %v8925_v63  ;;  %v8940_v55 = vld [vmem:[%s14136_s0 + $0x12c] sm:$0xf]  ;;  %v11987_v63 = vld [vmem:[%s14136_s0 + $0x130] sm:$0xf0] }
 0x195   :  { %v13419_v0 = vadd.f32 %v3866_v38, %v3778_v45  ;;  %v3691_v4 = vadd.f32 %v3690_v47, %v3602_v60  ;;  %v9485_v38 = vor.u32 %v12120_v17, %v9482_v20  ;;  %v9489_v45 = vor.u32 %v12129_v22, %v9488_v21 }
 0x196   :  { %v8941_v26 = vor.u32 %v11987_v63, %v8940_v55 }
 0x198   :  { %803 = vst [vmem:[#allocation2 + $0x558] sm:$0xff] %v8941_v26 }
 0x199   :  { %639 = vst [vmem:[#allocation2 + $0x378] sm:$0xff] %v8941_v26 }
 0x19a   :  { %v3779_v31 = vpop.f32.mrf.mxu2  ;;  %v3604_v43 = vpop.f32.mrf.mxu0  ;;  %670 = vst [vmem:[#allocation2 + $0x3f0] sm:$0xff] %v8941_v26 }
 0x19b   :  { %v3868_v33 = vpop.f32.mrf.mxu3  ;;  %v3780_v41 = vadd.f32 %v3779_v31, %v3691_v4  ;;  %v3693_v44 = vpop.f32.mrf.mxu1  ;;  %v3605_v47 = vadd.f32 %v13346_v54, %v3604_v43  ;;  %v11986_v4 = vld [vmem:[%s14136_s0 + $0x12c] sm:$0xf0]  ;;  %v9546_v43 = vld [vmem:[#allocation2 + $0x450] sm:$0xf0]  ;;  %834 = vst [vmem:[#allocation2 + $0x5d0] sm:$0xff] %v8941_v26 }
 0x19c   :  { %v8933_v22 = vor.u32 %v11986_v4, %v8932_v61 }
 0x19d   :  { %v13422_v52 = vadd.f32 %v3868_v33, %v3780_v41  ;;  %v3694_v60 = vadd.f32 %v3693_v44, %v3605_v47  ;;  %3919 = vmatmul.bf16.gmra.mxu0 %v9481_v35  ;;  %v9544_v33 = vld [vmem:[#allocation2 + $0x410] sm:$0xf]  ;;  %v12136_v35 = vld [vmem:[#allocation2 + $0x414] sm:$0xf]  ;;  %v9552_v44 = vld [vmem:[#allocation2 + $0x418] sm:$0xf] }
 0x19e   :  { %4008 = vmatmul.bf16.gmra.mxu1 %v9485_v38  ;;  %795 = vst [vmem:[#allocation2 + $0x518] sm:$0xff] %v8933_v22  ;;  %v12144_v41 = vld [vmem:[#allocation2 + $0x44c] sm:$0xf0]  ;;  %v9554_v47 = vld [vmem:[#allocation2 + $0x458] sm:$0xf0]  ;;  %v9549_v61 = vor.u32 %v12136_v35, %v9546_v43 }
 0x19f   :  { %4097 = vmatmul.bf16.gmra.mxu2 %v9489_v45  ;;  %v12137_v45 = vld [vmem:[#allocation2 + $0x41c] sm:$0xf]  ;;  %631 = vst [vmem:[#allocation2 + $0x338] sm:$0xff] %v8933_v22  ;;  %v12352_v35 = vld [vmem:[#allocation3 + $0x2d0] sm:$0xff] }
 0x1a0   :  { %4186 = vmatmul.bf16.gmra.mxu3 %v9493_v49  ;;  %v12145_v49 = vld [vmem:[#allocation2 + $0x454] sm:$0xf0]  ;;  %662 = vst [vmem:[#allocation2 + $0x3b0] sm:$0xff] %v8933_v22 }
 0x1a1   :  { %826 = vst [vmem:[#allocation2 + $0x590] sm:$0xff] %v8933_v22  ;;  %4504 = vmatpush.bf16.msra.mxu3 %v12352_v35 }
 0x1a2   :  { %v3782_v15 = vpop.f32.mrf.mxu2  ;;  %v3606_v20 = vpop.f32.mrf.mxu0 }
 0x1a3   :  { %v3871_v14 = vpop.f32.mrf.mxu3  ;;  %v3783_v17 = vadd.f32 %v3782_v15, %v3694_v60  ;;  %v3695_v21 = vpop.f32.mrf.mxu1  ;;  %v3607_v25 = vadd.f32 %v13346_v54, %v3606_v20  ;;  %v9545_v54 = vor.u32 %v12144_v41, %v9544_v33  ;;  %v9557_v20 = vor.u32 %v12137_v45, %v9554_v47  ;;  %v12328_v33 = vld [vmem:[#allocation3 + $0x210] sm:$0xff] }
 0x1a4   :  { %4237 = vmatpush.bf16.msra.mxu0 %v12328_v33 }
 0x1a5   :  { %v13437_v31 = vadd.f32 %v3871_v14, %v3783_v17  ;;  %v3696_v38 = vadd.f32 %v3695_v21, %v3607_v25  ;;  %v9553_v17 = vor.u32 %v12145_v49, %v9552_v44 }
 0x1aa   :  { %v3784_v60 = vpop.f32.mrf.mxu2  ;;  %v3885_v55 = vpop.f32.mrf.mxu0 }
 0x1ab   :  { %v3873_v15 = vpop.f32.mrf.mxu3  ;;  %v3785_v14 = vadd.f32 %v3784_v60, %v3696_v38  ;;  %v3974_v4 = vpop.f32.mrf.mxu1  ;;  %v3886_v21 = vadd.f32 %v3885_v55, %v13163_v3  ;;  %v12814_v38 = vld [vmem:[%s14136_s0 + $0x138] sm:$0xff]   ;;  %v12152_v55 = vld [vmem:[#allocation2 + $0x494] sm:$0xf] }
 0x1ac   :  { %v12780_v22 = vunpack.c.l.b16 %v12814_v38  ;;  %v12781_v41 = vunpack.c.h.b16 %v12814_v38 }
 0x1ad   :  { %v13440_v63 = vadd.f32 %v3873_v15, %v3785_v14  ;;  %v3975_v25 = vadd.f32 %v3974_v4, %v3886_v21  ;;  %3924 = vmatmul.bf16.gmra.mxu0 %v9545_v54  ;;  %v9608_v54 = vld [vmem:[#allocation2 + $0x490] sm:$0xf]  ;;  %v9610_v4 = vld [vmem:[#allocation2 + $0x4d0] sm:$0xf0]  ;;  %v12153_v21 = vld [vmem:[#allocation2 + $0x49c] sm:$0xf] }
 0x1ae   :  { %4013 = vmatmul.bf16.gmra.mxu1 %v9549_v61  ;;  %v649_v26 = vpack.c.b16 %v12992_v1, %v12780_v22  ;;  %v651_v47 = vpack.c.b16 %v12994_v2, %v12781_v41  ;;  %v12160_v61 = vld [vmem:[#allocation2 + $0x4cc] sm:$0xf0]  ;;  %v9613_v38 = vor.u32 %v12152_v55, %v9610_v4 }
 0x1af   :  { %4102 = vmatmul.bf16.gmra.mxu2 %v9553_v17  ;;  %v9616_v17 = vld [vmem:[#allocation2 + $0x498] sm:$0xf] }
 0x1b0   :  { %4191 = vmatmul.bf16.gmra.mxu3 %v9557_v20  ;;  %827 = vst [vmem:[#allocation2 + $0x598] sm:$0xff] %v649_v26  ;;  %v12161_v20 = vld [vmem:[#allocation2 + $0x4d4] sm:$0xf0] }
 0x1b1   :  { %835 = vst [vmem:[#allocation2 + $0x5d8] sm:$0xff] %v651_v47 }
 0x1b2   :  { %v4063_v3 = vpop.f32.mrf.mxu2  ;;  %v3887_v45 = vpop.f32.mrf.mxu0  ;;  %663 = vst [vmem:[#allocation2 + $0x3b8] sm:$0xff] %v649_v26  ;;  %v12817_v26 = vld [vmem:[%s14136_s0 + $0x180] sm:$0xff]  }
 0x1b3   :  { %v4152_v43 = vpop.f32.mrf.mxu3  ;;  %v4064_v44 = vadd.f32 %v4063_v3, %v3975_v25  ;;  %v3976_v49 = vpop.f32.mrf.mxu1  ;;  %v3888_v60 = vadd.f32 %v3887_v45, %v13166_v40  ;;  %v9618_v25 = vld [vmem:[#allocation2 + $0x4d8] sm:$0xf0]  ;;  %671 = vst [vmem:[#allocation2 + $0x3f8] sm:$0xff] %v651_v47  ;;  %v9609_v40 = vor.u32 %v12160_v61, %v9608_v54  ;;  %v12792_v47 = vunpack.c.l.b16 %v12817_v26 }
 0x1b4   :  { %v12793_v54 = vunpack.c.h.b16 %v12817_v26  ;;  %v12177_v26 = vld [vmem:[#allocation2 + $0x554] sm:$0xf0] }
 0x1b5   :  { %v13448_v15 = vadd.f32 %v4152_v43, %v4064_v44  ;;  %v3977_v14 = vadd.f32 %v3976_v49, %v3888_v60  ;;  %v9617_v43 = vor.u32 %v12161_v20, %v9616_v17  ;;  %v9621_v44 = vor.u32 %v12153_v21, %v9618_v25  ;;  %v8956_v25 = vld [vmem:[%s14136_s0 + $0x18c] sm:$0xf] }
 0x1b6   :  { %v698_v20 = vpack.c.b16 %v12792_v47, %v12992_v1  ;;  %v702_v21 = vpack.c.b16 %v12793_v54, %v12994_v2  ;;  %v12169_v47 = vld [vmem:[#allocation2 + $0x51c] sm:$0xf] }
 0x1b7   :  { %v9682_v54 = vld [vmem:[#allocation2 + $0x558] sm:$0xf0] }
 0x1b8   :  { %862 = vst [vmem:[#allocation2 + $0x610] sm:$0xff] %v698_v20 }
 0x1b9   :  { %870 = vst [vmem:[#allocation2 + $0x650] sm:$0xff] %v702_v21 }
 0x1ba   :  { %v4065_v33 = vpop.f32.mrf.mxu2  ;;  %v3890_v41 = vpop.f32.mrf.mxu0  ;;  %718 = vst [vmem:[#allocation2 + $0x430] sm:$0xff] %v698_v20 }
 0x1bb   :  { %v4154_v35 = vpop.f32.mrf.mxu3  ;;  %v4066_v22 = vadd.f32 %v4065_v33, %v3977_v14  ;;  %v3979_v3 = vpop.f32.mrf.mxu1  ;;  %v3891_v45 = vadd.f32 %v3890_v41, %v13186_v58  ;;  %v8948_v14 = vld [vmem:[%s14136_s0 + $0x188] sm:$0xf]  ;;  %v11994_v58 = vld [vmem:[%s14136_s0 + $0x18c] sm:$0xf0]  ;;  %v11995_v33 = vld [vmem:[%s14136_s0 + $0x190] sm:$0xf0] }
 0x1bc   :  { %v8949_v41 = vor.u32 %v11994_v58, %v8948_v14  ;;  %726 = vst [vmem:[#allocation2 + $0x470] sm:$0xff] %v702_v21  ;;  %v12343_v21 = vld [vmem:[#allocation3 + $0x288] sm:$0xff] }
 0x1bd   :  { %v13451_v49 = vadd.f32 %v4154_v35, %v4066_v22  ;;  %v3980_v60 = vadd.f32 %v3979_v3, %v3891_v45  ;;  %3929 = vmatmul.bf16.gmra.mxu0 %v9609_v40  ;;  %v12176_v22 = vld [vmem:[#allocation2 + $0x54c] sm:$0xf0]  ;;  %v8957_v45 = vor.u32 %v11995_v33, %v8956_v25  ;;  %4416 = vmatpush.bf16.msra.mxu2 %v12343_v21  ;;  %v9746_v21 = vld [vmem:[#allocation2 + $0x5d8] sm:$0xf0] }
 0x1be   :  { %4018 = vmatmul.bf16.gmra.mxu1 %v9613_v38  ;;  %v9672_v38 = vld [vmem:[#allocation2 + $0x510] sm:$0xf]  ;;  %863 = vst [vmem:[#allocation2 + $0x618] sm:$0xff] %v8949_v41 }
 0x1bf   :  { %4107 = vmatmul.bf16.gmra.mxu2 %v9617_v43  ;;  %v12168_v43 = vld [vmem:[#allocation2 + $0x514] sm:$0xf]  ;;  %871 = vst [vmem:[#allocation2 + $0x658] sm:$0xff] %v8957_v45 }
 0x1c0   :  { %4196 = vmatmul.bf16.gmra.mxu3 %v9621_v44  ;;  %v9674_v44 = vld [vmem:[#allocation2 + $0x550] sm:$0xf0]  ;;  %719 = vst [vmem:[#allocation2 + $0x438] sm:$0xff] %v8949_v41 }
 0x1c1   :  { %727 = vst [vmem:[#allocation2 + $0x478] sm:$0xff] %v8957_v45 }
 0x1c2   :  { %v4068_v61 = vpop.f32.mrf.mxu2  ;;  %v3892_v4 = vpop.f32.mrf.mxu0  ;;  %758 = vst [vmem:[#allocation2 + $0x4b0] sm:$0xff] %v8949_v41 }
 0x1c3   :  { %v4157_v9 = vpop.f32.mrf.mxu3  ;;  %v4069_v55 = vadd.f32 %v4068_v61, %v3980_v60  ;;  %v3981_v17 = vpop.f32.mrf.mxu1  ;;  %v3893_v35 = vadd.f32 %v3892_v4, %v13189_v27  ;;  %v9680_v60 = vld [vmem:[#allocation2 + $0x518] sm:$0xf]  ;;  %766 = vst [vmem:[#allocation2 + $0x4f0] sm:$0xff] %v8957_v45 }
 0x1c4   :  { %v9681_v58 = vor.u32 %v12177_v26, %v9680_v60  ;;  %890 = vst [vmem:[#allocation2 + $0x690] sm:$0xff] %v8949_v41  ;;  %v11996_v41 = vld [vmem:[%s14136_s0 + $0x19c] sm:$0xf0]  ;;  %v11997_v60 = vld [vmem:[%s14136_s0 + $0x1a0] sm:$0xf0] }
 0x1c5   :  { %v13471_v40 = vadd.f32 %v4157_v9, %v4069_v55  ;;  %v3982_v3 = vadd.f32 %v3981_v17, %v3893_v35  ;;  %v9673_v9 = vor.u32 %v12176_v22, %v9672_v38  ;;  %v9677_v55 = vor.u32 %v12168_v43, %v9674_v44  ;;  %v12327_v35 = vld [vmem:[#allocation3 + $0x208] sm:$0xff]  ;;  %898 = vst [vmem:[#allocation2 + $0x6d0] sm:$0xff] %v8957_v45 }
 0x1c6   :  { %v9685_v17 = vor.u32 %v12169_v47, %v9682_v54  ;;  %v12351_v38 = vld [vmem:[#allocation3 + $0x2c8] sm:$0xff]  ;;  %4238 = vmatpush.bf16.msra.mxu0 %v12327_v35 }
 0x1c7   :  { %4505 = vmatpush.bf16.msra.mxu3 %v12351_v38 }
 0x1ca   :  { %v4070_v61 = vpop.f32.mrf.mxu2  ;;  %v3895_v11 = vpop.f32.mrf.mxu0 }
 0x1cb   :  { %v4159_v27 = vpop.f32.mrf.mxu3  ;;  %v4071_v4 = vadd.f32 %v4070_v61, %v3982_v3  ;;  %v3984_v14 = vpop.f32.mrf.mxu1  ;;  %v3896_v25 = vadd.f32 %v3895_v11, %v13204_v46  ;;  %v8964_v11 = vld [vmem:[%s14136_s0 + $0x198] sm:$0xf]  ;;  %v8972_v46 = vld [vmem:[%s14136_s0 + $0x19c] sm:$0xf] }
 0x1cc   :  { %v8965_v26 = vor.u32 %v11996_v41, %v8964_v11  ;;  %v8973_v54 = vor.u32 %v11997_v60, %v8972_v46 }
 0x1cd   :  { %v13474_v33 = vadd.f32 %v4159_v27, %v4071_v4  ;;  %v3985_v20 = vadd.f32 %v3984_v14, %v3896_v25  ;;  %3934 = vmatmul.bf16.gmra.mxu0 %v9673_v9  ;;  %v9736_v27 = vld [vmem:[#allocation2 + $0x590] sm:$0xf]  ;;  %v12184_v14 = vld [vmem:[#allocation2 + $0x594] sm:$0xf]  ;;  %v12193_v25 = vld [vmem:[#allocation2 + $0x5d4] sm:$0xf0] }
 0x1ce   :  { %4023 = vmatmul.bf16.gmra.mxu1 %v9677_v55  ;;  %v12192_v9 = vld [vmem:[#allocation2 + $0x5cc] sm:$0xf0]  ;;  %v12335_v55 = vld [vmem:[#allocation3 + $0x248] sm:$0xff]  ;;  %891 = vst [vmem:[#allocation2 + $0x698] sm:$0xff] %v8965_v26 }
 0x1cf   :  { %4112 = vmatmul.bf16.gmra.mxu2 %v9681_v58  ;;  %v9738_v58 = vld [vmem:[#allocation2 + $0x5d0] sm:$0xf0]  ;;  %899 = vst [vmem:[#allocation2 + $0x6d8] sm:$0xff] %v8973_v54  ;;  %4327 = vmatpush.bf16.msra.mxu1 %v12335_v55  ;;  %v9737_v38 = vor.u32 %v12192_v9, %v9736_v27  ;;  %v8980_v9 = vld [vmem:[%s14136_s0 + $0x1a8] sm:$0xf] }
 0x1d0   :  { %4201 = vmatmul.bf16.gmra.mxu3 %v9685_v17  ;;  %v9744_v17 = vld [vmem:[#allocation2 + $0x598] sm:$0xf]  ;;  %759 = vst [vmem:[#allocation2 + $0x4b8] sm:$0xff] %v8965_v26 }
 0x1d1   :  { %767 = vst [vmem:[#allocation2 + $0x4f8] sm:$0xff] %v8973_v54  ;;  %v9745_v41 = vor.u32 %v12193_v25, %v9744_v17 }
 0x1d2   :  { %v4073_v22 = vpop.f32.mrf.mxu2  ;;  %v3897_v44 = vpop.f32.mrf.mxu0  ;;  %798 = vst [vmem:[#allocation2 + $0x530] sm:$0xff] %v8965_v26 }
 0x1d3   :  { %v4162_v3 = vpop.f32.mrf.mxu3  ;;  %v4074_v43 = vadd.f32 %v4073_v22, %v3985_v20  ;;  %v3986_v45 = vpop.f32.mrf.mxu1  ;;  %v3898_v47 = vadd.f32 %v3897_v44, %v13207_v16  ;;  %v12185_v20 = vld [vmem:[#allocation2 + $0x59c] sm:$0xf]  ;;  %v9741_v22 = vor.u32 %v12184_v14, %v9738_v58  ;;  %806 = vst [vmem:[#allocation2 + $0x570] sm:$0xff] %v8973_v54 }
 0x1d4   :  { %918 = vst [vmem:[#allocation2 + $0x710] sm:$0xff] %v8965_v26  ;;  %v8988_v26 = vld [vmem:[%s14136_s0 + $0x1ac] sm:$0xf] }
 0x1d5   :  { %v13489_v61 = vadd.f32 %v4162_v3, %v4074_v43  ;;  %v3987_v4 = vadd.f32 %v3986_v45, %v3898_v47  ;;  %v9749_v43 = vor.u32 %v12185_v20, %v9746_v21  ;;  %926 = vst [vmem:[#allocation2 + $0x750] sm:$0xff] %v8973_v54  ;;  %v11999_v54 = vld [vmem:[%s14136_s0 + $0x1b0] sm:$0xf0]  ;;  %v9800_v21 = vld [vmem:[#allocation2 + $0x610] sm:$0xf] }
 0x1d6   :  { %v8989_v25 = vor.u32 %v11999_v54, %v8988_v26  ;;  %v12342_v54 = vld [vmem:[#allocation3 + $0x280] sm:$0xff] }
 0x1d7   :  { %4417 = vmatpush.bf16.msra.mxu2 %v12342_v54 }
 0x1d8   :  { %927 = vst [vmem:[#allocation2 + $0x758] sm:$0xff] %v8989_v25 }
 0x1d9   :  { %807 = vst [vmem:[#allocation2 + $0x578] sm:$0xff] %v8989_v25 }
 0x1da   :  { %v4075_v16 = vpop.f32.mrf.mxu2  ;;  %v3900_v11 = vpop.f32.mrf.mxu0  ;;  %838 = vst [vmem:[#allocation2 + $0x5f0] sm:$0xff] %v8989_v25 }
 0x1db   :  { %v4164_v35 = vpop.f32.mrf.mxu3  ;;  %v4076_v3 = vadd.f32 %v4075_v16, %v3987_v4  ;;  %v3989_v46 = vpop.f32.mrf.mxu1  ;;  %v3901_v44 = vadd.f32 %v3900_v11, %v13222_v30  ;;  %v11998_v30 = vld [vmem:[%s14136_s0 + $0x1ac] sm:$0xf0]  ;;  %v12200_v16 = vld [vmem:[#allocation2 + $0x614] sm:$0xf]  ;;  %v12201_v11 = vld [vmem:[#allocation2 + $0x61c] sm:$0xf] }
 0x1dc   :  { %v8981_v58 = vor.u32 %v11998_v30, %v8980_v9  ;;  %950 = vst [vmem:[#allocation2 + $0x7d0] sm:$0xff] %v8989_v25 }
 0x1dd   :  { %v13492_v45 = vadd.f32 %v4164_v35, %v4076_v3  ;;  %v3990_v60 = vadd.f32 %v3989_v46, %v3901_v44  ;;  %3939 = vmatmul.bf16.gmra.mxu0 %v9737_v38  ;;  %v12208_v38 = vld [vmem:[#allocation2 + $0x64c] sm:$0xf0]  ;;  %v9808_v3 = vld [vmem:[#allocation2 + $0x618] sm:$0xf] }
 0x1de   :  { %4028 = vmatmul.bf16.gmra.mxu1 %v9741_v22  ;;  %919 = vst [vmem:[#allocation2 + $0x718] sm:$0xff] %v8981_v58  ;;  %v9802_v22 = vld [vmem:[#allocation2 + $0x650] sm:$0xf0]  ;;  %v12209_v46 = vld [vmem:[#allocation2 + $0x654] sm:$0xf0] }
 0x1df   :  { %4117 = vmatmul.bf16.gmra.mxu2 %v9745_v41  ;;  %799 = vst [vmem:[#allocation2 + $0x538] sm:$0xff] %v8981_v58  ;;  %v9810_v41 = vld [vmem:[#allocation2 + $0x658] sm:$0xf0]  ;;  %v9809_v26 = vor.u32 %v12209_v46, %v9808_v3 }
 0x1e0   :  { %4206 = vmatmul.bf16.gmra.mxu3 %v9749_v43  ;;  %830 = vst [vmem:[#allocation2 + $0x5b0] sm:$0xff] %v8981_v58  ;;  %v9813_v30 = vor.u32 %v12201_v11, %v9810_v41 }
 0x1e1   :  { %942 = vst [vmem:[#allocation2 + $0x790] sm:$0xff] %v8981_v58 }
 0x1e2   :  { %v4078_v47 = vpop.f32.mrf.mxu2  ;;  %v3902_v4 = vpop.f32.mrf.mxu0 }
 0x1e3   :  { %v4167_v27 = vpop.f32.mrf.mxu3  ;;  %v4079_v55 = vadd.f32 %v4078_v47, %v3990_v60  ;;  %v3991_v14 = vpop.f32.mrf.mxu1  ;;  %v3903_v17 = vadd.f32 %v3902_v4, %v13225_v53  ;;  %v9801_v53 = vor.u32 %v12208_v38, %v9800_v21  ;;  %v9805_v60 = vor.u32 %v12200_v16, %v9802_v22  ;;  %v12350_v21 = vld [vmem:[#allocation3 + $0x2c0] sm:$0xff]  ;;  %v12818_v16 = vld [vmem:[%s14136_s0 + $0x1b8] sm:$0xff]  }
 0x1e4   :  { %v12796_v58 = vunpack.c.l.b16 %v12818_v16  ;;  %4506 = vmatpush.bf16.msra.mxu3 %v12350_v21 }
 0x1e5   :  { %v13507_v20 = vadd.f32 %v4167_v27, %v4079_v55  ;;  %v3992_v35 = vadd.f32 %v3991_v14, %v3903_v17  ;;  %v12326_v17 = vld [vmem:[#allocation3 + $0x200] sm:$0xff] }
 0x1e6   :  { %4239 = vmatpush.bf16.msra.mxu0 %v12326_v17  ;;  %v817_v25 = vpack.c.b16 %v12992_v1, %v12796_v58 }
 0x1e8   :  { %943 = vst [vmem:[#allocation2 + $0x798] sm:$0xff] %v817_v25 }
 0x1e9   :  { %831 = vst [vmem:[#allocation2 + $0x5b8] sm:$0xff] %v817_v25 }
 0x1ea   :  { %v4080_v43 = vpop.f32.mrf.mxu2  ;;  %v3905_v27 = vpop.f32.mrf.mxu0 }
 0x1eb   :  { %v4169_v44 = vpop.f32.mrf.mxu3  ;;  %v4081_v47 = vadd.f32 %v4080_v43, %v3992_v35  ;;  %v3994_v9 = vpop.f32.mrf.mxu1  ;;  %v3906_v55 = vadd.f32 %v3905_v27, %v13233_v19  ;;  %v12797_v35 = vunpack.c.h.b16 %v12818_v16  ;;  %v12216_v27 = vld [vmem:[#allocation2 + $0x694] sm:$0xf] }
 0x1ed   :  { %v13510_v4 = vadd.f32 %v4169_v44, %v4081_v47  ;;  %v3995_v14 = vadd.f32 %v3994_v9, %v3906_v55  ;;  %3944 = vmatmul.bf16.gmra.mxu0 %v9801_v53  ;;  %v819_v46 = vpack.c.b16 %v12994_v2, %v12797_v35  ;;  %v9864_v44 = vld [vmem:[#allocation2 + $0x690] sm:$0xf]  ;;  %v9866_v9 = vld [vmem:[#allocation2 + $0x6d0] sm:$0xf0]  ;;  %v12217_v55 = vld [vmem:[#allocation2 + $0x69c] sm:$0xf] }
 0x1ee   :  { %4033 = vmatmul.bf16.gmra.mxu1 %v9805_v60  ;;  %v12224_v53 = vld [vmem:[#allocation2 + $0x6cc] sm:$0xf0]  ;;  %v12334_v60 = vld [vmem:[#allocation3 + $0x240] sm:$0xff]  ;;  %v9869_v21 = vor.u32 %v12216_v27, %v9866_v9 }
 0x1ef   :  { %4122 = vmatmul.bf16.gmra.mxu2 %v9809_v26  ;;  %951 = vst [vmem:[#allocation2 + $0x7d8] sm:$0xff] %v819_v46  ;;  %v9872_v26 = vld [vmem:[#allocation2 + $0x698] sm:$0xf]  ;;  %4328 = vmatpush.bf16.msra.mxu1 %v12334_v60  ;;  %v9928_v9 = vld [vmem:[#allocation2 + $0x710] sm:$0xf] }
 0x1f0   :  { %4211 = vmatmul.bf16.gmra.mxu3 %v9813_v30  ;;  %v12225_v30 = vld [vmem:[#allocation2 + $0x6d4] sm:$0xf0]  ;;  %839 = vst [vmem:[#allocation2 + $0x5f8] sm:$0xff] %v819_v46 }
 0x1f2   :  { %v4083_v19 = vpop.f32.mrf.mxu2  ;;  %v3907_v3 = vpop.f32.mrf.mxu0 }
 0x1f3   :  { %v4172_v38 = vpop.f32.mrf.mxu3  ;;  %v4084_v22 = vadd.f32 %v4083_v19, %v3995_v14  ;;  %v3996_v11 = vpop.f32.mrf.mxu1  ;;  %v3908_v41 = vadd.f32 %v3907_v3, %v13236_v42  ;;  %v9874_v14 = vld [vmem:[#allocation2 + $0x6d8] sm:$0xf0]  ;;  %v9865_v42 = vor.u32 %v12224_v53, %v9864_v44  ;;  %v9873_v19 = vor.u32 %v12225_v30, %v9872_v26  ;;  %v12240_v26 = vld [vmem:[#allocation2 + $0x74c] sm:$0xf0]  ;;  %v9930_v30 = vld [vmem:[#allocation2 + $0x750] sm:$0xf0] }
 0x1f5   :  { %v13518_v43 = vadd.f32 %v4172_v38, %v4084_v22  ;;  %v3997_v47 = vadd.f32 %v3996_v11, %v3908_v41  ;;  %v9877_v38 = vor.u32 %v12217_v55, %v9874_v14  ;;  %v9936_v55 = vld [vmem:[#allocation2 + $0x718] sm:$0xf] }
 0x1f6   :  { %v12241_v14 = vld [vmem:[#allocation2 + $0x754] sm:$0xf0] }
 0x1fa   :  { %v4085_v54 = vpop.f32.mrf.mxu2  ;;  %v3910_v58 = vpop.f32.mrf.mxu0 }
 0x1fb   :  { %v4174_v17 = vpop.f32.mrf.mxu3  ;;  %v4086_v16 = vadd.f32 %v4085_v54, %v3997_v47  ;;  %v3999_v35 = vpop.f32.mrf.mxu1  ;;  %v3911_v22 = vadd.f32 %v3910_v58, %v13256_v13  ;;  %v12232_v13 = vld [vmem:[#allocation2 + $0x714] sm:$0xf]  ;;  %v12233_v54 = vld [vmem:[#allocation2 + $0x71c] sm:$0xf] }
 0x1fc   :  { %v9933_v58 = vor.u32 %v12232_v13, %v9930_v30 }
 0x1fd   :  { %v13521_v3 = vadd.f32 %v4174_v17, %v4086_v16  ;;  %v4000_v11 = vadd.f32 %v3999_v35, %v3911_v22  ;;  %3949 = vmatmul.bf16.gmra.mxu0 %v9865_v42  ;;  %v9938_v17 = vld [vmem:[#allocation2 + $0x758] sm:$0xf0]  ;;  %v9929_v16 = vor.u32 %v12240_v26, %v9928_v9  ;;  %v9937_v22 = vor.u32 %v12241_v14, %v9936_v55 }
 0x1fe   :  { %4038 = vmatmul.bf16.gmra.mxu1 %v9869_v21  ;;  %v12373_v55 = vld [vmem:[#allocation3 + $0x378] sm:$0xff] }
 0x1ff   :  { %4127 = vmatmul.bf16.gmra.mxu2 %v9873_v19  ;;  %4677 = vmatpush.bf16.msrb.mxu1 %v12373_v55 }
 0x200   :  { %4216 = vmatmul.bf16.gmra.mxu3 %v9877_v38 }
 0x202   :  { %v4088_v25 = vpop.f32.mrf.mxu2  ;;  %v3912_v60 = vpop.f32.mrf.mxu0 }
 0x203   :  { %v4177_v46 = vpop.f32.mrf.mxu3  ;;  %v4089_v41 = vadd.f32 %v4088_v25, %v4000_v11  ;;  %v4001_v44 = vpop.f32.mrf.mxu1  ;;  %v3913_v53 = vadd.f32 %v3912_v60, %v13259_v36  ;;  %v9941_v36 = vor.u32 %v12233_v54, %v9938_v17  ;;  %v12365_v60 = vld [vmem:[#allocation3 + $0x338] sm:$0xff]  ;;  %v9992_v54 = vld [vmem:[#allocation2 + $0x790] sm:$0xf] }
 0x204   :  { %4588 = vmatpush.bf16.msrb.mxu0 %v12365_v60  ;;  %v12256_v17 = vld [vmem:[#allocation2 + $0x7cc] sm:$0xf0] }
 0x205   :  { %v13524_v47 = vadd.f32 %v4177_v46, %v4089_v41  ;;  %v4002_v27 = vadd.f32 %v4001_v44, %v3913_v53  ;;  %v12381_v41 = vld [vmem:[#allocation3 + $0x3b8] sm:$0xff] }
 0x206   :  { %v12389_v44 = vld [vmem:[#allocation3 + $0x3f8] sm:$0xff]  ;;  %4766 = vmatpush.bf16.msrb.mxu2 %v12381_v41 }
 0x207   :  { %4855 = vmatpush.bf16.msrb.mxu3 %v12389_v44 }
 0x20a   :  { %v4090_v42 = vpop.f32.mrf.mxu2  ;;  %v3915_v19 = vpop.f32.mrf.mxu0 }
 0x20b   :  { %v4179_v21 = vpop.f32.mrf.mxu3  ;;  %v4091_v35 = vadd.f32 %v4090_v42, %v4002_v27  ;;  %v4004_v38 = vpop.f32.mrf.mxu1  ;;  %v3916_v11 = vadd.f32 %v3915_v19, %v13274_v59  ;;  %v12248_v42 = vld [vmem:[#allocation2 + $0x794] sm:$0xf]  ;;  %v10002_v19 = vld [vmem:[#allocation2 + $0x7d8] sm:$0xf0] }
 0x20d   :  { %v13527_v25 = vadd.f32 %v4179_v21, %v4091_v35  ;;  %v4005_v46 = vadd.f32 %v4004_v38, %v3916_v11  ;;  %3954 = vmatmul.bf16.gmra.mxu0 %v9929_v16  ;;  %v9994_v21 = vld [vmem:[#allocation2 + $0x7d0] sm:$0xf0]  ;;  %v10000_v16 = vld [vmem:[#allocation2 + $0x798] sm:$0xf]  ;;  %v12249_v35 = vld [vmem:[#allocation2 + $0x79c] sm:$0xf] }
 0x20e   :  { %4043 = vmatmul.bf16.gmra.mxu1 %v9933_v58  ;;  %v12257_v58 = vld [vmem:[#allocation2 + $0x7d4] sm:$0xf0]  ;;  %v9997_v11 = vor.u32 %v12248_v42, %v9994_v21  ;;  %v10005_v44 = vor.u32 %v12249_v35, %v10002_v19  ;;  %v9048_v21 = vld [vmem:[#allocation2 + $0x20] sm:$0xf]  ;;  %v9056_v35 = vld [vmem:[#allocation2 + $0x28] sm:$0xf] }
 0x20f   :  { %4132 = vmatmul.bf16.gmra.mxu2 %v9937_v22  ;;  %v10001_v60 = vor.u32 %v12257_v58, %v10000_v16  ;;  %v12018_v16 = vld [vmem:[#allocation2 + $0x5c] sm:$0xf0]  ;;  %v9050_v58 = vld [vmem:[#allocation2 + $0x60] sm:$0xf0]  ;;  %v12019_v19 = vld [vmem:[#allocation2 + $0x64] sm:$0xf0] }
 0x210   :  { %4221 = vmatmul.bf16.gmra.mxu3 %v9941_v36  ;;  %v9993_v36 = vor.u32 %v12256_v17, %v9992_v54 }
 0x212   :  { %v4093_v53 = vpop.f32.mrf.mxu2  ;;  %v3917_v26 = vpop.f32.mrf.mxu0 }
 0x213   :  { %v4182_v27 = vpop.f32.mrf.mxu3  ;;  %v4094_v9 = vadd.f32 %v4093_v53, %v4005_v46  ;;  %v4006_v13 = vpop.f32.mrf.mxu1  ;;  %v3918_v59 = vadd.f32 %v3917_v26, %v13277_v32 }
 0x215   :  { %v13530_v30 = vadd.f32 %v4182_v27, %v4094_v9  ;;  %v4007_v14 = vadd.f32 %v4006_v13, %v3918_v59 }
 0x21a   :  { %v4095_v38 = vpop.f32.mrf.mxu2  ;;  %v3920_v41 = vpop.f32.mrf.mxu0 }
 0x21b   :  { %v4184_v22 = vpop.f32.mrf.mxu3  ;;  %v4096_v46 = vadd.f32 %v4095_v38, %v4007_v14  ;;  %v4009_v32 = vpop.f32.mrf.mxu1  ;;  %v3921_v53 = vadd.f32 %v3920_v41, %v13292_v51  ;;  %v12010_v51 = vld [vmem:[#allocation2 + $0x24] sm:$0xf]  ;;  %v12011_v38 = vld [vmem:[#allocation2 + $0x2c] sm:$0xf] }
 0x21c   :  { %v9053_v41 = vor.u32 %v12010_v51, %v9050_v58 }
 0x21d   :  { %v13533_v27 = vadd.f32 %v4184_v22, %v4096_v46  ;;  %v4010_v9 = vadd.f32 %v4009_v32, %v3921_v53  ;;  %3959 = vmatmul.bf16.gmra.mxu0 %v9993_v36  ;;  %v9058_v22 = vld [vmem:[#allocation2 + $0x68] sm:$0xf0]  ;;  %v9049_v46 = vor.u32 %v12018_v16, %v9048_v21  ;;  %v9057_v53 = vor.u32 %v12019_v19, %v9056_v35  ;;  %v12372_v35 = vld [vmem:[#allocation3 + $0x370] sm:$0xff] }
 0x21e   :  { %4048 = vmatmul.bf16.gmra.mxu1 %v9997_v11 }
 0x21f   :  { %4137 = vmatmul.bf16.gmra.mxu2 %v10001_v60  ;;  %4678 = vmatpush.bf16.msrb.mxu1 %v12372_v35 }
 0x220   :  { %4226 = vmatmul.bf16.gmra.mxu3 %v10005_v44 }
 0x222   :  { %v4098_v26 = vpop.f32.mrf.mxu2  ;;  %v3922_v55 = vpop.f32.mrf.mxu0 }
 0x223   :  { %v4187_v13 = vpop.f32.mrf.mxu3  ;;  %v4099_v59 = vadd.f32 %v4098_v26, %v4010_v9  ;;  %v4011_v54 = vpop.f32.mrf.mxu1  ;;  %v3923_v14 = vadd.f32 %v3922_v55, %v13295_v24  ;;  %v9061_v24 = vor.u32 %v12011_v38, %v9058_v22  ;;  %v12364_v55 = vld [vmem:[#allocation3 + $0x330] sm:$0xff]  ;;  %v9112_v38 = vld [vmem:[#allocation2 + $0xa0] sm:$0xf] }
 0x224   :  { %4589 = vmatpush.bf16.msrb.mxu0 %v12364_v55  ;;  %v12034_v22 = vld [vmem:[#allocation2 + $0xdc] sm:$0xf0] }
 0x225   :  { %v13536_v17 = vadd.f32 %v4187_v13, %v4099_v59  ;;  %v4012_v42 = vadd.f32 %v4011_v54, %v3923_v14  ;;  %v12380_v59 = vld [vmem:[#allocation3 + $0x3b0] sm:$0xff] }
 0x226   :  { %v12388_v54 = vld [vmem:[#allocation3 + $0x3f0] sm:$0xff]  ;;  %4767 = vmatpush.bf16.msrb.mxu2 %v12380_v59 }
 0x227   :  { %4856 = vmatpush.bf16.msrb.mxu3 %v12388_v54 }
 0x22a   :  { %v4100_v36 = vpop.f32.mrf.mxu2  ;;  %v3925_v60 = vpop.f32.mrf.mxu0 }
 0x22b   :  { %v4189_v11 = vpop.f32.mrf.mxu3  ;;  %v4101_v32 = vadd.f32 %v4100_v36, %v4012_v42  ;;  %v4014_v44 = vpop.f32.mrf.mxu1  ;;  %v3926_v9 = vadd.f32 %v3925_v60, %v13303_v48  ;;  %v12026_v36 = vld [vmem:[#allocation2 + $0xa4] sm:$0xf]  ;;  %v9122_v60 = vld [vmem:[#allocation2 + $0xe8] sm:$0xf0] }
 0x22d   :  { %v13539_v26 = vadd.f32 %v4189_v11, %v4101_v32  ;;  %v4015_v13 = vadd.f32 %v4014_v44, %v3926_v9  ;;  %4240 = vmatmul.bf16.vlgmr.msra.gmra.mxu0 %v9049_v46  ;;  %v9114_v11 = vld [vmem:[#allocation2 + $0xe0] sm:$0xf0]  ;;  %v9120_v46 = vld [vmem:[#allocation2 + $0xa8] sm:$0xf]  ;;  %v12027_v32 = vld [vmem:[#allocation2 + $0xac] sm:$0xf] }
 0x22e   :  { %4329 = vmatmul.bf16.vlgmr.msra.gmra.mxu1 %v9053_v41  ;;  %v12035_v41 = vld [vmem:[#allocation2 + $0xe4] sm:$0xf0]  ;;  %v9117_v9 = vor.u32 %v12026_v36, %v9114_v11  ;;  %v9125_v54 = vor.u32 %v12027_v32, %v9122_v60  ;;  %v9176_v11 = vld [vmem:[#allocation2 + $0x120] sm:$0xf] }
 0x22f   :  { %4418 = vmatmul.bf16.vlgmr.msra.gmra.mxu2 %v9057_v53  ;;  %v9121_v55 = vor.u32 %v12035_v41, %v9120_v46  ;;  %v12050_v46 = vld [vmem:[#allocation2 + $0x15c] sm:$0xf0]  ;;  %v9178_v41 = vld [vmem:[#allocation2 + $0x160] sm:$0xf0]  ;;  %v9184_v32 = vld [vmem:[#allocation2 + $0x128] sm:$0xf] }
 0x230   :  { %4507 = vmatmul.bf16.vlgmr.msra.gmra.mxu3 %v9061_v24  ;;  %v9113_v24 = vor.u32 %v12034_v22, %v9112_v38  ;;  %v12051_v60 = vld [vmem:[#allocation2 + $0x164] sm:$0xf0] }
 0x232   :  { %v4103_v14 = vpop.f32.mrf.mxu2  ;;  %v3927_v16 = vpop.f32.mrf.mxu0 }
 0x233   :  { %v4192_v42 = vpop.f32.mrf.mxu3  ;;  %v4104_v21 = vadd.f32 %v4103_v14, %v4015_v13  ;;  %v4016_v51 = vpop.f32.mrf.mxu1  ;;  %v3928_v48 = vadd.f32 %v3927_v16, %v13306_v23 }
 0x235   :  { %v13542_v58 = vadd.f32 %v4192_v42, %v4104_v21  ;;  %v4017_v19 = vadd.f32 %v4016_v51, %v3928_v48 }
 0x23a   :  { %v4105_v44 = vpop.f32.mrf.mxu2  ;;  %v3930_v59 = vpop.f32.mrf.mxu0 }
 0x23b   :  { %v4194_v53 = vpop.f32.mrf.mxu3  ;;  %v4106_v13 = vadd.f32 %v4105_v44, %v4017_v19  ;;  %v4019_v23 = vpop.f32.mrf.mxu1  ;;  %v3931_v14 = vadd.f32 %v3930_v59, %v13326_v50  ;;  %v12042_v50 = vld [vmem:[#allocation2 + $0x124] sm:$0xf]  ;;  %v12043_v44 = vld [vmem:[#allocation2 + $0x12c] sm:$0xf] }
 0x23c   :  { %v9181_v59 = vor.u32 %v12042_v50, %v9178_v41 }
 0x23d   :  { %v13545_v42 = vadd.f32 %v4194_v53, %v4106_v13  ;;  %v4020_v21 = vadd.f32 %v4019_v23, %v3931_v14  ;;  %4245 = vmatmul.bf16.gmra.mxu0 %v9113_v24  ;;  %v9186_v53 = vld [vmem:[#allocation2 + $0x168] sm:$0xf0]  ;;  %v9177_v13 = vor.u32 %v12050_v46, %v9176_v11  ;;  %v9185_v14 = vor.u32 %v12051_v60, %v9184_v32 }
 0x23e   :  { %4334 = vmatmul.bf16.gmra.mxu1 %v9117_v9  ;;  %v12371_v32 = vld [vmem:[#allocation3 + $0x368] sm:$0xff] }
 0x23f   :  { %4423 = vmatmul.bf16.gmra.mxu2 %v9121_v55  ;;  %4679 = vmatpush.bf16.msrb.mxu1 %v12371_v32 }
 0x240   :  { %4512 = vmatmul.bf16.gmra.mxu3 %v9125_v54 }
 0x242   :  { %v4108_v16 = vpop.f32.mrf.mxu2  ;;  %v3932_v35 = vpop.f32.mrf.mxu0 }
 0x243   :  { %v4197_v51 = vpop.f32.mrf.mxu3  ;;  %v4109_v48 = vadd.f32 %v4108_v16, %v4020_v21  ;;  %v4021_v38 = vpop.f32.mrf.mxu1  ;;  %v3933_v19 = vadd.f32 %v3932_v35, %v13329_v29  ;;  %v9189_v29 = vor.u32 %v12043_v44, %v9186_v53  ;;  %v12363_v35 = vld [vmem:[#allocation3 + $0x328] sm:$0xff]  ;;  %v9240_v44 = vld [vmem:[#allocation2 + $0x1a0] sm:$0xf] }
 0x244   :  { %4590 = vmatpush.bf16.msrb.mxu0 %v12363_v35  ;;  %v12066_v53 = vld [vmem:[#allocation2 + $0x1dc] sm:$0xf0] }
 0x245   :  { %v13548_v22 = vadd.f32 %v4197_v51, %v4109_v48  ;;  %v4022_v36 = vadd.f32 %v4021_v38, %v3933_v19  ;;  %v12379_v48 = vld [vmem:[#allocation3 + $0x3a8] sm:$0xff] }
 0x246   :  { %v12387_v38 = vld [vmem:[#allocation3 + $0x3e8] sm:$0xff]  ;;  %4768 = vmatpush.bf16.msrb.mxu2 %v12379_v48 }
 0x247   :  { %4857 = vmatpush.bf16.msrb.mxu3 %v12387_v38 }
 0x24a   :  { %v4110_v24 = vpop.f32.mrf.mxu2  ;;  %v3935_v55 = vpop.f32.mrf.mxu0 }
 0x24b   :  { %v4199_v9 = vpop.f32.mrf.mxu3  ;;  %v4111_v23 = vadd.f32 %v4110_v24, %v4022_v36  ;;  %v4024_v54 = vpop.f32.mrf.mxu1  ;;  %v3936_v21 = vadd.f32 %v3935_v55, %v13349_v57  ;;  %v12058_v24 = vld [vmem:[#allocation2 + $0x1a4] sm:$0xf]  ;;  %v9250_v55 = vld [vmem:[#allocation2 + $0x1e8] sm:$0xf0] }
 0x24d   :  { %v13551_v16 = vadd.f32 %v4199_v9, %v4111_v23  ;;  %v4025_v51 = vadd.f32 %v4024_v54, %v3936_v21  ;;  %4250 = vmatmul.bf16.gmra.mxu0 %v9177_v13  ;;  %v9242_v9 = vld [vmem:[#allocation2 + $0x1e0] sm:$0xf0]  ;;  %v9248_v13 = vld [vmem:[#allocation2 + $0x1a8] sm:$0xf]  ;;  %v12059_v23 = vld [vmem:[#allocation2 + $0x1ac] sm:$0xf] }
 0x24e   :  { %4339 = vmatmul.bf16.gmra.mxu1 %v9181_v59  ;;  %v12067_v59 = vld [vmem:[#allocation2 + $0x1e4] sm:$0xf0]  ;;  %v9245_v21 = vor.u32 %v12058_v24, %v9242_v9  ;;  %v9253_v38 = vor.u32 %v12059_v23, %v9250_v55  ;;  %v9304_v9 = vld [vmem:[#allocation2 + $0x220] sm:$0xf] }
 0x24f   :  { %4428 = vmatmul.bf16.gmra.mxu2 %v9185_v14  ;;  %v9249_v35 = vor.u32 %v12067_v59, %v9248_v13  ;;  %v12082_v13 = vld [vmem:[#allocation2 + $0x25c] sm:$0xf0]  ;;  %v9306_v59 = vld [vmem:[#allocation2 + $0x260] sm:$0xf0]  ;;  %v9312_v23 = vld [vmem:[#allocation2 + $0x228] sm:$0xf] }
 0x250   :  { %4517 = vmatmul.bf16.gmra.mxu3 %v9189_v29  ;;  %v9241_v29 = vor.u32 %v12066_v53, %v9240_v44  ;;  %v12083_v55 = vld [vmem:[#allocation2 + $0x264] sm:$0xf0] }
 0x252   :  { %v4113_v19 = vpop.f32.mrf.mxu2  ;;  %v3937_v46 = vpop.f32.mrf.mxu0 }
 0x253   :  { %v4202_v36 = vpop.f32.mrf.mxu3  ;;  %v4114_v11 = vadd.f32 %v4113_v19, %v4025_v51  ;;  %v4026_v50 = vpop.f32.mrf.mxu1  ;;  %v3938_v57 = vadd.f32 %v3937_v46, %v13352_v37 }
 0x255   :  { %v13554_v41 = vadd.f32 %v4202_v36, %v4114_v11  ;;  %v4027_v60 = vadd.f32 %v4026_v50, %v3938_v57 }
 0x25a   :  { %v4115_v54 = vpop.f32.mrf.mxu2  ;;  %v3940_v48 = vpop.f32.mrf.mxu0 }
 0x25b   :  { %v4204_v14 = vpop.f32.mrf.mxu3  ;;  %v4116_v51 = vadd.f32 %v4115_v54, %v4027_v60  ;;  %v4029_v37 = vpop.f32.mrf.mxu1  ;;  %v3941_v19 = vadd.f32 %v3940_v48, %v13367_v62  ;;  %v12074_v62 = vld [vmem:[#allocation2 + $0x224] sm:$0xf]  ;;  %v12075_v54 = vld [vmem:[#allocation2 + $0x22c] sm:$0xf] }
 0x25c   :  { %v9309_v48 = vor.u32 %v12074_v62, %v9306_v59 }
 0x25d   :  { %v13557_v36 = vadd.f32 %v4204_v14, %v4116_v51  ;;  %v4030_v11 = vadd.f32 %v4029_v37, %v3941_v19  ;;  %4255 = vmatmul.bf16.gmra.mxu0 %v9241_v29  ;;  %v9314_v14 = vld [vmem:[#allocation2 + $0x268] sm:$0xf0]  ;;  %v9305_v51 = vor.u32 %v12082_v13, %v9304_v9  ;;  %v9313_v19 = vor.u32 %v12083_v55, %v9312_v23  ;;  %v12370_v23 = vld [vmem:[#allocation3 + $0x360] sm:$0xff] }
 0x25e   :  { %4344 = vmatmul.bf16.gmra.mxu1 %v9245_v21 }
 0x25f   :  { %4433 = vmatmul.bf16.gmra.mxu2 %v9249_v35  ;;  %4680 = vmatpush.bf16.msrb.mxu1 %v12370_v23 }
 0x260   :  { %4522 = vmatmul.bf16.gmra.mxu3 %v9253_v38 }
 0x262   :  { %v4118_v46 = vpop.f32.mrf.mxu2  ;;  %v3942_v32 = vpop.f32.mrf.mxu0 }
 0x263   :  { %v4207_v50 = vpop.f32.mrf.mxu3  ;;  %v4119_v57 = vadd.f32 %v4118_v46, %v4030_v11  ;;  %v4031_v44 = vpop.f32.mrf.mxu1  ;;  %v3943_v60 = vadd.f32 %v3942_v32, %v13370_v39  ;;  %v9317_v39 = vor.u32 %v12075_v54, %v9314_v14  ;;  %v12362_v32 = vld [vmem:[#allocation3 + $0x320] sm:$0xff] }
 0x264   :  { %4591 = vmatpush.bf16.msrb.mxu0 %v12362_v32  ;;  %v9368_v54 = vld [vmem:[#allocation2 + $0x2a0] sm:$0xf] }
 0x265   :  { %v13560_v53 = vadd.f32 %v4207_v50, %v4119_v57  ;;  %v4032_v24 = vadd.f32 %v4031_v44, %v3943_v60  ;;  %v12378_v57 = vld [vmem:[#allocation3 + $0x3a0] sm:$0xff] }
 0x266   :  { %v12386_v44 = vld [vmem:[#allocation3 + $0x3e0] sm:$0xff]  ;;  %4769 = vmatpush.bf16.msrb.mxu2 %v12378_v57 }
 0x267   :  { %4858 = vmatpush.bf16.msrb.mxu3 %v12386_v44  ;;  %v12098_v14 = vld [vmem:[#allocation2 + $0x2dc] sm:$0xf0] }
 0x26a   :  { %v4120_v29 = vpop.f32.mrf.mxu2  ;;  %v3945_v35 = vpop.f32.mrf.mxu0 }
 0x26b   :  { %v4209_v21 = vpop.f32.mrf.mxu3  ;;  %v4121_v37 = vadd.f32 %v4120_v29, %v4032_v24  ;;  %v4034_v38 = vpop.f32.mrf.mxu1  ;;  %v3946_v11 = vadd.f32 %v3945_v35, %v13378_v18  ;;  %v12090_v29 = vld [vmem:[#allocation2 + $0x2a4] sm:$0xf]  ;;  %v9378_v35 = vld [vmem:[#allocation2 + $0x2e8] sm:$0xf0] }
 0x26d   :  { %v13563_v46 = vadd.f32 %v4209_v21, %v4121_v37  ;;  %v4035_v50 = vadd.f32 %v4034_v38, %v3946_v11  ;;  %4260 = vmatmul.bf16.gmra.mxu0 %v9305_v51  ;;  %v9370_v21 = vld [vmem:[#allocation2 + $0x2e0] sm:$0xf0]  ;;  %v9376_v51 = vld [vmem:[#allocation2 + $0x2a8] sm:$0xf]  ;;  %v12091_v37 = vld [vmem:[#allocation2 + $0x2ac] sm:$0xf] }
 0x26e   :  { %4349 = vmatmul.bf16.gmra.mxu1 %v9309_v48  ;;  %v12099_v48 = vld [vmem:[#allocation2 + $0x2e4] sm:$0xf0]  ;;  %v9373_v11 = vor.u32 %v12090_v29, %v9370_v21  ;;  %v9381_v44 = vor.u32 %v12091_v37, %v9378_v35  ;;  %v9432_v21 = vld [vmem:[#allocation2 + $0x320] sm:$0xf] }
 0x26f   :  { %4438 = vmatmul.bf16.gmra.mxu2 %v9313_v19  ;;  %v9377_v32 = vor.u32 %v12099_v48, %v9376_v51  ;;  %v12114_v51 = vld [vmem:[#allocation2 + $0x35c] sm:$0xf0]  ;;  %v9434_v48 = vld [vmem:[#allocation2 + $0x360] sm:$0xf0]  ;;  %v9440_v37 = vld [vmem:[#allocation2 + $0x328] sm:$0xf] }
 0x270   :  { %4527 = vmatmul.bf16.gmra.mxu3 %v9317_v39  ;;  %v9369_v39 = vor.u32 %v12098_v14, %v9368_v54  ;;  %v12115_v35 = vld [vmem:[#allocation2 + $0x364] sm:$0xf0] }
 0x272   :  { %v4123_v60 = vpop.f32.mrf.mxu2  ;;  %v3947_v13 = vpop.f32.mrf.mxu0 }
 0x273   :  { %v4212_v24 = vpop.f32.mrf.mxu3  ;;  %v4124_v9 = vadd.f32 %v4123_v60, %v4035_v50  ;;  %v4036_v62 = vpop.f32.mrf.mxu1  ;;  %v3948_v18 = vadd.f32 %v3947_v13, %v13381_v56 }
 0x275   :  { %v13566_v59 = vadd.f32 %v4212_v24, %v4124_v9  ;;  %v4037_v55 = vadd.f32 %v4036_v62, %v3948_v18 }
 0x27a   :  { %v4125_v38 = vpop.f32.mrf.mxu2  ;;  %v3950_v57 = vpop.f32.mrf.mxu0 }
 0x27b   :  { %v4214_v19 = vpop.f32.mrf.mxu3  ;;  %v4126_v50 = vadd.f32 %v4125_v38, %v4037_v55  ;;  %v4039_v56 = vpop.f32.mrf.mxu1  ;;  %v3951_v60 = vadd.f32 %v3950_v57, %v13401_v34  ;;  %v12106_v34 = vld [vmem:[#allocation2 + $0x324] sm:$0xf]  ;;  %v12107_v38 = vld [vmem:[#allocation2 + $0x32c] sm:$0xf] }
 0x27c   :  { %v9437_v57 = vor.u32 %v12106_v34, %v9434_v48 }
 0x27d   :  { %v13569_v24 = vadd.f32 %v4214_v19, %v4126_v50  ;;  %v4040_v9 = vadd.f32 %v4039_v56, %v3951_v60  ;;  %4265 = vmatmul.bf16.gmra.mxu0 %v9369_v39  ;;  %v9442_v19 = vld [vmem:[#allocation2 + $0x368] sm:$0xf0]  ;;  %v9433_v50 = vor.u32 %v12114_v51, %v9432_v21  ;;  %v9441_v60 = vor.u32 %v12115_v35, %v9440_v37  ;;  %v12369_v37 = vld [vmem:[#allocation3 + $0x358] sm:$0xff] }
 0x27e   :  { %4354 = vmatmul.bf16.gmra.mxu1 %v9373_v11 }
 0x27f   :  { %4443 = vmatmul.bf16.gmra.mxu2 %v9377_v32  ;;  %4681 = vmatpush.bf16.msrb.mxu1 %v12369_v37 }
 0x280   :  { %4532 = vmatmul.bf16.gmra.mxu3 %v9381_v44 }
 0x282   :  { %v4128_v13 = vpop.f32.mrf.mxu2  ;;  %v3952_v23 = vpop.f32.mrf.mxu0 }
 0x283   :  { %v4217_v62 = vpop.f32.mrf.mxu3  ;;  %v4129_v18 = vadd.f32 %v4128_v13, %v4040_v9  ;;  %v4041_v54 = vpop.f32.mrf.mxu1  ;;  %v3953_v55 = vadd.f32 %v3952_v23, %v13404_v28  ;;  %v9445_v28 = vor.u32 %v12107_v38, %v9442_v19  ;;  %v12361_v23 = vld [vmem:[#allocation3 + $0x318] sm:$0xff]  ;;  %v9496_v38 = vld [vmem:[#allocation2 + $0x3a0] sm:$0xf] }
 0x284   :  { %4592 = vmatpush.bf16.msrb.mxu0 %v12361_v23  ;;  %v12130_v19 = vld [vmem:[#allocation2 + $0x3dc] sm:$0xf0] }
 0x285   :  { %v13572_v14 = vadd.f32 %v4217_v62, %v4129_v18  ;;  %v4042_v29 = vadd.f32 %v4041_v54, %v3953_v55  ;;  %v12377_v18 = vld [vmem:[#allocation3 + $0x398] sm:$0xff] }
 0x286   :  { %v12385_v54 = vld [vmem:[#allocation3 + $0x3d8] sm:$0xff]  ;;  %4770 = vmatpush.bf16.msrb.mxu2 %v12377_v18 }
 0x287   :  { %4859 = vmatpush.bf16.msrb.mxu3 %v12385_v54 }
 0x28a   :  { %v4130_v39 = vpop.f32.mrf.mxu2  ;;  %v3955_v32 = vpop.f32.mrf.mxu0 }
 0x28b   :  { %v4219_v11 = vpop.f32.mrf.mxu3  ;;  %v4131_v56 = vadd.f32 %v4130_v39, %v4042_v29  ;;  %v4044_v44 = vpop.f32.mrf.mxu1  ;;  %v3956_v9 = vadd.f32 %v3955_v32, %v13419_v0  ;;  %v12122_v39 = vld [vmem:[#allocation2 + $0x3a4] sm:$0xf]  ;;  %v9506_v32 = vld [vmem:[#allocation2 + $0x3e8] sm:$0xf0] }
 0x28d   :  { %v13575_v13 = vadd.f32 %v4219_v11, %v4131_v56  ;;  %v4045_v62 = vadd.f32 %v4044_v44, %v3956_v9  ;;  %4270 = vmatmul.bf16.gmra.mxu0 %v9433_v50  ;;  %v9498_v11 = vld [vmem:[#allocation2 + $0x3e0] sm:$0xf0]  ;;  %v9504_v50 = vld [vmem:[#allocation2 + $0x3a8] sm:$0xf]  ;;  %v12123_v56 = vld [vmem:[#allocation2 + $0x3ac] sm:$0xf] }
 0x28e   :  { %4359 = vmatmul.bf16.gmra.mxu1 %v9437_v57  ;;  %v12131_v57 = vld [vmem:[#allocation2 + $0x3e4] sm:$0xf0]  ;;  %v9501_v9 = vor.u32 %v12122_v39, %v9498_v11  ;;  %v9509_v54 = vor.u32 %v12123_v56, %v9506_v32  ;;  %v9560_v11 = vld [vmem:[#allocation2 + $0x420] sm:$0xf] }
 0x28f   :  { %4448 = vmatmul.bf16.gmra.mxu2 %v9441_v60  ;;  %v9505_v23 = vor.u32 %v12131_v57, %v9504_v50  ;;  %v12146_v50 = vld [vmem:[#allocation2 + $0x45c] sm:$0xf0]  ;;  %v9562_v57 = vld [vmem:[#allocation2 + $0x460] sm:$0xf0]  ;;  %v9568_v56 = vld [vmem:[#allocation2 + $0x428] sm:$0xf] }
 0x290   :  { %4537 = vmatmul.bf16.gmra.mxu3 %v9445_v28  ;;  %v9497_v28 = vor.u32 %v12130_v19, %v9496_v38  ;;  %v12147_v32 = vld [vmem:[#allocation2 + $0x464] sm:$0xf0] }
 0x292   :  { %v4133_v55 = vpop.f32.mrf.mxu2  ;;  %v3957_v51 = vpop.f32.mrf.mxu0 }
 0x293   :  { %v4222_v29 = vpop.f32.mrf.mxu3  ;;  %v4134_v21 = vadd.f32 %v4133_v55, %v4045_v62  ;;  %v4046_v34 = vpop.f32.mrf.mxu1  ;;  %v3958_v0 = vadd.f32 %v3957_v51, %v13422_v52 }
 0x295   :  { %v13578_v48 = vadd.f32 %v4222_v29, %v4134_v21  ;;  %v4047_v35 = vadd.f32 %v4046_v34, %v3958_v0 }
 0x29a   :  { %v4135_v44 = vpop.f32.mrf.mxu2  ;;  %v3960_v18 = vpop.f32.mrf.mxu0 }
 0x29b   :  { %v4224_v60 = vpop.f32.mrf.mxu3  ;;  %v4136_v62 = vadd.f32 %v4135_v44, %v4047_v35  ;;  %v4049_v52 = vpop.f32.mrf.mxu1  ;;  %v3961_v55 = vadd.f32 %v3960_v18, %v13437_v31  ;;  %v12138_v31 = vld [vmem:[#allocation2 + $0x424] sm:$0xf]  ;;  %v12139_v44 = vld [vmem:[#allocation2 + $0x42c] sm:$0xf] }
 0x29c   :  { %v9565_v18 = vor.u32 %v12138_v31, %v9562_v57 }
 0x29d   :  { %v13581_v29 = vadd.f32 %v4224_v60, %v4136_v62  ;;  %v4050_v21 = vadd.f32 %v4049_v52, %v3961_v55  ;;  %4275 = vmatmul.bf16.gmra.mxu0 %v9497_v28  ;;  %v9570_v60 = vld [vmem:[#allocation2 + $0x468] sm:$0xf0]  ;;  %v9561_v62 = vor.u32 %v12146_v50, %v9560_v11  ;;  %v9569_v55 = vor.u32 %v12147_v32, %v9568_v56  ;;  %v12368_v56 = vld [vmem:[#allocation3 + $0x350] sm:$0xff] }
 0x29e   :  { %4364 = vmatmul.bf16.gmra.mxu1 %v9501_v9 }
 0x29f   :  { %4453 = vmatmul.bf16.gmra.mxu2 %v9505_v23  ;;  %4682 = vmatpush.bf16.msrb.mxu1 %v12368_v56 }
 0x2a0   :  { %4542 = vmatmul.bf16.gmra.mxu3 %v9509_v54 }
 0x2a2   :  { %v4138_v51 = vpop.f32.mrf.mxu2  ;;  %v3962_v37 = vpop.f32.mrf.mxu0 }
 0x2a3   :  { %v4227_v34 = vpop.f32.mrf.mxu3  ;;  %v4139_v0 = vadd.f32 %v4138_v51, %v4050_v21  ;;  %v4051_v38 = vpop.f32.mrf.mxu1  ;;  %v3963_v35 = vadd.f32 %v3962_v37, %v13440_v63  ;;  %v9573_v63 = vor.u32 %v12139_v44, %v9570_v60  ;;  %v12360_v37 = vld [vmem:[#allocation3 + $0x310] sm:$0xff]  ;;  %v9624_v44 = vld [vmem:[#allocation2 + $0x4a0] sm:$0xf] }
 0x2a4   :  { %4593 = vmatpush.bf16.msrb.mxu0 %v12360_v37  ;;  %v12162_v60 = vld [vmem:[#allocation2 + $0x4dc] sm:$0xf0] }
 0x2a5   :  { %v13584_v19 = vadd.f32 %v4227_v34, %v4139_v0  ;;  %v4052_v39 = vadd.f32 %v4051_v38, %v3963_v35  ;;  %v12376_v0 = vld [vmem:[#allocation3 + $0x390] sm:$0xff] }
 0x2a6   :  { %v12384_v38 = vld [vmem:[#allocation3 + $0x3d0] sm:$0xff]  ;;  %4771 = vmatpush.bf16.msrb.mxu2 %v12376_v0 }
 0x2a7   :  { %4860 = vmatpush.bf16.msrb.mxu3 %v12384_v38 }
 0x2aa   :  { %v4140_v28 = vpop.f32.mrf.mxu2  ;;  %v4241_v23 = vpop.f32.mrf.mxu0 }
 0x2ab   :  { %v4229_v9 = vpop.f32.mrf.mxu3  ;;  %v4141_v52 = vadd.f32 %v4140_v28, %v4052_v39  ;;  %v4330_v54 = vpop.f32.mrf.mxu1  ;;  %v4242_v21 = vadd.f32 %v4241_v23, %v13448_v15  ;;  %v12154_v28 = vld [vmem:[#allocation2 + $0x4a4] sm:$0xf]  ;;  %v9634_v23 = vld [vmem:[#allocation2 + $0x4e8] sm:$0xf0] }
 0x2ad   :  { %v13587_v51 = vadd.f32 %v4229_v9, %v4141_v52  ;;  %v4331_v34 = vadd.f32 %v4330_v54, %v4242_v21  ;;  %4280 = vmatmul.bf16.gmra.mxu0 %v9561_v62  ;;  %v9626_v9 = vld [vmem:[#allocation2 + $0x4e0] sm:$0xf0]  ;;  %v9632_v62 = vld [vmem:[#allocation2 + $0x4a8] sm:$0xf]  ;;  %v12155_v52 = vld [vmem:[#allocation2 + $0x4ac] sm:$0xf] }
 0x2ae   :  { %4369 = vmatmul.bf16.gmra.mxu1 %v9565_v18  ;;  %v12163_v18 = vld [vmem:[#allocation2 + $0x4e4] sm:$0xf0]  ;;  %v9629_v21 = vor.u32 %v12154_v28, %v9626_v9  ;;  %v9637_v38 = vor.u32 %v12155_v52, %v9634_v23  ;;  %v12001_v23 = vld [vmem:[%s14136_s0 + $0x1d0] sm:$0xf0] }
 0x2af   :  { %4458 = vmatmul.bf16.gmra.mxu2 %v9569_v55  ;;  %v9633_v37 = vor.u32 %v12163_v18, %v9632_v62 }
 0x2b0   :  { %4547 = vmatmul.bf16.gmra.mxu3 %v9573_v63  ;;  %v9625_v63 = vor.u32 %v12162_v60, %v9624_v44  ;;  %v8992_v44 = vld [vmem:[%s14136_s0 + $0x1c8] sm:$0xf]  ;;  %v12000_v60 = vld [vmem:[%s14136_s0 + $0x1cc] sm:$0xf0] }
 0x2b2   :  { %v4419_v35 = vpop.f32.mrf.mxu2  ;;  %v4243_v50 = vpop.f32.mrf.mxu0 }
 0x2b3   :  { %v4508_v39 = vpop.f32.mrf.mxu3  ;;  %v4420_v11 = vadd.f32 %v4419_v35, %v4331_v34  ;;  %v4332_v31 = vpop.f32.mrf.mxu1  ;;  %v4244_v15 = vadd.f32 %v4243_v50, %v13451_v49  ;;  %v12819_v50 = vld [vmem:[%s14136_s0 + $0x1c0] sm:$0xff]  }
 0x2b5   :  { %v13590_v57 = vadd.f32 %v4508_v39, %v4420_v11  ;;  %v4333_v32 = vadd.f32 %v4332_v31, %v4244_v15  ;;  %v12800_v31 = vunpack.c.l.b16 %v12819_v50  ;;  %v12801_v15 = vunpack.c.h.b16 %v12819_v50  ;;  %v12171_v50 = vld [vmem:[#allocation2 + $0x52c] sm:$0xf] }
 0x2b7   :  { %v852_v18 = vpack.c.b16 %v12800_v31, %v12992_v1  ;;  %v854_v52 = vpack.c.b16 %v12801_v15, %v12994_v2  ;;  %v9698_v31 = vld [vmem:[#allocation2 + $0x568] sm:$0xf0] }
 0x2b9   :  { %864 = vst [vmem:[#allocation2 + $0x620] sm:$0xff] %v852_v18 }
 0x2ba   :  { %v4421_v54 = vpop.f32.mrf.mxu2  ;;  %v4246_v0 = vpop.f32.mrf.mxu0  ;;  %872 = vst [vmem:[#allocation2 + $0x660] sm:$0xff] %v854_v52 }
 0x2bb   :  { %v4510_v55 = vpop.f32.mrf.mxu3  ;;  %v4422_v34 = vadd.f32 %v4421_v54, %v4333_v32  ;;  %v4335_v49 = vpop.f32.mrf.mxu1  ;;  %v4247_v35 = vadd.f32 %v4246_v0, %v13471_v40  ;;  %v8996_v40 = vld [vmem:[%s14136_s0 + $0x1cc] sm:$0xf]  ;;  %v8993_v54 = vor.u32 %v12000_v60, %v8992_v44  ;;  %v12178_v0 = vld [vmem:[#allocation2 + $0x55c] sm:$0xf0] }
 0x2bd   :  { %v13593_v39 = vadd.f32 %v4510_v55, %v4422_v34  ;;  %v4336_v11 = vadd.f32 %v4335_v49, %v4247_v35  ;;  %4285 = vmatmul.bf16.gmra.mxu0 %v9625_v63  ;;  %v8997_v63 = vor.u32 %v12001_v23, %v8996_v40  ;;  %v9688_v34 = vld [vmem:[#allocation2 + $0x520] sm:$0xf]  ;;  %v9696_v35 = vld [vmem:[#allocation2 + $0x528] sm:$0xf]  ;;  %865 = vst [vmem:[#allocation2 + $0x628] sm:$0xff] %v8993_v54 }
 0x2be   :  { %4374 = vmatmul.bf16.gmra.mxu1 %v9629_v21  ;;  %892 = vst [vmem:[#allocation2 + $0x6a0] sm:$0xff] %v8993_v54  ;;  %v12375_v23 = vld [vmem:[#allocation3 + $0x388] sm:$0xff] }
 0x2bf   :  { %4463 = vmatmul.bf16.gmra.mxu2 %v9633_v37  ;;  %v12170_v37 = vld [vmem:[#allocation2 + $0x524] sm:$0xf]  ;;  %873 = vst [vmem:[#allocation2 + $0x668] sm:$0xff] %v8997_v63  ;;  %v12359_v54 = vld [vmem:[#allocation3 + $0x308] sm:$0xff] }
 0x2c0   :  { %4552 = vmatmul.bf16.gmra.mxu3 %v9637_v38  ;;  %v9690_v38 = vld [vmem:[#allocation2 + $0x560] sm:$0xf0]  ;;  %900 = vst [vmem:[#allocation2 + $0x6e0] sm:$0xff] %v8997_v63  ;;  %4772 = vmatpush.bf16.msrb.mxu2 %v12375_v23  ;;  %v9762_v23 = vld [vmem:[#allocation2 + $0x5e8] sm:$0xf0] }
 0x2c1   :  { %v9693_v44 = vor.u32 %v12170_v37, %v9690_v38  ;;  %4594 = vmatpush.bf16.msrb.mxu0 %v12359_v54 }
 0x2c2   :  { %v4424_v56 = vpop.f32.mrf.mxu2  ;;  %v4248_v9 = vpop.f32.mrf.mxu0 }
 0x2c3   :  { %v4513_v32 = vpop.f32.mrf.mxu3  ;;  %v4425_v28 = vadd.f32 %v4424_v56, %v4336_v11  ;;  %v4337_v62 = vpop.f32.mrf.mxu1  ;;  %v4249_v55 = vadd.f32 %v4248_v9, %v13474_v33  ;;  %v12179_v11 = vld [vmem:[#allocation2 + $0x564] sm:$0xf0]  ;;  %v9689_v33 = vor.u32 %v12178_v0, %v9688_v34  ;;  %v9701_v9 = vor.u32 %v12171_v50, %v9698_v31  ;;  %v9000_v0 = vld [vmem:[%s14136_s0 + $0x1d8] sm:$0xf] }
 0x2c5   :  { %v13613_v21 = vadd.f32 %v4513_v32, %v4425_v28  ;;  %v4338_v49 = vadd.f32 %v4337_v62, %v4249_v55  ;;  %v9697_v28 = vor.u32 %v12179_v11, %v9696_v35  ;;  %v12383_v55 = vld [vmem:[#allocation3 + $0x3c8] sm:$0xff]  ;;  %v12003_v11 = vld [vmem:[%s14136_s0 + $0x1e0] sm:$0xf0] }
 0x2c6   :  { %4861 = vmatpush.bf16.msrb.mxu3 %v12383_v55 }
 0x2ca   :  { %v4426_v15 = vpop.f32.mrf.mxu2  ;;  %v4251_v40 = vpop.f32.mrf.mxu0 }
 0x2cb   :  { %v4515_v56 = vpop.f32.mrf.mxu3  ;;  %v4427_v32 = vadd.f32 %v4426_v15, %v4338_v49  ;;  %v4340_v60 = vpop.f32.mrf.mxu1  ;;  %v4252_v62 = vadd.f32 %v4251_v40, %v13489_v61  ;;  %v9004_v61 = vld [vmem:[%s14136_s0 + $0x1dc] sm:$0xf]  ;;  %v12002_v49 = vld [vmem:[%s14136_s0 + $0x1dc] sm:$0xf0] }
 0x2cc   :  { %v9001_v50 = vor.u32 %v12002_v49, %v9000_v0  ;;  %v9005_v15 = vor.u32 %v12003_v11, %v9004_v61 }
 0x2cd   :  { %v13616_v18 = vadd.f32 %v4515_v56, %v4427_v32  ;;  %v4341_v52 = vadd.f32 %v4340_v60, %v4252_v62  ;;  %4290 = vmatmul.bf16.gmra.mxu0 %v9689_v33  ;;  %v9752_v33 = vld [vmem:[#allocation2 + $0x5a0] sm:$0xf]  ;;  %v12367_v32 = vld [vmem:[#allocation3 + $0x348] sm:$0xff]  ;;  %v12186_v60 = vld [vmem:[#allocation2 + $0x5a4] sm:$0xf] }
 0x2ce   :  { %4379 = vmatmul.bf16.gmra.mxu1 %v9693_v44  ;;  %v12194_v44 = vld [vmem:[#allocation2 + $0x5dc] sm:$0xf0]  ;;  %893 = vst [vmem:[#allocation2 + $0x6a8] sm:$0xff] %v9001_v50  ;;  %v12195_v62 = vld [vmem:[#allocation2 + $0x5e4] sm:$0xf0] }
 0x2cf   :  { %4468 = vmatmul.bf16.gmra.mxu2 %v9697_v28  ;;  %v9754_v28 = vld [vmem:[#allocation2 + $0x5e0] sm:$0xf0]  ;;  %901 = vst [vmem:[#allocation2 + $0x6e8] sm:$0xff] %v9005_v15  ;;  %4683 = vmatpush.bf16.msrb.mxu1 %v12367_v32  ;;  %v9753_v55 = vor.u32 %v12194_v44, %v9752_v33  ;;  %v9012_v33 = vld [vmem:[%s14136_s0 + $0x1ec] sm:$0xf] }
 0x2d0   :  { %4557 = vmatmul.bf16.gmra.mxu3 %v9701_v9  ;;  %v9760_v9 = vld [vmem:[#allocation2 + $0x5a8] sm:$0xf]  ;;  %920 = vst [vmem:[#allocation2 + $0x720] sm:$0xff] %v9001_v50 }
 0x2d1   :  { %928 = vst [vmem:[#allocation2 + $0x760] sm:$0xff] %v9005_v15  ;;  %v9761_v49 = vor.u32 %v12195_v62, %v9760_v9  ;;  %v9008_v15 = vld [vmem:[%s14136_s0 + $0x1e8] sm:$0xf] }
 0x2d2   :  { %v4429_v34 = vpop.f32.mrf.mxu2  ;;  %v4253_v38 = vpop.f32.mrf.mxu0 }
 0x2d3   :  { %v4518_v63 = vpop.f32.mrf.mxu3  ;;  %v4430_v37 = vadd.f32 %v4429_v34, %v4341_v52  ;;  %v4342_v35 = vpop.f32.mrf.mxu1  ;;  %v4254_v31 = vadd.f32 %v4253_v38, %v13492_v45  ;;  %v12187_v52 = vld [vmem:[#allocation2 + $0x5ac] sm:$0xf]  ;;  %v9757_v34 = vor.u32 %v12186_v60, %v9754_v28  ;;  %v12005_v60 = vld [vmem:[%s14136_s0 + $0x1f0] sm:$0xf0] }
 0x2d4   :  { %v9013_v62 = vor.u32 %v12005_v60, %v9012_v33  ;;  %v12374_v60 = vld [vmem:[#allocation3 + $0x380] sm:$0xff] }
 0x2d5   :  { %v13631_v56 = vadd.f32 %v4518_v63, %v4430_v37  ;;  %v4343_v40 = vadd.f32 %v4342_v35, %v4254_v31  ;;  %v9765_v37 = vor.u32 %v12187_v52, %v9762_v23  ;;  %v9816_v23 = vld [vmem:[#allocation2 + $0x620] sm:$0xf]  ;;  %4773 = vmatpush.bf16.msrb.mxu2 %v12374_v60 }
 0x2d6   :  { %929 = vst [vmem:[#allocation2 + $0x768] sm:$0xff] %v9013_v62 }
 0x2d7   :  { %952 = vst [vmem:[#allocation2 + $0x7e0] sm:$0xff] %v9013_v62  ;;  %v12820_v62 = vld [vmem:[%s14136_s0 + $0x1f8] sm:$0xff]  }
 0x2da   :  { %v4431_v54 = vpop.f32.mrf.mxu2  ;;  %v4256_v0 = vpop.f32.mrf.mxu0 }
 0x2db   :  { %v4520_v45 = vpop.f32.mrf.mxu3  ;;  %v4432_v63 = vadd.f32 %v4431_v54, %v4343_v40  ;;  %v4345_v61 = vpop.f32.mrf.mxu1  ;;  %v4257_v38 = vadd.f32 %v4256_v0, %v13507_v20  ;;  %v12004_v20 = vld [vmem:[%s14136_s0 + $0x1ec] sm:$0xf0]  ;;  %v12202_v54 = vld [vmem:[#allocation2 + $0x624] sm:$0xf]  ;;  %v12203_v0 = vld [vmem:[#allocation2 + $0x62c] sm:$0xf] }
 0x2dc   :  { %v9009_v28 = vor.u32 %v12004_v20, %v9008_v15 }
 0x2dd   :  { %v13634_v35 = vadd.f32 %v4520_v45, %v4432_v63  ;;  %v4346_v11 = vadd.f32 %v4345_v61, %v4257_v38  ;;  %4295 = vmatmul.bf16.gmra.mxu0 %v9753_v55  ;;  %v12210_v55 = vld [vmem:[#allocation2 + $0x65c] sm:$0xf0]  ;;  %v9824_v63 = vld [vmem:[#allocation2 + $0x628] sm:$0xf] }
 0x2de   :  { %4384 = vmatmul.bf16.gmra.mxu1 %v9757_v34  ;;  %921 = vst [vmem:[#allocation2 + $0x728] sm:$0xff] %v9009_v28  ;;  %v9818_v34 = vld [vmem:[#allocation2 + $0x660] sm:$0xf0]  ;;  %v12211_v61 = vld [vmem:[#allocation2 + $0x664] sm:$0xf0] }
 0x2df   :  { %4473 = vmatmul.bf16.gmra.mxu2 %v9761_v49  ;;  %944 = vst [vmem:[#allocation2 + $0x7a0] sm:$0xff] %v9009_v28  ;;  %v9826_v49 = vld [vmem:[#allocation2 + $0x668] sm:$0xf0]  ;;  %v9825_v33 = vor.u32 %v12211_v61, %v9824_v63  ;;  %v12358_v28 = vld [vmem:[#allocation3 + $0x300] sm:$0xff] }
 0x2e0   :  { %4562 = vmatmul.bf16.gmra.mxu3 %v9765_v37  ;;  %v9829_v20 = vor.u32 %v12203_v0, %v9826_v49  ;;  %4595 = vmatpush.bf16.msrb.mxu0 %v12358_v28 }
 0x2e2   :  { %v4434_v50 = vpop.f32.mrf.mxu2  ;;  %v4258_v32 = vpop.f32.mrf.mxu0 }
 0x2e3   :  { %v4523_v31 = vpop.f32.mrf.mxu3  ;;  %v4435_v44 = vadd.f32 %v4434_v50, %v4346_v11  ;;  %v4347_v40 = vpop.f32.mrf.mxu1  ;;  %v4259_v9 = vadd.f32 %v4258_v32, %v13510_v4  ;;  %v9817_v11 = vor.u32 %v12210_v55, %v9816_v23  ;;  %v9821_v4 = vor.u32 %v12202_v54, %v9818_v34 }
 0x2e4   :  { %v12804_v23 = vunpack.c.l.b16 %v12820_v62  ;;  %v12805_v54 = vunpack.c.h.b16 %v12820_v62 }
 0x2e5   :  { %v13649_v52 = vadd.f32 %v4523_v31, %v4435_v44  ;;  %v4348_v45 = vadd.f32 %v4347_v40, %v4259_v9  ;;  %v12382_v9 = vld [vmem:[#allocation3 + $0x3c0] sm:$0xff] }
 0x2e6   :  { %4862 = vmatpush.bf16.msrb.mxu3 %v12382_v9  ;;  %v936_v0 = vpack.c.b16 %v12992_v1, %v12804_v23  ;;  %v937_v61 = vpack.c.b16 %v12994_v2, %v12805_v54 }
 0x2e8   :  { %945 = vst [vmem:[#allocation2 + $0x7a8] sm:$0xff] %v936_v0 }
 0x2e9   :  { %953 = vst [vmem:[#allocation2 + $0x7e8] sm:$0xff] %v937_v61 }
 0x2ea   :  { %v4436_v37 = vpop.f32.mrf.mxu2  ;;  %v4261_v31 = vpop.f32.mrf.mxu0 }
 0x2eb   :  { %v4525_v38 = vpop.f32.mrf.mxu3  ;;  %v4437_v50 = vadd.f32 %v4436_v37, %v4348_v45  ;;  %v4350_v15 = vpop.f32.mrf.mxu1  ;;  %v4262_v44 = vadd.f32 %v4261_v31, %v13518_v43  ;;  %v12218_v31 = vld [vmem:[#allocation2 + $0x6a4] sm:$0xf] }
 0x2ed   :  { %v13652_v32 = vadd.f32 %v4525_v38, %v4437_v50  ;;  %v4351_v40 = vadd.f32 %v4350_v15, %v4262_v44  ;;  %4300 = vmatmul.bf16.gmra.mxu0 %v9817_v11  ;;  %v12366_v38 = vld [vmem:[#allocation3 + $0x340] sm:$0xff]  ;;  %v12219_v44 = vld [vmem:[#allocation2 + $0x6ac] sm:$0xf] }
 0x2ee   :  { %4389 = vmatmul.bf16.gmra.mxu1 %v9821_v4  ;;  %v9880_v4 = vld [vmem:[#allocation2 + $0x6a0] sm:$0xf]  ;;  %v9882_v15 = vld [vmem:[#allocation2 + $0x6e0] sm:$0xf0] }
 0x2ef   :  { %4478 = vmatmul.bf16.gmra.mxu2 %v9825_v33  ;;  %v12226_v50 = vld [vmem:[#allocation2 + $0x6dc] sm:$0xf0]  ;;  %v9888_v33 = vld [vmem:[#allocation2 + $0x6a8] sm:$0xf]  ;;  %4684 = vmatpush.bf16.msrb.mxu1 %v12366_v38  ;;  %v9885_v62 = vor.u32 %v12218_v31, %v9882_v15 }
 0x2f0   :  { %4567 = vmatmul.bf16.gmra.mxu3 %v9829_v20  ;;  %v12227_v20 = vld [vmem:[#allocation2 + $0x6e4] sm:$0xf0]  ;;  %v9881_v9 = vor.u32 %v12226_v50, %v9880_v4  ;;  %v9944_v15 = vld [vmem:[#allocation2 + $0x720] sm:$0xf] }
 0x2f2   :  { %v4439_v45 = vpop.f32.mrf.mxu2  ;;  %v4263_v34 = vpop.f32.mrf.mxu0 }
 0x2f3   :  { %v4528_v43 = vpop.f32.mrf.mxu3  ;;  %v4440_v55 = vadd.f32 %v4439_v45, %v4351_v40  ;;  %v4352_v63 = vpop.f32.mrf.mxu1  ;;  %v4264_v49 = vadd.f32 %v4263_v34, %v13521_v3  ;;  %v9890_v40 = vld [vmem:[#allocation2 + $0x6e8] sm:$0xf0]  ;;  %v9889_v45 = vor.u32 %v12227_v20, %v9888_v33  ;;  %v12242_v33 = vld [vmem:[#allocation2 + $0x75c] sm:$0xf0]  ;;  %v9946_v20 = vld [vmem:[#allocation2 + $0x760] sm:$0xf0] }
 0x2f5   :  { %v13660_v37 = vadd.f32 %v4528_v43, %v4440_v55  ;;  %v4353_v11 = vadd.f32 %v4352_v63, %v4264_v49  ;;  %v9893_v43 = vor.u32 %v12219_v44, %v9890_v40  ;;  %v9952_v44 = vld [vmem:[#allocation2 + $0x728] sm:$0xf] }
 0x2f6   :  { %v12243_v40 = vld [vmem:[#allocation2 + $0x764] sm:$0xf0] }
 0x2fa   :  { %v4441_v60 = vpop.f32.mrf.mxu2  ;;  %v4266_v23 = vpop.f32.mrf.mxu0 }
 0x2fb   :  { %v4530_v28 = vpop.f32.mrf.mxu3  ;;  %v4442_v3 = vadd.f32 %v4441_v60, %v4353_v11  ;;  %v4355_v54 = vpop.f32.mrf.mxu1  ;;  %v4267_v55 = vadd.f32 %v4266_v23, %v13524_v47  ;;  %v12234_v47 = vld [vmem:[#allocation2 + $0x724] sm:$0xf]  ;;  %v12235_v60 = vld [vmem:[#allocation2 + $0x72c] sm:$0xf] }
 0x2fc   :  { %v9949_v23 = vor.u32 %v12234_v47, %v9946_v20 }
 0x2fd   :  { %v13663_v34 = vadd.f32 %v4530_v28, %v4442_v3  ;;  %v4356_v63 = vadd.f32 %v4355_v54, %v4267_v55  ;;  %4305 = vmatmul.bf16.gmra.mxu0 %v9881_v9  ;;  %v9954_v28 = vld [vmem:[#allocation2 + $0x768] sm:$0xf0]  ;;  %v9945_v3 = vor.u32 %v12242_v33, %v9944_v15  ;;  %v9953_v55 = vor.u32 %v12243_v40, %v9952_v44  ;;  %v12469_v44 = vld [vmem:[#allocation5 + $0x78] sm:$0xff] }
 0x2fe   :  { %4394 = vmatmul.bf16.gmra.mxu1 %v9885_v62 }
 0x2ff   :  { %4483 = vmatmul.bf16.gmra.mxu2 %v9889_v45  ;;  %6657 = vmatpush.bf16.msra.mxu1 %v12469_v44 }
 0x300   :  { %4572 = vmatmul.bf16.gmra.mxu3 %v9893_v43 }
 0x302   :  { %v4444_v0 = vpop.f32.mrf.mxu2  ;;  %v4268_v38 = vpop.f32.mrf.mxu0 }
 0x303   :  { %v4533_v61 = vpop.f32.mrf.mxu3  ;;  %v4445_v49 = vadd.f32 %v4444_v0, %v4356_v63  ;;  %v4357_v4 = vpop.f32.mrf.mxu1  ;;  %v4269_v11 = vadd.f32 %v4268_v38, %v13527_v25  ;;  %v9957_v25 = vor.u32 %v12235_v60, %v9954_v28  ;;  %v12461_v38 = vld [vmem:[#allocation5 + $0x38] sm:$0xff]  ;;  %v10008_v60 = vld [vmem:[#allocation2 + $0x7a0] sm:$0xf] }
 0x304   :  { %6628 = vmatpush.bf16.msra.mxu0 %v12461_v38  ;;  %v12258_v28 = vld [vmem:[#allocation2 + $0x7dc] sm:$0xf0] }
 0x305   :  { %v13666_v50 = vadd.f32 %v4533_v61, %v4445_v49  ;;  %v4358_v31 = vadd.f32 %v4357_v4, %v4269_v11  ;;  %v12477_v49 = vld [vmem:[#allocation5 + $0xb8] sm:$0xff] }
 0x306   :  { %v12485_v4 = vld [vmem:[#allocation5 + $0xf8] sm:$0xff]  ;;  %6686 = vmatpush.bf16.msra.mxu2 %v12477_v49 }
 0x307   :  { %6715 = vmatpush.bf16.msra.mxu3 %v12485_v4 }
 0x30a   :  { %v4446_v9 = vpop.f32.mrf.mxu2  ;;  %v4271_v45 = vpop.f32.mrf.mxu0 }
 0x30b   :  { %v4535_v62 = vpop.f32.mrf.mxu3  ;;  %v4447_v54 = vadd.f32 %v4446_v9, %v4358_v31  ;;  %v4360_v43 = vpop.f32.mrf.mxu1  ;;  %v4272_v63 = vadd.f32 %v4271_v45, %v13530_v30  ;;  %v12250_v9 = vld [vmem:[#allocation2 + $0x7a4] sm:$0xf]  ;;  %v10018_v45 = vld [vmem:[#allocation2 + $0x7e8] sm:$0xf0] }
 0x30d   :  { %v13669_v0 = vadd.f32 %v4535_v62, %v4447_v54  ;;  %v4361_v61 = vadd.f32 %v4360_v43, %v4272_v63  ;;  %4310 = vmatmul.bf16.gmra.mxu0 %v9945_v3  ;;  %v10010_v62 = vld [vmem:[#allocation2 + $0x7e0] sm:$0xf0]  ;;  %v10016_v3 = vld [vmem:[#allocation2 + $0x7a8] sm:$0xf]  ;;  %v12251_v54 = vld [vmem:[#allocation2 + $0x7ac] sm:$0xf] }
 0x30e   :  { %4399 = vmatmul.bf16.gmra.mxu1 %v9949_v23  ;;  %v12259_v23 = vld [vmem:[#allocation2 + $0x7e4] sm:$0xf0]  ;;  %v10013_v63 = vor.u32 %v12250_v9, %v10010_v62  ;;  %v10021_v4 = vor.u32 %v12251_v54, %v10018_v45  ;;  %v9064_v62 = vld [vmem:[#allocation2 + $0x30] sm:$0xf]  ;;  %v9072_v54 = vld [vmem:[#allocation2 + $0x38] sm:$0xf] }
 0x30f   :  { %4488 = vmatmul.bf16.gmra.mxu2 %v9953_v55  ;;  %v10017_v38 = vor.u32 %v12259_v23, %v10016_v3  ;;  %v12020_v3 = vld [vmem:[#allocation2 + $0x6c] sm:$0xf0]  ;;  %v9066_v23 = vld [vmem:[#allocation2 + $0x70] sm:$0xf0]  ;;  %v12021_v45 = vld [vmem:[#allocation2 + $0x74] sm:$0xf0] }
 0x310   :  { %4577 = vmatmul.bf16.gmra.mxu3 %v9957_v25  ;;  %v10009_v25 = vor.u32 %v12258_v28, %v10008_v60 }
 0x312   :  { %v4449_v11 = vpop.f32.mrf.mxu2  ;;  %v4273_v33 = vpop.f32.mrf.mxu0 }
 0x313   :  { %v4538_v31 = vpop.f32.mrf.mxu3  ;;  %v4450_v15 = vadd.f32 %v4449_v11, %v4361_v61  ;;  %v4362_v47 = vpop.f32.mrf.mxu1  ;;  %v4274_v30 = vadd.f32 %v4273_v33, %v13533_v27 }
 0x315   :  { %v13672_v20 = vadd.f32 %v4538_v31, %v4450_v15  ;;  %v4363_v40 = vadd.f32 %v4362_v47, %v4274_v30 }
 0x31a   :  { %v4451_v43 = vpop.f32.mrf.mxu2  ;;  %v4276_v49 = vpop.f32.mrf.mxu0 }
 0x31b   :  { %v4540_v55 = vpop.f32.mrf.mxu3  ;;  %v4452_v61 = vadd.f32 %v4451_v43, %v4363_v40  ;;  %v4365_v27 = vpop.f32.mrf.mxu1  ;;  %v4277_v11 = vadd.f32 %v4276_v49, %v13536_v17  ;;  %v12012_v17 = vld [vmem:[#allocation2 + $0x34] sm:$0xf]  ;;  %v12013_v43 = vld [vmem:[#allocation2 + $0x3c] sm:$0xf] }
 0x31c   :  { %v9069_v49 = vor.u32 %v12012_v17, %v9066_v23  ;;  %v13698_v17 = vld [vmem:[#allocation2 + $0x13c] sm:$0xf] }
 0x31d   :  { %v13675_v31 = vadd.f32 %v4540_v55, %v4452_v61  ;;  %v4366_v15 = vadd.f32 %v4365_v27, %v4277_v11  ;;  %4315 = vmatmul.bf16.gmra.mxu0 %v10009_v25  ;;  %v9074_v55 = vld [vmem:[#allocation2 + $0x78] sm:$0xf0]  ;;  %v9065_v61 = vor.u32 %v12020_v3, %v9064_v62  ;;  %v9073_v11 = vor.u32 %v12021_v45, %v9072_v54  ;;  %v13696_v3 = vld [vmem:[#allocation2 + $0x174] sm:$0xf0]  ;;  %v12476_v54 = vld [vmem:[#allocation5 + $0xb0] sm:$0xff] }
 0x31e   :  { %4404 = vmatmul.bf16.gmra.mxu1 %v10013_v63  ;;  %v13700_v23 = vld [vmem:[#allocation2 + $0x178] sm:$0xf0]  ;;  %v12460_v45 = vld [vmem:[#allocation5 + $0x30] sm:$0xff]  ;;  %6687 = vmatpush.bf16.msra.mxu2 %v12476_v54  ;;  %v12037_v54 = vld [vmem:[#allocation2 + $0xf4] sm:$0xf0] }
 0x31f   :  { %4493 = vmatmul.bf16.gmra.mxu2 %v10017_v38  ;;  %6629 = vmatpush.bf16.msra.mxu0 %v12460_v45  ;;  %v12029_v45 = vld [vmem:[#allocation2 + $0xbc] sm:$0xf] }
 0x320   :  { %4582 = vmatmul.bf16.gmra.mxu3 %v10021_v4 }
 0x322   :  { %v4454_v33 = vpop.f32.mrf.mxu2  ;;  %v4278_v44 = vpop.f32.mrf.mxu0 }
 0x323   :  { %v4543_v47 = vpop.f32.mrf.mxu3  ;;  %v4455_v30 = vadd.f32 %v4454_v33, %v4366_v15  ;;  %v4367_v60 = vpop.f32.mrf.mxu1  ;;  %v4279_v40 = vadd.f32 %v4278_v44, %v13539_v26  ;;  %v9077_v26 = vor.u32 %v12013_v43, %v9074_v55  ;;  %v13681_v33 = vld [vmem:[#allocation2 + $0x130] sm:$0xf] }
 0x324   :  { %v12484_v43 = vld [vmem:[#allocation5 + $0xf0] sm:$0xff] }
 0x325   :  { %v13678_v28 = vadd.f32 %v4543_v47, %v4455_v30  ;;  %v4368_v9 = vadd.f32 %v4367_v60, %v4279_v40  ;;  %v13683_v47 = vld [vmem:[#allocation2 + $0x16c] sm:$0xf0]  ;;  %v13685_v30 = vld [vmem:[#allocation2 + $0x134] sm:$0xf]  ;;  %v13691_v40 = vld [vmem:[#allocation2 + $0x100] sm:$0xff]  ;;  %6716 = vmatpush.bf16.msra.mxu3 %v12484_v43 }
 0x326   :  { %v13689_v60 = vld [vmem:[#allocation2 + $0x170] sm:$0xf0]  ;;  %5182 = vst [vmem:[#allocation2 + $0x130] sm:$0xff] %v13691_v40 }
 0x327   :  { %14156 = vst [vmem:[#allocation18_spill] sm:$0xff] %v13678_v28  ;;  %v13715_v28 = vld [vmem:[#allocation2 + $0x1f0] sm:$0xf0] }
 0x32a   :  { %v4456_v25 = vpop.f32.mrf.mxu2  ;;  %v4281_v38 = vpop.f32.mrf.mxu0 }
 0x32b   :  { %v4545_v63 = vpop.f32.mrf.mxu3  ;;  %v4457_v27 = vadd.f32 %v4456_v25, %v4368_v9  ;;  %v4370_v4 = vpop.f32.mrf.mxu1  ;;  %v4282_v15 = vadd.f32 %v4281_v38, %v13542_v58  ;;  %v13694_v9 = vld [vmem:[#allocation2 + $0x138] sm:$0xf]  ;;  %v12838_v58 = vld [vmem:[#allocation2 + $0x140] sm:$0xff] }
 0x32c   :  { %5190 = vst [vmem:[#allocation2 + $0x170] sm:$0xff] %v12838_v58 }
 0x32d   :  { %v13687_v44 = vadd.f32 %v4545_v63, %v4457_v27  ;;  %v4371_v62 = vadd.f32 %v4370_v4, %v4282_v15  ;;  %4596 = vmatmul.bf16.vlgmr.msrb.gmra.mxu0 %v9065_v61  ;;  %5183 = vst [vmem:[#allocation2 + $0x138] sm:$0xff] %v13691_v40  ;;  %v12468_v4 = vld [vmem:[#allocation5 + $0x70] sm:$0xff] }
 0x32e   :  { %4685 = vmatmul.bf16.vlgmr.msrb.gmra.mxu1 %v9069_v49  ;;  %5191 = vst [vmem:[#allocation2 + $0x178] sm:$0xff] %v12838_v58  ;;  %v12036_v15 = vld [vmem:[#allocation2 + $0xec] sm:$0xf0] }
 0x32f   :  { %14157 = vst [vmem:[#allocation19_spill] sm:$0xff] %v13687_v44  ;;  %4774 = vmatmul.bf16.vlgmr.msrb.gmra.mxu2 %v9073_v11  ;;  %6658 = vmatpush.bf16.msra.mxu1 %v12468_v4  ;;  %v13713_v4 = vld [vmem:[#allocation2 + $0x1ec] sm:$0xf0] }
 0x330   :  { %4863 = vmatmul.bf16.vlgmr.msrb.gmra.mxu3 %v9077_v26  ;;  %v9128_v26 = vld [vmem:[#allocation2 + $0xb0] sm:$0xf]  ;;  %5214 = vst [vmem:[#allocation2 + $0x1f0] sm:$0xff] %v12838_v58 }
 0x332   :  { %v4459_v55 = vpop.f32.mrf.mxu2  ;;  %v4283_v61 = vpop.f32.mrf.mxu0 }
 0x333   :  { %v4548_v25 = vpop.f32.mrf.mxu3  ;;  %v4460_v63 = vadd.f32 %v4459_v55, %v4371_v62  ;;  %v4372_v49 = vpop.f32.mrf.mxu1  ;;  %v4284_v27 = vadd.f32 %v4283_v61, %v13545_v42  ;;  %v9129_v62 = vor.u32 %v12036_v15, %v9128_v26  ;;  %v9133_v55 = vor.u32 %v12028_v12, %v9130_v10  ;;  %v9266_v12 = vld [vmem:[#allocation2 + $0x1f8] sm:$0xf0] }
 0x335   :  { %v13704_v38 = vadd.f32 %v4548_v25, %v4460_v63  ;;  %v4373_v11 = vadd.f32 %v4372_v49, %v4284_v27  ;;  %v9137_v25 = vor.u32 %v12037_v54, %v9136_v5  ;;  %v9141_v63 = vor.u32 %v12029_v45, %v9138_v7  ;;  %v13707_v49 = vld [vmem:[#allocation2 + $0x1b0] sm:$0xf]  ;;  %v13709_v27 = vld [vmem:[#allocation2 + $0x1b4] sm:$0xf]  ;;  %v9264_v5 = vld [vmem:[#allocation2 + $0x1b8] sm:$0xf] }
 0x336   :  { %5206 = vst [vmem:[#allocation2 + $0x1b0] sm:$0xff] %v13691_v40  ;;  %v12061_v7 = vld [vmem:[#allocation2 + $0x1bc] sm:$0xf] }
 0x337   :  { %14158 = vst [vmem:[#allocation20_spill] sm:$0xff] %v13704_v38 }
 0x338   :  { %5207 = vst [vmem:[#allocation2 + $0x1b8] sm:$0xff] %v13691_v40 }
 0x33a   :  { %v4461_v8 = vpop.f32.mrf.mxu2  ;;  %v4286_v44 = vpop.f32.mrf.mxu0 }
 0x33b   :  { %v4550_v43 = vpop.f32.mrf.mxu3  ;;  %v4462_v6 = vadd.f32 %v4461_v8, %v4373_v11  ;;  %v4375_v42 = vpop.f32.mrf.mxu1  ;;  %v4287_v61 = vadd.f32 %v4286_v44, %v13548_v22  ;;  %v12069_v8 = vld [vmem:[#allocation2 + $0x1f4] sm:$0xf0] }
 0x33c   :  { %5215 = vst [vmem:[#allocation2 + $0x1f8] sm:$0xff] %v12838_v58 }
 0x33d   :  { %v13711_v38 = vadd.f32 %v4550_v43, %v4462_v6  ;;  %v4376_v10 = vadd.f32 %v4375_v42, %v4287_v61  ;;  %4601 = vmatmul.bf16.gmra.mxu0 %v9129_v62  ;;  %v9197_v42 = vor.u32 %v13685_v30, %v13689_v60  ;;  %v12483_v30 = vld [vmem:[#allocation5 + $0xe8] sm:$0xff] }
 0x33e   :  { %4690 = vmatmul.bf16.gmra.mxu1 %v9133_v55  ;;  %v9193_v55 = vor.u32 %v13683_v47, %v13681_v33  ;;  %v12475_v33 = vld [vmem:[#allocation5 + $0xa8] sm:$0xff]  ;;  %6717 = vmatpush.bf16.msra.mxu3 %v12483_v30  ;;  %v12077_v30 = vld [vmem:[#allocation2 + $0x23c] sm:$0xf] }
 0x33f   :  { %4779 = vmatmul.bf16.gmra.mxu2 %v9137_v25  ;;  %v12459_v47 = vld [vmem:[#allocation5 + $0x28] sm:$0xff] }
 0x340   :  { %4868 = vmatmul.bf16.gmra.mxu3 %v9141_v63  ;;  %v9201_v63 = vor.u32 %v13696_v3, %v13694_v9  ;;  %6688 = vmatpush.bf16.msra.mxu2 %v12475_v33  ;;  %v9328_v33 = vld [vmem:[#allocation2 + $0x238] sm:$0xf] }
 0x341   :  { %6630 = vmatpush.bf16.msra.mxu0 %v12459_v47  ;;  %v12085_v47 = vld [vmem:[#allocation2 + $0x274] sm:$0xf0] }
 0x342   :  { %v4464_v6 = vpop.f32.mrf.mxu2  ;;  %v4288_v11 = vpop.f32.mrf.mxu0 }
 0x343   :  { %v4553_v22 = vpop.f32.mrf.mxu3  ;;  %v4465_v44 = vadd.f32 %v4464_v6, %v4376_v10  ;;  %v4377_v26 = vpop.f32.mrf.mxu1  ;;  %v4289_v15 = vadd.f32 %v4288_v11, %v13551_v16  ;;  %v9205_v16 = vor.u32 %v13698_v17, %v13700_v23 }
 0x345   :  { %v13720_v54 = vadd.f32 %v4553_v22, %v4465_v44  ;;  %v4378_v45 = vadd.f32 %v4377_v26, %v4289_v15  ;;  %v12467_v44 = vld [vmem:[#allocation5 + $0x68] sm:$0xff] }
 0x346   :  { %6659 = vmatpush.bf16.msra.mxu1 %v12467_v44 }
 0x34a   :  { %v4466_v43 = vpop.f32.mrf.mxu2  ;;  %v4291_v58 = vpop.f32.mrf.mxu0 }
 0x34b   :  { %v4555_v62 = vpop.f32.mrf.mxu3  ;;  %v4467_v40 = vadd.f32 %v4466_v43, %v4378_v45  ;;  %v4380_v25 = vpop.f32.mrf.mxu1  ;;  %v4292_v61 = vadd.f32 %v4291_v58, %v13554_v41  ;;  %v9257_v45 = vor.u32 %v13713_v4, %v13707_v49  ;;  %v9261_v43 = vor.u32 %v13709_v27, %v13715_v28 }
 0x34c   :  { %v9269_v58 = vor.u32 %v12061_v7, %v9266_v12  ;;  %v9320_v7 = vld [vmem:[#allocation2 + $0x230] sm:$0xf]  ;;  %v9322_v12 = vld [vmem:[#allocation2 + $0x270] sm:$0xf0] }
 0x34d   :  { %v13731_v10 = vadd.f32 %v4555_v62, %v4467_v40  ;;  %v4381_v6 = vadd.f32 %v4380_v25, %v4292_v61  ;;  %4606 = vmatmul.bf16.gmra.mxu0 %v9193_v55  ;;  %v9265_v40 = vor.u32 %v12069_v8, %v9264_v5  ;;  %v12084_v8 = vld [vmem:[#allocation2 + $0x26c] sm:$0xf0] }
 0x34e   :  { %4695 = vmatmul.bf16.gmra.mxu1 %v9197_v42 }
 0x34f   :  { %4784 = vmatmul.bf16.gmra.mxu2 %v9201_v63 }
 0x350   :  { %4873 = vmatmul.bf16.gmra.mxu3 %v9205_v16 }
 0x352   :  { %v4469_v60 = vpop.f32.mrf.mxu2  ;;  %v4293_v3 = vpop.f32.mrf.mxu0 }
 0x353   :  { %v4558_v22 = vpop.f32.mrf.mxu3  ;;  %v4470_v9 = vadd.f32 %v4469_v60, %v4381_v6  ;;  %v4382_v17 = vpop.f32.mrf.mxu1  ;;  %v4294_v41 = vadd.f32 %v4293_v3, %v13557_v36  ;;  %v9330_v60 = vld [vmem:[#allocation2 + $0x278] sm:$0xf0]  ;;  %v9321_v3 = vor.u32 %v12084_v8, %v9320_v7  ;;  %v9386_v7 = vld [vmem:[#allocation2 + $0x2f0] sm:$0xf0]  ;;  %v9392_v8 = vld [vmem:[#allocation2 + $0x2b8] sm:$0xf] }
 0x355   :  { %v13734_v23 = vadd.f32 %v4558_v22, %v4470_v9  ;;  %v4383_v11 = vadd.f32 %v4382_v17, %v4294_v41 }
 0x35a   :  { %v4471_v26 = vpop.f32.mrf.mxu2  ;;  %v4296_v55 = vpop.f32.mrf.mxu0 }
 0x35b   :  { %v4560_v15 = vpop.f32.mrf.mxu3  ;;  %v4472_v62 = vadd.f32 %v4471_v26, %v4383_v11  ;;  %v4385_v42 = vpop.f32.mrf.mxu1  ;;  %v4297_v36 = vadd.f32 %v4296_v55, %v13560_v53  ;;  %v12076_v53 = vld [vmem:[#allocation2 + $0x234] sm:$0xf]  ;;  %v9329_v26 = vor.u32 %v12085_v47, %v9328_v33  ;;  %v12458_v55 = vld [vmem:[#allocation5 + $0x20] sm:$0xff]  ;;  %v9394_v33 = vld [vmem:[#allocation2 + $0x2f8] sm:$0xf0] }
 0x35c   :  { %v9325_v17 = vor.u32 %v12076_v53, %v9322_v12  ;;  %6631 = vmatpush.bf16.msra.mxu0 %v12458_v55  ;;  %v12101_v53 = vld [vmem:[#allocation2 + $0x2f4] sm:$0xf0]  ;;  %v12093_v12 = vld [vmem:[#allocation2 + $0x2bc] sm:$0xf] }
 0x35d   :  { %v13741_v25 = vadd.f32 %v4560_v15, %v4472_v62  ;;  %v4386_v63 = vadd.f32 %v4385_v42, %v4297_v36  ;;  %4611 = vmatmul.bf16.gmra.mxu0 %v9257_v45  ;;  %v12474_v62 = vld [vmem:[#allocation5 + $0xa0] sm:$0xff] }
 0x35e   :  { %4700 = vmatmul.bf16.gmra.mxu1 %v9261_v43  ;;  %v12482_v42 = vld [vmem:[#allocation5 + $0xe0] sm:$0xff]  ;;  %6689 = vmatpush.bf16.msra.mxu2 %v12474_v62 }
 0x35f   :  { %4789 = vmatmul.bf16.gmra.mxu2 %v9265_v40  ;;  %6718 = vmatpush.bf16.msra.mxu3 %v12482_v42 }
 0x360   :  { %4878 = vmatmul.bf16.gmra.mxu3 %v9269_v58 }
 0x362   :  { %v4474_v16 = vpop.f32.mrf.mxu2  ;;  %v4298_v4 = vpop.f32.mrf.mxu0 }
 0x363   :  { %v4563_v61 = vpop.f32.mrf.mxu3  ;;  %v4475_v49 = vadd.f32 %v4474_v16, %v4386_v63  ;;  %v4387_v6 = vpop.f32.mrf.mxu1  ;;  %v4299_v28 = vadd.f32 %v4298_v4, %v13563_v46  ;;  %v9333_v46 = vor.u32 %v12077_v30, %v9330_v60 }
 0x365   :  { %v13744_v27 = vadd.f32 %v4563_v61, %v4475_v49  ;;  %v4388_v5 = vadd.f32 %v4387_v6, %v4299_v28  ;;  %v12466_v49 = vld [vmem:[#allocation5 + $0x60] sm:$0xff]  ;;  %v9384_v6 = vld [vmem:[#allocation2 + $0x2b0] sm:$0xf] }
 0x366   :  { %v12100_v28 = vld [vmem:[#allocation2 + $0x2ec] sm:$0xf0]  ;;  %6660 = vmatpush.bf16.msra.mxu1 %v12466_v49  ;;  %v12117_v49 = vld [vmem:[#allocation2 + $0x374] sm:$0xf0] }
 0x367   :  { %v9385_v60 = vor.u32 %v12100_v28, %v9384_v6  ;;  %v9458_v6 = vld [vmem:[#allocation2 + $0x378] sm:$0xf0] }
 0x36a   :  { %v4476_v22 = vpop.f32.mrf.mxu2  ;;  %v4301_v44 = vpop.f32.mrf.mxu0 }
 0x36b   :  { %v4565_v9 = vpop.f32.mrf.mxu3  ;;  %v4477_v41 = vadd.f32 %v4476_v22, %v4388_v5  ;;  %v4390_v11 = vpop.f32.mrf.mxu1  ;;  %v4302_v15 = vadd.f32 %v4301_v44, %v13566_v59  ;;  %v12092_v5 = vld [vmem:[#allocation2 + $0x2b4] sm:$0xf] }
 0x36c   :  { %v9389_v22 = vor.u32 %v12092_v5, %v9386_v7 }
 0x36d   :  { %v13747_v45 = vadd.f32 %v4565_v9, %v4477_v41  ;;  %v4391_v43 = vadd.f32 %v4390_v11, %v4302_v15  ;;  %4616 = vmatmul.bf16.gmra.mxu0 %v9321_v3  ;;  %v9397_v41 = vor.u32 %v12093_v12, %v9394_v33 }
 0x36e   :  { %4705 = vmatmul.bf16.gmra.mxu1 %v9325_v17  ;;  %v9393_v17 = vor.u32 %v12101_v53, %v9392_v8 }
 0x36f   :  { %4794 = vmatmul.bf16.gmra.mxu2 %v9329_v26 }
 0x370   :  { %4883 = vmatmul.bf16.gmra.mxu3 %v9333_v46 }
 0x372   :  { %v4479_v40 = vpop.f32.mrf.mxu2  ;;  %v4303_v63 = vpop.f32.mrf.mxu0 }
 0x373   :  { %v4568_v58 = vpop.f32.mrf.mxu3  ;;  %v4480_v36 = vadd.f32 %v4479_v40, %v4391_v43  ;;  %v4392_v16 = vpop.f32.mrf.mxu1  ;;  %v4304_v59 = vadd.f32 %v4303_v63, %v13569_v24  ;;  %v12116_v63 = vld [vmem:[#allocation2 + $0x36c] sm:$0xf0] }
 0x375   :  { %v13750_v61 = vadd.f32 %v4568_v58, %v4480_v36  ;;  %v4393_v4 = vadd.f32 %v4392_v16, %v4304_v59  ;;  %v9448_v36 = vld [vmem:[#allocation2 + $0x330] sm:$0xf]  ;;  %v9450_v16 = vld [vmem:[#allocation2 + $0x370] sm:$0xf0]  ;;  %v9456_v59 = vld [vmem:[#allocation2 + $0x338] sm:$0xf] }
 0x376   :  { %v9449_v7 = vor.u32 %v12116_v63, %v9448_v36  ;;  %v9520_v36 = vld [vmem:[#allocation2 + $0x3b8] sm:$0xf] }
 0x377   :  { %v12133_v63 = vld [vmem:[#allocation2 + $0x3f4] sm:$0xf0] }
 0x37a   :  { %v4481_v47 = vpop.f32.mrf.mxu2  ;;  %v4306_v3 = vpop.f32.mrf.mxu0 }
 0x37b   :  { %v4570_v30 = vpop.f32.mrf.mxu3  ;;  %v4482_v9 = vadd.f32 %v4481_v47, %v4393_v4  ;;  %v4395_v24 = vpop.f32.mrf.mxu1  ;;  %v4307_v44 = vadd.f32 %v4306_v3, %v13572_v14  ;;  %v12108_v14 = vld [vmem:[#allocation2 + $0x334] sm:$0xf]  ;;  %v12109_v4 = vld [vmem:[#allocation2 + $0x33c] sm:$0xf]  ;;  %v9457_v47 = vor.u32 %v12117_v49, %v9456_v59 }
 0x37c   :  { %v9453_v8 = vor.u32 %v12108_v14, %v9450_v16  ;;  %v12457_v3 = vld [vmem:[#allocation5 + $0x18] sm:$0xff] }
 0x37d   :  { %v13753_v11 = vadd.f32 %v4570_v30, %v4482_v9  ;;  %v4396_v26 = vadd.f32 %v4395_v24, %v4307_v44  ;;  %4621 = vmatmul.bf16.gmra.mxu0 %v9385_v60  ;;  %v12473_v9 = vld [vmem:[#allocation5 + $0x98] sm:$0xff] }
 0x37e   :  { %4710 = vmatmul.bf16.gmra.mxu1 %v9389_v22  ;;  %v12481_v24 = vld [vmem:[#allocation5 + $0xd8] sm:$0xff]  ;;  %6690 = vmatpush.bf16.msra.mxu2 %v12473_v9 }
 0x37f   :  { %4799 = vmatmul.bf16.gmra.mxu2 %v9393_v17  ;;  %6632 = vmatpush.bf16.msra.mxu0 %v12457_v3  ;;  %v12125_v14 = vld [vmem:[#allocation2 + $0x3bc] sm:$0xf] }
 0x380   :  { %4888 = vmatmul.bf16.gmra.mxu3 %v9397_v41  ;;  %v9522_v16 = vld [vmem:[#allocation2 + $0x3f8] sm:$0xf0] }
 0x381   :  { %6719 = vmatpush.bf16.msra.mxu3 %v12481_v24 }
 0x382   :  { %v4484_v46 = vpop.f32.mrf.mxu2  ;;  %v4308_v62 = vpop.f32.mrf.mxu0 }
 0x383   :  { %v4573_v15 = vpop.f32.mrf.mxu3  ;;  %v4485_v43 = vadd.f32 %v4484_v46, %v4396_v26  ;;  %v4397_v55 = vpop.f32.mrf.mxu1  ;;  %v4309_v42 = vadd.f32 %v4308_v62, %v13575_v13  ;;  %v9461_v13 = vor.u32 %v12109_v4, %v9458_v6  ;;  %v9512_v62 = vld [vmem:[#allocation2 + $0x3b0] sm:$0xf] }
 0x385   :  { %v13756_v40 = vadd.f32 %v4573_v15, %v4485_v43  ;;  %v4398_v58 = vadd.f32 %v4397_v55, %v4309_v42  ;;  %v12132_v55 = vld [vmem:[#allocation2 + $0x3ec] sm:$0xf0]  ;;  %v12124_v42 = vld [vmem:[#allocation2 + $0x3b4] sm:$0xf] }
 0x386   :  { %v9513_v4 = vor.u32 %v12132_v55, %v9512_v62  ;;  %v12141_v62 = vld [vmem:[#allocation2 + $0x43c] sm:$0xf] }
 0x387   :  { %v9586_v55 = vld [vmem:[#allocation2 + $0x478] sm:$0xf0] }
 0x38a   :  { %v4486_v28 = vpop.f32.mrf.mxu2  ;;  %v4311_v12 = vpop.f32.mrf.mxu0 }
 0x38b   :  { %v4575_v5 = vpop.f32.mrf.mxu3  ;;  %v4487_v53 = vadd.f32 %v4486_v28, %v4398_v58  ;;  %v4400_v33 = vpop.f32.mrf.mxu1  ;;  %v4312_v30 = vadd.f32 %v4311_v12, %v13578_v48  ;;  %v9514_v58 = vld [vmem:[#allocation2 + $0x3f0] sm:$0xf0] }
 0x38c   :  { %v9517_v6 = vor.u32 %v12124_v42, %v9514_v58 }
 0x38d   :  { %v13759_v60 = vadd.f32 %v4575_v5, %v4487_v53  ;;  %v4401_v22 = vadd.f32 %v4400_v33, %v4312_v30  ;;  %4626 = vmatmul.bf16.gmra.mxu0 %v9449_v7 }
 0x38e   :  { %4715 = vmatmul.bf16.gmra.mxu1 %v9453_v8  ;;  %v9521_v8 = vor.u32 %v12133_v63, %v9520_v36 }
 0x38f   :  { %4804 = vmatmul.bf16.gmra.mxu2 %v9457_v47  ;;  %v12465_v47 = vld [vmem:[#allocation5 + $0x58] sm:$0xff] }
 0x390   :  { %4893 = vmatmul.bf16.gmra.mxu3 %v9461_v13  ;;  %6661 = vmatpush.bf16.msra.mxu1 %v12465_v47 }
 0x392   :  { %v4489_v17 = vpop.f32.mrf.mxu2  ;;  %v4313_v26 = vpop.f32.mrf.mxu0 }
 0x393   :  { %v4578_v41 = vpop.f32.mrf.mxu3  ;;  %v4490_v44 = vadd.f32 %v4489_v17, %v4401_v22  ;;  %v4402_v46 = vpop.f32.mrf.mxu1  ;;  %v4314_v48 = vadd.f32 %v4313_v26, %v13581_v29  ;;  %v9525_v29 = vor.u32 %v12125_v14, %v9522_v16  ;;  %v12140_v26 = vld [vmem:[#allocation2 + $0x434] sm:$0xf] }
 0x395   :  { %v13762_v15 = vadd.f32 %v4578_v41, %v4490_v44  ;;  %v4403_v43 = vadd.f32 %v4402_v46, %v4314_v48  ;;  %v12148_v44 = vld [vmem:[#allocation2 + $0x46c] sm:$0xf0]  ;;  %v9578_v46 = vld [vmem:[#allocation2 + $0x470] sm:$0xf0]  ;;  %v9584_v48 = vld [vmem:[#allocation2 + $0x438] sm:$0xf] }
 0x396   :  { %v9581_v63 = vor.u32 %v12140_v26, %v9578_v46  ;;  %v12157_v26 = vld [vmem:[#allocation2 + $0x4bc] sm:$0xf] }
 0x397   :  { %v9650_v46 = vld [vmem:[#allocation2 + $0x4f8] sm:$0xf0] }
 0x39a   :  { %v4491_v59 = vpop.f32.mrf.mxu2  ;;  %v4316_v5 = vpop.f32.mrf.mxu0 }
 0x39b   :  { %v4580_v49 = vpop.f32.mrf.mxu3  ;;  %v4492_v28 = vadd.f32 %v4491_v59, %v4403_v43  ;;  %v4405_v7 = vpop.f32.mrf.mxu1  ;;  %v4317_v53 = vadd.f32 %v4316_v5, %v13584_v19  ;;  %v9576_v19 = vld [vmem:[#allocation2 + $0x430] sm:$0xf]  ;;  %v12149_v43 = vld [vmem:[#allocation2 + $0x474] sm:$0xf0] }
 0x39c   :  { %v9577_v36 = vor.u32 %v12148_v44, %v9576_v19  ;;  %v9648_v19 = vld [vmem:[#allocation2 + $0x4b8] sm:$0xf] }
 0x39d   :  { %v13765_v12 = vadd.f32 %v4580_v49, %v4492_v28  ;;  %v4406_v33 = vadd.f32 %v4405_v7, %v4317_v53  ;;  %4631 = vmatmul.bf16.gmra.mxu0 %v9513_v4  ;;  %v9585_v49 = vor.u32 %v12149_v43, %v9584_v48  ;;  %v12165_v44 = vld [vmem:[#allocation2 + $0x4f4] sm:$0xf0] }
 0x39e   :  { %4720 = vmatmul.bf16.gmra.mxu1 %v9517_v6 }
 0x39f   :  { %4809 = vmatmul.bf16.gmra.mxu2 %v9521_v8 }
 0x3a0   :  { %4898 = vmatmul.bf16.gmra.mxu3 %v9525_v29 }
 0x3a2   :  { %v4494_v13 = vpop.f32.mrf.mxu2  ;;  %v4318_v9 = vpop.f32.mrf.mxu0 }
 0x3a3   :  { %v4583_v30 = vpop.f32.mrf.mxu3  ;;  %v4495_v22 = vadd.f32 %v4494_v13, %v4406_v33  ;;  %v4407_v3 = vpop.f32.mrf.mxu1  ;;  %v4319_v24 = vadd.f32 %v4318_v9, %v13587_v51  ;;  %v9589_v51 = vor.u32 %v12141_v62, %v9586_v55  ;;  %v12472_v13 = vld [vmem:[#allocation5 + $0x90] sm:$0xff] }
 0x3a4   :  { %v9640_v9 = vld [vmem:[#allocation2 + $0x4b0] sm:$0xf]  ;;  %6691 = vmatpush.bf16.msra.mxu2 %v12472_v13 }
 0x3a5   :  { %v13768_v17 = vadd.f32 %v4583_v30, %v4495_v22  ;;  %v4408_v41 = vadd.f32 %v4407_v3, %v4319_v24  ;;  %v12456_v30 = vld [vmem:[#allocation5 + $0x10] sm:$0xff] }
 0x3a6   :  { %v12480_v22 = vld [vmem:[#allocation5 + $0xd0] sm:$0xff]  ;;  %6633 = vmatpush.bf16.msra.mxu0 %v12456_v30 }
 0x3a7   :  { %v12164_v3 = vld [vmem:[#allocation2 + $0x4ec] sm:$0xf0]  ;;  %v12156_v24 = vld [vmem:[#allocation2 + $0x4b4] sm:$0xf]  ;;  %6720 = vmatpush.bf16.msra.mxu3 %v12480_v22 }
 0x3aa   :  { %v4496_v42 = vpop.f32.mrf.mxu2  ;;  %v4597_v16 = vpop.f32.mrf.mxu0 }
 0x3ab   :  { %v4585_v58 = vpop.f32.mrf.mxu3  ;;  %v4497_v14 = vadd.f32 %v4496_v42, %v4408_v41  ;;  %v4686_v59 = vpop.f32.mrf.mxu1  ;;  %v4598_v6 = vadd.f32 %v4597_v16, %v13590_v57  ;;  %v9642_v41 = vld [vmem:[#allocation2 + $0x4f0] sm:$0xf0]  ;;  %v9649_v16 = vor.u32 %v12165_v44, %v9648_v19  ;;  %v9712_v19 = vld [vmem:[#allocation2 + $0x538] sm:$0xf] }
 0x3ac   :  { %v9645_v42 = vor.u32 %v12156_v24, %v9642_v41  ;;  %v9706_v41 = vld [vmem:[#allocation2 + $0x570] sm:$0xf0] }
 0x3ad   :  { %v13770_v4 = vadd.f32 %v4585_v58, %v4497_v14  ;;  %4636 = vmatmul.bf16.gmra.mxu0 %v9577_v36  ;;  %v4687_v28 = vadd.f32 %v4686_v59, %v4598_v6  ;;  %v9653_v59 = vor.u32 %v12157_v26, %v9650_v46  ;;  %v12181_v26 = vld [vmem:[#allocation2 + $0x574] sm:$0xf0]  ;;  %v12173_v46 = vld [vmem:[#allocation2 + $0x53c] sm:$0xf] }
 0x3ae   :  { %4725 = vmatmul.bf16.gmra.mxu1 %v9581_v63 }
 0x3af   :  { %4814 = vmatmul.bf16.gmra.mxu2 %v9585_v49 }
 0x3b0   :  { %4903 = vmatmul.bf16.gmra.mxu3 %v9589_v51 }
 0x3b2   :  { %v4775_v5 = vpop.f32.mrf.mxu2  ;;  %v4599_v29 = vpop.f32.mrf.mxu0 }
 0x3b3   :  { %v4864_v7 = vpop.f32.mrf.mxu3  ;;  %v4776_v8 = vadd.f32 %v4775_v5, %v4687_v28  ;;  %v4688_v53 = vpop.f32.mrf.mxu1  ;;  %v4600_v47 = vadd.f32 %v4599_v29, %v13593_v39  ;;  %v9641_v39 = vor.u32 %v12164_v3, %v9640_v9  ;;  %v9704_v9 = vld [vmem:[#allocation2 + $0x530] sm:$0xf] }
 0x3b4   :  { %v12180_v3 = vld [vmem:[#allocation2 + $0x56c] sm:$0xf0] }
 0x3b5   :  { %v4865_v33 = vadd.f32 %v4864_v7, %v4776_v8  ;;  %v4689_v43 = vadd.f32 %v4688_v53, %v4600_v47  ;;  %v12464_v53 = vld [vmem:[#allocation5 + $0x50] sm:$0xff] }
 0x3b6   :  { %6662 = vmatpush.bf16.msra.mxu1 %v12464_v53 }
 0x3b7   :  { %v4944_v57 = vmul.f32 0.2, %v4865_v33 }
 0x3b9   :  { %v4976_v48 = vmax.f32 %v4865_v33, %v4944_v57  ;;  %v12172_v57 = vld [vmem:[#allocation2 + $0x534] sm:$0xf] }
 0x3ba   :  { %v4777_v62 = vpop.f32.mrf.mxu2  ;;  %v4602_v63 = vpop.f32.mrf.mxu0 }
 0x3bb   :  { %v4866_v55 = vpop.f32.mrf.mxu3  ;;  %v5008_v58 = vpack.c.bf16 %v4976_v48, %v4976_v48  ;;  %v4778_v36 = vadd.f32 %v4777_v62, %v4689_v43  ;;  %v4691_v14 = vpop.f32.mrf.mxu1  ;;  %v4603_v7 = vadd.f32 %v4602_v63, %v13613_v21  ;;  %v9714_v21 = vld [vmem:[#allocation2 + $0x578] sm:$0xf0]  ;;  %v9705_v62 = vor.u32 %v12180_v3, %v9704_v9  ;;  %v9770_v9 = vld [vmem:[#allocation2 + $0x5f0] sm:$0xf0]  ;;  %v9776_v3 = vld [vmem:[#allocation2 + $0x5b8] sm:$0xf] }
 0x3bc   :  { %v9717_v63 = vor.u32 %v12173_v46, %v9714_v21  ;;  %v12471_v21 = vld [vmem:[#allocation5 + $0x88] sm:$0xff] }
 0x3bd   :  { %v5042_v49 = vunpack.c.l.b16 %v5008_v58  ;;  %v4867_v51 = vadd.f32 %v4866_v55, %v4778_v36  ;;  %4641 = vmatmul.bf16.gmra.mxu0 %v9641_v39  ;;  %v4692_v22 = vadd.f32 %v4691_v14, %v4603_v7  ;;  %v9709_v55 = vor.u32 %v12172_v57, %v9706_v41  ;;  %v12189_v41 = vld [vmem:[#allocation2 + $0x5bc] sm:$0xf]  ;;  %6692 = vmatpush.bf16.msra.mxu2 %v12471_v21  ;;  %v9840_v21 = vld [vmem:[#allocation2 + $0x638] sm:$0xf] }
 0x3be   :  { %4730 = vmatmul.bf16.gmra.mxu1 %v9645_v42  ;;  %v9713_v36 = vor.u32 %v12181_v26, %v9712_v19  ;;  %v9778_v19 = vld [vmem:[#allocation2 + $0x5f8] sm:$0xf0] }
 0x3bf   :  { %v5076_v6 = vpack.c.b16 %v5042_v49, %v12992_v1  ;;  %v4945_v28 = vmul.f32 0.2, %v4867_v51  ;;  %4819 = vmatmul.bf16.gmra.mxu2 %v9649_v16 }
 0x3c0   :  { %4908 = vmatmul.bf16.gmra.mxu3 %v9653_v59 }
 0x3c1   :  { %5102 = vst [vmem:[#allocation2 + $0x10] sm:$0xff] %v5076_v6  ;;  %v4977_v5 = vmax.f32 %v4867_v51, %v4945_v28 }
 0x3c2   :  { %v4780_v8 = vpop.f32.mrf.mxu2  ;;  %v4604_v47 = vpop.f32.mrf.mxu0 }
 0x3c3   :  { %v4869_v29 = vpop.f32.mrf.mxu3  ;;  %v5009_v33 = vpack.c.bf16 %v4977_v5, %v4977_v5  ;;  %v4693_v13 = vpop.f32.mrf.mxu1  ;;  %v4781_v44 = vadd.f32 %v4780_v8, %v4692_v22  ;;  %v4605_v39 = vadd.f32 %v4604_v47, %v13616_v18  ;;  %v12188_v22 = vld [vmem:[#allocation2 + $0x5b4] sm:$0xf] }
 0x3c5   :  { %v5043_v30 = vunpack.c.l.b16 %v5009_v33  ;;  %v4870_v14 = vadd.f32 %v4869_v29, %v4781_v44  ;;  %v4694_v59 = vadd.f32 %v4693_v13, %v4605_v39 }
 0x3c7   :  { %v5082_v24 = vpack.c.b16 %v5043_v30, %v12994_v2  ;;  %v4946_v49 = vmul.f32 0.2, %v4870_v14  ;;  %v9768_v30 = vld [vmem:[#allocation2 + $0x5b0] sm:$0xf] }
 0x3c9   :  { %5110 = vst [vmem:[#allocation2 + $0x50] sm:$0xff] %v5082_v24  ;;  %v4978_v53 = vmax.f32 %v4870_v14, %v4946_v49  ;;  %v12197_v24 = vld [vmem:[#allocation2 + $0x5f4] sm:$0xf0] }
 0x3ca   :  { %v4782_v48 = vpop.f32.mrf.mxu2  ;;  %v4607_v42 = vpop.f32.mrf.mxu0 }
 0x3cb   :  { %v4871_v43 = vpop.f32.mrf.mxu3  ;;  %v4696_v58 = vpop.f32.mrf.mxu1  ;;  %v4608_v16 = vadd.f32 %v4607_v42, %v13631_v56  ;;  %v4783_v51 = vadd.f32 %v4782_v48, %v4694_v59  ;;  %v12196_v56 = vld [vmem:[#allocation2 + $0x5ec] sm:$0xf0]  ;;  %v5010_v57 = vpack.c.bf16 %v4978_v53, %v4978_v53  ;;  %v12455_v48 = vld [vmem:[#allocation5 + $0x8] sm:$0xff]  ;;  %v9777_v42 = vor.u32 %v12197_v24, %v9776_v3 }
 0x3cc   :  { %v9769_v39 = vor.u32 %v12196_v56, %v9768_v30  ;;  %6634 = vmatpush.bf16.msra.mxu0 %v12455_v48  ;;  %v12463_v30 = vld [vmem:[#allocation5 + $0x48] sm:$0xff]  ;;  %v12213_v48 = vld [vmem:[#allocation2 + $0x674] sm:$0xf0] }
 0x3cd   :  { %4646 = vmatmul.bf16.gmra.mxu0 %v9705_v62  ;;  %v4697_v6 = vadd.f32 %v4696_v58, %v4608_v16  ;;  %v4872_v33 = vadd.f32 %v4871_v43, %v4783_v51  ;;  %v12479_v62 = vld [vmem:[#allocation5 + $0xc8] sm:$0xff]  ;;  %v9781_v16 = vor.u32 %v12189_v41, %v9778_v19  ;;  %v5046_v59 = vunpack.c.l.b16 %v5010_v57  ;;  %6663 = vmatpush.bf16.msra.mxu1 %v12463_v30  ;;  %v9832_v57 = vld [vmem:[#allocation2 + $0x630] sm:$0xf]  ;;  %v12204_v19 = vld [vmem:[#allocation2 + $0x634] sm:$0xf] }
 0x3ce   :  { %4735 = vmatmul.bf16.gmra.mxu1 %v9709_v55  ;;  %6721 = vmatpush.bf16.msra.mxu3 %v12479_v62  ;;  %v12212_v41 = vld [vmem:[#allocation2 + $0x66c] sm:$0xf0]  ;;  %v12205_v62 = vld [vmem:[#allocation2 + $0x63c] sm:$0xf] }
 0x3cf   :  { %4824 = vmatmul.bf16.gmra.mxu2 %v9713_v36  ;;  %v4947_v44 = vmul.f32 0.2, %v4872_v33 }
 0x3d0   :  { %4913 = vmatmul.bf16.gmra.mxu3 %v9717_v63 }
 0x3d1   :  { %v4979_v49 = vmax.f32 %v4872_v33, %v4947_v44 }
 0x3d2   :  { %v4785_v28 = vpop.f32.mrf.mxu2  ;;  %v4609_v8 = vpop.f32.mrf.mxu0 }
 0x3d3   :  { %v4874_v5 = vpop.f32.mrf.mxu3  ;;  %v4786_v7 = vadd.f32 %v4785_v28, %v4697_v6  ;;  %v4698_v18 = vpop.f32.mrf.mxu1  ;;  %v4610_v29 = vadd.f32 %v4609_v8, %v13634_v35  ;;  %v9773_v35 = vor.u32 %v12188_v22, %v9770_v9  ;;  %v5011_v8 = vpack.c.bf16 %v4979_v49, %v4979_v49 }
 0x3d5   :  { %v4875_v47 = vadd.f32 %v4874_v5, %v4786_v7  ;;  %v4699_v46 = vadd.f32 %v4698_v18, %v4610_v29 }
 0x3d7   :  { %v4948_v13 = vmul.f32 0.2, %v4875_v47 }
 0x3d9   :  { %v4980_v26 = vmax.f32 %v4875_v47, %v4948_v13 }
 0x3da   :  { %v4787_v43 = vpop.f32.mrf.mxu2  ;;  %v4612_v63 = vpop.f32.mrf.mxu0 }
 0x3db   :  { %v4876_v55 = vpop.f32.mrf.mxu3  ;;  %v5012_v58 = vpack.c.bf16 %v4980_v26, %v4980_v26  ;;  %v4788_v36 = vadd.f32 %v4787_v43, %v4699_v46  ;;  %v4701_v14 = vpop.f32.mrf.mxu1  ;;  %v4613_v28 = vadd.f32 %v4612_v63, %v13649_v52  ;;  %v5047_v52 = vunpack.c.l.b16 %v5011_v8  ;;  %v9834_v46 = vld [vmem:[#allocation2 + $0x670] sm:$0xf0]  ;;  %v9842_v43 = vld [vmem:[#allocation2 + $0x678] sm:$0xf0] }
 0x3dc   :  { %v9845_v49 = vor.u32 %v12205_v62, %v9842_v43  ;;  %v9906_v62 = vld [vmem:[#allocation2 + $0x6f8] sm:$0xf0] }
 0x3dd   :  { %v5050_v51 = vunpack.c.l.b16 %v5012_v58  ;;  %v4877_v6 = vadd.f32 %v4876_v55, %v4788_v36  ;;  %4651 = vmatmul.bf16.gmra.mxu0 %v9769_v39  ;;  %v4702_v53 = vadd.f32 %v4701_v14, %v4613_v28  ;;  %v9833_v58 = vor.u32 %v12212_v41, %v9832_v57  ;;  %v12228_v57 = vld [vmem:[#allocation2 + $0x6ec] sm:$0xf0]  ;;  %v12220_v41 = vld [vmem:[#allocation2 + $0x6b4] sm:$0xf] }
 0x3de   :  { %4740 = vmatmul.bf16.gmra.mxu1 %v9773_v35  ;;  %v9837_v36 = vor.u32 %v12204_v19, %v9834_v46  ;;  %v9904_v46 = vld [vmem:[#allocation2 + $0x6b8] sm:$0xf] }
 0x3df   :  { %v5077_v5 = vpack.c.b16 %v5050_v51, %v5046_v59  ;;  %v4949_v7 = vmul.f32 0.2, %v4877_v6  ;;  %4829 = vmatmul.bf16.gmra.mxu2 %v9777_v42  ;;  %v9841_v59 = vor.u32 %v12213_v48, %v9840_v21  ;;  %v12229_v21 = vld [vmem:[#allocation2 + $0x6f4] sm:$0xf0]  ;;  %v12221_v48 = vld [vmem:[#allocation2 + $0x6bc] sm:$0xf] }
 0x3e0   :  { %4918 = vmatmul.bf16.gmra.mxu3 %v9781_v16 }
 0x3e1   :  { %5103 = vst [vmem:[#allocation2 + $0x18] sm:$0xff] %v5077_v5  ;;  %v4981_v18 = vmax.f32 %v4877_v6, %v4949_v7 }
 0x3e2   :  { %5142 = vst [vmem:[#allocation2 + $0x90] sm:$0xff] %v5077_v5  ;;  %v4790_v47 = vpop.f32.mrf.mxu2  ;;  %v4614_v22 = vpop.f32.mrf.mxu0 }
 0x3e3   :  { %v4879_v29 = vpop.f32.mrf.mxu3  ;;  %v5013_v56 = vpack.c.bf16 %v4981_v18, %v4981_v18  ;;  %v4791_v33 = vadd.f32 %v4790_v47, %v4702_v53  ;;  %v4703_v9 = vpop.f32.mrf.mxu1  ;;  %v4615_v24 = vadd.f32 %v4614_v22, %v13652_v32 }
 0x3e5   :  { %v5051_v13 = vunpack.c.l.b16 %v5013_v56  ;;  %v4880_v3 = vadd.f32 %v4879_v29, %v4791_v33  ;;  %v4704_v39 = vadd.f32 %v4703_v9, %v4615_v24  ;;  %v9896_v24 = vld [vmem:[#allocation2 + $0x6b0] sm:$0xf] }
 0x3e7   :  { %v5083_v44 = vpack.c.b16 %v5051_v13, %v5047_v52  ;;  %v4950_v26 = vmul.f32 0.2, %v4880_v3  ;;  %v12470_v52 = vld [vmem:[#allocation5 + $0x80] sm:$0xff] }
 0x3e8   :  { %v12454_v13 = vld [vmem:[#allocation5] sm:$0xff]  ;;  %6693 = vmatpush.bf16.msra.mxu2 %v12470_v52  ;;  %v9962_v52 = vld [vmem:[#allocation2 + $0x770] sm:$0xf0] }
 0x3e9   :  { %5111 = vst [vmem:[#allocation2 + $0x58] sm:$0xff] %v5083_v44  ;;  %v4982_v55 = vmax.f32 %v4880_v3, %v4950_v26  ;;  %v12478_v3 = vld [vmem:[#allocation5 + $0xc0] sm:$0xff]  ;;  %v9898_v26 = vld [vmem:[#allocation2 + $0x6f0] sm:$0xf0]  ;;  %6635 = vmatpush.bf16.msra.mxu0 %v12454_v13  ;;  %v9968_v13 = vld [vmem:[#allocation2 + $0x738] sm:$0xf] }
 0x3ea   :  { %5150 = vst [vmem:[#allocation2 + $0xd0] sm:$0xff] %v5083_v44  ;;  %v4792_v35 = vpop.f32.mrf.mxu2  ;;  %v4617_v14 = vpop.f32.mrf.mxu0  ;;  %6722 = vmatpush.bf16.msra.mxu3 %v12478_v3 }
 0x3eb   :  { %v4881_v42 = vpop.f32.mrf.mxu3  ;;  %v5014_v63 = vpack.c.bf16 %v4982_v55, %v4982_v55  ;;  %v4793_v32 = vadd.f32 %v4792_v35, %v4704_v39  ;;  %v4706_v16 = vpop.f32.mrf.mxu1  ;;  %v4618_v28 = vadd.f32 %v4617_v14, %v13660_v37  ;;  %v9897_v35 = vor.u32 %v12228_v57, %v9896_v24  ;;  %v12245_v24 = vld [vmem:[#allocation2 + $0x774] sm:$0xf0]  ;;  %v12237_v57 = vld [vmem:[#allocation2 + $0x73c] sm:$0xf] }
 0x3ec   :  { %v9905_v14 = vor.u32 %v12229_v21, %v9904_v46 }
 0x3ed   :  { %v5118_v51 = vunpack.c.l.b16 %v5014_v63  ;;  %v4882_v6 = vadd.f32 %v4881_v42, %v4793_v32  ;;  %4656 = vmatmul.bf16.gmra.mxu0 %v9833_v58  ;;  %v4707_v18 = vadd.f32 %v4706_v16, %v4618_v28  ;;  %v9901_v42 = vor.u32 %v12220_v41, %v9898_v26 }
 0x3ee   :  { %4745 = vmatmul.bf16.gmra.mxu1 %v9837_v36  ;;  %v9909_v16 = vor.u32 %v12221_v48, %v9906_v62  ;;  %v9969_v62 = vor.u32 %v12245_v24, %v9968_v13  ;;  %v12509_v13 = vld [vmem:[#allocation5 + $0x1b8] sm:$0xff] }
 0x3ef   :  { %v5128_v5 = vpack.c.b16 %v12992_v1, %v5118_v51  ;;  %v4951_v7 = vmul.f32 0.2, %v4882_v6  ;;  %4834 = vmatmul.bf16.gmra.mxu2 %v9841_v59 }
 0x3f0   :  { %4923 = vmatmul.bf16.gmra.mxu3 %v9845_v49  ;;  %6802 = vmatpush.bf16.msrb.mxu2 %v12509_v13  ;;  %v12500_v13 = vld [vmem:[#allocation5 + $0x170] sm:$0xff] }
 0x3f1   :  { %5143 = vst [vmem:[#allocation2 + $0x98] sm:$0xff] %v5128_v5  ;;  %v4983_v8 = vmax.f32 %v4882_v6, %v4951_v7 }
 0x3f2   :  { %v4795_v53 = vpop.f32.mrf.mxu2  ;;  %v4619_v56 = vpop.f32.mrf.mxu0 }
 0x3f3   :  { %v4884_v47 = vpop.f32.mrf.mxu3  ;;  %v5015_v29 = vpack.c.bf16 %v4983_v8, %v4983_v8  ;;  %v4796_v30 = vadd.f32 %v4795_v53, %v4707_v18  ;;  %v4708_v33 = vpop.f32.mrf.mxu1  ;;  %v4620_v37 = vadd.f32 %v4619_v56, %v13663_v34 }
 0x3f5   :  { %v5119_v22 = vunpack.c.l.b16 %v5015_v29  ;;  %v4885_v9 = vadd.f32 %v4884_v47, %v4796_v30  ;;  %v4709_v34 = vadd.f32 %v4708_v33, %v4620_v37  ;;  %v12462_v29 = vld [vmem:[#allocation5 + $0x40] sm:$0xff]  ;;  %v9960_v33 = vld [vmem:[#allocation2 + $0x730] sm:$0xf]  ;;  %v12236_v37 = vld [vmem:[#allocation2 + $0x734] sm:$0xf] }
 0x3f6   :  { %6664 = vmatpush.bf16.msra.mxu1 %v12462_v29  ;;  %v9965_v26 = vor.u32 %v12236_v37, %v9962_v52  ;;  %v10034_v29 = vld [vmem:[#allocation2 + $0x7f8] sm:$0xf0] }
 0x3f7   :  { %v5131_v19 = vpack.c.b16 %v12994_v2, %v5119_v22  ;;  %v4952_v44 = vmul.f32 0.2, %v4885_v9  ;;  %v12244_v22 = vld [vmem:[#allocation2 + $0x76c] sm:$0xf0] }
 0x3f9   :  { %5151 = vst [vmem:[#allocation2 + $0xd8] sm:$0xff] %v5131_v19  ;;  %v4984_v43 = vmax.f32 %v4885_v9, %v4952_v44  ;;  %v9961_v44 = vor.u32 %v12244_v22, %v9960_v33 }
 0x3fa   :  { %v4797_v55 = vpop.f32.mrf.mxu2  ;;  %v4622_v63 = vpop.f32.mrf.mxu0 }
 0x3fb   :  { %v4886_v39 = vpop.f32.mrf.mxu3  ;;  %v5016_v58 = vpack.c.bf16 %v4984_v43, %v4984_v43  ;;  %v4798_v36 = vadd.f32 %v4797_v55, %v4709_v34  ;;  %v4711_v32 = vpop.f32.mrf.mxu1  ;;  %v4623_v5 = vadd.f32 %v4622_v63, %v13666_v50  ;;  %v9970_v50 = vld [vmem:[#allocation2 + $0x778] sm:$0xf0] }
 0x3fc   :  { %v9973_v43 = vor.u32 %v12237_v57, %v9970_v50 }
 0x3fd   :  { %v5054_v59 = vunpack.c.l.b16 %v5016_v58  ;;  %v4887_v49 = vadd.f32 %v4886_v39, %v4798_v36  ;;  %4661 = vmatmul.bf16.gmra.mxu0 %v9897_v35  ;;  %v4712_v56 = vadd.f32 %v4711_v32, %v4623_v5 }
 0x3fe   :  { %4750 = vmatmul.bf16.gmra.mxu1 %v9901_v42 }
 0x3ff   :  { %v5078_v51 = vpack.c.b16 %v5054_v59, %v12992_v1  ;;  %v4953_v6 = vmul.f32 0.2, %v4887_v49  ;;  %4839 = vmatmul.bf16.gmra.mxu2 %v9905_v14 }
 0x400   :  { %4928 = vmatmul.bf16.gmra.mxu3 %v9909_v16 }
 0x401   :  { %5104 = vst [vmem:[#allocation2 + $0x20] sm:$0xff] %v5078_v51  ;;  %v4985_v28 = vmax.f32 %v4887_v49, %v4953_v6  ;;  %v10024_v6 = vld [vmem:[#allocation2 + $0x7b0] sm:$0xf] }
 0x402   :  { %5176 = vst [vmem:[#allocation2 + $0x100] sm:$0xff] %v5078_v51  ;;  %v4800_v7 = vpop.f32.mrf.mxu2  ;;  %v4624_v53 = vpop.f32.mrf.mxu0 }
 0x403   :  { %v4889_v8 = vpop.f32.mrf.mxu3  ;;  %v5017_v18 = vpack.c.bf16 %v4985_v28, %v4985_v28  ;;  %v4713_v47 = vpop.f32.mrf.mxu1  ;;  %v4801_v3 = vadd.f32 %v4800_v7, %v4712_v56  ;;  %v4625_v46 = vadd.f32 %v4624_v53, %v13669_v0  ;;  %v12252_v28 = vld [vmem:[#allocation2 + $0x7b4] sm:$0xf]  ;;  %v12261_v53 = vld [vmem:[#allocation2 + $0x7f4] sm:$0xf0] }
 0x404   :  { %v10026_v7 = vld [vmem:[#allocation2 + $0x7f0] sm:$0xf0] }
 0x405   :  { %v5055_v30 = vunpack.c.l.b16 %v5017_v18  ;;  %v4890_v34 = vadd.f32 %v4889_v8, %v4801_v3  ;;  %v4714_v39 = vadd.f32 %v4713_v47, %v4625_v46  ;;  %v10032_v8 = vld [vmem:[#allocation2 + $0x7b8] sm:$0xf]  ;;  %v12253_v47 = vld [vmem:[#allocation2 + $0x7bc] sm:$0xf]  ;;  %v10029_v52 = vor.u32 %v12252_v28, %v10026_v7 }
 0x406   :  { %v12493_v3 = vld [vmem:[#allocation5 + $0x138] sm:$0xff] }
 0x407   :  { %v5084_v9 = vpack.c.b16 %v5055_v30, %v12994_v2  ;;  %v4954_v35 = vmul.f32 0.2, %v4890_v34  ;;  %6744 = vmatpush.bf16.msrb.mxu0 %v12493_v3  ;;  %v12507_v3 = vld [vmem:[#allocation5 + $0x1a8] sm:$0xff] }
 0x409   :  { %5112 = vst [vmem:[#allocation2 + $0x60] sm:$0xff] %v5084_v9  ;;  %v4986_v16 = vmax.f32 %v4890_v34, %v4954_v35 }
 0x40a   :  { %5184 = vst [vmem:[#allocation2 + $0x140] sm:$0xff] %v5084_v9  ;;  %v4802_v41 = vpop.f32.mrf.mxu2  ;;  %v4627_v21 = vpop.f32.mrf.mxu0 }
 0x40b   :  { %v4891_v19 = vpop.f32.mrf.mxu3  ;;  %v4716_v48 = vpop.f32.mrf.mxu1  ;;  %v4628_v55 = vadd.f32 %v4627_v21, %v13672_v20  ;;  %v4803_v42 = vadd.f32 %v4802_v41, %v4714_v39  ;;  %v12260_v20 = vld [vmem:[#allocation2 + $0x7ec] sm:$0xf0]  ;;  %v5018_v18 = vpack.c.bf16 %v4986_v16, %v4986_v16 }
 0x40c   :  { %v10025_v37 = vor.u32 %v12260_v20, %v10024_v6 }
 0x40d   :  { %4666 = vmatmul.bf16.gmra.mxu0 %v9961_v44  ;;  %v4717_v58 = vadd.f32 %v4716_v48, %v4628_v55  ;;  %v4892_v59 = vadd.f32 %v4891_v19, %v4803_v42  ;;  %v10033_v19 = vor.u32 %v12261_v53, %v10032_v8  ;;  %v10037_v44 = vor.u32 %v12253_v47, %v10034_v29 }
 0x40e   :  { %4755 = vmatmul.bf16.gmra.mxu1 %v9965_v26  ;;  %v5058_v26 = vunpack.c.l.b16 %v5018_v18 }
 0x40f   :  { %4844 = vmatmul.bf16.gmra.mxu2 %v9969_v62  ;;  %v4955_v30 = vmul.f32 0.2, %v4892_v59  ;;  %v14159_v62 = vld [vmem:[#allocation18_spill] sm:$0xff] }
 0x410   :  { %4933 = vmatmul.bf16.gmra.mxu3 %v9973_v43 }
 0x411   :  { %v4987_v46 = vmax.f32 %v4892_v59, %v4955_v30 }
 0x412   :  { %v4805_v36 = vpop.f32.mrf.mxu2  ;;  %v4629_v14 = vpop.f32.mrf.mxu0 }
 0x413   :  { %v4894_v63 = vpop.f32.mrf.mxu3  ;;  %v4806_v32 = vadd.f32 %v4805_v36, %v4717_v58  ;;  %v4718_v0 = vpop.f32.mrf.mxu1  ;;  %v4630_v51 = vadd.f32 %v4629_v14, %v13675_v31  ;;  %v12517_v31 = vld [vmem:[#allocation5 + $0x1f8] sm:$0xff]  ;;  %v5019_v39 = vpack.c.bf16 %v4987_v46, %v4987_v46  ;;  %v12492_v14 = vld [vmem:[#allocation5 + $0x130] sm:$0xff] }
 0x414   :  { %6831 = vmatpush.bf16.msrb.mxu3 %v12517_v31  ;;  %6745 = vmatpush.bf16.msrb.mxu0 %v12492_v14  ;;  %v12491_v31 = vld [vmem:[#allocation5 + $0x128] sm:$0xff]  ;;  %v14167_v46 = vld [vmem:[#allocation16_spill] sm:$0xff] }
 0x415   :  { %v4895_v49 = vadd.f32 %v4894_v63, %v4806_v32  ;;  %v4719_v33 = vadd.f32 %v4718_v0, %v4630_v51  ;;  %v12501_v63 = vld [vmem:[#allocation5 + $0x178] sm:$0xff]  ;;  %v12508_v32 = vld [vmem:[#allocation5 + $0x1b0] sm:$0xff]  ;;  %v5059_v6 = vunpack.c.l.b16 %v5019_v39 }
 0x416   :  { %v12516_v51 = vld [vmem:[#allocation5 + $0x1f0] sm:$0xff]  ;;  %6773 = vmatpush.bf16.msrb.mxu1 %v12501_v63  ;;  %6803 = vmatpush.bf16.msrb.mxu2 %v12508_v32 }
 0x417   :  { %v4956_v5 = vmul.f32 0.2, %v4895_v49 }
 0x418   :  { %6832 = vmatpush.bf16.msrb.mxu3 %v12516_v51  ;;  %6746 = vmatpush.bf16.msrb.mxu0 %v12491_v31 }
 0x419   :  { %v4988_v56 = vmax.f32 %v4895_v49, %v4956_v5  ;;  %v14160_v5 = vld [vmem:[#allocation19_spill] sm:$0xff] }
 0x41a   :  { %v4807_v22 = vpop.f32.mrf.mxu2  ;;  %v4632_v50 = vpop.f32.mrf.mxu0  ;;  %6774 = vmatpush.bf16.msrb.mxu1 %v12500_v13  ;;  %6804 = vmatpush.bf16.msrb.mxu2 %v12507_v3  ;;  %v12407_v13 = vld [vmem:[#allocation2 + $0x8c] sm:$0xf] }
 0x41b   :  { %v4896_v9 = vpop.f32.mrf.mxu3  ;;  %v5020_v24 = vpack.c.bf16 %v4988_v56, %v4988_v56  ;;  %v4808_v57 = vadd.f32 %v4807_v22, %v4719_v33  ;;  %v4721_v41 = vpop.f32.mrf.mxu1  ;;  %v4633_v43 = vadd.f32 %v4632_v50, %v14159_v62  ;;  %v14161_v56 = vld [vmem:[#allocation11_spill] sm:$0xff]  ;;  %v14162_v33 = vld [vmem:[#allocation13_spill] sm:$0xff] }
 0x41c   :  { %v10553_v22 = vor.u32 %v14162_v33, %v14161_v56  ;;  %v12515_v62 = vld [vmem:[#allocation5 + $0x1e8] sm:$0xff]  ;;  %v12513_v56 = vld [vmem:[#allocation5 + $0x1d8] sm:$0xff] }
 0x41d   :  { %v5062_v21 = vunpack.c.l.b16 %v5020_v24  ;;  %v4897_v48 = vadd.f32 %v4896_v9, %v4808_v57  ;;  %4671 = vmatmul.bf16.gmra.mxu0 %v10025_v37  ;;  %v4722_v42 = vadd.f32 %v4721_v41, %v4633_v43  ;;  %v14163_v9 = vld [vmem:[#allocation12_spill] sm:$0xff]  ;;  %v14164_v37 = vld [vmem:[#allocation10_spill] sm:$0xff]  ;;  %6833 = vmatpush.bf16.msrb.mxu3 %v12515_v62  ;;  %v10626_v3 = vld [vmem:[#allocation2 + $0xc8] sm:$0xf0] }
 0x41e   :  { %4760 = vmatmul.bf16.gmra.mxu1 %v10029_v52  ;;  %v10557_v52 = vor.u32 %v14164_v37, %v14163_v9  ;;  %v10618_v9 = vld [vmem:[#allocation2 + $0xc0] sm:$0xf0]  ;;  %v10624_v37 = vld [vmem:[#allocation2 + $0x88] sm:$0xf] }
 0x41f   :  { %v5079_v34 = vpack.c.b16 %v5062_v21, %v5058_v26  ;;  %v4957_v55 = vmul.f32 0.2, %v4897_v48  ;;  %4849 = vmatmul.bf16.gmra.mxu2 %v10033_v19  ;;  %v14165_v19 = vld [vmem:[#allocation15_spill] sm:$0xff]  ;;  %v14168_v21 = vld [vmem:[#allocation14_spill] sm:$0xff] }
 0x420   :  { %4938 = vmatmul.bf16.gmra.mxu3 %v10037_v44  ;;  %v14166_v44 = vld [vmem:[#allocation17_spill] sm:$0xff] }
 0x421   :  { %5105 = vst [vmem:[#allocation2 + $0x28] sm:$0xff] %v5079_v34  ;;  %v4989_v35 = vmax.f32 %v4897_v48, %v4957_v55  ;;  %v10561_v26 = vor.u32 %v14166_v44, %v14165_v19  ;;  %v10565_v48 = vor.u32 %v14168_v21, %v14167_v46  ;;  %v14169_v55 = vld [vmem:[#allocation20_spill] sm:$0xff] }
 0x422   :  { %5144 = vst [vmem:[#allocation2 + $0xa0] sm:$0xff] %v5079_v34  ;;  %v4810_v58 = vpop.f32.mrf.mxu2  ;;  %v4634_v59 = vpop.f32.mrf.mxu0 }
 0x423   :  { %v4899_v36 = vpop.f32.mrf.mxu3  ;;  %5177 = vst [vmem:[#allocation2 + $0x108] sm:$0xff] %v5079_v34  ;;  %v5021_v0 = vpack.c.bf16 %v4989_v35, %v4989_v35  ;;  %v4811_v16 = vadd.f32 %v4810_v58, %v4722_v42  ;;  %v4723_v49 = vpop.f32.mrf.mxu1  ;;  %v4635_v7 = vadd.f32 %v4634_v59, %v14160_v5  ;;  %v12499_v35 = vld [vmem:[#allocation5 + $0x168] sm:$0xff]  ;;  %v12506_v42 = vld [vmem:[#allocation5 + $0x1a0] sm:$0xff] }
 0x424   :  { %5200 = vst [vmem:[#allocation2 + $0x180] sm:$0xff] %v5079_v34  ;;  %v12490_v58 = vld [vmem:[#allocation5 + $0x120] sm:$0xff]  ;;  %6775 = vmatpush.bf16.msrb.mxu1 %v12499_v35  ;;  %6805 = vmatpush.bf16.msrb.mxu2 %v12506_v42  ;;  %v12497_v35 = vld [vmem:[#allocation5 + $0x158] sm:$0xff] }
 0x425   :  { %v5063_v20 = vunpack.c.l.b16 %v5021_v0  ;;  %v4900_v28 = vadd.f32 %v4899_v36, %v4811_v16  ;;  %v4724_v47 = vadd.f32 %v4723_v49, %v4635_v7  ;;  %v12514_v36 = vld [vmem:[#allocation5 + $0x1e0] sm:$0xff]  ;;  %6747 = vmatpush.bf16.msrb.mxu0 %v12490_v58 }
 0x426   :  { %6834 = vmatpush.bf16.msrb.mxu3 %v12514_v36 }
 0x427   :  { %v5085_v8 = vpack.c.b16 %v5063_v20, %v5059_v6  ;;  %v4958_v18 = vmul.f32 0.2, %v4900_v28 }
 0x429   :  { %5113 = vst [vmem:[#allocation2 + $0x68] sm:$0xff] %v5085_v8  ;;  %v4990_v53 = vmax.f32 %v4900_v28, %v4958_v18  ;;  %v12498_v18 = vld [vmem:[#allocation5 + $0x160] sm:$0xff] }
 0x42a   :  { %5152 = vst [vmem:[#allocation2 + $0xe0] sm:$0xff] %v5085_v8  ;;  %v4812_v29 = vpop.f32.mrf.mxu2  ;;  %v4637_v50 = vpop.f32.mrf.mxu0  ;;  %6776 = vmatpush.bf16.msrb.mxu1 %v12498_v18  ;;  %6835 = vmatpush.bf16.msrb.mxu3 %v12513_v56  ;;  %v12503_v56 = vld [vmem:[#allocation5 + $0x188] sm:$0xff] }
 0x42b   :  { %v4901_v30 = vpop.f32.mrf.mxu3  ;;  %5185 = vst [vmem:[#allocation2 + $0x148] sm:$0xff] %v5085_v8  ;;  %v5022_v24 = vpack.c.bf16 %v4990_v53, %v4990_v53  ;;  %v4813_v57 = vadd.f32 %v4812_v29, %v4724_v47  ;;  %v4726_v41 = vpop.f32.mrf.mxu1  ;;  %v4638_v39 = vadd.f32 %v4637_v50, %v14169_v55  ;;  %v12505_v53 = vld [vmem:[#allocation5 + $0x198] sm:$0xff]  ;;  %v12414_v29 = vld [vmem:[#allocation2 + $0xbc] sm:$0xf0] }
 0x42c   :  { %5208 = vst [vmem:[#allocation2 + $0x1c0] sm:$0xff] %v5085_v8  ;;  %v10616_v8 = vld [vmem:[#allocation2 + $0x80] sm:$0xf]  ;;  %v12489_v47 = vld [vmem:[#allocation5 + $0x118] sm:$0xff]  ;;  %6806 = vmatpush.bf16.msrb.mxu2 %v12505_v53 }
 0x42d   :  { %v5122_v43 = vunpack.c.l.b16 %v5022_v24  ;;  %v4902_v34 = vadd.f32 %v4901_v30, %v4813_v57  ;;  %6636 = vmatmul.bf16.vlgmr.msra.gmra.mxu0 %v10553_v22  ;;  %v4727_v0 = vadd.f32 %v4726_v41, %v4638_v39  ;;  %v12406_v30 = vld [vmem:[#allocation2 + $0x84] sm:$0xf]  ;;  %v10617_v50 = vor.u32 %v12414_v29, %v10616_v8 }
 0x42e   :  { %6665 = vmatmul.bf16.vlgmr.msra.gmra.mxu1 %v10557_v52  ;;  %v12415_v52 = vld [vmem:[#allocation2 + $0xc4] sm:$0xf0]  ;;  %6748 = vmatpush.bf16.msrb.mxu0 %v12489_v47  ;;  %v10621_v41 = vor.u32 %v12406_v30, %v10618_v9 }
 0x42f   :  { %v5129_v63 = vpack.c.b16 %v12992_v1, %v5122_v43  ;;  %v4959_v32 = vmul.f32 0.2, %v4902_v34  ;;  %6694 = vmatmul.bf16.vlgmr.msra.gmra.mxu2 %v10561_v26  ;;  %v10625_v21 = vor.u32 %v12415_v52, %v10624_v37  ;;  %6777 = vmatpush.bf16.msrb.mxu1 %v12497_v35  ;;  %v10680_v52 = vld [vmem:[#allocation2 + $0x100] sm:$0xf] }
 0x430   :  { %6723 = vmatmul.bf16.vlgmr.msra.gmra.mxu3 %v10565_v48  ;;  %v10629_v48 = vor.u32 %v12407_v13, %v10626_v3  ;;  %v12422_v13 = vld [vmem:[#allocation2 + $0x104] sm:$0xf]  ;;  %v12495_v3 = vld [vmem:[#allocation5 + $0x148] sm:$0xff] }
 0x431   :  { %5145 = vst [vmem:[#allocation2 + $0xa8] sm:$0xff] %v5129_v63  ;;  %v4991_v14 = vmax.f32 %v4902_v34, %v4959_v32 }
 0x432   :  { %5201 = vst [vmem:[#allocation2 + $0x188] sm:$0xff] %v5129_v63  ;;  %v4815_v16 = vpop.f32.mrf.mxu2  ;;  %v4639_v6 = vpop.f32.mrf.mxu0  ;;  %v10690_v8 = vld [vmem:[#allocation2 + $0x148] sm:$0xf0] }
 0x433   :  { %v4904_v59 = vpop.f32.mrf.mxu3  ;;  %v5023_v49 = vpack.c.bf16 %v4991_v14, %v4991_v14  ;;  %v4816_v51 = vadd.f32 %v4815_v16, %v4727_v0  ;;  %v4728_v20 = vpop.f32.mrf.mxu1  ;;  %v4640_v7 = vadd.f32 %v4639_v6, %v13711_v38  ;;  %v12504_v0 = vld [vmem:[#allocation5 + $0x190] sm:$0xff] }
 0x434   :  { %v12488_v16 = vld [vmem:[#allocation5 + $0x110] sm:$0xff]  ;;  %6807 = vmatpush.bf16.msrb.mxu2 %v12504_v0 }
 0x435   :  { %v5123_v28 = vunpack.c.l.b16 %v5023_v49  ;;  %v4905_v5 = vadd.f32 %v4904_v59, %v4816_v51  ;;  %v4729_v31 = vadd.f32 %v4728_v20, %v4640_v7  ;;  %v12512_v59 = vld [vmem:[#allocation5 + $0x1d0] sm:$0xff]  ;;  %6749 = vmatpush.bf16.msrb.mxu0 %v12488_v16  ;;  %v12431_v7 = vld [vmem:[#allocation2 + $0x144] sm:$0xf0] }
 0x436   :  { %v12496_v51 = vld [vmem:[#allocation5 + $0x150] sm:$0xff]  ;;  %6836 = vmatpush.bf16.msrb.mxu3 %v12512_v59 }
 0x437   :  { %v5132_v33 = vpack.c.b16 %v12994_v2, %v5123_v28  ;;  %v4960_v22 = vmul.f32 0.2, %v4905_v5  ;;  %v12430_v28 = vld [vmem:[#allocation2 + $0x13c] sm:$0xf0]  ;;  %6778 = vmatpush.bf16.msrb.mxu1 %v12496_v51 }
 0x438   :  { %6808 = vmatpush.bf16.msrb.mxu2 %v12503_v56 }
 0x439   :  { %5153 = vst [vmem:[#allocation2 + $0xe8] sm:$0xff] %v5132_v33  ;;  %v4992_v38 = vmax.f32 %v4905_v5, %v4960_v22  ;;  %v10682_v5 = vld [vmem:[#allocation2 + $0x140] sm:$0xf0]  ;;  %v12511_v22 = vld [vmem:[#allocation5 + $0x1c8] sm:$0xff] }
 0x43a   :  { %5209 = vst [vmem:[#allocation2 + $0x1c8] sm:$0xff] %v5132_v33  ;;  %v4817_v24 = vpop.f32.mrf.mxu2  ;;  %v4642_v26 = vpop.f32.mrf.mxu0  ;;  %v12487_v33 = vld [vmem:[#allocation5 + $0x108] sm:$0xff]  ;;  %6837 = vmatpush.bf16.msrb.mxu3 %v12511_v22 }
 0x43b   :  { %v4906_v57 = vpop.f32.mrf.mxu3  ;;  %v5024_v19 = vpack.c.bf16 %v4992_v38, %v4992_v38  ;;  %v4818_v44 = vadd.f32 %v4817_v24, %v4729_v31  ;;  %v4731_v46 = vpop.f32.mrf.mxu1  ;;  %v4643_v42 = vadd.f32 %v4642_v26, %v13720_v54  ;;  %v13814_v38 = vld [vmem:[#allocation2 + $0x630] sm:$0xff]  ;;  %v10681_v24 = vor.u32 %v12430_v28, %v10680_v52  ;;  %6750 = vmatpush.bf16.msrb.mxu0 %v12487_v33  ;;  %v10744_v28 = vld [vmem:[#allocation2 + $0x180] sm:$0xf]  ;;  %v12549_v52 = vld [vmem:[#allocation5 + $0x2f8] sm:$0xff] }
 0x43c   :  { %6779 = vmatpush.bf16.msrb.mxu1 %v12495_v3 }
 0x43d   :  { %v5066_v62 = vunpack.c.l.b16 %v5024_v19  ;;  %v4907_v43 = vadd.f32 %v4906_v57, %v4818_v44  ;;  %6641 = vmatmul.bf16.gmra.mxu0 %v10617_v50  ;;  %v4732_v6 = vadd.f32 %v4731_v46, %v4643_v42  ;;  %v10685_v57 = vor.u32 %v12422_v13, %v10682_v5  ;;  %v10688_v50 = vld [vmem:[#allocation2 + $0x108] sm:$0xf]  ;;  %v12502_v46 = vld [vmem:[#allocation5 + $0x180] sm:$0xff] }
 0x43e   :  { %6670 = vmatmul.bf16.gmra.mxu1 %v10621_v41  ;;  %v12423_v41 = vld [vmem:[#allocation2 + $0x10c] sm:$0xf]  ;;  %v10689_v19 = vor.u32 %v12431_v7, %v10688_v50  ;;  %6809 = vmatpush.bf16.msrb.mxu2 %v12502_v46  ;;  %v10746_v5 = vld [vmem:[#allocation2 + $0x1c0] sm:$0xf0] }
 0x43f   :  { %v5080_v34 = vpack.c.b16 %v5066_v62, %v12992_v1  ;;  %v4961_v55 = vmul.f32 0.2, %v4907_v43  ;;  %6699 = vmatmul.bf16.gmra.mxu2 %v10625_v21  ;;  %v10693_v44 = vor.u32 %v12423_v41, %v10690_v8  ;;  %v12486_v21 = vld [vmem:[#allocation5 + $0x100] sm:$0xff]  ;;  %v12439_v50 = vld [vmem:[#allocation2 + $0x18c] sm:$0xf] }
 0x440   :  { %6728 = vmatmul.bf16.gmra.mxu3 %v10629_v48  ;;  %v12510_v48 = vld [vmem:[#allocation5 + $0x1c0] sm:$0xff]  ;;  %6751 = vmatpush.bf16.msrb.mxu0 %v12486_v21 }
 0x441   :  { %5106 = vst [vmem:[#allocation2 + $0x30] sm:$0xff] %v5080_v34  ;;  %v4993_v39 = vmax.f32 %v4907_v43, %v4961_v55  ;;  %v12494_v62 = vld [vmem:[#allocation5 + $0x140] sm:$0xff]  ;;  %6838 = vmatpush.bf16.msrb.mxu3 %v12510_v48  ;;  %v10754_v56 = vld [vmem:[#allocation2 + $0x1c8] sm:$0xf0] }
 0x442   :  { %5178 = vst [vmem:[#allocation2 + $0x110] sm:$0xff] %v5080_v34  ;;  %v4820_v58 = vpop.f32.mrf.mxu2  ;;  %v4644_v32 = vpop.f32.mrf.mxu0  ;;  %6780 = vmatpush.bf16.msrb.mxu1 %v12494_v62 }
 0x443   :  { %v4909_v36 = vpop.f32.mrf.mxu3  ;;  %v5025_v63 = vpack.c.bf16 %v4993_v39, %v4993_v39  ;;  %v4733_v14 = vpop.f32.mrf.mxu1  ;;  %v4821_v54 = vadd.f32 %v4820_v58, %v4732_v6  ;;  %v4645_v47 = vadd.f32 %v4644_v32, %v13731_v10  ;;  %v13826_v58 = vld [vmem:[#allocation2 + $0x670] sm:$0xff] }
 0x445   :  { %v5067_v49 = vunpack.c.l.b16 %v5025_v63  ;;  %v4910_v31 = vadd.f32 %v4909_v36, %v4821_v54  ;;  %v4734_v26 = vadd.f32 %v4733_v14, %v4645_v47  ;;  %v12446_v54 = vld [vmem:[#allocation2 + $0x1bc] sm:$0xf0]  ;;  %6947 = vmatpush.bf16.msra.mxu3 %v12549_v52  ;;  %v12539_v52 = vld [vmem:[#allocation5 + $0x2a8] sm:$0xff] }
 0x447   :  { %v5086_v20 = vpack.c.b16 %v5067_v49, %v12994_v2  ;;  %v4962_v43 = vmul.f32 0.2, %v4910_v31 }
 0x448   :  { %v13809_v18 = vld [vmem:[#allocation2 + $0x30] sm:$0xf]  ;;  %v13811_v53 = vld [vmem:[#allocation2 + $0x34] sm:$0xf] }
 0x449   :  { %5114 = vst [vmem:[#allocation2 + $0x70] sm:$0xff] %v5086_v20  ;;  %v4994_v16 = vmax.f32 %v4910_v31, %v4962_v43 }
 0x44a   :  { %5186 = vst [vmem:[#allocation2 + $0x150] sm:$0xff] %v5086_v20  ;;  %v4822_v29 = vpop.f32.mrf.mxu2  ;;  %v4647_v9 = vpop.f32.mrf.mxu0 }
 0x44b   :  { %v4911_v30 = vpop.f32.mrf.mxu3  ;;  %v4736_v37 = vpop.f32.mrf.mxu1  ;;  %7154 = vst [vmem:[#allocation2 + $0x30] sm:$0xff] %v13814_v38  ;;  %v4648_v10 = vadd.f32 %v4647_v9, %v13734_v23  ;;  %v4823_v34 = vadd.f32 %v4822_v29, %v4734_v26  ;;  %v5026_v20 = vpack.c.bf16 %v4994_v16, %v4994_v16  ;;  %v12447_v29 = vld [vmem:[#allocation2 + $0x1c4] sm:$0xf0]  ;;  %v12541_v9 = vld [vmem:[#allocation5 + $0x2b8] sm:$0xff] }
 0x44c   :  { %6918 = vmatpush.bf16.msra.mxu2 %v12541_v9  ;;  %v12392_v9 = vld [vmem:[#allocation2 + $0x14] sm:$0xf] }
 0x44d   :  { %6646 = vmatmul.bf16.gmra.mxu0 %v10681_v24  ;;  %v4737_v39 = vadd.f32 %v4736_v37, %v4648_v10  ;;  %v4912_v59 = vadd.f32 %v4911_v30, %v4823_v34  ;;  %v12525_v37 = vld [vmem:[#allocation5 + $0x238] sm:$0xff]  ;;  %v12438_v24 = vld [vmem:[#allocation2 + $0x184] sm:$0xf]  ;;  %v5070_v41 = vunpack.c.l.b16 %v5026_v20 }
 0x44e   :  { %6675 = vmatmul.bf16.gmra.mxu1 %v10685_v57  ;;  %v10752_v57 = vld [vmem:[#allocation2 + $0x188] sm:$0xf]  ;;  %v10749_v10 = vor.u32 %v12438_v24, %v10746_v5  ;;  %6860 = vmatpush.bf16.msra.mxu0 %v12525_v37  ;;  %v12532_v37 = vld [vmem:[#allocation5 + $0x270] sm:$0xff] }
 0x44f   :  { %6704 = vmatmul.bf16.gmra.mxu2 %v10689_v19  ;;  %v4963_v7 = vmul.f32 0.2, %v4912_v59  ;;  %v10753_v19 = vor.u32 %v12447_v29, %v10752_v57  ;;  %v10570_v29 = vld [vmem:[#allocation2 + $0x50] sm:$0xf0]  ;;  %v12547_v24 = vld [vmem:[#allocation5 + $0x2e8] sm:$0xff] }
 0x450   :  { %6733 = vmatmul.bf16.gmra.mxu3 %v10693_v44  ;;  %v13818_v55 = vld [vmem:[#allocation2 + $0x6c] sm:$0xf0]  ;;  %v13820_v23 = vld [vmem:[#allocation2 + $0x70] sm:$0xf0]  ;;  %v10757_v44 = vor.u32 %v12439_v50, %v10754_v56 }
 0x451   :  { %v10601_v35 = vor.u32 %v13818_v55, %v13809_v18  ;;  %v10605_v42 = vor.u32 %v13811_v53, %v13820_v23  ;;  %7162 = vst [vmem:[#allocation2 + $0x70] sm:$0xff] %v13826_v58  ;;  %v4995_v26 = vmax.f32 %v4912_v59, %v4963_v7  ;;  %v12548_v59 = vld [vmem:[#allocation5 + $0x2f0] sm:$0xff] }
 0x452   :  { %v4825_v36 = vpop.f32.mrf.mxu2  ;;  %v4649_v14 = vpop.f32.mrf.mxu0  ;;  %6948 = vmatpush.bf16.msra.mxu3 %v12548_v59 }
 0x453   :  { %v4914_v63 = vpop.f32.mrf.mxu3  ;;  %v4826_v32 = vadd.f32 %v4825_v36, %v4737_v39  ;;  %v4738_v0 = vpop.f32.mrf.mxu1  ;;  %v4650_v51 = vadd.f32 %v4649_v14, %v13741_v25  ;;  %v10745_v25 = vor.u32 %v12446_v54, %v10744_v28  ;;  %v5027_v34 = vpack.c.bf16 %v4995_v26, %v4995_v26  ;;  %v12524_v14 = vld [vmem:[#allocation5 + $0x230] sm:$0xff] }
 0x454   :  { %6861 = vmatpush.bf16.msra.mxu0 %v12524_v14 }
 0x455   :  { %v4915_v49 = vadd.f32 %v4914_v63, %v4826_v32  ;;  %v4739_v47 = vadd.f32 %v4738_v0, %v4650_v51  ;;  %v12533_v63 = vld [vmem:[#allocation5 + $0x278] sm:$0xff]  ;;  %v12540_v32 = vld [vmem:[#allocation5 + $0x2b0] sm:$0xff]  ;;  %v5071_v20 = vunpack.c.l.b16 %v5027_v34 }
 0x456   :  { %6889 = vmatpush.bf16.msra.mxu1 %v12533_v63  ;;  %6919 = vmatpush.bf16.msra.mxu2 %v12540_v32  ;;  %v12538_v63 = vld [vmem:[#allocation5 + $0x2a0] sm:$0xff] }
 0x457   :  { %v4964_v6 = vmul.f32 0.2, %v4915_v49  ;;  %6949 = vmatpush.bf16.msra.mxu3 %v12547_v24  ;;  %v12522_v32 = vld [vmem:[#allocation5 + $0x220] sm:$0xff]  ;;  %v10642_v24 = vld [vmem:[#allocation2 + $0xd8] sm:$0xf0] }
 0x459   :  { %v4996_v8 = vmax.f32 %v4915_v49, %v4964_v6 }
 0x45a   :  { %v4827_v33 = vpop.f32.mrf.mxu2  ;;  %v4652_v3 = vpop.f32.mrf.mxu0  ;;  %6890 = vmatpush.bf16.msra.mxu1 %v12532_v37  ;;  %6920 = vmatpush.bf16.msra.mxu2 %v12539_v52 }
 0x45b   :  { %v4916_v22 = vpop.f32.mrf.mxu3  ;;  %v5028_v13 = vpack.c.bf16 %v4996_v8, %v4996_v8  ;;  %v4828_v30 = vadd.f32 %v4827_v33, %v4739_v47  ;;  %v4741_v31 = vpop.f32.mrf.mxu1  ;;  %v4653_v48 = vadd.f32 %v4652_v3, %v13744_v27  ;;  %v12400_v47 = vld [vmem:[#allocation2 + $0x4c] sm:$0xf0] }
 0x45d   :  { %v5074_v46 = vunpack.c.l.b16 %v5028_v13  ;;  %v4917_v21 = vadd.f32 %v4916_v22, %v4828_v30  ;;  %6651 = vmatmul.bf16.gmra.mxu0 %v10745_v25  ;;  %v4742_v36 = vadd.f32 %v4741_v31, %v4653_v48  ;;  %v10568_v22 = vld [vmem:[#allocation2 + $0x10] sm:$0xf]  ;;  %v12523_v13 = vld [vmem:[#allocation5 + $0x228] sm:$0xff]  ;;  %v12401_v31 = vld [vmem:[#allocation2 + $0x54] sm:$0xf0] }
 0x45e   :  { %6680 = vmatmul.bf16.gmra.mxu1 %v10749_v10  ;;  %v10578_v25 = vld [vmem:[#allocation2 + $0x58] sm:$0xf0]  ;;  %v10576_v10 = vld [vmem:[#allocation2 + $0x18] sm:$0xf]  ;;  %v10569_v26 = vor.u32 %v12400_v47, %v10568_v22  ;;  %6862 = vmatpush.bf16.msra.mxu0 %v12523_v13 }
 0x45f   :  { %v5081_v62 = vpack.c.b16 %v5074_v46, %v5070_v41  ;;  %v4965_v43 = vmul.f32 0.2, %v4917_v21  ;;  %6709 = vmatmul.bf16.gmra.mxu2 %v10753_v19  ;;  %v12393_v19 = vld [vmem:[#allocation2 + $0x1c] sm:$0xf]  ;;  %v10573_v46 = vor.u32 %v12392_v9, %v10570_v29  ;;  %v10577_v34 = vor.u32 %v12401_v31, %v10576_v10  ;;  %v10632_v10 = vld [vmem:[#allocation2 + $0x90] sm:$0xf] }
 0x460   :  { %6738 = vmatmul.bf16.gmra.mxu3 %v10757_v44  ;;  %6921 = vmatpush.bf16.msra.mxu2 %v12538_v63  ;;  %v12521_v22 = vld [vmem:[#allocation5 + $0x218] sm:$0xff] }
 0x461   :  { %5107 = vst [vmem:[#allocation2 + $0x38] sm:$0xff] %v5081_v62  ;;  %v4997_v39 = vmax.f32 %v4917_v21, %v4965_v43  ;;  %v12545_v9 = vld [vmem:[#allocation5 + $0x2d8] sm:$0xff] }
 0x462   :  { %5146 = vst [vmem:[#allocation2 + $0xb0] sm:$0xff] %v5081_v62  ;;  %v4830_v0 = vpop.f32.mrf.mxu2  ;;  %v4654_v51 = vpop.f32.mrf.mxu0  ;;  %6863 = vmatpush.bf16.msra.mxu0 %v12522_v32 }
 0x463   :  { %v4919_v16 = vpop.f32.mrf.mxu3  ;;  %5179 = vst [vmem:[#allocation2 + $0x118] sm:$0xff] %v5081_v62  ;;  %v5029_v27 = vpack.c.bf16 %v4997_v39, %v4997_v39  ;;  %v4831_v49 = vadd.f32 %v4830_v0, %v4742_v36  ;;  %v4743_v6 = vpop.f32.mrf.mxu1  ;;  %v4655_v5 = vadd.f32 %v4654_v51, %v13747_v45  ;;  %v10581_v39 = vor.u32 %v12393_v19, %v10578_v25  ;;  %v12531_v36 = vld [vmem:[#allocation5 + $0x268] sm:$0xff]  ;;  %v12408_v19 = vld [vmem:[#allocation2 + $0x94] sm:$0xf] }
 0x464   :  { %5202 = vst [vmem:[#allocation2 + $0x190] sm:$0xff] %v5081_v62  ;;  %6891 = vmatpush.bf16.msra.mxu1 %v12531_v36 }
 0x465   :  { %v5075_v28 = vunpack.c.l.b16 %v5029_v27  ;;  %v4920_v54 = vadd.f32 %v4919_v16, %v4831_v49  ;;  %v4744_v33 = vadd.f32 %v4743_v6, %v4655_v5 }
 0x466   :  { %6864 = vmatpush.bf16.msra.mxu0 %v12521_v22  ;;  %v10698_v22 = vld [vmem:[#allocation2 + $0x150] sm:$0xf0] }
 0x467   :  { %v5087_v7 = vpack.c.b16 %v5075_v28, %v5071_v20  ;;  %v4966_v8 = vmul.f32 0.2, %v4920_v54 }
 0x468   :  { %v13833_v21 = vld [vmem:[#allocation2 + $0x38] sm:$0xf]  ;;  %v13835_v48 = vld [vmem:[#allocation2 + $0x3c] sm:$0xf] }
 0x469   :  { %5115 = vst [vmem:[#allocation2 + $0x78] sm:$0xff] %v5087_v7  ;;  %v4998_v56 = vmax.f32 %v4920_v54, %v4966_v8 }
 0x46a   :  { %5154 = vst [vmem:[#allocation2 + $0xf0] sm:$0xff] %v5087_v7  ;;  %v4832_v30 = vpop.f32.mrf.mxu2  ;;  %v4657_v50 = vpop.f32.mrf.mxu0 }
 0x46b   :  { %v4921_v3 = vpop.f32.mrf.mxu3  ;;  %5187 = vst [vmem:[#allocation2 + $0x158] sm:$0xff] %v5087_v7  ;;  %v5030_v45 = vpack.c.bf16 %v4998_v56, %v4998_v56  ;;  %v4833_v57 = vadd.f32 %v4832_v30, %v4744_v33  ;;  %v4746_v41 = vpop.f32.mrf.mxu1  ;;  %v4658_v44 = vadd.f32 %v4657_v50, %v13750_v61  ;;  %v12546_v61 = vld [vmem:[#allocation5 + $0x2e0] sm:$0xff]  ;;  %v12537_v33 = vld [vmem:[#allocation5 + $0x298] sm:$0xff] }
 0x46c   :  { %5210 = vst [vmem:[#allocation2 + $0x1d0] sm:$0xff] %v5087_v7  ;;  %6950 = vmatpush.bf16.msra.mxu3 %v12546_v61  ;;  %v12530_v56 = vld [vmem:[#allocation5 + $0x260] sm:$0xff]  ;;  %6922 = vmatpush.bf16.msra.mxu2 %v12537_v33 }
 0x46d   :  { %v5126_v62 = vunpack.c.l.b16 %v5030_v45  ;;  %v4922_v43 = vadd.f32 %v4921_v3, %v4833_v57  ;;  %7155 = vst [vmem:[#allocation2 + $0x38] sm:$0xff] %v13814_v38  ;;  %6752 = vmatmul.bf16.vlgmr.msrb.gmra.mxu0 %v10569_v26  ;;  %v4747_v16 = vadd.f32 %v4746_v41, %v4658_v44  ;;  %6892 = vmatpush.bf16.msra.mxu1 %v12530_v56  ;;  %v12416_v3 = vld [vmem:[#allocation2 + $0xcc] sm:$0xf0] }
 0x46e   :  { %6781 = vmatmul.bf16.vlgmr.msrb.gmra.mxu1 %v10573_v46  ;;  %v10633_v44 = vor.u32 %v12416_v3, %v10632_v10  ;;  %v10640_v46 = vld [vmem:[#allocation2 + $0x98] sm:$0xf]  ;;  %v12519_v3 = vld [vmem:[#allocation5 + $0x208] sm:$0xff] }
 0x46f   :  { %v5130_v14 = vpack.c.b16 %v12992_v1, %v5126_v62  ;;  %v4967_v0 = vmul.f32 0.2, %v4922_v43  ;;  %6810 = vmatmul.bf16.vlgmr.msrb.gmra.mxu2 %v10577_v34  ;;  %v12409_v62 = vld [vmem:[#allocation2 + $0x9c] sm:$0xf] }
 0x470   :  { %6839 = vmatmul.bf16.vlgmr.msrb.gmra.mxu3 %v10581_v39  ;;  %v13839_v59 = vld [vmem:[#allocation2 + $0x74] sm:$0xf0]  ;;  %v13841_v27 = vld [vmem:[#allocation2 + $0x78] sm:$0xf0]  ;;  %v10645_v36 = vor.u32 %v12409_v62, %v10642_v24  ;;  %v10696_v24 = vld [vmem:[#allocation2 + $0x110] sm:$0xf] }
 0x471   :  { %5147 = vst [vmem:[#allocation2 + $0xb8] sm:$0xff] %v5130_v14  ;;  %v4999_v49 = vmax.f32 %v4922_v43, %v4967_v0  ;;  %v10609_v38 = vor.u32 %v13839_v59, %v13833_v21  ;;  %v10613_v51 = vor.u32 %v13835_v48, %v13841_v27  ;;  %6951 = vmatpush.bf16.msra.mxu3 %v12545_v9  ;;  %v12420_v55 = vld [vmem:[#allocation2 + $0xec] sm:$0xf0]  ;;  %v10666_v53 = vld [vmem:[#allocation2 + $0xf0] sm:$0xf0] }
 0x472   :  { %5203 = vst [vmem:[#allocation2 + $0x198] sm:$0xff] %v5130_v14  ;;  %v4835_v6 = vpop.f32.mrf.mxu2  ;;  %v4659_v5 = vpop.f32.mrf.mxu0  ;;  %v12433_v9 = vld [vmem:[#allocation2 + $0x154] sm:$0xf0]  ;;  %v10664_v27 = vld [vmem:[#allocation2 + $0xb0] sm:$0xf] }
 0x473   :  { %v4924_v20 = vpop.f32.mrf.mxu3  ;;  %v5031_v28 = vpack.c.bf16 %v4999_v49, %v4999_v49  ;;  %v4836_v54 = vadd.f32 %v4835_v6, %v4747_v16  ;;  %v4748_v7 = vpop.f32.mrf.mxu1  ;;  %7163 = vst [vmem:[#allocation2 + $0x78] sm:$0xff] %v13826_v58  ;;  %v4660_v29 = vadd.f32 %v4659_v5, %v13753_v11  ;;  %v10634_v58 = vld [vmem:[#allocation2 + $0xd0] sm:$0xf0]  ;;  %v12417_v11 = vld [vmem:[#allocation2 + $0xd4] sm:$0xf0] }
 0x474   :  { %v10637_v26 = vor.u32 %v12408_v19, %v10634_v58  ;;  %v10641_v39 = vor.u32 %v12417_v11, %v10640_v46  ;;  %v12529_v49 = vld [vmem:[#allocation5 + $0x258] sm:$0xff]  ;;  %v12536_v6 = vld [vmem:[#allocation5 + $0x290] sm:$0xff]  ;;  %v12543_v58 = vld [vmem:[#allocation5 + $0x2c8] sm:$0xff] }
 0x475   :  { %v5127_v8 = vunpack.c.l.b16 %v5031_v28  ;;  %v4925_v47 = vadd.f32 %v4924_v20, %v4836_v54  ;;  %v4749_v30 = vadd.f32 %v4748_v7, %v4660_v29  ;;  %v12520_v20 = vld [vmem:[#allocation5 + $0x210] sm:$0xff]  ;;  %6893 = vmatpush.bf16.msra.mxu1 %v12529_v49  ;;  %6923 = vmatpush.bf16.msra.mxu2 %v12536_v6  ;;  %v10704_v19 = vld [vmem:[#allocation2 + $0x118] sm:$0xf] }
 0x476   :  { %v12544_v7 = vld [vmem:[#allocation5 + $0x2d0] sm:$0xff]  ;;  %6865 = vmatpush.bf16.msra.mxu0 %v12520_v20  ;;  %v10705_v46 = vor.u32 %v12433_v9, %v10704_v19  ;;  %v12573_v9 = vld [vmem:[#allocation5 + $0x3b8] sm:$0xff] }
 0x477   :  { %v5133_v37 = vpack.c.b16 %v12994_v2, %v5127_v8  ;;  %v4968_v52 = vmul.f32 0.2, %v4925_v47  ;;  %6952 = vmatpush.bf16.msra.mxu3 %v12544_v7  ;;  %v12528_v29 = vld [vmem:[#allocation5 + $0x250] sm:$0xff] }
 0x478   :  { %v12448_v7 = vld [vmem:[#allocation2 + $0x1cc] sm:$0xf0] }
 0x479   :  { %5155 = vst [vmem:[#allocation2 + $0xf8] sm:$0xff] %v5133_v37  ;;  %v5000_v13 = vmax.f32 %v4925_v47, %v4968_v52  ;;  %6894 = vmatpush.bf16.msra.mxu1 %v12528_v29 }
 0x47a   :  { %5211 = vst [vmem:[#allocation2 + $0x1d8] sm:$0xff] %v5133_v37  ;;  %v4837_v31 = vpop.f32.mrf.mxu2  ;;  %v4662_v50 = vpop.f32.mrf.mxu0  ;;  %v10706_v37 = vld [vmem:[#allocation2 + $0x158] sm:$0xf0]  ;;  %6866 = vmatpush.bf16.msra.mxu0 %v12519_v3 }
 0x47b   :  { %v4926_v25 = vpop.f32.mrf.mxu3  ;;  %v5032_v45 = vpack.c.bf16 %v5000_v13, %v5000_v13  ;;  %v4838_v57 = vadd.f32 %v4837_v31, %v4749_v30  ;;  %v4751_v41 = vpop.f32.mrf.mxu1  ;;  %v4663_v14 = vadd.f32 %v4662_v50, %v13756_v40  ;;  %v12432_v40 = vld [vmem:[#allocation2 + $0x14c] sm:$0xf0]  ;;  %v12535_v30 = vld [vmem:[#allocation5 + $0x288] sm:$0xff]  ;;  %6953 = vmatpush.bf16.msra.mxu3 %v12543_v58 }
 0x47c   :  { %6924 = vmatpush.bf16.msra.mxu2 %v12535_v30  ;;  %v10760_v58 = vld [vmem:[#allocation2 + $0x190] sm:$0xf] }
 0x47d   :  { %v5158_v43 = vunpack.c.l.b16 %v5032_v45  ;;  %v4927_v34 = vadd.f32 %v4926_v25, %v4838_v57  ;;  %6757 = vmatmul.bf16.gmra.mxu0 %v10633_v44  ;;  %v4752_v47 = vadd.f32 %v4751_v41, %v4663_v14  ;;  %v12424_v45 = vld [vmem:[#allocation2 + $0x114] sm:$0xf]  ;;  %v12527_v57 = vld [vmem:[#allocation5 + $0x248] sm:$0xff]  ;;  %v10697_v41 = vor.u32 %v12432_v40, %v10696_v24  ;;  %v12425_v44 = vld [vmem:[#allocation2 + $0x11c] sm:$0xf] }
 0x47e   :  { %6786 = vmatmul.bf16.gmra.mxu1 %v10637_v26  ;;  %v10701_v10 = vor.u32 %v12424_v45, %v10698_v22  ;;  %v10709_v62 = vor.u32 %v12425_v44, %v10706_v37  ;;  %v12557_v37 = vld [vmem:[#allocation5 + $0x338] sm:$0xff]  ;;  %v10761_v24 = vor.u32 %v12448_v7, %v10760_v58  ;;  %v12440_v45 = vld [vmem:[#allocation2 + $0x194] sm:$0xf]  ;;  %v12402_v58 = vld [vmem:[#allocation2 + $0x5c] sm:$0xf0] }
 0x47f   :  { %v5168_v63 = vpack.c.b16 %v5158_v43, %v12992_v1  ;;  %v4969_v32 = vmul.f32 0.2, %v4927_v34  ;;  %6815 = vmatmul.bf16.gmra.mxu2 %v10641_v39  ;;  %6895 = vmatpush.bf16.msra.mxu1 %v12527_v57  ;;  %v12518_v43 = vld [vmem:[#allocation5 + $0x200] sm:$0xff]  ;;  %v10768_v57 = vld [vmem:[#allocation2 + $0x198] sm:$0xf] }
 0x480   :  { %6844 = vmatmul.bf16.gmra.mxu3 %v10645_v36  ;;  %v12526_v36 = vld [vmem:[#allocation5 + $0x240] sm:$0xff]  ;;  %6867 = vmatpush.bf16.msra.mxu0 %v12518_v43  ;;  %v10674_v21 = vld [vmem:[#allocation2 + $0xf8] sm:$0xf0] }
 0x481   :  { %5180 = vst [vmem:[#allocation2 + $0x120] sm:$0xff] %v5168_v63  ;;  %v5001_v61 = vmax.f32 %v4927_v34, %v4969_v32  ;;  %v12542_v34 = vld [vmem:[#allocation5 + $0x2c0] sm:$0xff]  ;;  %v12449_v29 = vld [vmem:[#allocation2 + $0x1d4] sm:$0xf0] }
 0x482   :  { %v4840_v0 = vpop.f32.mrf.mxu2  ;;  %v4664_v54 = vpop.f32.mrf.mxu0  ;;  %6954 = vmatpush.bf16.msra.mxu3 %v12542_v34  ;;  %v10769_v19 = vor.u32 %v12449_v29, %v10768_v57 }
 0x483   :  { %v4929_v16 = vpop.f32.mrf.mxu3  ;;  %v5033_v28 = vpack.c.bf16 %v5001_v61, %v5001_v61  ;;  %v4753_v5 = vpop.f32.mrf.mxu1  ;;  %v4841_v33 = vadd.f32 %v4840_v0, %v4752_v47  ;;  %v4665_v31 = vadd.f32 %v4664_v54, %v13759_v60  ;;  %v12534_v60 = vld [vmem:[#allocation5 + $0x280] sm:$0xff]  ;;  %6896 = vmatpush.bf16.msra.mxu1 %v12526_v36  ;;  %v10762_v47 = vld [vmem:[#allocation2 + $0x1d0] sm:$0xf0] }
 0x484   :  { %6925 = vmatpush.bf16.msra.mxu2 %v12534_v60  ;;  %6976 = vmatpush.bf16.msrb.mxu0 %v12557_v37  ;;  %v12564_v36 = vld [vmem:[#allocation5 + $0x370] sm:$0xff] }
 0x485   :  { %v5159_v8 = vunpack.c.l.b16 %v5033_v28  ;;  %v4930_v50 = vadd.f32 %v4929_v16, %v4841_v33  ;;  %v4754_v39 = vadd.f32 %v4753_v5, %v4665_v31  ;;  %v12565_v31 = vld [vmem:[#allocation5 + $0x378] sm:$0xff] }
 0x487   :  { %v5170_v56 = vpack.c.b16 %v5159_v8, %v12994_v2  ;;  %v4970_v63 = vmul.f32 0.2, %v4930_v50  ;;  %7005 = vmatpush.bf16.msrb.mxu1 %v12565_v31 }
 0x488   :  { %7034 = vmatpush.bf16.msrb.mxu2 %v12573_v9 }
 0x489   :  { %5188 = vst [vmem:[#allocation2 + $0x160] sm:$0xff] %v5170_v56  ;;  %v5002_v6 = vmax.f32 %v4930_v50, %v4970_v63  ;;  %v10770_v56 = vld [vmem:[#allocation2 + $0x1d8] sm:$0xf0] }
 0x48a   :  { %v4842_v52 = vpop.f32.mrf.mxu2  ;;  %v4667_v25 = vpop.f32.mrf.mxu0  ;;  %v12441_v50 = vld [vmem:[#allocation2 + $0x19c] sm:$0xf] }
 0x48b   :  { %v4931_v13 = vpop.f32.mrf.mxu3  ;;  %v4756_v11 = vpop.f32.mrf.mxu1  ;;  %v4668_v26 = vadd.f32 %v4667_v25, %v13762_v15  ;;  %v4843_v32 = vadd.f32 %v4842_v52, %v4754_v39  ;;  %v5034_v8 = vpack.c.bf16 %v5002_v6, %v5002_v6  ;;  %v12581_v52 = vld [vmem:[#allocation5 + $0x3f8] sm:$0xff]  ;;  %v10773_v44 = vor.u32 %v12441_v50, %v10770_v56  ;;  %v12580_v39 = vld [vmem:[#allocation5 + $0x3f0] sm:$0xff]  ;;  %7006 = vmatpush.bf16.msrb.mxu1 %v12564_v36  ;;  %v12563_v56 = vld [vmem:[#allocation5 + $0x368] sm:$0xff] }
 0x48c   :  { %7063 = vmatpush.bf16.msrb.mxu3 %v12581_v52  ;;  %v13861_v52 = vld [vmem:[%s14140_s4] ss:$0 sm:$0xff] }
 0x48d   :  { %6762 = vmatmul.bf16.gmra.mxu0 %v10697_v41  ;;  %v4757_v61 = vadd.f32 %v4756_v11, %v4668_v26  ;;  %v4932_v20 = vadd.f32 %v4931_v13, %v4843_v32  ;;  %v5162_v41 = vunpack.c.l.b16 %v5034_v8  ;;  %v12572_v26 = vld [vmem:[#allocation5 + $0x3b0] sm:$0xff]  ;;  %v10584_v50 = vld [vmem:[#allocation2 + $0x20] sm:$0xf] }
 0x48e   :  { %6791 = vmatmul.bf16.gmra.mxu1 %v10701_v10  ;;  %v10765_v10 = vor.u32 %v12440_v45, %v10762_v47  ;;  %7035 = vmatpush.bf16.msrb.mxu2 %v12572_v26  ;;  %v10592_v26 = vld [vmem:[#allocation2 + $0x28] sm:$0xf] }
 0x48f   :  { %6820 = vmatmul.bf16.gmra.mxu2 %v10705_v46  ;;  %v4971_v33 = vmul.f32 0.2, %v4932_v20  ;;  %v12556_v46 = vld [vmem:[#allocation5 + $0x330] sm:$0xff]  ;;  %7007 = vmatpush.bf16.msrb.mxu1 %v12563_v56 }
 0x490   :  { %6849 = vmatmul.bf16.gmra.mxu3 %v10709_v62  ;;  %6977 = vmatpush.bf16.msrb.mxu0 %v12556_v46  ;;  %v12395_v46 = vld [vmem:[#allocation2 + $0x2c] sm:$0xf]  ;;  %v12552_v56 = vld [vmem:[#allocation5 + $0x310] sm:$0xff] }
 0x491   :  { %v5003_v62 = vmax.f32 %v4932_v20, %v4971_v33  ;;  %7064 = vmatpush.bf16.msrb.mxu3 %v12580_v39  ;;  %v12570_v33 = vld [vmem:[#allocation5 + $0x3a0] sm:$0xff] }
 0x492   :  { %v4845_v15 = vpop.f32.mrf.mxu2  ;;  %v4669_v16 = vpop.f32.mrf.mxu0  ;;  %v12562_v39 = vld [vmem:[#allocation5 + $0x360] sm:$0xff] }
 0x493   :  { %v4934_v14 = vpop.f32.mrf.mxu3  ;;  %v4846_v0 = vadd.f32 %v4845_v15, %v4757_v61  ;;  %v4758_v49 = vpop.f32.mrf.mxu1  ;;  %v4670_v54 = vadd.f32 %v4669_v16, %v13765_v12  ;;  %v12571_v61 = vld [vmem:[#allocation5 + $0x3a8] sm:$0xff]  ;;  %7008 = vmatpush.bf16.msrb.mxu1 %v12562_v39 }
 0x494   :  { %v12555_v15 = vld [vmem:[#allocation5 + $0x328] sm:$0xff]  ;;  %7036 = vmatpush.bf16.msrb.mxu2 %v12571_v61  ;;  %v12569_v61 = vld [vmem:[#allocation5 + $0x398] sm:$0xff] }
 0x495   :  { %v4935_v28 = vadd.f32 %v4934_v14, %v4846_v0  ;;  %v4759_v22 = vadd.f32 %v4758_v49, %v4670_v54  ;;  %v5035_v14 = vpack.c.bf16 %v5003_v62, %v5003_v62  ;;  %v12579_v49 = vld [vmem:[#allocation5 + $0x3e8] sm:$0xff]  ;;  %6978 = vmatpush.bf16.msrb.mxu0 %v12555_v15  ;;  %v12553_v15 = vld [vmem:[#allocation5 + $0x318] sm:$0xff] }
 0x496   :  { %7065 = vmatpush.bf16.msrb.mxu3 %v12579_v49 }
 0x497   :  { %v4972_v5 = vmul.f32 0.2, %v4935_v28  ;;  %v5163_v7 = vunpack.c.l.b16 %v5035_v14  ;;  %v12577_v14 = vld [vmem:[#allocation5 + $0x3d8] sm:$0xff] }
 0x498   :  { %7037 = vmatpush.bf16.msrb.mxu2 %v12570_v33  ;;  %v12576_v33 = vld [vmem:[#allocation5 + $0x3d0] sm:$0xff] }
 0x499   :  { %v5004_v40 = vmax.f32 %v4935_v28, %v4972_v5 }
 0x49a   :  { %v4847_v30 = vpop.f32.mrf.mxu2  ;;  %v4672_v11 = vpop.f32.mrf.mxu0 }
 0x49b   :  { %v4936_v3 = vpop.f32.mrf.mxu3  ;;  %v5036_v13 = vpack.c.bf16 %v5004_v40, %v5004_v40  ;;  %v4848_v25 = vadd.f32 %v4847_v30, %v4759_v22  ;;  %v4761_v12 = vpop.f32.mrf.mxu1  ;;  %v4673_v34 = vadd.f32 %v4672_v11, %v13768_v17  ;;  %v12554_v40 = vld [vmem:[#allocation5 + $0x320] sm:$0xff]  ;;  %v10594_v11 = vld [vmem:[#allocation2 + $0x68] sm:$0xf0] }
 0x49c   :  { %v12578_v22 = vld [vmem:[#allocation5 + $0x3e0] sm:$0xff]  ;;  %6979 = vmatpush.bf16.msrb.mxu0 %v12554_v40  ;;  %7038 = vmatpush.bf16.msrb.mxu2 %v12569_v61 }
 0x49d   :  { %v5166_v60 = vunpack.c.l.b16 %v5036_v13  ;;  %v4937_v43 = vadd.f32 %v4936_v3, %v4848_v25  ;;  %6767 = vmatmul.bf16.gmra.mxu0 %v10761_v24  ;;  %v4762_v16 = vadd.f32 %v4761_v12, %v4673_v34  ;;  %7066 = vmatpush.bf16.msrb.mxu3 %v12578_v22  ;;  %v12403_v25 = vld [vmem:[#allocation2 + $0x64] sm:$0xf0]  ;;  %v10597_v34 = vor.u32 %v12395_v46, %v10594_v11  ;;  %v12418_v22 = vld [vmem:[#allocation2 + $0xdc] sm:$0xf0]  ;;  %v12410_v11 = vld [vmem:[#allocation2 + $0xa4] sm:$0xf] }
 0x49e   :  { %6796 = vmatmul.bf16.gmra.mxu1 %v10765_v10  ;;  %v12567_v46 = vld [vmem:[#allocation5 + $0x388] sm:$0xff] }
 0x49f   :  { %v5169_v63 = vpack.c.b16 %v5166_v60, %v5162_v41  ;;  %v4973_v32 = vmul.f32 0.2, %v4937_v43  ;;  %6825 = vmatmul.bf16.gmra.mxu2 %v10769_v19  ;;  %v12394_v41 = vld [vmem:[#allocation2 + $0x24] sm:$0xf]  ;;  %v10585_v19 = vor.u32 %v12402_v58, %v10584_v50  ;;  %v10658_v58 = vld [vmem:[#allocation2 + $0xe8] sm:$0xf0] }
 0x4a0   :  { %6854 = vmatmul.bf16.gmra.mxu3 %v10773_v44  ;;  %6980 = vmatpush.bf16.msrb.mxu0 %v12553_v15  ;;  %v12411_v50 = vld [vmem:[#allocation2 + $0xac] sm:$0xf] }
 0x4a1   :  { %5181 = vst [vmem:[#allocation2 + $0x128] sm:$0xff] %v5169_v63  ;;  %v5005_v0 = vmax.f32 %v4937_v43, %v4973_v32  ;;  %v10593_v43 = vor.u32 %v12403_v25, %v10592_v26  ;;  %7067 = vmatpush.bf16.msrb.mxu3 %v12577_v14  ;;  %v10648_v25 = vld [vmem:[#allocation2 + $0xa0] sm:$0xf]  ;;  %v12559_v15 = vld [vmem:[#allocation5 + $0x348] sm:$0xff] }
 0x4a2   :  { %5204 = vst [vmem:[#allocation2 + $0x1a0] sm:$0xff] %v5169_v63  ;;  %v4850_v17 = vpop.f32.mrf.mxu2  ;;  %v4674_v54 = vpop.f32.mrf.mxu0 }
 0x4a3   :  { %v4939_v6 = vpop.f32.mrf.mxu3  ;;  %v5037_v20 = vpack.c.bf16 %v5005_v0, %v5005_v0  ;;  %v4851_v28 = vadd.f32 %v4850_v17, %v4762_v16  ;;  %v4763_v5 = vpop.f32.mrf.mxu1  ;;  %v4675_v29 = vadd.f32 %v4674_v54, %v13770_v4  ;;  %v10586_v4 = vld [vmem:[#allocation2 + $0x60] sm:$0xf0] }
 0x4a4   :  { %v10589_v44 = vor.u32 %v12394_v41, %v10586_v4  ;;  %6981 = vmatpush.bf16.msrb.mxu0 %v12552_v56  ;;  %v10712_v56 = vld [vmem:[#allocation2 + $0x120] sm:$0xf] }
 0x4a5   :  { %v5167_v8 = vunpack.c.l.b16 %v5037_v20  ;;  %v4940_v47 = vadd.f32 %v4939_v6, %v4851_v28  ;;  %v4764_v3 = vadd.f32 %v4763_v5, %v4675_v29  ;;  %v12568_v29 = vld [vmem:[#allocation5 + $0x390] sm:$0xff]  ;;  %7068 = vmatpush.bf16.msrb.mxu3 %v12576_v33  ;;  %v12426_v33 = vld [vmem:[#allocation2 + $0x124] sm:$0xf] }
 0x4a6   :  { %7039 = vmatpush.bf16.msrb.mxu2 %v12568_v29 }
 0x4a7   :  { %v5171_v9 = vpack.c.b16 %v5167_v8, %v5163_v7  ;;  %v4974_v37 = vmul.f32 0.2, %v4940_v47  ;;  %v12561_v8 = vld [vmem:[#allocation5 + $0x358] sm:$0xff] }
 0x4a8   :  { %7009 = vmatpush.bf16.msrb.mxu1 %v12561_v8 }
 0x4a9   :  { %5189 = vst [vmem:[#allocation2 + $0x168] sm:$0xff] %v5171_v9  ;;  %v5006_v30 = vmax.f32 %v4940_v47, %v4974_v37 }
 0x4aa   :  { %5212 = vst [vmem:[#allocation2 + $0x1e0] sm:$0xff] %v5171_v9  ;;  %v4852_v31 = vpop.f32.mrf.mxu2  ;;  %v6637_v45 = vpop.f32.mrf.mxu0  ;;  %v10650_v9 = vld [vmem:[#allocation2 + $0xe0] sm:$0xf0]  ;;  %7040 = vmatpush.bf16.msrb.mxu2 %v12567_v46 }
 0x4ab   :  { %v4941_v13 = vpop.f32.mrf.mxu3  ;;  %v5038_v12 = vpack.c.bf16 %v5006_v30, %v5006_v30  ;;  %v4853_v24 = vadd.f32 %v4852_v31, %v4764_v3  ;;  %v6666_v57 = vpop.f32.mrf.mxu1  ;;  %v6638_v10 = vadd.f32 %v13861_v52, %v6637_v45  ;;  %v12419_v3 = vld [vmem:[#allocation2 + $0xe4] sm:$0xf0]  ;;  %v10653_v45 = vor.u32 %v12410_v11, %v10650_v9 }
 0x4ad   :  { %v5194_v62 = vunpack.c.l.b16 %v5038_v12  ;;  %v4942_v60 = vadd.f32 %v4941_v13, %v4853_v24  ;;  %v6667_v36 = vadd.f32 %v6666_v57, %v6638_v10  ;;  %6868 = vmatmul.bf16.vlgmr.msra.gmra.mxu0 %v10585_v19  ;;  %v10649_v24 = vor.u32 %v12418_v22, %v10648_v25  ;;  %v10656_v57 = vld [vmem:[#allocation2 + $0xa8] sm:$0xf] }
 0x4ae   :  { %6897 = vmatmul.bf16.vlgmr.msra.gmra.mxu1 %v10589_v44  ;;  %v10657_v10 = vor.u32 %v12419_v3, %v10656_v57  ;;  %v10661_v19 = vor.u32 %v12411_v50, %v10658_v58  ;;  %v12560_v44 = vld [vmem:[#allocation5 + $0x350] sm:$0xff] }
 0x4af   :  { %v5196_v63 = vpack.c.b16 %v12992_v1, %v5194_v62  ;;  %v4975_v32 = vmul.f32 0.2, %v4942_v60  ;;  %6926 = vmatmul.bf16.vlgmr.msra.gmra.mxu2 %v10593_v43  ;;  %v12551_v62 = vld [vmem:[#allocation5 + $0x308] sm:$0xff]  ;;  %7010 = vmatpush.bf16.msrb.mxu1 %v12560_v44 }
 0x4b0   :  { %6955 = vmatmul.bf16.vlgmr.msra.gmra.mxu3 %v10597_v34  ;;  %6982 = vmatpush.bf16.msrb.mxu0 %v12551_v62 }
 0x4b1   :  { %5205 = vst [vmem:[#allocation2 + $0x1a8] sm:$0xff] %v5196_v63  ;;  %v5007_v0 = vmax.f32 %v4942_v60, %v4975_v32  ;;  %v12575_v60 = vld [vmem:[#allocation5 + $0x3c8] sm:$0xff]  ;;  %v10778_v44 = vld [vmem:[#allocation2 + $0x1e0] sm:$0xf0] }
 0x4b2   :  { %v6695_v16 = vpop.f32.mrf.mxu2  ;;  %v6639_v20 = vpop.f32.mrf.mxu0  ;;  %7069 = vmatpush.bf16.msrb.mxu3 %v12575_v60 }
 0x4b3   :  { %v6724_v49 = vpop.f32.mrf.mxu3  ;;  %v5039_v17 = vpack.c.bf16 %v5007_v0, %v5007_v0  ;;  %v6696_v6 = vadd.f32 %v6695_v16, %v6667_v36  ;;  %v6668_v28 = vpop.f32.mrf.mxu1  ;;  %v6640_v54 = vadd.f32 %v13861_v52, %v6639_v20  ;;  %v12566_v0 = vld [vmem:[#allocation5 + $0x380] sm:$0xff]  ;;  %7011 = vmatpush.bf16.msrb.mxu1 %v12559_v15 }
 0x4b4   :  { %v12550_v16 = vld [vmem:[#allocation5 + $0x300] sm:$0xff]  ;;  %7041 = vmatpush.bf16.msrb.mxu2 %v12566_v0 }
 0x4b5   :  { %v5195_v5 = vunpack.c.l.b16 %v5039_v17  ;;  %v13866_v7 = vadd.f32 %v6724_v49, %v6696_v6  ;;  %v6669_v47 = vadd.f32 %v6668_v28, %v6640_v54  ;;  %v12574_v49 = vld [vmem:[#allocation5 + $0x3c0] sm:$0xff]  ;;  %6983 = vmatpush.bf16.msrb.mxu0 %v12550_v16  ;;  %v12435_v54 = vld [vmem:[#allocation2 + $0x164] sm:$0xf0] }
 0x4b6   :  { %v12434_v17 = vld [vmem:[#allocation2 + $0x15c] sm:$0xf0]  ;;  %v10714_v6 = vld [vmem:[#allocation2 + $0x160] sm:$0xf0]  ;;  %7070 = vmatpush.bf16.msrb.mxu3 %v12574_v49 }
 0x4b7   :  { %v5197_v40 = vpack.c.b16 %v12994_v2, %v5195_v5  ;;  %v10722_v5 = vld [vmem:[#allocation2 + $0x168] sm:$0xf0]  ;;  %v10713_v22 = vor.u32 %v12434_v17, %v10712_v56  ;;  %v10717_v9 = vor.u32 %v12426_v33, %v10714_v6 }
 0x4b8   :  { %v10784_v0 = vld [vmem:[#allocation2 + $0x1a8] sm:$0xf]  ;;  %v12443_v16 = vld [vmem:[#allocation2 + $0x1ac] sm:$0xf] }
 0x4b9   :  { %5213 = vst [vmem:[#allocation2 + $0x1e8] sm:$0xff] %v5197_v40 }
 0x4ba   :  { %v6697_v37 = vpop.f32.mrf.mxu2  ;;  %v6642_v31 = vpop.f32.mrf.mxu0 }
 0x4bb   :  { %v6726_v30 = vpop.f32.mrf.mxu3  ;;  %v6698_v4 = vadd.f32 %v6697_v37, %v6669_v47  ;;  %v6671_v13 = vpop.f32.mrf.mxu1  ;;  %v6643_v12 = vadd.f32 %v13861_v52, %v6642_v31  ;;  %v10720_v37 = vld [vmem:[#allocation2 + $0x128] sm:$0xf]  ;;  %v12558_v31 = vld [vmem:[#allocation5 + $0x340] sm:$0xff] }
 0x4bc   :  { %v10721_v58 = vor.u32 %v12435_v54, %v10720_v37  ;;  %7012 = vmatpush.bf16.msrb.mxu1 %v12558_v31 }
 0x4bd   :  { %v13870_v41 = vadd.f32 %v6726_v30, %v6698_v4  ;;  %v6672_v26 = vadd.f32 %v6671_v13, %v6643_v12  ;;  %6873 = vmatmul.bf16.gmra.mxu0 %v10649_v24  ;;  %v12427_v30 = vld [vmem:[#allocation2 + $0x12c] sm:$0xf] }
 0x4be   :  { %6902 = vmatmul.bf16.gmra.mxu1 %v10653_v45  ;;  %v10725_v4 = vor.u32 %v12427_v30, %v10722_v5 }
 0x4bf   :  { %6931 = vmatmul.bf16.gmra.mxu2 %v10657_v10 }
 0x4c0   :  { %6960 = vmatmul.bf16.gmra.mxu3 %v10661_v19  ;;  %v12450_v19 = vld [vmem:[#allocation2 + $0x1dc] sm:$0xf0]  ;;  %v12451_v62 = vld [vmem:[#allocation2 + $0x1e4] sm:$0xf0]  ;;  %v10786_v60 = vld [vmem:[#allocation2 + $0x1e8] sm:$0xf0] }
 0x4c1   :  { %v10785_v17 = vor.u32 %v12451_v62, %v10784_v0  ;;  %v10789_v6 = vor.u32 %v12443_v16, %v10786_v60  ;;  %v10738_v0 = vld [vmem:[#allocation2 + $0x178] sm:$0xf0] }
 0x4c2   :  { %v6700_v43 = vpop.f32.mrf.mxu2  ;;  %v6644_v36 = vpop.f32.mrf.mxu0 }
 0x4c3   :  { %v6729_v34 = vpop.f32.mrf.mxu3  ;;  %v6701_v39 = vadd.f32 %v6700_v43, %v6672_v26  ;;  %v6673_v63 = vpop.f32.mrf.mxu1  ;;  %v6645_v32 = vadd.f32 %v13861_v52, %v6644_v36  ;;  %v10776_v36 = vld [vmem:[#allocation2 + $0x1a0] sm:$0xf] }
 0x4c4   :  { %v10777_v15 = vor.u32 %v12450_v19, %v10776_v36  ;;  %v12428_v36 = vld [vmem:[#allocation2 + $0x134] sm:$0xf] }
 0x4c5   :  { %v13873_v61 = vadd.f32 %v6729_v34, %v6701_v39  ;;  %v6674_v14 = vadd.f32 %v6673_v63, %v6645_v32  ;;  %v12442_v63 = vld [vmem:[#allocation2 + $0x1a4] sm:$0xf] }
 0x4ca   :  { %v6702_v20 = vpop.f32.mrf.mxu2  ;;  %v6647_v47 = vpop.f32.mrf.mxu0 }
 0x4cb   :  { %v6731_v28 = vpop.f32.mrf.mxu3  ;;  %v6703_v8 = vadd.f32 %v6702_v20, %v6674_v14  ;;  %v6676_v29 = vpop.f32.mrf.mxu1  ;;  %v6648_v40 = vadd.f32 %v13861_v52, %v6647_v47  ;;  %v10781_v14 = vor.u32 %v12442_v63, %v10778_v44  ;;  %v10730_v63 = vld [vmem:[#allocation2 + $0x170] sm:$0xf0] }
 0x4cd   :  { %v13876_v3 = vadd.f32 %v6731_v28, %v6703_v8  ;;  %v6677_v13 = vadd.f32 %v6676_v29, %v6648_v40  ;;  %6878 = vmatmul.bf16.gmra.mxu0 %v10713_v22 }
 0x4ce   :  { %6907 = vmatmul.bf16.gmra.mxu1 %v10717_v9 }
 0x4cf   :  { %6936 = vmatmul.bf16.gmra.mxu2 %v10721_v58 }
 0x4d0   :  { %6965 = vmatmul.bf16.gmra.mxu3 %v10725_v4 }
 0x4d2   :  { %v6705_v25 = vpop.f32.mrf.mxu2  ;;  %v6649_v24 = vpop.f32.mrf.mxu0 }
 0x4d3   :  { %v6734_v11 = vpop.f32.mrf.mxu3  ;;  %v6706_v12 = vadd.f32 %v6705_v25, %v6677_v13  ;;  %v6678_v45 = vpop.f32.mrf.mxu1  ;;  %v6650_v57 = vadd.f32 %v13861_v52, %v6649_v24 }
 0x4d5   :  { %v13879_v50 = vadd.f32 %v6734_v11, %v6706_v12  ;;  %v6679_v10 = vadd.f32 %v6678_v45, %v6650_v57  ;;  %v10665_v12 = vor.u32 %v12420_v55, %v10664_v27  ;;  %v10672_v45 = vld [vmem:[#allocation2 + $0xb8] sm:$0xf]  ;;  %v12413_v57 = vld [vmem:[#allocation2 + $0xbc] sm:$0xf] }
 0x4d6   :  { %v10677_v19 = vor.u32 %v12413_v57, %v10674_v21  ;;  %v12445_v55 = vld [vmem:[#allocation2 + $0x1bc] sm:$0xf] }
 0x4da   :  { %v6707_v26 = vpop.f32.mrf.mxu2  ;;  %v6652_v34 = vpop.f32.mrf.mxu0 }
 0x4db   :  { %v6736_v46 = vpop.f32.mrf.mxu3  ;;  %v6708_v43 = vadd.f32 %v6707_v26, %v6679_v10  ;;  %v6681_v39 = vpop.f32.mrf.mxu1  ;;  %v6653_v32 = vadd.f32 %v13861_v52, %v6652_v34 }
 0x4dd   :  { %v13882_v49 = vadd.f32 %v6736_v46, %v6708_v43  ;;  %v6682_v20 = vadd.f32 %v6681_v39, %v6653_v32  ;;  %6883 = vmatmul.bf16.gmra.mxu0 %v10777_v15  ;;  %v12436_v39 = vld [vmem:[#allocation2 + $0x16c] sm:$0xf0]  ;;  %v10736_v32 = vld [vmem:[#allocation2 + $0x138] sm:$0xf] }
 0x4de   :  { %6912 = vmatmul.bf16.gmra.mxu1 %v10781_v14  ;;  %v12437_v15 = vld [vmem:[#allocation2 + $0x174] sm:$0xf0]  ;;  %v12429_v14 = vld [vmem:[#allocation2 + $0x13c] sm:$0xf] }
 0x4df   :  { %6941 = vmatmul.bf16.gmra.mxu2 %v10785_v17 }
 0x4e0   :  { %6970 = vmatmul.bf16.gmra.mxu3 %v10789_v6 }
 0x4e2   :  { %v6710_v28 = vpop.f32.mrf.mxu2  ;;  %v6654_v8 = vpop.f32.mrf.mxu0 }
 0x4e3   :  { %v6739_v54 = vpop.f32.mrf.mxu3  ;;  %v6711_v5 = vadd.f32 %v6710_v28, %v6682_v20  ;;  %v6683_v47 = vpop.f32.mrf.mxu1  ;;  %v6655_v29 = vadd.f32 %v13861_v52, %v6654_v8  ;;  %v10733_v20 = vor.u32 %v12428_v36, %v10730_v63  ;;  %v10741_v8 = vor.u32 %v12429_v14, %v10738_v0  ;;  %v12605_v14 = vld [vmem:[#allocation7 + $0x38] sm:$0xff] }
 0x4e4   :  { %v12613_v0 = vld [vmem:[#allocation7 + $0x78] sm:$0xff]  ;;  %8288 = vmatpush.bf16.msra.mxu0 %v12605_v14 }
 0x4e5   :  { %v13885_v56 = vadd.f32 %v6739_v54, %v6711_v5  ;;  %v6684_v33 = vadd.f32 %v6683_v47, %v6655_v29  ;;  %v10737_v5 = vor.u32 %v12437_v15, %v10736_v32  ;;  %8302 = vmatpush.bf16.msra.mxu1 %v12613_v0  ;;  %v12617_v14 = vld [vmem:[#allocation7 + $0x98] sm:$0xff] }
 0x4e6   :  { %v12625_v0 = vld [vmem:[#allocation7 + $0xd8] sm:$0xff] }
 0x4ea   :  { %v6712_v40 = vpop.f32.mrf.mxu2  ;;  %v6753_v37 = vpop.f32.mrf.mxu0 }
 0x4eb   :  { %v6741_v22 = vpop.f32.mrf.mxu3  ;;  %v6713_v9 = vadd.f32 %v6712_v40, %v6684_v33  ;;  %v6782_v30 = vpop.f32.mrf.mxu1  ;;  %v6754_v58 = vadd.f32 %v6753_v37, %v13866_v7 }
 0x4ed   :  { %v13888_v4 = vadd.f32 %v6741_v22, %v6713_v9  ;;  %v6783_v31 = vadd.f32 %v6782_v30, %v6754_v58  ;;  %6984 = vmatmul.bf16.vlgmr.msrb.gmra.mxu0 %v10601_v35  ;;  %v10792_v58 = vld [vmem:[#allocation2 + $0x1b0] sm:$0xf] }
 0x4ee   :  { %7013 = vmatmul.bf16.vlgmr.msrb.gmra.mxu1 %v10605_v42  ;;  %v12421_v42 = vld [vmem:[#allocation2 + $0xf4] sm:$0xf0] }
 0x4ef   :  { %7042 = vmatmul.bf16.vlgmr.msrb.gmra.mxu2 %v10609_v38  ;;  %v12412_v38 = vld [vmem:[#allocation2 + $0xb4] sm:$0xf]  ;;  %v10673_v10 = vor.u32 %v12421_v42, %v10672_v45 }
 0x4f0   :  { %7071 = vmatmul.bf16.vlgmr.msrb.gmra.mxu3 %v10613_v51  ;;  %v10669_v24 = vor.u32 %v12412_v38, %v10666_v53  ;;  %v10802_v53 = vld [vmem:[#allocation2 + $0x1f8] sm:$0xf0] }
 0x4f2   :  { %v6811_v52 = vpop.f32.mrf.mxu2  ;;  %v13902_v25 = vpop.f32.mrf.mxu0 }
 0x4f3   :  { %v6840_v7 = vpop.f32.mrf.mxu3  ;;  %v6812_v13 = vadd.f32 %v6811_v52, %v6783_v31  ;;  %v13904_v11 = vpop.f32.mrf.mxu1  ;;  %v12452_v31 = vld [vmem:[#allocation2 + $0x1ec] sm:$0xf0]  ;;  %v12444_v52 = vld [vmem:[#allocation2 + $0x1b4] sm:$0xf] }
 0x4f5   :  { %v13906_v18 = vadd.f32 %v6840_v7, %v6812_v13  ;;  %v10794_v7 = vld [vmem:[#allocation2 + $0x1f0] sm:$0xf0]  ;;  %v10800_v13 = vld [vmem:[#allocation2 + $0x1b8] sm:$0xf] }
 0x4fa   :  { %v13908_v23 = vpop.f32.mrf.mxu2  ;;  %v6758_v59 = vpop.f32.mrf.mxu0 }
 0x4fb   :  { %v13910_v35 = vpop.f32.mrf.mxu3  ;;  %v6787_v48 = vpop.f32.mrf.mxu1  ;;  %v6759_v51 = vadd.f32 %v6758_v59, %v13873_v61  ;;  %v10728_v61 = vld [vmem:[#allocation2 + $0x130] sm:$0xf]  ;;  %v10793_v59 = vor.u32 %v12452_v31, %v10792_v58 }
 0x4fc   :  { %v10729_v6 = vor.u32 %v12436_v39, %v10728_v61  ;;  %v12628_v58 = vld [vmem:[#allocation7 + $0xf0] sm:$0xff] }
 0x4fd   :  { %v6788_v44 = vadd.f32 %v6787_v48, %v6759_v51  ;;  %6989 = vmatmul.bf16.gmra.mxu0 %v10665_v12  ;;  %v10797_v48 = vor.u32 %v12444_v52, %v10794_v7  ;;  %v10805_v12 = vor.u32 %v12445_v55, %v10802_v53  ;;  %v12610_v55 = vld [vmem:[#allocation7 + $0x60] sm:$0xff]  ;;  %v12619_v53 = vld [vmem:[#allocation7 + $0xa8] sm:$0xff] }
 0x4fe   :  { %7018 = vmatmul.bf16.gmra.mxu1 %v10669_v24 }
 0x4ff   :  { %7047 = vmatmul.bf16.gmra.mxu2 %v10673_v10 }
 0x500   :  { %7076 = vmatmul.bf16.gmra.mxu3 %v10677_v19 }
 0x502   :  { %v6816_v26 = vpop.f32.mrf.mxu2  ;;  %v13913_v60 = vpop.f32.mrf.mxu0 }
 0x503   :  { %v6845_v46 = vpop.f32.mrf.mxu3  ;;  %v6817_v62 = vadd.f32 %v6816_v26, %v6788_v44  ;;  %v13915_v43 = vpop.f32.mrf.mxu1 }
 0x505   :  { %v13917_v34 = vadd.f32 %v6845_v46, %v6817_v62 }
 0x50a   :  { %v13919_v16 = vpop.f32.mrf.mxu2  ;;  %v6763_v28 = vpop.f32.mrf.mxu0 }
 0x50b   :  { %v13921_v17 = vpop.f32.mrf.mxu3  ;;  %v6792_v54 = vpop.f32.mrf.mxu1  ;;  %v6764_v47 = vadd.f32 %v6763_v28, %v13879_v50  ;;  %v12453_v50 = vld [vmem:[#allocation2 + $0x1f4] sm:$0xf0] }
 0x50c   :  { %v10801_v51 = vor.u32 %v12453_v50, %v10800_v13  ;;  %v12602_v50 = vld [vmem:[#allocation7 + $0x20] sm:$0xff] }
 0x50d   :  { %v6793_v29 = vadd.f32 %v6792_v54, %v6764_v47  ;;  %6994 = vmatmul.bf16.gmra.mxu0 %v10729_v6  ;;  %v12621_v47 = vld [vmem:[#allocation7 + $0xb8] sm:$0xff] }
 0x50e   :  { %7023 = vmatmul.bf16.gmra.mxu1 %v10733_v20  ;;  %8316 = vmatpush.bf16.msra.mxu2 %v12621_v47  ;;  %v12616_v47 = vld [vmem:[#allocation7 + $0x90] sm:$0xff] }
 0x50f   :  { %7052 = vmatmul.bf16.gmra.mxu2 %v10737_v5  ;;  %v12604_v5 = vld [vmem:[#allocation7 + $0x30] sm:$0xff] }
 0x510   :  { %7081 = vmatmul.bf16.gmra.mxu3 %v10741_v8  ;;  %v12612_v8 = vld [vmem:[#allocation7 + $0x70] sm:$0xff]  ;;  %8289 = vmatpush.bf16.msra.mxu0 %v12604_v5  ;;  %v12599_v5 = vld [vmem:[#allocation7 + $0x8] sm:$0xff] }
 0x511   :  { %8303 = vmatpush.bf16.msra.mxu1 %v12612_v8  ;;  %v12607_v8 = vld [vmem:[#allocation7 + $0x48] sm:$0xff] }
 0x512   :  { %v6821_v33 = vpop.f32.mrf.mxu2  ;;  %v13924_v9 = vpop.f32.mrf.mxu0 }
 0x513   :  { %v6850_v40 = vpop.f32.mrf.mxu3  ;;  %v6822_v22 = vadd.f32 %v6821_v33, %v6793_v29  ;;  %v13926_v37 = vpop.f32.mrf.mxu1  ;;  %v12629_v29 = vld [vmem:[#allocation7 + $0xf8] sm:$0xff]  ;;  %v12603_v33 = vld [vmem:[#allocation7 + $0x28] sm:$0xff] }
 0x514   :  { %8330 = vmatpush.bf16.msra.mxu3 %v12629_v29  ;;  %8290 = vmatpush.bf16.msra.mxu0 %v12603_v33  ;;  %v12624_v29 = vld [vmem:[#allocation7 + $0xd0] sm:$0xff] }
 0x515   :  { %v13928_v30 = vadd.f32 %v6850_v40, %v6822_v22  ;;  %v12611_v40 = vld [vmem:[#allocation7 + $0x68] sm:$0xff]  ;;  %v12620_v22 = vld [vmem:[#allocation7 + $0xb0] sm:$0xff] }
 0x516   :  { %8304 = vmatpush.bf16.msra.mxu1 %v12611_v40  ;;  %8317 = vmatpush.bf16.msra.mxu2 %v12620_v22 }
 0x518   :  { %8331 = vmatpush.bf16.msra.mxu3 %v12628_v58  ;;  %8291 = vmatpush.bf16.msra.mxu0 %v12602_v50  ;;  %v12598_v50 = vld [vmem:[#allocation7] sm:$0xff] }
 0x51a   :  { %v13930_v42 = vpop.f32.mrf.mxu2  ;;  %v6768_v27 = vpop.f32.mrf.mxu0  ;;  %8305 = vmatpush.bf16.msra.mxu1 %v12610_v55  ;;  %8318 = vmatpush.bf16.msra.mxu2 %v12619_v53  ;;  %v12606_v55 = vld [vmem:[#allocation7 + $0x40] sm:$0xff]  ;;  %v12637_v53 = vld [vmem:[#allocation7 + $0x138] sm:$0xff] }
 0x51b   :  { %v13932_v21 = vpop.f32.mrf.mxu3  ;;  %v6797_v38 = vpop.f32.mrf.mxu1  ;;  %v6769_v24 = vadd.f32 %v6768_v27, %v13885_v56  ;;  %v12609_v27 = vld [vmem:[#allocation7 + $0x58] sm:$0xff] }
 0x51d   :  { %v6798_v45 = vadd.f32 %v6797_v38, %v6769_v24  ;;  %6999 = vmatmul.bf16.gmra.mxu0 %v10793_v59  ;;  %v12627_v59 = vld [vmem:[#allocation7 + $0xe8] sm:$0xff]  ;;  %v12618_v38 = vld [vmem:[#allocation7 + $0xa0] sm:$0xff] }
 0x51e   :  { %7028 = vmatmul.bf16.gmra.mxu1 %v10797_v48  ;;  %v12601_v48 = vld [vmem:[#allocation7 + $0x18] sm:$0xff]  ;;  %8332 = vmatpush.bf16.msra.mxu3 %v12627_v59 }
 0x51f   :  { %7057 = vmatmul.bf16.gmra.mxu2 %v10801_v51  ;;  %v12626_v51 = vld [vmem:[#allocation7 + $0xe0] sm:$0xff]  ;;  %8292 = vmatpush.bf16.msra.mxu0 %v12601_v48  ;;  %v12645_v59 = vld [vmem:[#allocation7 + $0x178] sm:$0xff]  ;;  %v12615_v48 = vld [vmem:[#allocation7 + $0x88] sm:$0xff] }
 0x520   :  { %7086 = vmatmul.bf16.gmra.mxu3 %v10805_v12  ;;  %8306 = vmatpush.bf16.msra.mxu1 %v12609_v27  ;;  %v12623_v27 = vld [vmem:[#allocation7 + $0xc8] sm:$0xff] }
 0x521   :  { %8319 = vmatpush.bf16.msra.mxu2 %v12618_v38 }
 0x522   :  { %v6826_v57 = vpop.f32.mrf.mxu2  ;;  %v13935_v44 = vpop.f32.mrf.mxu0  ;;  %8333 = vmatpush.bf16.msra.mxu3 %v12626_v51 }
 0x523   :  { %v6855_v10 = vpop.f32.mrf.mxu3  ;;  %v6827_v19 = vadd.f32 %v6826_v57, %v6798_v45  ;;  %v13937_v26 = vpop.f32.mrf.mxu1 }
 0x525   :  { %v13939_v46 = vadd.f32 %v6855_v10, %v6827_v19  ;;  %v12600_v10 = vld [vmem:[#allocation7 + $0x10] sm:$0xff]  ;;  %8320 = vmatpush.bf16.msra.mxu2 %v12617_v14 }
 0x526   :  { %v12608_v19 = vld [vmem:[#allocation7 + $0x50] sm:$0xff]  ;;  %8293 = vmatpush.bf16.msra.mxu0 %v12600_v10  ;;  %8334 = vmatpush.bf16.msra.mxu3 %v12625_v0 }
 0x527   :  { %8307 = vmatpush.bf16.msra.mxu1 %v12608_v19  ;;  %v12636_v10 = vld [vmem:[#allocation7 + $0x130] sm:$0xff] }
 0x528   :  { %v12644_v19 = vld [vmem:[#allocation7 + $0x170] sm:$0xff] }
 0x529   :  { %8321 = vmatpush.bf16.msra.mxu2 %v12616_v47  ;;  %v12653_v47 = vld [vmem:[#allocation7 + $0x1b8] sm:$0xff] }
 0x52a   :  { %v13941_v62 = vpop.f32.mrf.mxu2  ;;  %v13945_v39 = vpop.f32.mrf.mxu0  ;;  %8294 = vmatpush.bf16.msra.mxu0 %v12599_v5  ;;  %8335 = vmatpush.bf16.msra.mxu3 %v12624_v29  ;;  %v12614_v5 = vld [vmem:[#allocation7 + $0x80] sm:$0xff]  ;;  %v12661_v29 = vld [vmem:[#allocation7 + $0x1f8] sm:$0xff] }
 0x52b   :  { %v13943_v61 = vpop.f32.mrf.mxu3  ;;  %v13947_v56 = vpop.f32.mrf.mxu1  ;;  %8308 = vmatpush.bf16.msra.mxu1 %v12607_v8  ;;  %v12622_v8 = vld [vmem:[#allocation7 + $0xc0] sm:$0xff] }
 0x52c   :  { %14170 = vst [vmem:[#allocation18_spill] sm:$0xff] %v13943_v61 }
 0x52d   :  { %8322 = vmatpush.bf16.msra.mxu2 %v12615_v48  ;;  %v12660_v48 = vld [vmem:[#allocation7 + $0x1f0] sm:$0xff] }
 0x52e   :  { %8295 = vmatpush.bf16.msra.mxu0 %v12598_v50  ;;  %8336 = vmatpush.bf16.msra.mxu3 %v12623_v27  ;;  %v6756_v50 = vadd.f32 %v13902_v25, %v13870_v41  ;;  %v12634_v41 = vld [vmem:[#allocation7 + $0x120] sm:$0xff] }
 0x52f   :  { %8309 = vmatpush.bf16.msra.mxu1 %v12606_v55  ;;  %v12635_v55 = vld [vmem:[#allocation7 + $0x128] sm:$0xff]  ;;  %v12642_v25 = vld [vmem:[#allocation7 + $0x160] sm:$0xff] }
 0x530   :  { %v6785_v27 = vadd.f32 %v13904_v11, %v6756_v50  ;;  %v12651_v11 = vld [vmem:[#allocation7 + $0x1a8] sm:$0xff]  ;;  %v11320_v50 = vld [vmem:[#allocation2] sm:$0xf] }
 0x531   :  { %8323 = vmatpush.bf16.msra.mxu2 %v12614_v5 }
 0x532   :  { %v13949_v36 = vpop.f32.mrf.mxu2  ;;  %v13953_v32 = vpop.f32.mrf.mxu0  ;;  %8344 = vmatpush.bf16.msrb.mxu0 %v12637_v53  ;;  %8337 = vmatpush.bf16.msra.mxu3 %v12622_v8  ;;  %v12643_v53 = vld [vmem:[#allocation7 + $0x168] sm:$0xff]  ;;  %v6814_v5 = vadd.f32 %v13908_v23, %v6785_v27  ;;  %v12641_v23 = vld [vmem:[#allocation7 + $0x158] sm:$0xff] }
 0x533   :  { %v13951_v63 = vpop.f32.mrf.mxu3  ;;  %v13955_v15 = vpop.f32.mrf.mxu1  ;;  %8358 = vmatpush.bf16.msrb.mxu1 %v12645_v59  ;;  %v12652_v59 = vld [vmem:[#allocation7 + $0x1b0] sm:$0xff] }
 0x534   :  { %v6843_v27 = vadd.f32 %v13910_v35, %v6814_v5 }
 0x535   :  { %8372 = vmatpush.bf16.msrb.mxu2 %v12653_v47 }
 0x536   :  { %8345 = vmatpush.bf16.msrb.mxu0 %v12636_v10  ;;  %8386 = vmatpush.bf16.msrb.mxu3 %v12661_v29  ;;  %v6870_v10 = vadd.f32 %v13945_v39, %v13906_v18  ;;  %v12659_v29 = vld [vmem:[#allocation7 + $0x1e8] sm:$0xff]  ;;  %v12590_v39 = vld [vmem:[#allocation2 + $0x3c] sm:$0xf0] }
 0x537   :  { %8359 = vmatpush.bf16.msrb.mxu1 %v12644_v19 }
 0x538   :  { %v6899_v18 = vadd.f32 %v13947_v56, %v6870_v10 }
 0x539   :  { %8373 = vmatpush.bf16.msrb.mxu2 %v12652_v59  ;;  %v11321_v59 = vor.u32 %v12590_v39, %v11320_v50  ;;  %v11328_v50 = vld [vmem:[#allocation2 + $0x8] sm:$0xf] }
 0x53a   :  { %v13957_v6 = vpop.f32.mrf.mxu2  ;;  %v13961_v28 = vpop.f32.mrf.mxu0  ;;  %8346 = vmatpush.bf16.msrb.mxu0 %v12635_v55  ;;  %8387 = vmatpush.bf16.msrb.mxu3 %v12660_v48  ;;  %v12582_v55 = vld [vmem:[#allocation2 + $0x4] sm:$0xf] }
 0x53b   :  { %v13959_v20 = vpop.f32.mrf.mxu3  ;;  %v13963_v54 = vpop.f32.mrf.mxu1  ;;  %8360 = vmatpush.bf16.msrb.mxu1 %v12643_v53  ;;  %v11322_v53 = vld [vmem:[#allocation2 + $0x40] sm:$0xf0]  ;;  %8296 = vmatmul.bf16.vlgmr.msra.gmra.mxu0 %v11321_v59 }
 0x53c   :  { %v11325_v48 = vor.u32 %v12582_v55, %v11322_v53  ;;  %v12649_v55 = vld [vmem:[#allocation7 + $0x198] sm:$0xff] }
 0x53d   :  { %8374 = vmatpush.bf16.msrb.mxu2 %v12651_v11  ;;  %v12632_v11 = vld [vmem:[#allocation7 + $0x110] sm:$0xff]  ;;  %v12657_v53 = vld [vmem:[#allocation7 + $0x1d8] sm:$0xff] }
 0x53e   :  { %8347 = vmatpush.bf16.msrb.mxu0 %v12634_v41  ;;  %8388 = vmatpush.bf16.msrb.mxu3 %v12659_v29  ;;  %v12650_v41 = vld [vmem:[#allocation7 + $0x1a0] sm:$0xff]  ;;  %v12640_v29 = vld [vmem:[#allocation7 + $0x150] sm:$0xff] }
 0x53f   :  { %8361 = vmatpush.bf16.msrb.mxu1 %v12642_v25  ;;  %v12658_v25 = vld [vmem:[#allocation7 + $0x1e0] sm:$0xff] }
 0x540   :  { %8310 = vmatmul.bf16.vlgmr.msra.gmra.mxu1 %v11325_v48 }
 0x541   :  { %8375 = vmatpush.bf16.msrb.mxu2 %v12650_v41 }
 0x542   :  { %v13965_v31 = vpop.f32.mrf.mxu2  ;;  %v13969_v7 = vpop.f32.mrf.mxu0  ;;  %8389 = vmatpush.bf16.msrb.mxu3 %v12658_v25  ;;  %v12648_v25 = vld [vmem:[#allocation7 + $0x190] sm:$0xff] }
 0x543   :  { %v13967_v52 = vpop.f32.mrf.mxu3  ;;  %v13971_v13 = vpop.f32.mrf.mxu1  ;;  %8362 = vmatpush.bf16.msrb.mxu1 %v12641_v23  ;;  %v11330_v23 = vld [vmem:[#allocation2 + $0x48] sm:$0xf0] }
 0x545   :  { %8376 = vmatpush.bf16.msrb.mxu2 %v12649_v55 }
 0x546   :  { %8390 = vmatpush.bf16.msrb.mxu3 %v12657_v53  ;;  %v12647_v53 = vld [vmem:[#allocation7 + $0x188] sm:$0xff] }
 0x547   :  { %8363 = vmatpush.bf16.msrb.mxu1 %v12640_v29  ;;  %v12638_v29 = vld [vmem:[#allocation7 + $0x140] sm:$0xff] }
 0x549   :  { %8377 = vmatpush.bf16.msrb.mxu2 %v12648_v25  ;;  %v12685_v25 = vld [vmem:[#allocation7 + $0x2b8] sm:$0xff] }
 0x54a   :  { %v13973_v12 = vpop.f32.mrf.mxu2  ;;  %v13977_v45 = vpop.f32.mrf.mxu0 }
 0x54b   :  { %v13975_v24 = vpop.f32.mrf.mxu3  ;;  %v13979_v57 = vpop.f32.mrf.mxu1 }
 0x54d   :  { %8378 = vmatpush.bf16.msrb.mxu2 %v12647_v53 }
 0x552   :  { %v13981_v33 = vpop.f32.mrf.mxu2  ;;  %v13985_v22 = vpop.f32.mrf.mxu0 }
 0x553   :  { %v13983_v40 = vpop.f32.mrf.mxu3  ;;  %v13987_v58 = vpop.f32.mrf.mxu1 }
 0x55a   :  { %v13989_v38 = vpop.f32.mrf.mxu2  ;;  %v13993_v14 = vpop.f32.mrf.mxu0 }
 0x55b   :  { %v13991_v51 = vpop.f32.mrf.mxu3  ;;  %v13995_v0 = vpop.f32.mrf.mxu1 }
 0x562   :  { %v14002_v19 = vpop.f32.mrf.mxu2  ;;  %v14007_v8 = vpop.f32.mrf.mxu0 }
 0x563   :  { %v14004_v61 = vpop.f32.mrf.mxu3  ;;  %14172 = vst [vmem:[#allocation11_spill] sm:$0xff] %v14007_v8  ;;  %v14009_v47 = vpop.f32.mrf.mxu1  ;;  %v6872_v8 = vadd.f32 %v13953_v32, %v6843_v27  ;;  %v12583_v32 = vld [vmem:[#allocation2 + $0xc] sm:$0xf] }
 0x564   :  { %14171 = vst [vmem:[#allocation19_spill] sm:$0xff] %v14004_v61  ;;  %v12633_v61 = vld [vmem:[#allocation7 + $0x118] sm:$0xff]  ;;  %v11333_v27 = vor.u32 %v12583_v32, %v11330_v23  ;;  %v12655_v32 = vld [vmem:[#allocation7 + $0x1c8] sm:$0xff]  ;;  %v12646_v23 = vld [vmem:[#allocation7 + $0x180] sm:$0xff] }
 0x565   :  { %14173 = vst [vmem:[#allocation13_spill] sm:$0xff] %v14009_v47  ;;  %v6928_v47 = vadd.f32 %v13949_v36, %v6899_v18  ;;  %8348 = vmatpush.bf16.msrb.mxu0 %v12633_v61  ;;  %v12591_v18 = vld [vmem:[#allocation2 + $0x44] sm:$0xf0]  ;;  %v6761_v61 = vadd.f32 %v13913_v60, %v13876_v3  ;;  %v6901_v59 = vadd.f32 %v13955_v15, %v6872_v8 }
 0x566   :  { %v11329_v39 = vor.u32 %v12591_v18, %v11328_v50  ;;  %8338 = vmatmul.bf16.vlgmr.msra.gmra.mxu3 %v11333_v27  ;;  %v12656_v50 = vld [vmem:[#allocation7 + $0x1d0] sm:$0xff]  ;;  %v6875_v3 = vadd.f32 %v13961_v28, %v13917_v34  ;;  %v12654_v27 = vld [vmem:[#allocation7 + $0x1c0] sm:$0xff]  ;;  %8379 = vmatpush.bf16.msrb.mxu2 %v12646_v23 }
 0x567   :  { %v6957_v35 = vadd.f32 %v13951_v63, %v6928_v47  ;;  %v12631_v63 = vld [vmem:[#allocation7 + $0x108] sm:$0xff]  ;;  %v6930_v41 = vadd.f32 %v13957_v6, %v6901_v59  ;;  %v6790_v18 = vadd.f32 %v13915_v43, %v6761_v61  ;;  %8391 = vmatpush.bf16.msrb.mxu3 %v12656_v50  ;;  %v12669_v43 = vld [vmem:[#allocation7 + $0x238] sm:$0xff] }
 0x568   :  { %8324 = vmatmul.bf16.vlgmr.msra.gmra.mxu2 %v11329_v39  ;;  %v12639_v47 = vld [vmem:[#allocation7 + $0x148] sm:$0xff]  ;;  %v6904_v34 = vadd.f32 %v13963_v54, %v6875_v3  ;;  %v12677_v61 = vld [vmem:[#allocation7 + $0x278] sm:$0xff] }
 0x569   :  { %8349 = vmatpush.bf16.msrb.mxu0 %v12632_v11  ;;  %8364 = vmatpush.bf16.msrb.mxu1 %v12639_v47  ;;  %v12630_v11 = vld [vmem:[#allocation7 + $0x100] sm:$0xff]  ;;  %v6959_v6 = vadd.f32 %v13959_v20, %v6930_v41  ;;  %v12676_v41 = vld [vmem:[#allocation7 + $0x270] sm:$0xff]  ;;  %v12693_v50 = vld [vmem:[#allocation7 + $0x2f8] sm:$0xff] }
 0x56a   :  { %v14015_v56 = vpop.f32.mrf.mxu2  ;;  %v6985_v36 = vpop.f32.mrf.mxu0  ;;  %v6933_v20 = vadd.f32 %v13965_v31, %v6904_v34  ;;  %8428 = vmatpush.bf16.msra.mxu2 %v12685_v25  ;;  %v12666_v34 = vld [vmem:[#allocation7 + $0x220] sm:$0xff]  ;;  %v12673_v25 = vld [vmem:[#allocation7 + $0x258] sm:$0xff] }
 0x56b   :  { %v14017_v10 = vpop.f32.mrf.mxu3  ;;  %v7014_v5 = vpop.f32.mrf.mxu1  ;;  %v6986_v48 = vadd.f32 %v6985_v36, %v6957_v35  ;;  %v6819_v35 = vadd.f32 %v13919_v16, %v6790_v18  ;;  %8392 = vmatpush.bf16.msrb.mxu3 %v12655_v32 }
 0x56d   :  { %v7015_v60 = vadd.f32 %v7014_v5, %v6986_v48  ;;  %8350 = vmatpush.bf16.msrb.mxu0 %v12631_v63  ;;  %8365 = vmatpush.bf16.msrb.mxu1 %v12638_v29  ;;  %v6848_v16 = vadd.f32 %v13921_v17, %v6819_v35  ;;  %v12668_v48 = vld [vmem:[#allocation7 + $0x230] sm:$0xff]  ;;  %v6962_v17 = vadd.f32 %v13967_v52, %v6933_v20 }
 0x56e   :  { %v12692_v52 = vld [vmem:[#allocation7 + $0x2f0] sm:$0xff] }
 0x56f   :  { %v6877_v63 = vadd.f32 %v13969_v7, %v6848_v16  ;;  %8393 = vmatpush.bf16.msrb.mxu3 %v12654_v27  ;;  %v6766_v7 = vadd.f32 %v13924_v9, %v13882_v49  ;;  %v6880_v9 = vadd.f32 %v13977_v45, %v13928_v30  ;;  %v12691_v16 = vld [vmem:[#allocation7 + $0x2e8] sm:$0xff] }
 0x571   :  { %8351 = vmatpush.bf16.msrb.mxu0 %v12630_v11  ;;  %8414 = vmatpush.bf16.msra.mxu1 %v12677_v61  ;;  %v12667_v11 = vld [vmem:[#allocation7 + $0x228] sm:$0xff]  ;;  %v6906_v29 = vadd.f32 %v13971_v13, %v6877_v63  ;;  %v6795_v49 = vadd.f32 %v13926_v37, %v6766_v7  ;;  %v6909_v30 = vadd.f32 %v13979_v57, %v6880_v9  ;;  %v12689_v7 = vld [vmem:[#allocation7 + $0x2d8] sm:$0xff]  ;;  %v12688_v9 = vld [vmem:[#allocation7 + $0x2d0] sm:$0xff] }
 0x572   :  { %v7043_v15 = vpop.f32.mrf.mxu2  ;;  %v6987_v39 = vpop.f32.mrf.mxu0  ;;  %v12683_v61 = vld [vmem:[#allocation7 + $0x2a8] sm:$0xff] }
 0x573   :  { %v7072_v8 = vpop.f32.mrf.mxu3  ;;  %v7044_v36 = vadd.f32 %v7043_v15, %v7015_v60  ;;  %v7016_v55 = vpop.f32.mrf.mxu1  ;;  %v6988_v5 = vadd.f32 %v6987_v39, %v6959_v6  ;;  %8442 = vmatpush.bf16.msra.mxu3 %v12693_v50  ;;  %v12675_v39 = vld [vmem:[#allocation7 + $0x268] sm:$0xff]  ;;  %v12682_v50 = vld [vmem:[#allocation7 + $0x2a0] sm:$0xff] }
 0x575   :  { %v7073_v28 = vadd.f32 %v7072_v8, %v7044_v36  ;;  %8400 = vmatpush.bf16.msra.mxu0 %v12669_v43  ;;  %v7017_v47 = vadd.f32 %v7016_v55, %v6988_v5  ;;  %8415 = vmatpush.bf16.msra.mxu1 %v12676_v41  ;;  %v12684_v55 = vld [vmem:[#allocation7 + $0x2b0] sm:$0xff]  ;;  %v6935_v43 = vadd.f32 %v13973_v12, %v6906_v29  ;;  %v12674_v5 = vld [vmem:[#allocation7 + $0x260] sm:$0xff] }
 0x576   :  { %8429 = vmatpush.bf16.msra.mxu2 %v12684_v55  ;;  %v12663_v55 = vld [vmem:[#allocation7 + $0x208] sm:$0xff] }
 0x577   :  { %v7092_v59 = vmul.f32 0.2, %v7073_v28  ;;  %8443 = vmatpush.bf16.msra.mxu3 %v12692_v52 }
 0x579   :  { %v7100_v54 = vmax.f32 %v7073_v28, %v7092_v59  ;;  %8401 = vmatpush.bf16.msra.mxu0 %v12668_v48  ;;  %8416 = vmatpush.bf16.msra.mxu1 %v12675_v39  ;;  %v6824_v59 = vadd.f32 %v13930_v42, %v6795_v49  ;;  %v6964_v48 = vadd.f32 %v13975_v24, %v6935_v43  ;;  %v12680_v49 = vld [vmem:[#allocation7 + $0x290] sm:$0xff] }
 0x57a   :  { %v7045_v18 = vpop.f32.mrf.mxu2  ;;  %v6990_v15 = vpop.f32.mrf.mxu0  ;;  %8430 = vmatpush.bf16.msra.mxu2 %v12683_v61  ;;  %v6938_v24 = vadd.f32 %v13981_v33, %v6909_v30 }
 0x57b   :  { %v7074_v3 = vpop.f32.mrf.mxu3  ;;  %v7108_v31 = vpack.c.bf16 %v7100_v54, %v7100_v54  ;;  %v7046_v60 = vadd.f32 %v7045_v18, %v7017_v47  ;;  %v7019_v8 = vpop.f32.mrf.mxu1  ;;  %v6991_v36 = vadd.f32 %v6990_v15, %v6962_v17  ;;  %v12665_v54 = vld [vmem:[#allocation7 + $0x218] sm:$0xff]  ;;  %8444 = vmatpush.bf16.msra.mxu3 %v12691_v16  ;;  %v12690_v18 = vld [vmem:[#allocation7 + $0x2e0] sm:$0xff]  ;;  %v6853_v42 = vadd.f32 %v13932_v21, %v6824_v59 }
 0x57c   :  { %v6967_v21 = vadd.f32 %v13983_v40, %v6938_v24 }
 0x57d   :  { %v7118_v35 = vunpack.c.l.b16 %v7108_v31  ;;  %v7075_v6 = vadd.f32 %v7074_v3, %v7046_v60  ;;  %8402 = vmatpush.bf16.msra.mxu0 %v12667_v11  ;;  %v7020_v28 = vadd.f32 %v7019_v8, %v6991_v36  ;;  %8417 = vmatpush.bf16.msra.mxu1 %v12674_v5  ;;  %v12664_v31 = vld [vmem:[#allocation7 + $0x210] sm:$0xff]  ;;  %v6882_v57 = vadd.f32 %v13985_v22, %v6853_v42  ;;  %v12681_v11 = vld [vmem:[#allocation7 + $0x298] sm:$0xff] }
 0x57e   :  { %8431 = vmatpush.bf16.msra.mxu2 %v12682_v50  ;;  %v12672_v8 = vld [vmem:[#allocation7 + $0x250] sm:$0xff]  ;;  %v6771_v22 = vadd.f32 %v13935_v44, %v13888_v4  ;;  %v12662_v4 = vld [vmem:[#allocation7 + $0x200] sm:$0xff] }
 0x57f   :  { %v7132_v53 = vpack.c.b16 %v7118_v35, %v12992_v1  ;;  %v7093_v32 = vmul.f32 0.2, %v7075_v6  ;;  %8445 = vmatpush.bf16.msra.mxu3 %v12690_v18  ;;  %v6911_v52 = vadd.f32 %v13987_v58, %v6882_v57  ;;  %v6885_v58 = vadd.f32 %v13993_v14, %v13939_v46  ;;  %v12700_v50 = vld [vmem:[#allocation7 + $0x330] sm:$0xff] }
 0x580   :  { %v6800_v44 = vadd.f32 %v13937_v26, %v6771_v22 }
 0x581   :  { %7150 = vst [vmem:[#allocation2 + $0x10] sm:$0xff] %v7132_v53  ;;  %v7101_v13 = vmax.f32 %v7075_v6, %v7093_v32  ;;  %8403 = vmatpush.bf16.msra.mxu0 %v12666_v34  ;;  %8418 = vmatpush.bf16.msra.mxu1 %v12673_v25  ;;  %v12671_v34 = vld [vmem:[#allocation7 + $0x248] sm:$0xff]  ;;  %v6914_v18 = vadd.f32 %v13995_v0, %v6885_v58 }
 0x582   :  { %v7048_v20 = vpop.f32.mrf.mxu2  ;;  %v6992_v63 = vpop.f32.mrf.mxu0  ;;  %8432 = vmatpush.bf16.msra.mxu2 %v12681_v11  ;;  %v12699_v11 = vld [vmem:[#allocation7 + $0x328] sm:$0xff] }
 0x583   :  { %v7077_v12 = vpop.f32.mrf.mxu3  ;;  %v7109_v23 = vpack.c.bf16 %v7101_v13, %v7101_v13  ;;  %v7049_v27 = vadd.f32 %v7048_v20, %v7020_v28  ;;  %v7021_v37 = vpop.f32.mrf.mxu1  ;;  %v6993_v41 = vadd.f32 %v6992_v63, %v6964_v48  ;;  %8446 = vmatpush.bf16.msra.mxu3 %v12689_v7  ;;  %v6940_v13 = vadd.f32 %v13989_v38, %v6911_v52  ;;  %v12679_v63 = vld [vmem:[#allocation7 + $0x288] sm:$0xff]  ;;  %v12698_v52 = vld [vmem:[#allocation7 + $0x320] sm:$0xff] }
 0x584   :  { %v14175_v7 = vld [vmem:[#allocation11_spill] sm:$0xff] }
 0x585   :  { %v7119_v45 = vunpack.c.l.b16 %v7109_v23  ;;  %v7078_v47 = vadd.f32 %v7077_v12, %v7049_v27  ;;  %8404 = vmatpush.bf16.msra.mxu0 %v12665_v54  ;;  %v7022_v15 = vadd.f32 %v7021_v37, %v6993_v41  ;;  %8419 = vmatpush.bf16.msra.mxu1 %v12672_v8  ;;  %v12701_v12 = vld [vmem:[#allocation7 + $0x338] sm:$0xff]  ;;  %v12670_v27 = vld [vmem:[#allocation7 + $0x240] sm:$0xff]  ;;  %v12687_v37 = vld [vmem:[#allocation7 + $0x2c8] sm:$0xff]  ;;  %v6829_v54 = vadd.f32 %v13941_v62, %v6800_v44 }
 0x586   :  { %8433 = vmatpush.bf16.msra.mxu2 %v12680_v49  ;;  %v6969_v46 = vadd.f32 %v13991_v51, %v6940_v13  ;;  %v12708_v51 = vld [vmem:[#allocation7 + $0x370] sm:$0xff]  ;;  %v12725_v44 = vld [vmem:[#allocation7 + $0x3f8] sm:$0xff] }
 0x587   :  { %v7136_v3 = vpack.c.b16 %v7119_v45, %v12994_v2  ;;  %v7094_v17 = vmul.f32 0.2, %v7078_v47  ;;  %8447 = vmatpush.bf16.msra.mxu3 %v12688_v9  ;;  %v12709_v45 = vld [vmem:[#allocation7 + $0x378] sm:$0xff] }
 0x588   :  { %v11336_v40 = vld [vmem:[#allocation2 + $0x10] sm:$0xf]  ;;  %v12584_v61 = vld [vmem:[#allocation2 + $0x14] sm:$0xf] }
 0x589   :  { %7158 = vst [vmem:[#allocation2 + $0x50] sm:$0xff] %v7136_v3  ;;  %v7102_v60 = vmax.f32 %v7078_v47, %v7094_v17  ;;  %8405 = vmatpush.bf16.msra.mxu0 %v12664_v31  ;;  %8420 = vmatpush.bf16.msra.mxu1 %v12671_v34  ;;  %v12678_v3 = vld [vmem:[#allocation7 + $0x280] sm:$0xff] }
 0x58a   :  { %v7050_v29 = vpop.f32.mrf.mxu2  ;;  %v6995_v36 = vpop.f32.mrf.mxu0  ;;  %8434 = vmatpush.bf16.msra.mxu2 %v12679_v63  ;;  %v12686_v17 = vld [vmem:[#allocation7 + $0x2c0] sm:$0xff] }
 0x58b   :  { %v7079_v35 = vpop.f32.mrf.mxu3  ;;  %v7110_v33 = vpack.c.bf16 %v7102_v60, %v7102_v60  ;;  %v7051_v6 = vadd.f32 %v7050_v29, %v7022_v15  ;;  %v7024_v39 = vpop.f32.mrf.mxu1  ;;  %v6996_v32 = vadd.f32 %v6995_v36, %v6967_v21  ;;  %8448 = vmatpush.bf16.msra.mxu3 %v12687_v37  ;;  %v14174_v31 = vld [vmem:[#allocation18_spill] sm:$0xff]  ;;  %v6943_v60 = vadd.f32 %v14002_v19, %v6914_v18  ;;  %v14176_v36 = vld [vmem:[#allocation19_spill] sm:$0xff] }
 0x58c   :  { %v6858_v57 = vadd.f32 %v14174_v31, %v6829_v54 }
 0x58d   :  { %v7122_v43 = vunpack.c.l.b16 %v7110_v33  ;;  %v7080_v53 = vadd.f32 %v7079_v35, %v7051_v6  ;;  %8406 = vmatpush.bf16.msra.mxu0 %v12663_v55  ;;  %v7025_v48 = vadd.f32 %v7024_v39, %v6996_v32  ;;  %8421 = vmatpush.bf16.msra.mxu1 %v12670_v27  ;;  %v12707_v6 = vld [vmem:[#allocation7 + $0x368] sm:$0xff]  ;;  %v6972_v39 = vadd.f32 %v14176_v36, %v6943_v60 }
 0x58e   :  { %v6887_v0 = vadd.f32 %v14175_v7, %v6858_v57  ;;  %8435 = vmatpush.bf16.msra.mxu2 %v12678_v3  ;;  %v12703_v57 = vld [vmem:[#allocation7 + $0x348] sm:$0xff]  ;;  %v12722_v7 = vld [vmem:[#allocation7 + $0x3e0] sm:$0xff] }
 0x58f   :  { %v7133_v28 = vpack.c.b16 %v12992_v1, %v7122_v43  ;;  %v7095_v5 = vmul.f32 0.2, %v7080_v53  ;;  %8449 = vmatpush.bf16.msra.mxu3 %v12686_v17  ;;  %v14177_v43 = vld [vmem:[#allocation13_spill] sm:$0xff] }
 0x590   :  { %v12592_v16 = vld [vmem:[#allocation2 + $0x4c] sm:$0xf0]  ;;  %v11338_v20 = vld [vmem:[#allocation2 + $0x50] sm:$0xf0] }
 0x591   :  { %7151 = vst [vmem:[#allocation2 + $0x18] sm:$0xff] %v7133_v28  ;;  %v7103_v59 = vmax.f32 %v7080_v53, %v7095_v5  ;;  %v11337_v38 = vor.u32 %v12592_v16, %v11336_v40  ;;  %v11341_v23 = vor.u32 %v12584_v61, %v11338_v20  ;;  %8407 = vmatpush.bf16.msra.mxu0 %v12662_v4  ;;  %v12706_v40 = vld [vmem:[#allocation7 + $0x360] sm:$0xff]  ;;  %v12717_v4 = vld [vmem:[#allocation7 + $0x3b8] sm:$0xff] }
 0x592   :  { %v7053_v30 = vpop.f32.mrf.mxu2  ;;  %v6997_v41 = vpop.f32.mrf.mxu0  ;;  %v6916_v53 = vadd.f32 %v14177_v43, %v6887_v0 }
 0x593   :  { %v7082_v26 = vpop.f32.mrf.mxu3  ;;  %v7111_v14 = vpack.c.bf16 %v7103_v59, %v7103_v59  ;;  %v7054_v47 = vadd.f32 %v7053_v30, %v7025_v48  ;;  %8352 = vmatmul.bf16.vlgmr.msrb.gmra.mxu0 %v11337_v38  ;;  %8366 = vmatmul.bf16.vlgmr.msrb.gmra.mxu1 %v11341_v23  ;;  %v7026_v25 = vpop.f32.mrf.mxu1  ;;  %v6998_v62 = vadd.f32 %v6997_v41, %v6969_v46  ;;  %v12697_v23 = vld [vmem:[#allocation7 + $0x318] sm:$0xff]  ;;  %v12724_v46 = vld [vmem:[#allocation7 + $0x3f0] sm:$0xff] }
 0x594   :  { %8470 = vmatpush.bf16.msrb.mxu1 %v12709_v45  ;;  %v6945_v13 = vadd.f32 %v14015_v56, %v6916_v53  ;;  %v12705_v56 = vld [vmem:[#allocation7 + $0x358] sm:$0xff]  ;;  %v12716_v45 = vld [vmem:[#allocation7 + $0x3b0] sm:$0xff] }
 0x595   :  { %8456 = vmatpush.bf16.msrb.mxu0 %v12701_v12  ;;  %v7123_v42 = vunpack.c.l.b16 %v7111_v14  ;;  %v7083_v24 = vadd.f32 %v7082_v26, %v7054_v47  ;;  %v7027_v35 = vadd.f32 %v7026_v25, %v6998_v62  ;;  %v12696_v25 = vld [vmem:[#allocation7 + $0x310] sm:$0xff]  ;;  %v12723_v62 = vld [vmem:[#allocation7 + $0x3e8] sm:$0xff] }
 0x596   :  { %v6974_v37 = vadd.f32 %v14017_v10, %v6945_v13  ;;  %v12711_v13 = vld [vmem:[#allocation7 + $0x388] sm:$0xff] }
 0x597   :  { %v7137_v15 = vpack.c.b16 %v12994_v2, %v7123_v42  ;;  %v7096_v8 = vmul.f32 0.2, %v7083_v24 }
 0x598   :  { %8471 = vmatpush.bf16.msrb.mxu1 %v12708_v51  ;;  %v11344_v61 = vld [vmem:[#allocation2 + $0x18] sm:$0xf]  ;;  %v12585_v16 = vld [vmem:[#allocation2 + $0x1c] sm:$0xf]  ;;  %v12695_v51 = vld [vmem:[#allocation7 + $0x308] sm:$0xff] }
 0x599   :  { %8457 = vmatpush.bf16.msrb.mxu0 %v12700_v50  ;;  %7159 = vst [vmem:[#allocation2 + $0x58] sm:$0xff] %v7137_v15  ;;  %v7104_v29 = vmax.f32 %v7083_v24, %v7096_v8  ;;  %v12704_v50 = vld [vmem:[#allocation7 + $0x350] sm:$0xff]  ;;  %v12715_v24 = vld [vmem:[#allocation7 + $0x3a8] sm:$0xff] }
 0x59a   :  { %v7055_v21 = vpop.f32.mrf.mxu2  ;;  %v7000_v22 = vpop.f32.mrf.mxu0 }
 0x59b   :  { %v7084_v33 = vpop.f32.mrf.mxu3  ;;  %v7112_v55 = vpack.c.bf16 %v7104_v29, %v7104_v29  ;;  %v7056_v19 = vadd.f32 %v7055_v21, %v7027_v35  ;;  %v7001_v49 = vadd.f32 %v7000_v22, %v6972_v39  ;;  %v7029_v9 = vpop.f32.mrf.mxu1  ;;  %v12694_v35 = vld [vmem:[#allocation7 + $0x300] sm:$0xff]  ;;  %v12713_v39 = vld [vmem:[#allocation7 + $0x398] sm:$0xff] }
 0x59c   :  { %8472 = vmatpush.bf16.msrb.mxu1 %v12707_v6  ;;  %v12702_v21 = vld [vmem:[#allocation7 + $0x340] sm:$0xff] }
 0x59d   :  { %8458 = vmatpush.bf16.msrb.mxu0 %v12699_v11  ;;  %v7126_v32 = vunpack.c.l.b16 %v7112_v55  ;;  %v7085_v34 = vadd.f32 %v7084_v33, %v7056_v19  ;;  %v7030_v59 = vadd.f32 %v7029_v9, %v7001_v49  ;;  %v12714_v11 = vld [vmem:[#allocation7 + $0x3a0] sm:$0xff]  ;;  %v12721_v55 = vld [vmem:[#allocation7 + $0x3d8] sm:$0xff]  ;;  %v12720_v49 = vld [vmem:[#allocation7 + $0x3d0] sm:$0xff] }
 0x59f   :  { %v7134_v28 = vpack.c.b16 %v7126_v32, %v12992_v1  ;;  %v7097_v5 = vmul.f32 0.2, %v7085_v34 }
 0x5a0   :  { %v12593_v58 = vld [vmem:[#allocation2 + $0x54] sm:$0xf0]  ;;  %v11346_v20 = vld [vmem:[#allocation2 + $0x58] sm:$0xf0]  ;;  %8473 = vmatpush.bf16.msrb.mxu1 %v12706_v40 }
 0x5a1   :  { %8459 = vmatpush.bf16.msrb.mxu0 %v12698_v52  ;;  %7152 = vst [vmem:[#allocation2 + $0x20] sm:$0xff] %v7134_v28  ;;  %v7105_v12 = vmax.f32 %v7085_v34, %v7097_v5  ;;  %v11345_v48 = vor.u32 %v12593_v58, %v11344_v61  ;;  %v11349_v38 = vor.u32 %v12585_v16, %v11346_v20  ;;  %v12719_v28 = vld [vmem:[#allocation7 + $0x3c8] sm:$0xff]  ;;  %v11368_v5 = vld [vmem:[#allocation2 + $0x30] sm:$0xf]  ;;  %v12710_v61 = vld [vmem:[#allocation7 + $0x380] sm:$0xff] }
 0x5a2   :  { %v7058_v27 = vpop.f32.mrf.mxu2  ;;  %v7002_v26 = vpop.f32.mrf.mxu0  ;;  %v12588_v58 = vld [vmem:[#allocation2 + $0x34] sm:$0xf] }
 0x5a3   :  { %v7087_v63 = vpop.f32.mrf.mxu3  ;;  %v7113_v54 = vpack.c.bf16 %v7105_v12, %v7105_v12  ;;  %v7059_v30 = vadd.f32 %v7058_v27, %v7030_v59  ;;  %8380 = vmatmul.bf16.vlgmr.msrb.gmra.mxu2 %v11345_v48  ;;  %8394 = vmatmul.bf16.vlgmr.msrb.gmra.mxu3 %v11349_v38  ;;  %v7003_v41 = vadd.f32 %v7002_v26, %v6974_v37  ;;  %v7031_v10 = vpop.f32.mrf.mxu1  ;;  %v11370_v16 = vld [vmem:[#allocation2 + $0x70] sm:$0xf0]  ;;  %v12589_v37 = vld [vmem:[#allocation2 + $0x3c] sm:$0xf] }
 0x5a4   :  { %8484 = vmatpush.bf16.msrb.mxu2 %v12717_v4  ;;  %8498 = vmatpush.bf16.msrb.mxu3 %v12725_v44  ;;  %v12718_v4 = vld [vmem:[#allocation7 + $0x3c0] sm:$0xff]  ;;  %v12596_v44 = vld [vmem:[#allocation2 + $0x6c] sm:$0xf0] }
 0x5a5   :  { %v7127_v14 = vunpack.c.l.b16 %v7113_v54  ;;  %v7088_v47 = vadd.f32 %v7087_v63, %v7059_v30  ;;  %8460 = vmatpush.bf16.msrb.mxu0 %v12697_v23  ;;  %8474 = vmatpush.bf16.msrb.mxu1 %v12705_v56  ;;  %v7032_v17 = vadd.f32 %v7031_v10, %v7003_v41  ;;  %v11369_v38 = vor.u32 %v12596_v44, %v11368_v5  ;;  %v11376_v63 = vld [vmem:[#allocation2 + $0x38] sm:$0xf]  ;;  %v11378_v54 = vld [vmem:[#allocation2 + $0x78] sm:$0xf0] }
 0x5a6   :  { %v11373_v23 = vor.u32 %v12588_v58, %v11370_v16  ;;  %v12597_v56 = vld [vmem:[#allocation2 + $0x74] sm:$0xf0]  ;;  %v11381_v26 = vor.u32 %v12589_v37, %v11378_v54 }
 0x5a7   :  { %v7138_v18 = vpack.c.b16 %v7127_v14, %v12994_v2  ;;  %v7098_v42 = vmul.f32 0.2, %v7088_v47  ;;  %v11377_v30 = vor.u32 %v12597_v56, %v11376_v63  ;;  %v12741_v16 = vld [vmem:[%s14145_s9 + $0x38] sm:$0xff]  ;;  %v12739_v63 = vld [vmem:[%s14145_s9 + $0x28] sm:$0xff] }
 0x5a8   :  { %8485 = vmatpush.bf16.msrb.mxu2 %v12716_v45  ;;  %8499 = vmatpush.bf16.msrb.mxu3 %v12724_v46  ;;  %v11352_v36 = vld [vmem:[#allocation2 + $0x20] sm:$0xf]  ;;  %v12586_v22 = vld [vmem:[#allocation2 + $0x24] sm:$0xf] }
 0x5a9   :  { %7160 = vst [vmem:[#allocation2 + $0x60] sm:$0xff] %v7138_v18  ;;  %v7106_v3 = vmax.f32 %v7088_v47, %v7098_v42  ;;  %8461 = vmatpush.bf16.msrb.mxu0 %v12696_v25  ;;  %8475 = vmatpush.bf16.msrb.mxu1 %v12704_v50  ;;  %v12829_v50 = vld [vmem:[%s14142_s6] ss:$0 sm:$0xff] }
 0x5aa   :  { %v7060_v31 = vpop.f32.mrf.mxu2 }
 0x5ab   :  { %v7114_v60 = vpack.c.bf16 %v7106_v3, %v7106_v3  ;;  %v7061_v15 = vadd.f32 %v7060_v31, %v7032_v17  ;;  %v7089_v8 = vpop.f32.mrf.mxu3  ;;  %v12732_v31 = vld [vmem:[%s14143_s7 + $0x30] sm:$0xff] }
 0x5ac   :  { %8486 = vmatpush.bf16.msrb.mxu2 %v12715_v24  ;;  %8500 = vmatpush.bf16.msrb.mxu3 %v12723_v62  ;;  %v12733_v24 = vld [vmem:[%s14143_s7 + $0x38] sm:$0xff] }
 0x5ad   :  { %v7130_v0 = vunpack.c.l.b16 %v7114_v60  ;;  %v7090_v29 = vadd.f32 %v7089_v8, %v7061_v15  ;;  %8462 = vmatpush.bf16.msrb.mxu0 %v12695_v51  ;;  %8476 = vmatpush.bf16.msrb.mxu1 %v12703_v57 }
 0x5af   :  { %v7135_v33 = vpack.c.b16 %v12992_v1, %v7130_v0  ;;  %v7099_v6 = vmul.f32 0.2, %v7090_v29  ;;  %v12712_v1 = vld [vmem:[#allocation7 + $0x390] sm:$0xff] }
 0x5b0   :  { %v12594_v19 = vld [vmem:[#allocation2 + $0x5c] sm:$0xf0]  ;;  %v11354_v52 = vld [vmem:[#allocation2 + $0x60] sm:$0xf0]  ;;  %8487 = vmatpush.bf16.msrb.mxu2 %v12714_v11  ;;  %8501 = vmatpush.bf16.msrb.mxu3 %v12722_v7  ;;  %v12731_v11 = vld [vmem:[%s14143_s7 + $0x28] sm:$0xff] }
 0x5b1   :  { %7153 = vst [vmem:[#allocation2 + $0x28] sm:$0xff] %v7135_v33  ;;  %v7107_v43 = vmax.f32 %v7090_v29, %v7099_v6  ;;  %v11353_v53 = vor.u32 %v12594_v19, %v11352_v36  ;;  %v11357_v32 = vor.u32 %v12586_v22, %v11354_v52  ;;  %8463 = vmatpush.bf16.msrb.mxu0 %v12694_v35 }
 0x5b2   :  { %8477 = vmatpush.bf16.msrb.mxu1 %v12702_v21  ;;  %v12730_v21 = vld [vmem:[%s14143_s7 + $0x20] sm:$0xff] }
 0x5b3   :  { %v7115_v34 = vpack.c.bf16 %v7107_v43, %v7107_v43  ;;  %8408 = vmatmul.bf16.vlgmr.msra.gmra.mxu0 %v11353_v53  ;;  %8422 = vmatmul.bf16.vlgmr.msra.gmra.mxu1 %v11357_v32  ;;  %v12728_v32 = vld [vmem:[%s14143_s7 + $0x10] sm:$0xff] }
 0x5b4   :  { %8488 = vmatpush.bf16.msrb.mxu2 %v12713_v39  ;;  %8502 = vmatpush.bf16.msrb.mxu3 %v12721_v55  ;;  %v12729_v39 = vld [vmem:[%s14143_s7 + $0x18] sm:$0xff] }
 0x5b5   :  { %v7131_v9 = vunpack.c.l.b16 %v7115_v34  ;;  %8585 = vmatpush.bf16.msra.mxu0 %v12733_v24 }
 0x5b6   :  { %8672 = vmatpush.bf16.msra.mxu1 %v12741_v16 }
 0x5b7   :  { %v7139_v40 = vpack.c.b16 %v12994_v2, %v7131_v9  ;;  %v12727_v9 = vld [vmem:[%s14143_s7 + $0x8] sm:$0xff] }
 0x5b8   :  { %8489 = vmatpush.bf16.msrb.mxu2 %v12712_v1  ;;  %8503 = vmatpush.bf16.msrb.mxu3 %v12720_v49  ;;  %v11360_v20 = vld [vmem:[#allocation2 + $0x28] sm:$0xf]  ;;  %v12587_v59 = vld [vmem:[#allocation2 + $0x2c] sm:$0xf]  ;;  %v8297_v45 = vpop.f32.mrf.mxu0 }
 0x5b9   :  { %7161 = vst [vmem:[#allocation2 + $0x68] sm:$0xff] %v7139_v40  ;;  %v8298_v42 = vadd.f32 %v12829_v50, %v8297_v45  ;;  %8586 = vmatpush.bf16.msra.mxu0 %v12732_v31 }
 0x5bc   :  { %8490 = vmatpush.bf16.msrb.mxu2 %v12711_v13  ;;  %8504 = vmatpush.bf16.msrb.mxu3 %v12719_v28 }
 0x5bd   :  { %v8311_v46 = vpop.f32.mrf.mxu1  ;;  %8587 = vmatpush.bf16.msra.mxu0 %v12731_v11  ;;  %v12735_v11 = vld [vmem:[%s14145_s9 + $0x8] sm:$0xff] }
 0x5be   :  { %v8312_v17 = vadd.f32 %v8311_v46, %v8298_v42 }
 0x5c0   :  { %v12595_v12 = vld [vmem:[#allocation2 + $0x64] sm:$0xf0]  ;;  %v11362_v48 = vld [vmem:[#allocation2 + $0x68] sm:$0xf0]  ;;  %8491 = vmatpush.bf16.msrb.mxu2 %v12710_v61  ;;  %8505 = vmatpush.bf16.msrb.mxu3 %v12718_v4  ;;  %v8299_v14 = vpop.f32.mrf.mxu0  ;;  %v12726_v61 = vld [vmem:[%s14143_s7] sm:$0xff] }
 0x5c1   :  { %v11361_v2 = vor.u32 %v12595_v12, %v11360_v20  ;;  %v11365_v27 = vor.u32 %v12587_v59, %v11362_v48  ;;  %v8300_v51 = vadd.f32 %v12829_v50, %v8299_v14  ;;  %8588 = vmatpush.bf16.msra.mxu0 %v12730_v21  ;;  %v12740_v48 = vld [vmem:[%s14145_s9 + $0x30] sm:$0xff] }
 0x5c2   :  { %8673 = vmatpush.bf16.msra.mxu1 %v12740_v48 }
 0x5c3   :  { %8436 = vmatmul.bf16.vlgmr.msra.gmra.mxu2 %v11361_v2  ;;  %8450 = vmatmul.bf16.vlgmr.msra.gmra.mxu3 %v11365_v27 }
 0x5c4   :  { %8464 = vmatmul.bf16.vlgmr.msrb.gmra.mxu0 %v11369_v38  ;;  %8478 = vmatmul.bf16.vlgmr.msrb.gmra.mxu1 %v11373_v23 }
 0x5c5   :  { %v8313_v41 = vpop.f32.mrf.mxu1  ;;  %8589 = vmatpush.bf16.msra.mxu0 %v12729_v39 }
 0x5c6   :  { %v8314_v15 = vadd.f32 %v8313_v41, %v8300_v51  ;;  %8674 = vmatpush.bf16.msra.mxu1 %v12739_v63 }
 0x5c9   :  { %8590 = vmatpush.bf16.msra.mxu0 %v12728_v32 }
 0x5cd   :  { %8591 = vmatpush.bf16.msra.mxu0 %v12727_v9 }
 0x5d1   :  { %8592 = vmatpush.bf16.msra.mxu0 %v12726_v61 }
 0x5d3   :  { %8492 = vmatmul.bf16.vlgmr.msrb.gmra.mxu2 %v11377_v30  ;;  %8506 = vmatmul.bf16.vlgmr.msrb.gmra.mxu3 %v11381_v26  ;;  %v12738_v30 = vld [vmem:[%s14145_s9 + $0x20] sm:$0xff] }
 0x5d4   :  { %8675 = vmatpush.bf16.msra.mxu1 %v12738_v30 }
 0x5e9   :  { %v8339_v25 = vpop.f32.mrf.mxu3 }
 0x5eb   :  { %v8325_v47 = vpop.f32.mrf.mxu2 }
 0x5ec   :  { %v8326_v57 = vadd.f32 %v8325_v47, %v8312_v17 }
 0x5ee   :  { %v8340_v0 = vadd.f32 %v8339_v25, %v8326_v57 }
 0x5f1   :  { %v8341_v3 = vpop.f32.mrf.mxu3 }
 0x5f3   :  { %v8327_v10 = vpop.f32.mrf.mxu2 }
 0x5f4   :  { %v8328_v35 = vadd.f32 %v8327_v10, %v8314_v15  ;;  %v12737_v15 = vld [vmem:[%s14145_s9 + $0x18] sm:$0xff] }
 0x5f5   :  { %8676 = vmatpush.bf16.msra.mxu1 %v12737_v15 }
 0x5f6   :  { %v8342_v36 = vadd.f32 %v8341_v3, %v8328_v35 }
 0x610   :  { %v8353_v18 = vpop.f32.mrf.mxu0  ;;  %v8367_v62 = vpop.f32.mrf.mxu1 }
 0x611   :  { %v8354_v33 = vadd.f32 %v8353_v18, %v8340_v0 }
 0x613   :  { %v8368_v55 = vadd.f32 %v8367_v62, %v8354_v33 }
 0x618   :  { %v8355_v60 = vpop.f32.mrf.mxu0  ;;  %v8369_v29 = vpop.f32.mrf.mxu1 }
 0x619   :  { %v8356_v43 = vadd.f32 %v8355_v60, %v8342_v36 }
 0x61b   :  { %v8370_v34 = vadd.f32 %v8369_v29, %v8356_v43  ;;  %v12830_v29 = vld [vmem:[%s14144_s8] ss:$0 sm:$0xff] }
 0x626   :  { %v8381_v8 = vpop.f32.mrf.mxu2  ;;  %v8395_v7 = vpop.f32.mrf.mxu3 }
 0x627   :  { %v8382_v53 = vadd.f32 %v8381_v8, %v8368_v55  ;;  %v12736_v8 = vld [vmem:[%s14145_s9 + $0x10] sm:$0xff] }
 0x628   :  { %8677 = vmatpush.bf16.msra.mxu1 %v12736_v8 }
 0x629   :  { %v8396_v1 = vadd.f32 %v8395_v7, %v8382_v53  ;;  %v12734_v7 = vld [vmem:[%s14145_s9] sm:$0xff] }
 0x62c   :  { %8678 = vmatpush.bf16.msra.mxu1 %v12735_v11 }
 0x62e   :  { %v8383_v19 = vpop.f32.mrf.mxu2  ;;  %v8397_v22 = vpop.f32.mrf.mxu3 }
 0x62f   :  { %v8384_v40 = vadd.f32 %v8383_v19, %v8370_v34 }
 0x630   :  { %v8409_v6 = vpop.f32.mrf.mxu0  ;;  %v8423_v52 = vpop.f32.mrf.mxu1  ;;  %8679 = vmatpush.bf16.msra.mxu1 %v12734_v7 }
 0x631   :  { %v8410_v13 = vadd.f32 %v8409_v6, %v8396_v1  ;;  %v8398_v44 = vadd.f32 %v8397_v22, %v8384_v40  ;;  %v12831_v22 = vld [vmem:[%s14146_s10] ss:$0 sm:$0xff] }
 0x633   :  { %v8424_v58 = vadd.f32 %v8423_v52, %v8410_v13 }
 0x638   :  { %v8411_v49 = vpop.f32.mrf.mxu0  ;;  %v8425_v4 = vpop.f32.mrf.mxu1 }
 0x639   :  { %v8412_v20 = vadd.f32 %v8411_v49, %v8398_v44 }
 0x63b   :  { %v8426_v2 = vadd.f32 %v8425_v4, %v8412_v20 }
 0x641   :  { %v8465_v59 = vpop.f32.mrf.mxu0  ;;  %v8479_v56 = vpop.f32.mrf.mxu1 }
 0x646   :  { %v8437_v28 = vpop.f32.mrf.mxu2  ;;  %v8451_v5 = vpop.f32.mrf.mxu3 }
 0x647   :  { %v8438_v12 = vadd.f32 %v8437_v28, %v8424_v58 }
 0x649   :  { %v8452_v27 = vadd.f32 %v8451_v5, %v8438_v12  ;;  %v8467_v45 = vpop.f32.mrf.mxu0  ;;  %v8481_v50 = vpop.f32.mrf.mxu1 }
 0x64b   :  { %v8466_v54 = vadd.f32 %v8465_v59, %v8452_v27 }
 0x64d   :  { %v8480_v47 = vadd.f32 %v8479_v56, %v8466_v54 }
 0x64e   :  { %v8439_v38 = vpop.f32.mrf.mxu2  ;;  %v8453_v23 = vpop.f32.mrf.mxu3 }
 0x64f   :  { %v8440_v37 = vadd.f32 %v8439_v38, %v8426_v2 }
 0x651   :  { %v8454_v26 = vadd.f32 %v8453_v23, %v8440_v37 }
 0x653   :  { %v8468_v41 = vadd.f32 %v8467_v45, %v8454_v26 }
 0x655   :  { %v8482_v18 = vadd.f32 %v8481_v50, %v8468_v41 }
 0x656   :  { %v8493_v46 = vpop.f32.mrf.mxu2  ;;  %v8507_v14 = vpop.f32.mrf.mxu3 }
 0x657   :  { %v8494_v25 = vadd.f32 %v8493_v46, %v8480_v47 }
 0x659   :  { %v8508_v42 = vadd.f32 %v8507_v14, %v8494_v25 }
 0x65b   :  { %v8512_v3 = vmul.f32 0.2, %v8508_v42 }
 0x65d   :  { %v8514_v31 = vmax.f32 %v8508_v42, %v8512_v3 }
 0x65e   :  { %v8495_v10 = vpop.f32.mrf.mxu2  ;;  %v8509_v62 = vpop.f32.mrf.mxu3 }
 0x65f   :  { %v8496_v24 = vadd.f32 %v8495_v10, %v8482_v18 }
 0x661   :  { %v8510_v17 = vadd.f32 %v8509_v62, %v8496_v24 }
 0x663   :  { %v8513_v51 = vmul.f32 0.2, %v8510_v17 }
 0x665   :  { %v8515_v57 = vmax.f32 %v8510_v17, %v8513_v51 }
 0x667   :  { %v8516_v60 = vpack.c.bf16 %v8515_v57, %v8514_v31 }
 0x669   :  { %8593 = vmatmul.bf16.vlgmr.msra.gmra.mxu0 %v8516_v60 }
 0x6e6   :  { %v8594_v0 = vpop.f32.mrf.mxu0 }
 0x6e7   :  { %v8595_v35 = vadd.f32 %v12830_v29, %v8594_v0 }
 0x6e9   :  { %v8599_v33 = vmul.f32 0.2, %v8595_v35 }
 0x6eb   :  { %v8601_v39 = vmax.f32 %v8595_v35, %v8599_v33 }
 0x6ee   :  { %v8596_v21 = vpop.f32.mrf.mxu0 }
 0x6ef   :  { %v8597_v6 = vadd.f32 %v12830_v29, %v8596_v21 }
 0x6f1   :  { %v8600_v36 = vmul.f32 0.2, %v8597_v6 }
 0x6f3   :  { %v8602_v55 = vmax.f32 %v8597_v6, %v8600_v36 }
 0x6f5   :  { %v8603_v19 = vpack.c.bf16 %v8602_v55, %v8601_v39 }
 0x6f7   :  { %8680 = vmatmul.bf16.vlgmr.msra.gmra.mxu1 %v8603_v19 }
 0x774   :  { %v8681_v52 = vpop.f32.mrf.mxu1 }
 0x775   :  { %v8682_v43 = vadd.f32 %v12831_v22, %v8681_v52 }
 0x777   :  { %12832 = vtanh.f32 %v8682_v43 }
 0x77c   :  { %v8683_v53 = vpop.f32.mrf.mxu1 }
 0x77d   :  { %v12833_v32 = vpop.eup %12832  ;;  %v8684_v34 = vadd.f32 %v12831_v22, %v8683_v53 }
 0x77e   :  { %8688 = vst [vmem:[%s14147_s11] sm:$0xff] %v12833_v32 }
 0x77f   :  { %12834 = vtanh.f32 %v8684_v34 }
 0x785   :  { %v12835_v1 = vpop.eup %12834 }
 0x786   :  { %8689 = vst [vmem:[%s14147_s11 + $0x8] sm:$0xff] %v12835_v1 }
 0x787   :  { %8694 = vsyncpa [#allocation4], 1 }
 0x788   :  { %8695 = vsyncpa [#allocation6], 1 }

</bundles_post_ra>
